<compile_context>
chip_gen: v6e
topology: v6e:2x2x1
jax: 0.10.0
libtpu: 0.0.40
codegen_flags: <defaults>
</compile_context>

<pallas_src>
import functools

import numpy as np
import jax
import jax.numpy as jnp
from jax.experimental import pallas as pl
from jax.experimental.pallas import tpu as pltpu


# ----------------------------------------------------------------------------
# The fused kernel
# ----------------------------------------------------------------------------
def _vae_kernel(x0, m1, b1, m2, b2, wenc, benc, wdec, bdec,
                m1d, b1d, m2d, b2d, m3d, b3d,
                out_ref, x2, d1, d2, d3, *, batch):
    f32 = jnp.float32
    bf16 = jnp.bfloat16

    def mm(a, w):
        # bf16 MXU inputs, f32 accumulation.
        return jnp.dot(a.astype(bf16), w, preferred_element_type=f32)

    # Zero the scratch buffers once; rows that stay zero act as vertical padding
    # (conv2) and as the zero-inserted rows of the transposed convolutions.
    x2[...] = jnp.zeros(x2.shape, x2.dtype)
    d1[...] = jnp.zeros(d1.shape, d1.dtype)
    d2[...] = jnp.zeros(d2.shape, d2.dtype)
    d3[...] = jnp.zeros(d3.shape, d3.dtype)

    for b in range(batch):
        # ------------------------------ encoder ------------------------------
        # conv1 (1->32, k3, s3, p1) fused with the vertical half of pool1:
        # the wrapper pre-split the 30 padded input rows into 6 phases of 5 so
        # even / odd conv1 output rows read contiguous row blocks.
        acc_e = jnp.zeros((5, 320), f32)
        acc_o = jnp.zeros((5, 320), f32)
        for kh in range(3):
            w = m1[kh]                                            # [28, 320] bf16
            acc_e = acc_e + mm(x0[pl.ds(b * 30 + kh * 5, 5), :], w)
            acc_o = acc_o + mm(x0[pl.ds(b * 30 + (kh + 3) * 5, 5), :], w)
        r_e = jnp.maximum(acc_e + b1[...], 0.0)                   # conv1+relu (even rows)
        r_o = jnp.maximum(acc_o + b1[...], 0.0)                   # conv1+relu (odd rows)
        v = jnp.maximum(r_e, r_o)                                 # pool1 vertical (k2 s2)

        # pool1 horizontal (k2 s2): 10x32 -> 5x32 lanes, written into the
        # vertically-padded conv2 input scratch (rows 1..5 of each 7-row block).
        for wo in range(5):
            blk = jnp.maximum(v[:, (2 * wo) * 32:(2 * wo + 1) * 32],
                              v[:, (2 * wo + 1) * 32:(2 * wo + 2) * 32])
            x2[pl.ds(b * 7 + 1, 5), wo * 32:(wo + 1) * 32] = blk

        # conv2 (32->16, k3, s2, p1) + relu, one output row at a time.
        rows2 = []
        for oh in range(3):
            acc = jnp.zeros((1, 48), f32)
            for kh in range(3):
                acc = acc + mm(x2[pl.ds(b * 7 + 2 * oh + kh, 1), :], m2[kh])
            rows2.append(jnp.maximum(acc + b2[...], 0.0))

        # pool2 (k2 s1) + encode_lin (64 -> 2), all on VMEM-resident values.
        v0 = jnp.maximum(rows2[0], rows2[1])
        v1 = jnp.maximum(rows2[1], rows2[2])
        z = benc[...]                                             # [1, 2] f32
        for h, vh in enumerate((v0, v1)):
            for wq in range(2):
                p = jnp.maximum(vh[:, wq * 16:(wq + 1) * 16],
                                vh[:, (wq + 1) * 16:(wq + 2) * 16])
                z = z + mm(p, wenc[h * 2 + wq])

        # ------------------------------ decoder ------------------------------
        # decode_lin (2 -> 64), written straight into deconv1's zero-inserted
        # input rows (rows 2 and 4 of the 7-row block).
        for h in range(2):
            row = mm(z, wdec[h]) + bdec[h]                        # [1, 32]
            d1[pl.ds(b * 7 + 2 + 2 * h, 1), :] = row

        # deconv1 (16->32, k3, s2, p0) + relu -> zero-inserted rows of d2.
        acc = jnp.zeros((5, 160), f32)
        for j in range(3):
            acc = acc + mm(d1[pl.ds(b * 7 + j, 5), :], m1d[j])
        y1 = jnp.maximum(acc + b1d[...], 0.0)                     # [5, 160]
        for h in range(5):
            d2[pl.ds(b * 19 + 3 + 3 * h, 1), :] = y1[h:h + 1, :]

        # deconv2 (32->40, k5, s3, p1) + relu -> zero-inserted rows of d3.
        acc = jnp.zeros((15, 600), f32)
        for j in range(5):
            acc = acc + mm(d2[pl.ds(b * 19 + j, 15), :], m2d[j])
        y2 = jnp.maximum(acc + b2d[...], 0.0)                     # [15, 600]
        for h in range(15):
            d3[pl.ds(b * 29 + 2 * h, 1), :] = y2[h:h + 1, :]

        # deconv3 (40->1, k2, s2, p1) + tanh -> output image rows.
        acc = jnp.zeros((28, 28), f32)
        for j in range(2):
            acc = acc + mm(d3[pl.ds(b * 29 + j, 28), :], m3d[j])
        out_ref[b] = jnp.tanh(acc + b3d[...])


def _make_vae_call(batch):
    vspec = pl.BlockSpec(memory_space=pltpu.MemorySpace.VMEM)
    return pl.pallas_call(
        functools.partial(_vae_kernel, batch=batch),
        out_shape=jax.ShapeDtypeStruct((batch, 28, 28), jnp.float32),
        in_specs=[vspec] * 15,
        out_specs=vspec,
        scratch_shapes=[
            pltpu.VMEM((batch * 7, 160), jnp.float32),   # x2: padded conv2 input
            pltpu.VMEM((batch * 7, 32), jnp.float32),    # d1: dilated deconv1 input
            pltpu.VMEM((batch * 19, 160), jnp.float32),  # d2: dilated deconv2 input
            pltpu.VMEM((batch * 29, 600), jnp.float32),  # d3: dilated deconv3 input
        ],
    )


# ----------------------------------------------------------------------------
# One-time weight packing (numpy, at init): band matrices, permuted linears,
# tiled bias rows.  Removes all per-forward transpose/flip/reshape glue.
# ----------------------------------------------------------------------------
def _band_conv(w_oihw, w_in, stride, pad):
    """Forward-conv row-band matrices M[kh]: input row (w*Ci+ci lanes) ->
    output row (wo*Co+co lanes); horizontal stride/padding baked in."""
    co, ci, k, _ = w_oihw.shape
    wo_n = (w_in + 2 * pad - k) // stride + 1
    m = np.zeros((k, w_in * ci, wo_n * co), np.float32)
    for kh in range(k):
        for kw in range(k):
            for wo in range(wo_n):
                w = stride * wo + kw - pad
                if 0 <= w < w_in:
                    m[kh, w * ci:(w + 1) * ci, wo * co:(wo + 1) * co] = w_oihw[:, :, kh, kw].T
    return m


def _band_deconv(w_iohw, w_in, stride, pad):
    """ConvTranspose row-band matrices for the zero-inserted-rows scheme:
    out[oh] = sum_j D[oh+j] @ M[j],  D[(k-1-pad) + stride*h] = x[h];
    horizontal stride/padding/dilation baked in, vertical tap kh = k-1-j."""
    ci, co, k, _ = w_iohw.shape
    w_out = (w_in - 1) * stride - 2 * pad + k
    m = np.zeros((k, w_in * ci, w_out * co), np.float32)
    for j in range(k):
        kh = k - 1 - j
        for w in range(w_in):
            for ow in range(w_out):
                kw = ow + pad - stride * w
                if 0 <= kw < k:
                    m[j, w * ci:(w + 1) * ci, ow * co:(ow + 1) * co] = w_iohw[:, :, kh, kw]
    return m


def pack_params(params):
    p = {k: np.asarray(v, np.float32) for k, v in params.items()}
    bf16 = lambda a: jnp.asarray(a).astype(jnp.bfloat16)
    f32 = lambda a: jnp.asarray(a, jnp.float32)

    # encode_lin: PyTorch flattens NCHW ([B,16,2,2] -> index c*4 + h*2 + w).
    wenc = np.zeros((4, 16, 2), np.float32)
    for h in range(2):
        for w in range(2):
            for c in range(16):
                wenc[h * 2 + w, c, :] = p["enc_lin_w"][:, c * 4 + h * 2 + w]

    # decode_lin: output index o = c*4 + h*2 + w  ->  (row h, lane w*16 + c).
    wdec = np.zeros((2, 2, 32), np.float32)
    bdec = np.zeros((2, 1, 32), np.float32)
    for h in range(2):
        for w in range(2):
            for c in range(16):
                o = c * 4 + h * 2 + w
                wdec[h, :, w * 16 + c] = p["dec_lin_w"][o, :]
                bdec[h, 0, w * 16 + c] = p["dec_lin_b"][o]

    return (
        bf16(_band_conv(p["conv1_w"], 28, 3, 1)),        # m1  [3, 28, 320]
        f32(np.tile(p["conv1_b"], 10)[None, :]),         # b1  [1, 320]
        bf16(_band_conv(p["conv2_w"], 5, 2, 1)),         # m2  [3, 160, 48]
        f32(np.tile(p["conv2_b"], 3)[None, :]),          # b2  [1, 48]
        bf16(wenc),                                      # wenc [4, 16, 2]
        f32(p["enc_lin_b"][None, :]),                    # benc [1, 2]
        bf16(wdec),                                      # wdec [2, 2, 32]
        f32(bdec),                                       # bdec [2, 1, 32]
        bf16(_band_deconv(p["deconv1_w"], 2, 2, 0)),     # m1d [3, 32, 160]
        f32(np.tile(p["deconv1_b"], 5)[None, :]),        # b1d [1, 160]
        bf16(_band_deconv(p["deconv2_w"], 5, 3, 1)),     # m2d [5, 160, 600]
        f32(np.tile(p["deconv2_b"], 15)[None, :]),       # b2d [1, 600]
        bf16(_band_deconv(p["deconv3_w"], 15, 2, 1)),    # m3d [2, 600, 28]
        f32(np.tile(p["deconv3_b"], 28)[None, :]),       # b3d [1, 28]
    )


# ----------------------------------------------------------------------------
# Forward wrapper (layout plumbing on the tiny network input only)
# ----------------------------------------------------------------------------
def vae_forward(packed, x_nchw):
    """x: [B, 1, 28, 28] float32 (NCHW) -> [B, 1, 28, 28] float32."""
    B = x_nchw.shape[0]
    # Vertical pad (p=1) and split the 30 padded rows into 6 phases of 5 so the
    # kernel's conv1 stride-3 taps and pool1 stride-2 windows read contiguous
    # row blocks:  stored row (b, phase, i)  =  padded row 6*i + phase.
    xp = jnp.pad(x_nchw[:, 0], ((0, 0), (1, 1), (0, 0)))              # [B, 30, 28]
    x0 = xp.reshape(B, 5, 6, 28).transpose(0, 2, 1, 3).reshape(B * 30, 28)
    y = _make_vae_call(B)(x0, *packed)                                # [B, 28, 28]
    return y[:, None, :, :]


# ----------------------------------------------------------------------------
# Pure-JAX reference (for correctness check) + parameter init
# ----------------------------------------------------------------------------
def vae_reference(params, x):
    dn = ("NCHW", "OIHW", "NCHW")

    def conv(t, w, b, s, p):
        y = jax.lax.conv_general_dilated(t, w, (s, s), ((p, p), (p, p)),
                                         dimension_numbers=dn)
        return y + b.reshape(1, -1, 1, 1)

    def deconv(t, wt, b, s, p):
        w = jnp.flip(wt, (2, 3)).transpose(1, 0, 2, 3)
        q = wt.shape[2] - 1 - p
        y = jax.lax.conv_general_dilated(t, w, (1, 1), ((q, q), (q, q)),
                                         lhs_dilation=(s, s), dimension_numbers=dn)
        return y + b.reshape(1, -1, 1, 1)

    def pool(t, k, s):
        return jax.lax.reduce_window(t, -jnp.inf, jax.lax.max,
                                     (1, 1, k, k), (1, 1, s, s), "VALID")

    relu = lambda t: jnp.maximum(t, 0.0)
    h = relu(conv(x, params["conv1_w"], params["conv1_b"], 3, 1))
    h = pool(h, 2, 2)
    h = relu(conv(h, params["conv2_w"], params["conv2_b"], 2, 1))
    h = pool(h, 2, 1)
    B = h.shape[0]
    z = h.reshape(B, -1) @ params["enc_lin_w"].T + params["enc_lin_b"]
    y = z @ params["dec_lin_w"].T + params["dec_lin_b"]
    # TODO(synk): original code does view(B, 10, 2, 2), which is shape-inconsistent
    # (64 != 40) and incompatible with ConvTranspose2d(16, ...); the only consistent
    # interpretation, view(B, 16, 2, 2), is used here (same as before).
    y = y.reshape(B, 16, 2, 2)
    y = relu(deconv(y, params["deconv1_w"], params["deconv1_b"], 2, 0))
    y = relu(deconv(y, params["deconv2_w"], params["deconv2_b"], 3, 1))
    y = jnp.tanh(deconv(y, params["deconv3_w"], params["deconv3_b"], 2, 1))
    return y


def init_params(key):
    ks = jax.random.split(key, 14)

    def w(k, shape, fan_in):
        return jax.random.normal(k, shape, jnp.float32) / np.sqrt(fan_in)

    def bias(k, n):
        return 0.1 * jax.random.normal(k, (n,), jnp.float32)

    return {
        "conv1_w": w(ks[0], (32, 1, 3, 3), 9),       "conv1_b": bias(ks[1], 32),
        "conv2_w": w(ks[2], (16, 32, 3, 3), 288),    "conv2_b": bias(ks[3], 16),
        "enc_lin_w": w(ks[4], (2, 64), 64),          "enc_lin_b": bias(ks[5], 2),
        "dec_lin_w": w(ks[6], (64, 2), 2),           "dec_lin_b": bias(ks[7], 64),
        "deconv1_w": w(ks[8], (16, 32, 3, 3), 144),  "deconv1_b": bias(ks[9], 32),
        "deconv2_w": w(ks[10], (32, 40, 5, 5), 800), "deconv2_b": bias(ks[11], 40),
        "deconv3_w": w(ks[12], (40, 1, 2, 2), 160),  "deconv3_b": bias(ks[13], 1),
    }


if __name__ == "__main__":
    key = jax.random.PRNGKey(0)
    k_x, k_p = jax.random.split(key)
    # MNIST-shaped input (the architecture requires 28x28 for the 16*2*2 flatten).
    x = jax.random.normal(k_x, (2, 1, 28, 28), jnp.float32)
    params = init_params(k_p)
    packed = pack_params(params)          # one-time weight repack (bf16 band matrices)

    fwd = jax.jit(vae_forward)
    out = fwd(packed, x)
    jax.block_until_ready(out)

    assert out.shape == (2, 1, 28, 28), out.shape
    assert out.dtype == jnp.float32
    assert bool(jnp.all(jnp.isfinite(out)))
    assert bool(jnp.all(jnp.abs(out) <= 1.0))     # tanh output range

    ref = vae_reference(params, x)
    err = float(jnp.max(jnp.abs(out - ref)))
    assert err < 5e-2, f"max |pallas - reference| = {err}"

    print("KERNEL_OK")
</pallas_src>

<mosaic_0001>
module attributes {stable_mosaic.version = 11 : i64} {
  func.func @_vae_kernel(%arg0: memref<60x28xf32, #tpu.memory_space<vmem>>, %arg1: memref<3x28x320xbf16, #tpu.memory_space<vmem>>, %arg2: memref<1x320xf32, #tpu.memory_space<vmem>>, %arg3: memref<3x160x48xbf16, #tpu.memory_space<vmem>>, %arg4: memref<1x48xf32, #tpu.memory_space<vmem>>, %arg5: memref<4x16x2xbf16, #tpu.memory_space<vmem>>, %arg6: memref<1x2xf32, #tpu.memory_space<vmem>>, %arg7: memref<2x2x32xbf16, #tpu.memory_space<vmem>>, %arg8: memref<2x1x32xf32, #tpu.memory_space<vmem>>, %arg9: memref<3x32x160xbf16, #tpu.memory_space<vmem>>, %arg10: memref<1x160xf32, #tpu.memory_space<vmem>>, %arg11: memref<5x160x600xbf16, #tpu.memory_space<vmem>>, %arg12: memref<1x600xf32, #tpu.memory_space<vmem>>, %arg13: memref<2x600x28xbf16, #tpu.memory_space<vmem>>, %arg14: memref<1x28xf32, #tpu.memory_space<vmem>>, %arg15: memref<2x28x28xf32, #tpu.memory_space<vmem>>, %arg16: memref<14x160xf32, #tpu.memory_space<vmem>>, %arg17: memref<14x32xf32, #tpu.memory_space<vmem>>, %arg18: memref<38x160xf32, #tpu.memory_space<vmem>>, %arg19: memref<58x600xf32, #tpu.memory_space<vmem>>) attributes {dimension_semantics = [], scalar_prefetch = 0 : i64, scratch_operands = 4 : i64, tpu.core_type = #tpu.core_type<tc>} {
    %cst = arith.constant 0.000000e+00 : f32
    %0 = vector.broadcast %cst : f32 to vector<14x160xf32>
    %c0 = arith.constant 0 : index
    %c0_0 = arith.constant 0 : index
    %1 = vector.load %arg16[%c0, %c0_0] : memref<14x160xf32, #tpu.memory_space<vmem>>, vector<14x160xf32>
    tpu.vector_store %arg16[%c0, %c0_0], %0 {strides = array<i32>} : memref<14x160xf32, #tpu.memory_space<vmem>>, vector<14x160xf32>,
    %cst_1 = arith.constant 0.000000e+00 : f32
    %2 = vector.broadcast %cst_1 : f32 to vector<14x32xf32>
    %c0_2 = arith.constant 0 : index
    %c0_3 = arith.constant 0 : index
    %3 = vector.load %arg17[%c0_2, %c0_3] : memref<14x32xf32, #tpu.memory_space<vmem>>, vector<14x32xf32>
    tpu.vector_store %arg17[%c0_2, %c0_3], %2 {strides = array<i32>} : memref<14x32xf32, #tpu.memory_space<vmem>>, vector<14x32xf32>,
    %cst_4 = arith.constant 0.000000e+00 : f32
    %4 = vector.broadcast %cst_4 : f32 to vector<38x160xf32>
    %c0_5 = arith.constant 0 : index
    %c0_6 = arith.constant 0 : index
    %5 = vector.load %arg18[%c0_5, %c0_6] : memref<38x160xf32, #tpu.memory_space<vmem>>, vector<38x160xf32>
    tpu.vector_store %arg18[%c0_5, %c0_6], %4 {strides = array<i32>} : memref<38x160xf32, #tpu.memory_space<vmem>>, vector<38x160xf32>,
    %cst_7 = arith.constant 0.000000e+00 : f32
    %6 = vector.broadcast %cst_7 : f32 to vector<58x600xf32>
    %c0_8 = arith.constant 0 : index
    %c0_9 = arith.constant 0 : index
    %7 = vector.load %arg19[%c0_8, %c0_9] : memref<58x600xf32, #tpu.memory_space<vmem>>, vector<58x600xf32>
    tpu.vector_store %arg19[%c0_8, %c0_9], %6 {strides = array<i32>} : memref<58x600xf32, #tpu.memory_space<vmem>>, vector<58x600xf32>,
    %cst_10 = arith.constant 0.000000e+00 : f32
    %8 = vector.broadcast %cst_10 : f32 to vector<5x320xf32>
    %cst_11 = arith.constant 0.000000e+00 : f32
    %9 = vector.broadcast %cst_11 : f32 to vector<5x320xf32>
    %c0_12 = arith.constant 0 : index
    %c0_13 = arith.constant 0 : index
    %c0_14 = arith.constant 0 : index
    %10 = vector.load %arg1[%c0_12, %c0_13, %c0_14] : memref<3x28x320xbf16, #tpu.memory_space<vmem>>, vector<1x28x320xbf16>
    %11 = vector.shape_cast %10 : vector<1x28x320xbf16> to vector<28x320xbf16>
    %c0_15 = arith.constant 0 : index
    %c0_16 = arith.constant 0 : index
    %12 = vector.load %arg0[%c0_15, %c0_16] : memref<60x28xf32, #tpu.memory_space<vmem>>, vector<5x28xf32>
    %13 = arith.truncf %12 : vector<5x28xf32> to vector<5x28xbf16>
    %cst_17 = arith.constant dense<0.000000e+00> : vector<5x320xf32>
    %14 = tpu.matmul %13, %11, %cst_17 {dimension_numbers = #tpu.dot_dimension_numbers<[1], [0], [0], [1], [0, 0, 1, 1], [], []>} : vector<5x28xbf16>, vector<28x320xbf16>, vector<5x320xf32> -> vector<5x320xf32>
    %15 = arith.addf %8, %14 : vector<5x320xf32>
    %c15 = arith.constant 15 : index
    %c0_18 = arith.constant 0 : index
    %16 = vector.load %arg0[%c15, %c0_18] : memref<60x28xf32, #tpu.memory_space<vmem>>, vector<5x28xf32>
    %17 = arith.truncf %16 : vector<5x28xf32> to vector<5x28xbf16>
    %cst_19 = arith.constant dense<0.000000e+00> : vector<5x320xf32>
    %18 = tpu.matmul %17, %11, %cst_19 {dimension_numbers = #tpu.dot_dimension_numbers<[1], [0], [0], [1], [0, 0, 1, 1], [], []>} : vector<5x28xbf16>, vector<28x320xbf16>, vector<5x320xf32> -> vector<5x320xf32>
    %19 = arith.addf %9, %18 : vector<5x320xf32>
    %c1 = arith.constant 1 : index
    %c0_20 = arith.constant 0 : index
    %c0_21 = arith.constant 0 : index
    %20 = vector.load %arg1[%c1, %c0_20, %c0_21] : memref<3x28x320xbf16, #tpu.memory_space<vmem>>, vector<1x28x320xbf16>
    %21 = vector.shape_cast %20 : vector<1x28x320xbf16> to vector<28x320xbf16>
    %c5 = arith.constant 5 : index
    %c0_22 = arith.constant 0 : index
    %22 = vector.load %arg0[%c5, %c0_22] : memref<60x28xf32, #tpu.memory_space<vmem>>, vector<5x28xf32>
    %23 = arith.truncf %22 : vector<5x28xf32> to vector<5x28xbf16>
    %cst_23 = arith.constant dense<0.000000e+00> : vector<5x320xf32>
    %24 = tpu.matmul %23, %21, %cst_23 {dimension_numbers = #tpu.dot_dimension_numbers<[1], [0], [0], [1], [0, 0, 1, 1], [], []>} : vector<5x28xbf16>, vector<28x320xbf16>, vector<5x320xf32> -> vector<5x320xf32>
    %25 = arith.addf %15, %24 : vector<5x320xf32>
    %c20 = arith.constant 20 : index
    %c0_24 = arith.constant 0 : index
    %26 = vector.load %arg0[%c20, %c0_24] : memref<60x28xf32, #tpu.memory_space<vmem>>, vector<5x28xf32>
    %27 = arith.truncf %26 : vector<5x28xf32> to vector<5x28xbf16>
    %cst_25 = arith.constant dense<0.000000e+00> : vector<5x320xf32>
    %28 = tpu.matmul %27, %21, %cst_25 {dimension_numbers = #tpu.dot_dimension_numbers<[1], [0], [0], [1], [0, 0, 1, 1], [], []>} : vector<5x28xbf16>, vector<28x320xbf16>, vector<5x320xf32> -> vector<5x320xf32>
    %29 = arith.addf %19, %28 : vector<5x320xf32>
    %c2 = arith.constant 2 : index
    %c0_26 = arith.constant 0 : index
    %c0_27 = arith.constant 0 : index
    %30 = vector.load %arg1[%c2, %c0_26, %c0_27] : memref<3x28x320xbf16, #tpu.memory_space<vmem>>, vector<1x28x320xbf16>
    %31 = vector.shape_cast %30 : vector<1x28x320xbf16> to vector<28x320xbf16>
    %c10 = arith.constant 10 : index
    %c0_28 = arith.constant 0 : index
    %32 = vector.load %arg0[%c10, %c0_28] : memref<60x28xf32, #tpu.memory_space<vmem>>, vector<5x28xf32>
    %33 = arith.truncf %32 : vector<5x28xf32> to vector<5x28xbf16>
    %cst_29 = arith.constant dense<0.000000e+00> : vector<5x320xf32>
    %34 = tpu.matmul %33, %31, %cst_29 {dimension_numbers = #tpu.dot_dimension_numbers<[1], [0], [0], [1], [0, 0, 1, 1], [], []>} : vector<5x28xbf16>, vector<28x320xbf16>, vector<5x320xf32> -> vector<5x320xf32>
    %35 = arith.addf %25, %34 : vector<5x320xf32>
    %c25 = arith.constant 25 : index
    %c0_30 = arith.constant 0 : index
    %36 = vector.load %arg0[%c25, %c0_30] : memref<60x28xf32, #tpu.memory_space<vmem>>, vector<5x28xf32>
    %37 = arith.truncf %36 : vector<5x28xf32> to vector<5x28xbf16>
    %cst_31 = arith.constant dense<0.000000e+00> : vector<5x320xf32>
    %38 = tpu.matmul %37, %31, %cst_31 {dimension_numbers = #tpu.dot_dimension_numbers<[1], [0], [0], [1], [0, 0, 1, 1], [], []>} : vector<5x28xbf16>, vector<28x320xbf16>, vector<5x320xf32> -> vector<5x320xf32>
    %39 = arith.addf %29, %38 : vector<5x320xf32>
    %c0_32 = arith.constant 0 : index
    %c0_33 = arith.constant 0 : index
    %40 = vector.load %arg2[%c0_32, %c0_33] : memref<1x320xf32, #tpu.memory_space<vmem>>, vector<1x320xf32>
    %41 = vector.broadcast %40 : vector<1x320xf32> to vector<5x320xf32>
    %42 = arith.addf %35, %41 : vector<5x320xf32>
    %cst_34 = arith.constant 0.000000e+00 : f32
    %43 = vector.broadcast %cst_34 : f32 to vector<5x320xf32>
    %44 = arith.maximumf %42, %43 : vector<5x320xf32>
    %c0_35 = arith.constant 0 : index
    %c0_36 = arith.constant 0 : index
    %45 = vector.load %arg2[%c0_35, %c0_36] : memref<1x320xf32, #tpu.memory_space<vmem>>, vector<1x320xf32>
    %46 = vector.broadcast %45 : vector<1x320xf32> to vector<5x320xf32>
    %47 = arith.addf %39, %46 : vector<5x320xf32>
    %cst_37 = arith.constant 0.000000e+00 : f32
    %48 = vector.broadcast %cst_37 : f32 to vector<5x320xf32>
    %49 = arith.maximumf %47, %48 : vector<5x320xf32>
    %50 = arith.maximumf %44, %49 : vector<5x320xf32>
    %51 = vector.extract_strided_slice %50 {offsets = [0, 0], sizes = [5, 32], strides = [1, 1]} : vector<5x320xf32> to vector<5x32xf32>
    %52 = vector.extract_strided_slice %50 {offsets = [0, 32], sizes = [5, 32], strides = [1, 1]} : vector<5x320xf32> to vector<5x32xf32>
    %53 = arith.maximumf %51, %52 : vector<5x32xf32>
    %c1_38 = arith.constant 1 : index
    %c0_39 = arith.constant 0 : index
    %54 = vector.load %arg16[%c1_38, %c0_39] : memref<14x160xf32, #tpu.memory_space<vmem>>, vector<5x32xf32>
    tpu.vector_store %arg16[%c1_38, %c0_39], %53 {strides = array<i32>} : memref<14x160xf32, #tpu.memory_space<vmem>>, vector<5x32xf32>,
    %55 = vector.extract_strided_slice %50 {offsets = [0, 64], sizes = [5, 32], strides = [1, 1]} : vector<5x320xf32> to vector<5x32xf32>
    %56 = vector.extract_strided_slice %50 {offsets = [0, 96], sizes = [5, 32], strides = [1, 1]} : vector<5x320xf32> to vector<5x32xf32>
    %57 = arith.maximumf %55, %56 : vector<5x32xf32>
    %c1_40 = arith.constant 1 : index
    %c32 = arith.constant 32 : index
    %58 = vector.load %arg16[%c1_40, %c32] : memref<14x160xf32, #tpu.memory_space<vmem>>, vector<5x32xf32>
    tpu.vector_store %arg16[%c1_40, %c32], %57 {strides = array<i32>} : memref<14x160xf32, #tpu.memory_space<vmem>>, vector<5x32xf32>,
    %59 = vector.extract_strided_slice %50 {offsets = [0, 128], sizes = [5, 32], strides = [1, 1]} : vector<5x320xf32> to vector<5x32xf32>
    %60 = vector.extract_strided_slice %50 {offsets = [0, 160], sizes = [5, 32], strides = [1, 1]} : vector<5x320xf32> to vector<5x32xf32>
    %61 = arith.maximumf %59, %60 : vector<5x32xf32>
    %c1_41 = arith.constant 1 : index
    %c64 = arith.constant 64 : index
    %62 = vector.load %arg16[%c1_41, %c64] : memref<14x160xf32, #tpu.memory_space<vmem>>, vector<5x32xf32>
    tpu.vector_store %arg16[%c1_41, %c64], %61 {strides = array<i32>} : memref<14x160xf32, #tpu.memory_space<vmem>>, vector<5x32xf32>,
    %63 = vector.extract_strided_slice %50 {offsets = [0, 192], sizes = [5, 32], strides = [1, 1]} : vector<5x320xf32> to vector<5x32xf32>
    %64 = vector.extract_strided_slice %50 {offsets = [0, 224], sizes = [5, 32], strides = [1, 1]} : vector<5x320xf32> to vector<5x32xf32>
    %65 = arith.maximumf %63, %64 : vector<5x32xf32>
    %c1_42 = arith.constant 1 : index
    %c96 = arith.constant 96 : index
    %66 = vector.load %arg16[%c1_42, %c96] : memref<14x160xf32, #tpu.memory_space<vmem>>, vector<5x32xf32>
    tpu.vector_store %arg16[%c1_42, %c96], %65 {strides = array<i32>} : memref<14x160xf32, #tpu.memory_space<vmem>>, vector<5x32xf32>,
    %67 = vector.extract_strided_slice %50 {offsets = [0, 256], sizes = [5, 32], strides = [1, 1]} : vector<5x320xf32> to vector<5x32xf32>
    %68 = vector.extract_strided_slice %50 {offsets = [0, 288], sizes = [5, 32], strides = [1, 1]} : vector<5x320xf32> to vector<5x32xf32>
    %69 = arith.maximumf %67, %68 : vector<5x32xf32>
    %c1_43 = arith.constant 1 : index
    %c128 = arith.constant 128 : index
    %70 = vector.load %arg16[%c1_43, %c128] : memref<14x160xf32, #tpu.memory_space<vmem>>, vector<5x32xf32>
    tpu.vector_store %arg16[%c1_43, %c128], %69 {strides = array<i32>} : memref<14x160xf32, #tpu.memory_space<vmem>>, vector<5x32xf32>,
    %cst_44 = arith.constant 0.000000e+00 : f32
    %71 = vector.broadcast %cst_44 : f32 to vector<1x48xf32>
    %c0_45 = arith.constant 0 : index
    %c0_46 = arith.constant 0 : index
    %72 = vector.load %arg16[%c0_45, %c0_46] : memref<14x160xf32, #tpu.memory_space<vmem>>, vector<1x160xf32>
    %c0_47 = arith.constant 0 : index
    %c0_48 = arith.constant 0 : index
    %c0_49 = arith.constant 0 : index
    %73 = vector.load %arg3[%c0_47, %c0_48, %c0_49] : memref<3x160x48xbf16, #tpu.memory_space<vmem>>, vector<1x160x48xbf16>
    %74 = vector.shape_cast %73 : vector<1x160x48xbf16> to vector<160x48xbf16>
    %75 = arith.truncf %72 : vector<1x160xf32> to vector<1x160xbf16>
    %cst_50 = arith.constant dense<0.000000e+00> : vector<1x48xf32>
    %76 = tpu.matmul %75, %74, %cst_50 {dimension_numbers = #tpu.dot_dimension_numbers<[1], [0], [0], [1], [0, 0, 1, 1], [], []>} : vector<1x160xbf16>, vector<160x48xbf16>, vector<1x48xf32> -> vector<1x48xf32>
    %77 = arith.addf %71, %76 : vector<1x48xf32>
    %c1_51 = arith.constant 1 : index
    %c0_52 = arith.constant 0 : index
    %78 = vector.load %arg16[%c1_51, %c0_52] : memref<14x160xf32, #tpu.memory_space<vmem>>, vector<1x160xf32>
    %c1_53 = arith.constant 1 : index
    %c0_54 = arith.constant 0 : index
    %c0_55 = arith.constant 0 : index
    %79 = vector.load %arg3[%c1_53, %c0_54, %c0_55] : memref<3x160x48xbf16, #tpu.memory_space<vmem>>, vector<1x160x48xbf16>
    %80 = vector.shape_cast %79 : vector<1x160x48xbf16> to vector<160x48xbf16>
    %81 = arith.truncf %78 : vector<1x160xf32> to vector<1x160xbf16>
    %cst_56 = arith.constant dense<0.000000e+00> : vector<1x48xf32>
    %82 = tpu.matmul %81, %80, %cst_56 {dimension_numbers = #tpu.dot_dimension_numbers<[1], [0], [0], [1], [0, 0, 1, 1], [], []>} : vector<1x160xbf16>, vector<160x48xbf16>, vector<1x48xf32> -> vector<1x48xf32>
    %83 = arith.addf %77, %82 : vector<1x48xf32>
    %c2_57 = arith.constant 2 : index
    %c0_58 = arith.constant 0 : index
    %84 = vector.load %arg16[%c2_57, %c0_58] : memref<14x160xf32, #tpu.memory_space<vmem>>, vector<1x160xf32>
    %c2_59 = arith.constant 2 : index
    %c0_60 = arith.constant 0 : index
    %c0_61 = arith.constant 0 : index
    %85 = vector.load %arg3[%c2_59, %c0_60, %c0_61] : memref<3x160x48xbf16, #tpu.memory_space<vmem>>, vector<1x160x48xbf16>
    %86 = vector.shape_cast %85 : vector<1x160x48xbf16> to vector<160x48xbf16>
    %87 = arith.truncf %84 : vector<1x160xf32> to vector<1x160xbf16>
    %cst_62 = arith.constant dense<0.000000e+00> : vector<1x48xf32>
    %88 = tpu.matmul %87, %86, %cst_62 {dimension_numbers = #tpu.dot_dimension_numbers<[1], [0], [0], [1], [0, 0, 1, 1], [], []>} : vector<1x160xbf16>, vector<160x48xbf16>, vector<1x48xf32> -> vector<1x48xf32>
    %89 = arith.addf %83, %88 : vector<1x48xf32>
    %c0_63 = arith.constant 0 : index
    %c0_64 = arith.constant 0 : index
    %90 = vector.load %arg4[%c0_63, %c0_64] : memref<1x48xf32, #tpu.memory_space<vmem>>, vector<1x48xf32>
    %91 = arith.addf %89, %90 : vector<1x48xf32>
    %cst_65 = arith.constant 0.000000e+00 : f32
    %92 = vector.broadcast %cst_65 : f32 to vector<1x48xf32>
    %93 = arith.maximumf %91, %92 : vector<1x48xf32>
    %cst_66 = arith.constant 0.000000e+00 : f32
    %94 = vector.broadcast %cst_66 : f32 to vector<1x48xf32>
    %c2_67 = arith.constant 2 : index
    %c0_68 = arith.constant 0 : index
    %95 = vector.load %arg16[%c2_67, %c0_68] : memref<14x160xf32, #tpu.memory_space<vmem>>, vector<1x160xf32>
    %c0_69 = arith.constant 0 : index
    %c0_70 = arith.constant 0 : index
    %c0_71 = arith.constant 0 : index
    %96 = vector.load %arg3[%c0_69, %c0_70, %c0_71] : memref<3x160x48xbf16, #tpu.memory_space<vmem>>, vector<1x160x48xbf16>
    %97 = vector.shape_cast %96 : vector<1x160x48xbf16> to vector<160x48xbf16>
    %98 = arith.truncf %95 : vector<1x160xf32> to vector<1x160xbf16>
    %cst_72 = arith.constant dense<0.000000e+00> : vector<1x48xf32>
    %99 = tpu.matmul %98, %97, %cst_72 {dimension_numbers = #tpu.dot_dimension_numbers<[1], [0], [0], [1], [0, 0, 1, 1], [], []>} : vector<1x160xbf16>, vector<160x48xbf16>, vector<1x48xf32> -> vector<1x48xf32>
    %100 = arith.addf %94, %99 : vector<1x48xf32>
    %c3 = arith.constant 3 : index
    %c0_73 = arith.constant 0 : index
    %101 = vector.load %arg16[%c3, %c0_73] : memref<14x160xf32, #tpu.memory_space<vmem>>, vector<1x160xf32>
    %c1_74 = arith.constant 1 : index
    %c0_75 = arith.constant 0 : index
    %c0_76 = arith.constant 0 : index
    %102 = vector.load %arg3[%c1_74, %c0_75, %c0_76] : memref<3x160x48xbf16, #tpu.memory_space<vmem>>, vector<1x160x48xbf16>
    %103 = vector.shape_cast %102 : vector<1x160x48xbf16> to vector<160x48xbf16>
    %104 = arith.truncf %101 : vector<1x160xf32> to vector<1x160xbf16>
    %cst_77 = arith.constant dense<0.000000e+00> : vector<1x48xf32>
    %105 = tpu.matmul %104, %103, %cst_77 {dimension_numbers = #tpu.dot_dimension_numbers<[1], [0], [0], [1], [0, 0, 1, 1], [], []>} : vector<1x160xbf16>, vector<160x48xbf16>, vector<1x48xf32> -> vector<1x48xf32>
    %106 = arith.addf %100, %105 : vector<1x48xf32>
    %c4 = arith.constant 4 : index
    %c0_78 = arith.constant 0 : index
    %107 = vector.load %arg16[%c4, %c0_78] : memref<14x160xf32, #tpu.memory_space<vmem>>, vector<1x160xf32>
    %c2_79 = arith.constant 2 : index
    %c0_80 = arith.constant 0 : index
    %c0_81 = arith.constant 0 : index
    %108 = vector.load %arg3[%c2_79, %c0_80, %c0_81] : memref<3x160x48xbf16, #tpu.memory_space<vmem>>, vector<1x160x48xbf16>
    %109 = vector.shape_cast %108 : vector<1x160x48xbf16> to vector<160x48xbf16>
    %110 = arith.truncf %107 : vector<1x160xf32> to vector<1x160xbf16>
    %cst_82 = arith.constant dense<0.000000e+00> : vector<1x48xf32>
    %111 = tpu.matmul %110, %109, %cst_82 {dimension_numbers = #tpu.dot_dimension_numbers<[1], [0], [0], [1], [0, 0, 1, 1], [], []>} : vector<1x160xbf16>, vector<160x48xbf16>, vector<1x48xf32> -> vector<1x48xf32>
    %112 = arith.addf %106, %111 : vector<1x48xf32>
    %c0_83 = arith.constant 0 : index
    %c0_84 = arith.constant 0 : index
    %113 = vector.load %arg4[%c0_83, %c0_84] : memref<1x48xf32, #tpu.memory_space<vmem>>, vector<1x48xf32>
    %114 = arith.addf %112, %113 : vector<1x48xf32>
    %cst_85 = arith.constant 0.000000e+00 : f32
    %115 = vector.broadcast %cst_85 : f32 to vector<1x48xf32>
    %116 = arith.maximumf %114, %115 : vector<1x48xf32>
    %cst_86 = arith.constant 0.000000e+00 : f32
    %117 = vector.broadcast %cst_86 : f32 to vector<1x48xf32>
    %c4_87 = arith.constant 4 : index
    %c0_88 = arith.constant 0 : index
    %118 = vector.load %arg16[%c4_87, %c0_88] : memref<14x160xf32, #tpu.memory_space<vmem>>, vector<1x160xf32>
    %c0_89 = arith.constant 0 : index
    %c0_90 = arith.constant 0 : index
    %c0_91 = arith.constant 0 : index
    %119 = vector.load %arg3[%c0_89, %c0_90, %c0_91] : memref<3x160x48xbf16, #tpu.memory_space<vmem>>, vector<1x160x48xbf16>
    %120 = vector.shape_cast %119 : vector<1x160x48xbf16> to vector<160x48xbf16>
    %121 = arith.truncf %118 : vector<1x160xf32> to vector<1x160xbf16>
    %cst_92 = arith.constant dense<0.000000e+00> : vector<1x48xf32>
    %122 = tpu.matmul %121, %120, %cst_92 {dimension_numbers = #tpu.dot_dimension_numbers<[1], [0], [0], [1], [0, 0, 1, 1], [], []>} : vector<1x160xbf16>, vector<160x48xbf16>, vector<1x48xf32> -> vector<1x48xf32>
    %123 = arith.addf %117, %122 : vector<1x48xf32>
    %c5_93 = arith.constant 5 : index
    %c0_94 = arith.constant 0 : index
    %124 = vector.load %arg16[%c5_93, %c0_94] : memref<14x160xf32, #tpu.memory_space<vmem>>, vector<1x160xf32>
    %c1_95 = arith.constant 1 : index
    %c0_96 = arith.constant 0 : index
    %c0_97 = arith.constant 0 : index
    %125 = vector.load %arg3[%c1_95, %c0_96, %c0_97] : memref<3x160x48xbf16, #tpu.memory_space<vmem>>, vector<1x160x48xbf16>
    %126 = vector.shape_cast %125 : vector<1x160x48xbf16> to vector<160x48xbf16>
    %127 = arith.truncf %124 : vector<1x160xf32> to vector<1x160xbf16>
    %cst_98 = arith.constant dense<0.000000e+00> : vector<1x48xf32>
    %128 = tpu.matmul %127, %126, %cst_98 {dimension_numbers = #tpu.dot_dimension_numbers<[1], [0], [0], [1], [0, 0, 1, 1], [], []>} : vector<1x160xbf16>, vector<160x48xbf16>, vector<1x48xf32> -> vector<1x48xf32>
    %129 = arith.addf %123, %128 : vector<1x48xf32>
    %c6 = arith.constant 6 : index
    %c0_99 = arith.constant 0 : index
    %130 = vector.load %arg16[%c6, %c0_99] : memref<14x160xf32, #tpu.memory_space<vmem>>, vector<1x160xf32>
    %c2_100 = arith.constant 2 : index
    %c0_101 = arith.constant 0 : index
    %c0_102 = arith.constant 0 : index
    %131 = vector.load %arg3[%c2_100, %c0_101, %c0_102] : memref<3x160x48xbf16, #tpu.memory_space<vmem>>, vector<1x160x48xbf16>
    %132 = vector.shape_cast %131 : vector<1x160x48xbf16> to vector<160x48xbf16>
    %133 = arith.truncf %130 : vector<1x160xf32> to vector<1x160xbf16>
    %cst_103 = arith.constant dense<0.000000e+00> : vector<1x48xf32>
    %134 = tpu.matmul %133, %132, %cst_103 {dimension_numbers = #tpu.dot_dimension_numbers<[1], [0], [0], [1], [0, 0, 1, 1], [], []>} : vector<1x160xbf16>, vector<160x48xbf16>, vector<1x48xf32> -> vector<1x48xf32>
    %135 = arith.addf %129, %134 : vector<1x48xf32>
    %c0_104 = arith.constant 0 : index
    %c0_105 = arith.constant 0 : index
    %136 = vector.load %arg4[%c0_104, %c0_105] : memref<1x48xf32, #tpu.memory_space<vmem>>, vector<1x48xf32>
    %137 = arith.addf %135, %136 : vector<1x48xf32>
    %cst_106 = arith.constant 0.000000e+00 : f32
    %138 = vector.broadcast %cst_106 : f32 to vector<1x48xf32>
    %139 = arith.maximumf %137, %138 : vector<1x48xf32>
    %140 = arith.maximumf %93, %116 : vector<1x48xf32>
    %141 = arith.maximumf %116, %139 : vector<1x48xf32>
    %c0_107 = arith.constant 0 : index
    %c0_108 = arith.constant 0 : index
    %142 = vector.load %arg6[%c0_107, %c0_108] : memref<1x2xf32, #tpu.memory_space<vmem>>, vector<1x2xf32>
    %143 = vector.extract_strided_slice %140 {offsets = [0, 0], sizes = [1, 16], strides = [1, 1]} : vector<1x48xf32> to vector<1x16xf32>
    %144 = vector.extract_strided_slice %140 {offsets = [0, 16], sizes = [1, 16], strides = [1, 1]} : vector<1x48xf32> to vector<1x16xf32>
    %145 = arith.maximumf %143, %144 : vector<1x16xf32>
    %c0_109 = arith.constant 0 : index
    %c0_110 = arith.constant 0 : index
    %c0_111 = arith.constant 0 : index
    %146 = vector.load %arg5[%c0_109, %c0_110, %c0_111] : memref<4x16x2xbf16, #tpu.memory_space<vmem>>, vector<1x16x2xbf16>
    %147 = vector.shape_cast %146 : vector<1x16x2xbf16> to vector<16x2xbf16>
    %148 = arith.truncf %145 : vector<1x16xf32> to vector<1x16xbf16>
    %cst_112 = arith.constant dense<0.000000e+00> : vector<1x2xf32>
    %149 = tpu.matmul %148, %147, %cst_112 {dimension_numbers = #tpu.dot_dimension_numbers<[1], [0], [0], [1], [0, 0, 1, 1], [], []>} : vector<1x16xbf16>, vector<16x2xbf16>, vector<1x2xf32> -> vector<1x2xf32>
    %150 = arith.addf %142, %149 : vector<1x2xf32>
    %151 = vector.extract_strided_slice %140 {offsets = [0, 16], sizes = [1, 16], strides = [1, 1]} : vector<1x48xf32> to vector<1x16xf32>
    %152 = vector.extract_strided_slice %140 {offsets = [0, 32], sizes = [1, 16], strides = [1, 1]} : vector<1x48xf32> to vector<1x16xf32>
    %153 = arith.maximumf %151, %152 : vector<1x16xf32>
    %c1_113 = arith.constant 1 : index
    %c0_114 = arith.constant 0 : index
    %c0_115 = arith.constant 0 : index
    %154 = vector.load %arg5[%c1_113, %c0_114, %c0_115] : memref<4x16x2xbf16, #tpu.memory_space<vmem>>, vector<1x16x2xbf16>
    %155 = vector.shape_cast %154 : vector<1x16x2xbf16> to vector<16x2xbf16>
    %156 = arith.truncf %153 : vector<1x16xf32> to vector<1x16xbf16>
    %cst_116 = arith.constant dense<0.000000e+00> : vector<1x2xf32>
    %157 = tpu.matmul %156, %155, %cst_116 {dimension_numbers = #tpu.dot_dimension_numbers<[1], [0], [0], [1], [0, 0, 1, 1], [], []>} : vector<1x16xbf16>, vector<16x2xbf16>, vector<1x2xf32> -> vector<1x2xf32>
    %158 = arith.addf %150, %157 : vector<1x2xf32>
    %159 = vector.extract_strided_slice %141 {offsets = [0, 0], sizes = [1, 16], strides = [1, 1]} : vector<1x48xf32> to vector<1x16xf32>
    %160 = vector.extract_strided_slice %141 {offsets = [0, 16], sizes = [1, 16], strides = [1, 1]} : vector<1x48xf32> to vector<1x16xf32>
    %161 = arith.maximumf %159, %160 : vector<1x16xf32>
    %c2_117 = arith.constant 2 : index
    %c0_118 = arith.constant 0 : index
    %c0_119 = arith.constant 0 : index
    %162 = vector.load %arg5[%c2_117, %c0_118, %c0_119] : memref<4x16x2xbf16, #tpu.memory_space<vmem>>, vector<1x16x2xbf16>
    %163 = vector.shape_cast %162 : vector<1x16x2xbf16> to vector<16x2xbf16>
    %164 = arith.truncf %161 : vector<1x16xf32> to vector<1x16xbf16>
    %cst_120 = arith.constant dense<0.000000e+00> : vector<1x2xf32>
    %165 = tpu.matmul %164, %163, %cst_120 {dimension_numbers = #tpu.dot_dimension_numbers<[1], [0], [0], [1], [0, 0, 1, 1], [], []>} : vector<1x16xbf16>, vector<16x2xbf16>, vector<1x2xf32> -> vector<1x2xf32>
    %166 = arith.addf %158, %165 : vector<1x2xf32>
    %167 = vector.extract_strided_slice %141 {offsets = [0, 16], sizes = [1, 16], strides = [1, 1]} : vector<1x48xf32> to vector<1x16xf32>
    %168 = vector.extract_strided_slice %141 {offsets = [0, 32], sizes = [1, 16], strides = [1, 1]} : vector<1x48xf32> to vector<1x16xf32>
    %169 = arith.maximumf %167, %168 : vector<1x16xf32>
    %c3_121 = arith.constant 3 : index
    %c0_122 = arith.constant 0 : index
    %c0_123 = arith.constant 0 : index
    %170 = vector.load %arg5[%c3_121, %c0_122, %c0_123] : memref<4x16x2xbf16, #tpu.memory_space<vmem>>, vector<1x16x2xbf16>
    %171 = vector.shape_cast %170 : vector<1x16x2xbf16> to vector<16x2xbf16>
    %172 = arith.truncf %169 : vector<1x16xf32> to vector<1x16xbf16>
    %cst_124 = arith.constant dense<0.000000e+00> : vector<1x2xf32>
    %173 = tpu.matmul %172, %171, %cst_124 {dimension_numbers = #tpu.dot_dimension_numbers<[1], [0], [0], [1], [0, 0, 1, 1], [], []>} : vector<1x16xbf16>, vector<16x2xbf16>, vector<1x2xf32> -> vector<1x2xf32>
    %174 = arith.addf %166, %173 : vector<1x2xf32>
    %c0_125 = arith.constant 0 : index
    %c0_126 = arith.constant 0 : index
    %c0_127 = arith.constant 0 : index
    %175 = vector.load %arg7[%c0_125, %c0_126, %c0_127] : memref<2x2x32xbf16, #tpu.memory_space<vmem>>, vector<1x2x32xbf16>
    %176 = vector.shape_cast %175 : vector<1x2x32xbf16> to vector<2x32xbf16>
    %177 = arith.truncf %174 : vector<1x2xf32> to vector<1x2xbf16>
    %cst_128 = arith.constant dense<0.000000e+00> : vector<1x32xf32>
    %178 = tpu.matmul %177, %176, %cst_128 {dimension_numbers = #tpu.dot_dimension_numbers<[1], [0], [0], [1], [0, 0, 1, 1], [], []>} : vector<1x2xbf16>, vector<2x32xbf16>, vector<1x32xf32> -> vector<1x32xf32>
    %c0_129 = arith.constant 0 : index
    %c0_130 = arith.constant 0 : index
    %c0_131 = arith.constant 0 : index
    %179 = vector.load %arg8[%c0_129, %c0_130, %c0_131] : memref<2x1x32xf32, #tpu.memory_space<vmem>>, vector<1x1x32xf32>
    %180 = vector.shape_cast %179 : vector<1x1x32xf32> to vector<1x32xf32>
    %181 = arith.addf %178, %180 : vector<1x32xf32>
    %c2_132 = arith.constant 2 : index
    %c0_133 = arith.constant 0 : index
    %182 = vector.load %arg17[%c2_132, %c0_133] : memref<14x32xf32, #tpu.memory_space<vmem>>, vector<1x32xf32>
    tpu.vector_store %arg17[%c2_132, %c0_133], %181 {strides = array<i32>} : memref<14x32xf32, #tpu.memory_space<vmem>>, vector<1x32xf32>,
    %c1_134 = arith.constant 1 : index
    %c0_135 = arith.constant 0 : index
    %c0_136 = arith.constant 0 : index
    %183 = vector.load %arg7[%c1_134, %c0_135, %c0_136] : memref<2x2x32xbf16, #tpu.memory_space<vmem>>, vector<1x2x32xbf16>
    %184 = vector.shape_cast %183 : vector<1x2x32xbf16> to vector<2x32xbf16>
    %185 = arith.truncf %174 : vector<1x2xf32> to vector<1x2xbf16>
    %cst_137 = arith.constant dense<0.000000e+00> : vector<1x32xf32>
    %186 = tpu.matmul %185, %184, %cst_137 {dimension_numbers = #tpu.dot_dimension_numbers<[1], [0], [0], [1], [0, 0, 1, 1], [], []>} : vector<1x2xbf16>, vector<2x32xbf16>, vector<1x32xf32> -> vector<1x32xf32>
    %c1_138 = arith.constant 1 : index
    %c0_139 = arith.constant 0 : index
    %c0_140 = arith.constant 0 : index
    %187 = vector.load %arg8[%c1_138, %c0_139, %c0_140] : memref<2x1x32xf32, #tpu.memory_space<vmem>>, vector<1x1x32xf32>
    %188 = vector.shape_cast %187 : vector<1x1x32xf32> to vector<1x32xf32>
    %189 = arith.addf %186, %188 : vector<1x32xf32>
    %c4_141 = arith.constant 4 : index
    %c0_142 = arith.constant 0 : index
    %190 = vector.load %arg17[%c4_141, %c0_142] : memref<14x32xf32, #tpu.memory_space<vmem>>, vector<1x32xf32>
    tpu.vector_store %arg17[%c4_141, %c0_142], %189 {strides = array<i32>} : memref<14x32xf32, #tpu.memory_space<vmem>>, vector<1x32xf32>,
    %cst_143 = arith.constant 0.000000e+00 : f32
    %191 = vector.broadcast %cst_143 : f32 to vector<5x160xf32>
    %c0_144 = arith.constant 0 : index
    %c0_145 = arith.constant 0 : index
    %192 = vector.load %arg17[%c0_144, %c0_145] : memref<14x32xf32, #tpu.memory_space<vmem>>, vector<5x32xf32>
    %c0_146 = arith.constant 0 : index
    %c0_147 = arith.constant 0 : index
    %c0_148 = arith.constant 0 : index
    %193 = vector.load %arg9[%c0_146, %c0_147, %c0_148] : memref<3x32x160xbf16, #tpu.memory_space<vmem>>, vector<1x32x160xbf16>
    %194 = vector.shape_cast %193 : vector<1x32x160xbf16> to vector<32x160xbf16>
    %195 = arith.truncf %192 : vector<5x32xf32> to vector<5x32xbf16>
    %cst_149 = arith.constant dense<0.000000e+00> : vector<5x160xf32>
    %196 = tpu.matmul %195, %194, %cst_149 {dimension_numbers = #tpu.dot_dimension_numbers<[1], [0], [0], [1], [0, 0, 1, 1], [], []>} : vector<5x32xbf16>, vector<32x160xbf16>, vector<5x160xf32> -> vector<5x160xf32>
    %197 = arith.addf %191, %196 : vector<5x160xf32>
    %c1_150 = arith.constant 1 : index
    %c0_151 = arith.constant 0 : index
    %198 = vector.load %arg17[%c1_150, %c0_151] : memref<14x32xf32, #tpu.memory_space<vmem>>, vector<5x32xf32>
    %c1_152 = arith.constant 1 : index
    %c0_153 = arith.constant 0 : index
    %c0_154 = arith.constant 0 : index
    %199 = vector.load %arg9[%c1_152, %c0_153, %c0_154] : memref<3x32x160xbf16, #tpu.memory_space<vmem>>, vector<1x32x160xbf16>
    %200 = vector.shape_cast %199 : vector<1x32x160xbf16> to vector<32x160xbf16>
    %201 = arith.truncf %198 : vector<5x32xf32> to vector<5x32xbf16>
    %cst_155 = arith.constant dense<0.000000e+00> : vector<5x160xf32>
    %202 = tpu.matmul %201, %200, %cst_155 {dimension_numbers = #tpu.dot_dimension_numbers<[1], [0], [0], [1], [0, 0, 1, 1], [], []>} : vector<5x32xbf16>, vector<32x160xbf16>, vector<5x160xf32> -> vector<5x160xf32>
    %203 = arith.addf %197, %202 : vector<5x160xf32>
    %c2_156 = arith.constant 2 : index
    %c0_157 = arith.constant 0 : index
    %204 = vector.load %arg17[%c2_156, %c0_157] : memref<14x32xf32, #tpu.memory_space<vmem>>, vector<5x32xf32>
    %c2_158 = arith.constant 2 : index
    %c0_159 = arith.constant 0 : index
    %c0_160 = arith.constant 0 : index
    %205 = vector.load %arg9[%c2_158, %c0_159, %c0_160] : memref<3x32x160xbf16, #tpu.memory_space<vmem>>, vector<1x32x160xbf16>
    %206 = vector.shape_cast %205 : vector<1x32x160xbf16> to vector<32x160xbf16>
    %207 = arith.truncf %204 : vector<5x32xf32> to vector<5x32xbf16>
    %cst_161 = arith.constant dense<0.000000e+00> : vector<5x160xf32>
    %208 = tpu.matmul %207, %206, %cst_161 {dimension_numbers = #tpu.dot_dimension_numbers<[1], [0], [0], [1], [0, 0, 1, 1], [], []>} : vector<5x32xbf16>, vector<32x160xbf16>, vector<5x160xf32> -> vector<5x160xf32>
    %209 = arith.addf %203, %208 : vector<5x160xf32>
    %c0_162 = arith.constant 0 : index
    %c0_163 = arith.constant 0 : index
    %210 = vector.load %arg10[%c0_162, %c0_163] : memref<1x160xf32, #tpu.memory_space<vmem>>, vector<1x160xf32>
    %211 = vector.broadcast %210 : vector<1x160xf32> to vector<5x160xf32>
    %212 = arith.addf %209, %211 : vector<5x160xf32>
    %cst_164 = arith.constant 0.000000e+00 : f32
    %213 = vector.broadcast %cst_164 : f32 to vector<5x160xf32>
    %214 = arith.maximumf %212, %213 : vector<5x160xf32>
    %215 = vector.extract_strided_slice %214 {offsets = [0, 0], sizes = [1, 160], strides = [1, 1]} : vector<5x160xf32> to vector<1x160xf32>
    %c3_165 = arith.constant 3 : index
    %c0_166 = arith.constant 0 : index
    %216 = vector.load %arg18[%c3_165, %c0_166] : memref<38x160xf32, #tpu.memory_space<vmem>>, vector<1x160xf32>
    tpu.vector_store %arg18[%c3_165, %c0_166], %215 {strides = array<i32>} : memref<38x160xf32, #tpu.memory_space<vmem>>, vector<1x160xf32>,
    %217 = vector.extract_strided_slice %214 {offsets = [1, 0], sizes = [1, 160], strides = [1, 1]} : vector<5x160xf32> to vector<1x160xf32>
    %c6_167 = arith.constant 6 : index
    %c0_168 = arith.constant 0 : index
    %218 = vector.load %arg18[%c6_167, %c0_168] : memref<38x160xf32, #tpu.memory_space<vmem>>, vector<1x160xf32>
    tpu.vector_store %arg18[%c6_167, %c0_168], %217 {strides = array<i32>} : memref<38x160xf32, #tpu.memory_space<vmem>>, vector<1x160xf32>,
    %219 = vector.extract_strided_slice %214 {offsets = [2, 0], sizes = [1, 160], strides = [1, 1]} : vector<5x160xf32> to vector<1x160xf32>
    %c9 = arith.constant 9 : index
    %c0_169 = arith.constant 0 : index
    %220 = vector.load %arg18[%c9, %c0_169] : memref<38x160xf32, #tpu.memory_space<vmem>>, vector<1x160xf32>
    tpu.vector_store %arg18[%c9, %c0_169], %219 {strides = array<i32>} : memref<38x160xf32, #tpu.memory_space<vmem>>, vector<1x160xf32>,
    %221 = vector.extract_strided_slice %214 {offsets = [3, 0], sizes = [1, 160], strides = [1, 1]} : vector<5x160xf32> to vector<1x160xf32>
    %c12 = arith.constant 12 : index
    %c0_170 = arith.constant 0 : index
    %222 = vector.load %arg18[%c12, %c0_170] : memref<38x160xf32, #tpu.memory_space<vmem>>, vector<1x160xf32>
    tpu.vector_store %arg18[%c12, %c0_170], %221 {strides = array<i32>} : memref<38x160xf32, #tpu.memory_space<vmem>>, vector<1x160xf32>,
    %223 = vector.extract_strided_slice %214 {offsets = [4, 0], sizes = [1, 160], strides = [1, 1]} : vector<5x160xf32> to vector<1x160xf32>
    %c15_171 = arith.constant 15 : index
    %c0_172 = arith.constant 0 : index
    %224 = vector.load %arg18[%c15_171, %c0_172] : memref<38x160xf32, #tpu.memory_space<vmem>>, vector<1x160xf32>
    tpu.vector_store %arg18[%c15_171, %c0_172], %223 {strides = array<i32>} : memref<38x160xf32, #tpu.memory_space<vmem>>, vector<1x160xf32>,
    %cst_173 = arith.constant 0.000000e+00 : f32
    %225 = vector.broadcast %cst_173 : f32 to vector<15x600xf32>
    %c0_174 = arith.constant 0 : index
    %c0_175 = arith.constant 0 : index
    %226 = vector.load %arg18[%c0_174, %c0_175] : memref<38x160xf32, #tpu.memory_space<vmem>>, vector<15x160xf32>
    %c0_176 = arith.constant 0 : index
    %c0_177 = arith.constant 0 : index
    %c0_178 = arith.constant 0 : index
    %227 = vector.load %arg11[%c0_176, %c0_177, %c0_178] : memref<5x160x600xbf16, #tpu.memory_space<vmem>>, vector<1x160x600xbf16>
    %228 = vector.shape_cast %227 : vector<1x160x600xbf16> to vector<160x600xbf16>
    %229 = arith.truncf %226 : vector<15x160xf32> to vector<15x160xbf16>
    %cst_179 = arith.constant dense<0.000000e+00> : vector<15x600xf32>
    %230 = tpu.matmul %229, %228, %cst_179 {dimension_numbers = #tpu.dot_dimension_numbers<[1], [0], [0], [1], [0, 0, 1, 1], [], []>} : vector<15x160xbf16>, vector<160x600xbf16>, vector<15x600xf32> -> vector<15x600xf32>
    %231 = arith.addf %225, %230 : vector<15x600xf32>
    %c1_180 = arith.constant 1 : index
    %c0_181 = arith.constant 0 : index
    %232 = vector.load %arg18[%c1_180, %c0_181] : memref<38x160xf32, #tpu.memory_space<vmem>>, vector<15x160xf32>
    %c1_182 = arith.constant 1 : index
    %c0_183 = arith.constant 0 : index
    %c0_184 = arith.constant 0 : index
    %233 = vector.load %arg11[%c1_182, %c0_183, %c0_184] : memref<5x160x600xbf16, #tpu.memory_space<vmem>>, vector<1x160x600xbf16>
    %234 = vector.shape_cast %233 : vector<1x160x600xbf16> to vector<160x600xbf16>
    %235 = arith.truncf %232 : vector<15x160xf32> to vector<15x160xbf16>
    %cst_185 = arith.constant dense<0.000000e+00> : vector<15x600xf32>
    %236 = tpu.matmul %235, %234, %cst_185 {dimension_numbers = #tpu.dot_dimension_numbers<[1], [0], [0], [1], [0, 0, 1, 1], [], []>} : vector<15x160xbf16>, vector<160x600xbf16>, vector<15x600xf32> -> vector<15x600xf32>
    %237 = arith.addf %231, %236 : vector<15x600xf32>
    %c2_186 = arith.constant 2 : index
    %c0_187 = arith.constant 0 : index
    %238 = vector.load %arg18[%c2_186, %c0_187] : memref<38x160xf32, #tpu.memory_space<vmem>>, vector<15x160xf32>
    %c2_188 = arith.constant 2 : index
    %c0_189 = arith.constant 0 : index
    %c0_190 = arith.constant 0 : index
    %239 = vector.load %arg11[%c2_188, %c0_189, %c0_190] : memref<5x160x600xbf16, #tpu.memory_space<vmem>>, vector<1x160x600xbf16>
    %240 = vector.shape_cast %239 : vector<1x160x600xbf16> to vector<160x600xbf16>
    %241 = arith.truncf %238 : vector<15x160xf32> to vector<15x160xbf16>
    %cst_191 = arith.constant dense<0.000000e+00> : vector<15x600xf32>
    %242 = tpu.matmul %241, %240, %cst_191 {dimension_numbers = #tpu.dot_dimension_numbers<[1], [0], [0], [1], [0, 0, 1, 1], [], []>} : vector<15x160xbf16>, vector<160x600xbf16>, vector<15x600xf32> -> vector<15x600xf32>
    %243 = arith.addf %237, %242 : vector<15x600xf32>
    %c3_192 = arith.constant 3 : index
    %c0_193 = arith.constant 0 : index
    %244 = vector.load %arg18[%c3_192, %c0_193] : memref<38x160xf32, #tpu.memory_space<vmem>>, vector<15x160xf32>
    %c3_194 = arith.constant 3 : index
    %c0_195 = arith.constant 0 : index
    %c0_196 = arith.constant 0 : index
    %245 = vector.load %arg11[%c3_194, %c0_195, %c0_196] : memref<5x160x600xbf16, #tpu.memory_space<vmem>>, vector<1x160x600xbf16>
    %246 = vector.shape_cast %245 : vector<1x160x600xbf16> to vector<160x600xbf16>
    %247 = arith.truncf %244 : vector<15x160xf32> to vector<15x160xbf16>
    %cst_197 = arith.constant dense<0.000000e+00> : vector<15x600xf32>
    %248 = tpu.matmul %247, %246, %cst_197 {dimension_numbers = #tpu.dot_dimension_numbers<[1], [0], [0], [1], [0, 0, 1, 1], [], []>} : vector<15x160xbf16>, vector<160x600xbf16>, vector<15x600xf32> -> vector<15x600xf32>
    %249 = arith.addf %243, %248 : vector<15x600xf32>
    %c4_198 = arith.constant 4 : index
    %c0_199 = arith.constant 0 : index
    %250 = vector.load %arg18[%c4_198, %c0_199] : memref<38x160xf32, #tpu.memory_space<vmem>>, vector<15x160xf32>
    %c4_200 = arith.constant 4 : index
    %c0_201 = arith.constant 0 : index
    %c0_202 = arith.constant 0 : index
    %251 = vector.load %arg11[%c4_200, %c0_201, %c0_202] : memref<5x160x600xbf16, #tpu.memory_space<vmem>>, vector<1x160x600xbf16>
    %252 = vector.shape_cast %251 : vector<1x160x600xbf16> to vector<160x600xbf16>
    %253 = arith.truncf %250 : vector<15x160xf32> to vector<15x160xbf16>
    %cst_203 = arith.constant dense<0.000000e+00> : vector<15x600xf32>
    %254 = tpu.matmul %253, %252, %cst_203 {dimension_numbers = #tpu.dot_dimension_numbers<[1], [0], [0], [1], [0, 0, 1, 1], [], []>} : vector<15x160xbf16>, vector<160x600xbf16>, vector<15x600xf32> -> vector<15x600xf32>
    %255 = arith.addf %249, %254 : vector<15x600xf32>
    %c0_204 = arith.constant 0 : index
    %c0_205 = arith.constant 0 : index
    %256 = vector.load %arg12[%c0_204, %c0_205] : memref<1x600xf32, #tpu.memory_space<vmem>>, vector<1x600xf32>
    %257 = vector.broadcast %256 : vector<1x600xf32> to vector<15x600xf32>
    %258 = arith.addf %255, %257 : vector<15x600xf32>
    %cst_206 = arith.constant 0.000000e+00 : f32
    %259 = vector.broadcast %cst_206 : f32 to vector<15x600xf32>
    %260 = arith.maximumf %258, %259 : vector<15x600xf32>
    %261 = vector.extract_strided_slice %260 {offsets = [0, 0], sizes = [1, 600], strides = [1, 1]} : vector<15x600xf32> to vector<1x600xf32>
    %c0_207 = arith.constant 0 : index
    %c0_208 = arith.constant 0 : index
    %262 = vector.load %arg19[%c0_207, %c0_208] : memref<58x600xf32, #tpu.memory_space<vmem>>, vector<1x600xf32>
    tpu.vector_store %arg19[%c0_207, %c0_208], %261 {strides = array<i32>} : memref<58x600xf32, #tpu.memory_space<vmem>>, vector<1x600xf32>,
    %263 = vector.extract_strided_slice %260 {offsets = [1, 0], sizes = [1, 600], strides = [1, 1]} : vector<15x600xf32> to vector<1x600xf32>
    %c2_209 = arith.constant 2 : index
    %c0_210 = arith.constant 0 : index
    %264 = vector.load %arg19[%c2_209, %c0_210] : memref<58x600xf32, #tpu.memory_space<vmem>>, vector<1x600xf32>
    tpu.vector_store %arg19[%c2_209, %c0_210], %263 {strides = array<i32>} : memref<58x600xf32, #tpu.memory_space<vmem>>, vector<1x600xf32>,
    %265 = vector.extract_strided_slice %260 {offsets = [2, 0], sizes = [1, 600], strides = [1, 1]} : vector<15x600xf32> to vector<1x600xf32>
    %c4_211 = arith.constant 4 : index
    %c0_212 = arith.constant 0 : index
    %266 = vector.load %arg19[%c4_211, %c0_212] : memref<58x600xf32, #tpu.memory_space<vmem>>, vector<1x600xf32>
    tpu.vector_store %arg19[%c4_211, %c0_212], %265 {strides = array<i32>} : memref<58x600xf32, #tpu.memory_space<vmem>>, vector<1x600xf32>,
    %267 = vector.extract_strided_slice %260 {offsets = [3, 0], sizes = [1, 600], strides = [1, 1]} : vector<15x600xf32> to vector<1x600xf32>
    %c6_213 = arith.constant 6 : index
    %c0_214 = arith.constant 0 : index
    %268 = vector.load %arg19[%c6_213, %c0_214] : memref<58x600xf32, #tpu.memory_space<vmem>>, vector<1x600xf32>
    tpu.vector_store %arg19[%c6_213, %c0_214], %267 {strides = array<i32>} : memref<58x600xf32, #tpu.memory_space<vmem>>, vector<1x600xf32>,
    %269 = vector.extract_strided_slice %260 {offsets = [4, 0], sizes = [1, 600], strides = [1, 1]} : vector<15x600xf32> to vector<1x600xf32>
    %c8 = arith.constant 8 : index
    %c0_215 = arith.constant 0 : index
    %270 = vector.load %arg19[%c8, %c0_215] : memref<58x600xf32, #tpu.memory_space<vmem>>, vector<1x600xf32>
    tpu.vector_store %arg19[%c8, %c0_215], %269 {strides = array<i32>} : memref<58x600xf32, #tpu.memory_space<vmem>>, vector<1x600xf32>,
    %271 = vector.extract_strided_slice %260 {offsets = [5, 0], sizes = [1, 600], strides = [1, 1]} : vector<15x600xf32> to vector<1x600xf32>
    %c10_216 = arith.constant 10 : index
    %c0_217 = arith.constant 0 : index
    %272 = vector.load %arg19[%c10_216, %c0_217] : memref<58x600xf32, #tpu.memory_space<vmem>>, vector<1x600xf32>
    tpu.vector_store %arg19[%c10_216, %c0_217], %271 {strides = array<i32>} : memref<58x600xf32, #tpu.memory_space<vmem>>, vector<1x600xf32>,
    %273 = vector.extract_strided_slice %260 {offsets = [6, 0], sizes = [1, 600], strides = [1, 1]} : vector<15x600xf32> to vector<1x600xf32>
    %c12_218 = arith.constant 12 : index
    %c0_219 = arith.constant 0 : index
    %274 = vector.load %arg19[%c12_218, %c0_219] : memref<58x600xf32, #tpu.memory_space<vmem>>, vector<1x600xf32>
    tpu.vector_store %arg19[%c12_218, %c0_219], %273 {strides = array<i32>} : memref<58x600xf32, #tpu.memory_space<vmem>>, vector<1x600xf32>,
    %275 = vector.extract_strided_slice %260 {offsets = [7, 0], sizes = [1, 600], strides = [1, 1]} : vector<15x600xf32> to vector<1x600xf32>
    %c14 = arith.constant 14 : index
    %c0_220 = arith.constant 0 : index
    %276 = vector.load %arg19[%c14, %c0_220] : memref<58x600xf32, #tpu.memory_space<vmem>>, vector<1x600xf32>
    tpu.vector_store %arg19[%c14, %c0_220], %275 {strides = array<i32>} : memref<58x600xf32, #tpu.memory_space<vmem>>, vector<1x600xf32>,
    %277 = vector.extract_strided_slice %260 {offsets = [8, 0], sizes = [1, 600], strides = [1, 1]} : vector<15x600xf32> to vector<1x600xf32>
    %c16 = arith.constant 16 : index
    %c0_221 = arith.constant 0 : index
    %278 = vector.load %arg19[%c16, %c0_221] : memref<58x600xf32, #tpu.memory_space<vmem>>, vector<1x600xf32>
    tpu.vector_store %arg19[%c16, %c0_221], %277 {strides = array<i32>} : memref<58x600xf32, #tpu.memory_space<vmem>>, vector<1x600xf32>,
    %279 = vector.extract_strided_slice %260 {offsets = [9, 0], sizes = [1, 600], strides = [1, 1]} : vector<15x600xf32> to vector<1x600xf32>
    %c18 = arith.constant 18 : index
    %c0_222 = arith.constant 0 : index
    %280 = vector.load %arg19[%c18, %c0_222] : memref<58x600xf32, #tpu.memory_space<vmem>>, vector<1x600xf32>
    tpu.vector_store %arg19[%c18, %c0_222], %279 {strides = array<i32>} : memref<58x600xf32, #tpu.memory_space<vmem>>, vector<1x600xf32>,
    %281 = vector.extract_strided_slice %260 {offsets = [10, 0], sizes = [1, 600], strides = [1, 1]} : vector<15x600xf32> to vector<1x600xf32>
    %c20_223 = arith.constant 20 : index
    %c0_224 = arith.constant 0 : index
    %282 = vector.load %arg19[%c20_223, %c0_224] : memref<58x600xf32, #tpu.memory_space<vmem>>, vector<1x600xf32>
    tpu.vector_store %arg19[%c20_223, %c0_224], %281 {strides = array<i32>} : memref<58x600xf32, #tpu.memory_space<vmem>>, vector<1x600xf32>,
    %283 = vector.extract_strided_slice %260 {offsets = [11, 0], sizes = [1, 600], strides = [1, 1]} : vector<15x600xf32> to vector<1x600xf32>
    %c22 = arith.constant 22 : index
    %c0_225 = arith.constant 0 : index
    %284 = vector.load %arg19[%c22, %c0_225] : memref<58x600xf32, #tpu.memory_space<vmem>>, vector<1x600xf32>
    tpu.vector_store %arg19[%c22, %c0_225], %283 {strides = array<i32>} : memref<58x600xf32, #tpu.memory_space<vmem>>, vector<1x600xf32>,
    %285 = vector.extract_strided_slice %260 {offsets = [12, 0], sizes = [1, 600], strides = [1, 1]} : vector<15x600xf32> to vector<1x600xf32>
    %c24 = arith.constant 24 : index
    %c0_226 = arith.constant 0 : index
    %286 = vector.load %arg19[%c24, %c0_226] : memref<58x600xf32, #tpu.memory_space<vmem>>, vector<1x600xf32>
    tpu.vector_store %arg19[%c24, %c0_226], %285 {strides = array<i32>} : memref<58x600xf32, #tpu.memory_space<vmem>>, vector<1x600xf32>,
    %287 = vector.extract_strided_slice %260 {offsets = [13, 0], sizes = [1, 600], strides = [1, 1]} : vector<15x600xf32> to vector<1x600xf32>
    %c26 = arith.constant 26 : index
    %c0_227 = arith.constant 0 : index
    %288 = vector.load %arg19[%c26, %c0_227] : memref<58x600xf32, #tpu.memory_space<vmem>>, vector<1x600xf32>
    tpu.vector_store %arg19[%c26, %c0_227], %287 {strides = array<i32>} : memref<58x600xf32, #tpu.memory_space<vmem>>, vector<1x600xf32>,
    %289 = vector.extract_strided_slice %260 {offsets = [14, 0], sizes = [1, 600], strides = [1, 1]} : vector<15x600xf32> to vector<1x600xf32>
    %c28 = arith.constant 28 : index
    %c0_228 = arith.constant 0 : index
    %290 = vector.load %arg19[%c28, %c0_228] : memref<58x600xf32, #tpu.memory_space<vmem>>, vector<1x600xf32>
    tpu.vector_store %arg19[%c28, %c0_228], %289 {strides = array<i32>} : memref<58x600xf32, #tpu.memory_space<vmem>>, vector<1x600xf32>,
    %cst_229 = arith.constant 0.000000e+00 : f32
    %291 = vector.broadcast %cst_229 : f32 to vector<28x28xf32>
    %c0_230 = arith.constant 0 : index
    %c0_231 = arith.constant 0 : index
    %292 = vector.load %arg19[%c0_230, %c0_231] : memref<58x600xf32, #tpu.memory_space<vmem>>, vector<28x600xf32>
    %c0_232 = arith.constant 0 : index
    %c0_233 = arith.constant 0 : index
    %c0_234 = arith.constant 0 : index
    %293 = vector.load %arg13[%c0_232, %c0_233, %c0_234] : memref<2x600x28xbf16, #tpu.memory_space<vmem>>, vector<1x600x28xbf16>
    %294 = vector.shape_cast %293 : vector<1x600x28xbf16> to vector<600x28xbf16>
    %295 = arith.truncf %292 : vector<28x600xf32> to vector<28x600xbf16>
    %cst_235 = arith.constant dense<0.000000e+00> : vector<28x28xf32>
    %296 = tpu.matmul %295, %294, %cst_235 {dimension_numbers = #tpu.dot_dimension_numbers<[1], [0], [0], [1], [0, 0, 1, 1], [], []>} : vector<28x600xbf16>, vector<600x28xbf16>, vector<28x28xf32> -> vector<28x28xf32>
    %297 = arith.addf %291, %296 : vector<28x28xf32>
    %c1_236 = arith.constant 1 : index
    %c0_237 = arith.constant 0 : index
    %298 = vector.load %arg19[%c1_236, %c0_237] : memref<58x600xf32, #tpu.memory_space<vmem>>, vector<28x600xf32>
    %c1_238 = arith.constant 1 : index
    %c0_239 = arith.constant 0 : index
    %c0_240 = arith.constant 0 : index
    %299 = vector.load %arg13[%c1_238, %c0_239, %c0_240] : memref<2x600x28xbf16, #tpu.memory_space<vmem>>, vector<1x600x28xbf16>
    %300 = vector.shape_cast %299 : vector<1x600x28xbf16> to vector<600x28xbf16>
    %301 = arith.truncf %298 : vector<28x600xf32> to vector<28x600xbf16>
    %cst_241 = arith.constant dense<0.000000e+00> : vector<28x28xf32>
    %302 = tpu.matmul %301, %300, %cst_241 {dimension_numbers = #tpu.dot_dimension_numbers<[1], [0], [0], [1], [0, 0, 1, 1], [], []>} : vector<28x600xbf16>, vector<600x28xbf16>, vector<28x28xf32> -> vector<28x28xf32>
    %303 = arith.addf %297, %302 : vector<28x28xf32>
    %c0_242 = arith.constant 0 : index
    %c0_243 = arith.constant 0 : index
    %304 = vector.load %arg14[%c0_242, %c0_243] : memref<1x28xf32, #tpu.memory_space<vmem>>, vector<1x28xf32>
    %305 = vector.broadcast %304 : vector<1x28xf32> to vector<28x28xf32>
    %306 = arith.addf %303, %305 : vector<28x28xf32>
    %307 = math.tanh %306 : vector<28x28xf32>
    %c0_244 = arith.constant 0 : index
    %c0_245 = arith.constant 0 : index
    %c0_246 = arith.constant 0 : index
    %308 = vector.load %arg15[%c0_244, %c0_245, %c0_246] : memref<2x28x28xf32, #tpu.memory_space<vmem>>, vector<1x28x28xf32>
    %309 = vector.shape_cast %308 : vector<1x28x28xf32> to vector<28x28xf32>
    %310 = vector.shape_cast %307 : vector<28x28xf32> to vector<1x28x28xf32>
    tpu.vector_store %arg15[%c0_244, %c0_245, %c0_246], %310 {strides = array<i32>} : memref<2x28x28xf32, #tpu.memory_space<vmem>>, vector<1x28x28xf32>,
    %cst_247 = arith.constant 0.000000e+00 : f32
    %311 = vector.broadcast %cst_247 : f32 to vector<5x320xf32>
    %cst_248 = arith.constant 0.000000e+00 : f32
    %312 = vector.broadcast %cst_248 : f32 to vector<5x320xf32>
    %c0_249 = arith.constant 0 : index
    %c0_250 = arith.constant 0 : index
    %c0_251 = arith.constant 0 : index
    %313 = vector.load %arg1[%c0_249, %c0_250, %c0_251] : memref<3x28x320xbf16, #tpu.memory_space<vmem>>, vector<1x28x320xbf16>
    %314 = vector.shape_cast %313 : vector<1x28x320xbf16> to vector<28x320xbf16>
    %c30 = arith.constant 30 : index
    %c0_252 = arith.constant 0 : index
    %315 = vector.load %arg0[%c30, %c0_252] : memref<60x28xf32, #tpu.memory_space<vmem>>, vector<5x28xf32>
    %316 = arith.truncf %315 : vector<5x28xf32> to vector<5x28xbf16>
    %cst_253 = arith.constant dense<0.000000e+00> : vector<5x320xf32>
    %317 = tpu.matmul %316, %314, %cst_253 {dimension_numbers = #tpu.dot_dimension_numbers<[1], [0], [0], [1], [0, 0, 1, 1], [], []>} : vector<5x28xbf16>, vector<28x320xbf16>, vector<5x320xf32> -> vector<5x320xf32>
    %318 = arith.addf %311, %317 : vector<5x320xf32>
    %c45 = arith.constant 45 : index
    %c0_254 = arith.constant 0 : index
    %319 = vector.load %arg0[%c45, %c0_254] : memref<60x28xf32, #tpu.memory_space<vmem>>, vector<5x28xf32>
    %320 = arith.truncf %319 : vector<5x28xf32> to vector<5x28xbf16>
    %cst_255 = arith.constant dense<0.000000e+00> : vector<5x320xf32>
    %321 = tpu.matmul %320, %314, %cst_255 {dimension_numbers = #tpu.dot_dimension_numbers<[1], [0], [0], [1], [0, 0, 1, 1], [], []>} : vector<5x28xbf16>, vector<28x320xbf16>, vector<5x320xf32> -> vector<5x320xf32>
    %322 = arith.addf %312, %321 : vector<5x320xf32>
    %c1_256 = arith.constant 1 : index
    %c0_257 = arith.constant 0 : index
    %c0_258 = arith.constant 0 : index
    %323 = vector.load %arg1[%c1_256, %c0_257, %c0_258] : memref<3x28x320xbf16, #tpu.memory_space<vmem>>, vector<1x28x320xbf16>
    %324 = vector.shape_cast %323 : vector<1x28x320xbf16> to vector<28x320xbf16>
    %c35 = arith.constant 35 : index
    %c0_259 = arith.constant 0 : index
    %325 = vector.load %arg0[%c35, %c0_259] : memref<60x28xf32, #tpu.memory_space<vmem>>, vector<5x28xf32>
    %326 = arith.truncf %325 : vector<5x28xf32> to vector<5x28xbf16>
    %cst_260 = arith.constant dense<0.000000e+00> : vector<5x320xf32>
    %327 = tpu.matmul %326, %324, %cst_260 {dimension_numbers = #tpu.dot_dimension_numbers<[1], [0], [0], [1], [0, 0, 1, 1], [], []>} : vector<5x28xbf16>, vector<28x320xbf16>, vector<5x320xf32> -> vector<5x320xf32>
    %328 = arith.addf %318, %327 : vector<5x320xf32>
    %c50 = arith.constant 50 : index
    %c0_261 = arith.constant 0 : index
    %329 = vector.load %arg0[%c50, %c0_261] : memref<60x28xf32, #tpu.memory_space<vmem>>, vector<5x28xf32>
    %330 = arith.truncf %329 : vector<5x28xf32> to vector<5x28xbf16>
    %cst_262 = arith.constant dense<0.000000e+00> : vector<5x320xf32>
    %331 = tpu.matmul %330, %324, %cst_262 {dimension_numbers = #tpu.dot_dimension_numbers<[1], [0], [0], [1], [0, 0, 1, 1], [], []>} : vector<5x28xbf16>, vector<28x320xbf16>, vector<5x320xf32> -> vector<5x320xf32>
    %332 = arith.addf %322, %331 : vector<5x320xf32>
    %c2_263 = arith.constant 2 : index
    %c0_264 = arith.constant 0 : index
    %c0_265 = arith.constant 0 : index
    %333 = vector.load %arg1[%c2_263, %c0_264, %c0_265] : memref<3x28x320xbf16, #tpu.memory_space<vmem>>, vector<1x28x320xbf16>
    %334 = vector.shape_cast %333 : vector<1x28x320xbf16> to vector<28x320xbf16>
    %c40 = arith.constant 40 : index
    %c0_266 = arith.constant 0 : index
    %335 = vector.load %arg0[%c40, %c0_266] : memref<60x28xf32, #tpu.memory_space<vmem>>, vector<5x28xf32>
    %336 = arith.truncf %335 : vector<5x28xf32> to vector<5x28xbf16>
    %cst_267 = arith.constant dense<0.000000e+00> : vector<5x320xf32>
    %337 = tpu.matmul %336, %334, %cst_267 {dimension_numbers = #tpu.dot_dimension_numbers<[1], [0], [0], [1], [0, 0, 1, 1], [], []>} : vector<5x28xbf16>, vector<28x320xbf16>, vector<5x320xf32> -> vector<5x320xf32>
    %338 = arith.addf %328, %337 : vector<5x320xf32>
    %c55 = arith.constant 55 : index
    %c0_268 = arith.constant 0 : index
    %339 = vector.load %arg0[%c55, %c0_268] : memref<60x28xf32, #tpu.memory_space<vmem>>, vector<5x28xf32>
    %340 = arith.truncf %339 : vector<5x28xf32> to vector<5x28xbf16>
    %cst_269 = arith.constant dense<0.000000e+00> : vector<5x320xf32>
    %341 = tpu.matmul %340, %334, %cst_269 {dimension_numbers = #tpu.dot_dimension_numbers<[1], [0], [0], [1], [0, 0, 1, 1], [], []>} : vector<5x28xbf16>, vector<28x320xbf16>, vector<5x320xf32> -> vector<5x320xf32>
    %342 = arith.addf %332, %341 : vector<5x320xf32>
    %c0_270 = arith.constant 0 : index
    %c0_271 = arith.constant 0 : index
    %343 = vector.load %arg2[%c0_270, %c0_271] : memref<1x320xf32, #tpu.memory_space<vmem>>, vector<1x320xf32>
    %344 = vector.broadcast %343 : vector<1x320xf32> to vector<5x320xf32>
    %345 = arith.addf %338, %344 : vector<5x320xf32>
    %cst_272 = arith.constant 0.000000e+00 : f32
    %346 = vector.broadcast %cst_272 : f32 to vector<5x320xf32>
    %347 = arith.maximumf %345, %346 : vector<5x320xf32>
    %c0_273 = arith.constant 0 : index
    %c0_274 = arith.constant 0 : index
    %348 = vector.load %arg2[%c0_273, %c0_274] : memref<1x320xf32, #tpu.memory_space<vmem>>, vector<1x320xf32>
    %349 = vector.broadcast %348 : vector<1x320xf32> to vector<5x320xf32>
    %350 = arith.addf %342, %349 : vector<5x320xf32>
    %cst_275 = arith.constant 0.000000e+00 : f32
    %351 = vector.broadcast %cst_275 : f32 to vector<5x320xf32>
    %352 = arith.maximumf %350, %351 : vector<5x320xf32>
    %353 = arith.maximumf %347, %352 : vector<5x320xf32>
    %354 = vector.extract_strided_slice %353 {offsets = [0, 0], sizes = [5, 32], strides = [1, 1]} : vector<5x320xf32> to vector<5x32xf32>
    %355 = vector.extract_strided_slice %353 {offsets = [0, 32], sizes = [5, 32], strides = [1, 1]} : vector<5x320xf32> to vector<5x32xf32>
    %356 = arith.maximumf %354, %355 : vector<5x32xf32>
    %c8_276 = arith.constant 8 : index
    %c0_277 = arith.constant 0 : index
    %357 = vector.load %arg16[%c8_276, %c0_277] : memref<14x160xf32, #tpu.memory_space<vmem>>, vector<5x32xf32>
    tpu.vector_store %arg16[%c8_276, %c0_277], %356 {strides = array<i32>} : memref<14x160xf32, #tpu.memory_space<vmem>>, vector<5x32xf32>,
    %358 = vector.extract_strided_slice %353 {offsets = [0, 64], sizes = [5, 32], strides = [1, 1]} : vector<5x320xf32> to vector<5x32xf32>
    %359 = vector.extract_strided_slice %353 {offsets = [0, 96], sizes = [5, 32], strides = [1, 1]} : vector<5x320xf32> to vector<5x32xf32>
    %360 = arith.maximumf %358, %359 : vector<5x32xf32>
    %c8_278 = arith.constant 8 : index
    %c32_279 = arith.constant 32 : index
    %361 = vector.load %arg16[%c8_278, %c32_279] : memref<14x160xf32, #tpu.memory_space<vmem>>, vector<5x32xf32>
    tpu.vector_store %arg16[%c8_278, %c32_279], %360 {strides = array<i32>} : memref<14x160xf32, #tpu.memory_space<vmem>>, vector<5x32xf32>,
    %362 = vector.extract_strided_slice %353 {offsets = [0, 128], sizes = [5, 32], strides = [1, 1]} : vector<5x320xf32> to vector<5x32xf32>
    %363 = vector.extract_strided_slice %353 {offsets = [0, 160], sizes = [5, 32], strides = [1, 1]} : vector<5x320xf32> to vector<5x32xf32>
    %364 = arith.maximumf %362, %363 : vector<5x32xf32>
    %c8_280 = arith.constant 8 : index
    %c64_281 = arith.constant 64 : index
    %365 = vector.load %arg16[%c8_280, %c64_281] : memref<14x160xf32, #tpu.memory_space<vmem>>, vector<5x32xf32>
    tpu.vector_store %arg16[%c8_280, %c64_281], %364 {strides = array<i32>} : memref<14x160xf32, #tpu.memory_space<vmem>>, vector<5x32xf32>,
    %366 = vector.extract_strided_slice %353 {offsets = [0, 192], sizes = [5, 32], strides = [1, 1]} : vector<5x320xf32> to vector<5x32xf32>
    %367 = vector.extract_strided_slice %353 {offsets = [0, 224], sizes = [5, 32], strides = [1, 1]} : vector<5x320xf32> to vector<5x32xf32>
    %368 = arith.maximumf %366, %367 : vector<5x32xf32>
    %c8_282 = arith.constant 8 : index
    %c96_283 = arith.constant 96 : index
    %369 = vector.load %arg16[%c8_282, %c96_283] : memref<14x160xf32, #tpu.memory_space<vmem>>, vector<5x32xf32>
    tpu.vector_store %arg16[%c8_282, %c96_283], %368 {strides = array<i32>} : memref<14x160xf32, #tpu.memory_space<vmem>>, vector<5x32xf32>,
    %370 = vector.extract_strided_slice %353 {offsets = [0, 256], sizes = [5, 32], strides = [1, 1]} : vector<5x320xf32> to vector<5x32xf32>
    %371 = vector.extract_strided_slice %353 {offsets = [0, 288], sizes = [5, 32], strides = [1, 1]} : vector<5x320xf32> to vector<5x32xf32>
    %372 = arith.maximumf %370, %371 : vector<5x32xf32>
    %c8_284 = arith.constant 8 : index
    %c128_285 = arith.constant 128 : index
    %373 = vector.load %arg16[%c8_284, %c128_285] : memref<14x160xf32, #tpu.memory_space<vmem>>, vector<5x32xf32>
    tpu.vector_store %arg16[%c8_284, %c128_285], %372 {strides = array<i32>} : memref<14x160xf32, #tpu.memory_space<vmem>>, vector<5x32xf32>,
    %cst_286 = arith.constant 0.000000e+00 : f32
    %374 = vector.broadcast %cst_286 : f32 to vector<1x48xf32>
    %c7 = arith.constant 7 : index
    %c0_287 = arith.constant 0 : index
    %375 = vector.load %arg16[%c7, %c0_287] : memref<14x160xf32, #tpu.memory_space<vmem>>, vector<1x160xf32>
    %c0_288 = arith.constant 0 : index
    %c0_289 = arith.constant 0 : index
    %c0_290 = arith.constant 0 : index
    %376 = vector.load %arg3[%c0_288, %c0_289, %c0_290] : memref<3x160x48xbf16, #tpu.memory_space<vmem>>, vector<1x160x48xbf16>
    %377 = vector.shape_cast %376 : vector<1x160x48xbf16> to vector<160x48xbf16>
    %378 = arith.truncf %375 : vector<1x160xf32> to vector<1x160xbf16>
    %cst_291 = arith.constant dense<0.000000e+00> : vector<1x48xf32>
    %379 = tpu.matmul %378, %377, %cst_291 {dimension_numbers = #tpu.dot_dimension_numbers<[1], [0], [0], [1], [0, 0, 1, 1], [], []>} : vector<1x160xbf16>, vector<160x48xbf16>, vector<1x48xf32> -> vector<1x48xf32>
    %380 = arith.addf %374, %379 : vector<1x48xf32>
    %c8_292 = arith.constant 8 : index
    %c0_293 = arith.constant 0 : index
    %381 = vector.load %arg16[%c8_292, %c0_293] : memref<14x160xf32, #tpu.memory_space<vmem>>, vector<1x160xf32>
    %c1_294 = arith.constant 1 : index
    %c0_295 = arith.constant 0 : index
    %c0_296 = arith.constant 0 : index
    %382 = vector.load %arg3[%c1_294, %c0_295, %c0_296] : memref<3x160x48xbf16, #tpu.memory_space<vmem>>, vector<1x160x48xbf16>
    %383 = vector.shape_cast %382 : vector<1x160x48xbf16> to vector<160x48xbf16>
    %384 = arith.truncf %381 : vector<1x160xf32> to vector<1x160xbf16>
    %cst_297 = arith.constant dense<0.000000e+00> : vector<1x48xf32>
    %385 = tpu.matmul %384, %383, %cst_297 {dimension_numbers = #tpu.dot_dimension_numbers<[1], [0], [0], [1], [0, 0, 1, 1], [], []>} : vector<1x160xbf16>, vector<160x48xbf16>, vector<1x48xf32> -> vector<1x48xf32>
    %386 = arith.addf %380, %385 : vector<1x48xf32>
    %c9_298 = arith.constant 9 : index
    %c0_299 = arith.constant 0 : index
    %387 = vector.load %arg16[%c9_298, %c0_299] : memref<14x160xf32, #tpu.memory_space<vmem>>, vector<1x160xf32>
    %c2_300 = arith.constant 2 : index
    %c0_301 = arith.constant 0 : index
    %c0_302 = arith.constant 0 : index
    %388 = vector.load %arg3[%c2_300, %c0_301, %c0_302] : memref<3x160x48xbf16, #tpu.memory_space<vmem>>, vector<1x160x48xbf16>
    %389 = vector.shape_cast %388 : vector<1x160x48xbf16> to vector<160x48xbf16>
    %390 = arith.truncf %387 : vector<1x160xf32> to vector<1x160xbf16>
    %cst_303 = arith.constant dense<0.000000e+00> : vector<1x48xf32>
    %391 = tpu.matmul %390, %389, %cst_303 {dimension_numbers = #tpu.dot_dimension_numbers<[1], [0], [0], [1], [0, 0, 1, 1], [], []>} : vector<1x160xbf16>, vector<160x48xbf16>, vector<1x48xf32> -> vector<1x48xf32>
    %392 = arith.addf %386, %391 : vector<1x48xf32>
    %c0_304 = arith.constant 0 : index
    %c0_305 = arith.constant 0 : index
    %393 = vector.load %arg4[%c0_304, %c0_305] : memref<1x48xf32, #tpu.memory_space<vmem>>, vector<1x48xf32>
    %394 = arith.addf %392, %393 : vector<1x48xf32>
    %cst_306 = arith.constant 0.000000e+00 : f32
    %395 = vector.broadcast %cst_306 : f32 to vector<1x48xf32>
    %396 = arith.maximumf %394, %395 : vector<1x48xf32>
    %cst_307 = arith.constant 0.000000e+00 : f32
    %397 = vector.broadcast %cst_307 : f32 to vector<1x48xf32>
    %c9_308 = arith.constant 9 : index
    %c0_309 = arith.constant 0 : index
    %398 = vector.load %arg16[%c9_308, %c0_309] : memref<14x160xf32, #tpu.memory_space<vmem>>, vector<1x160xf32>
    %c0_310 = arith.constant 0 : index
    %c0_311 = arith.constant 0 : index
    %c0_312 = arith.constant 0 : index
    %399 = vector.load %arg3[%c0_310, %c0_311, %c0_312] : memref<3x160x48xbf16, #tpu.memory_space<vmem>>, vector<1x160x48xbf16>
    %400 = vector.shape_cast %399 : vector<1x160x48xbf16> to vector<160x48xbf16>
    %401 = arith.truncf %398 : vector<1x160xf32> to vector<1x160xbf16>
    %cst_313 = arith.constant dense<0.000000e+00> : vector<1x48xf32>
    %402 = tpu.matmul %401, %400, %cst_313 {dimension_numbers = #tpu.dot_dimension_numbers<[1], [0], [0], [1], [0, 0, 1, 1], [], []>} : vector<1x160xbf16>, vector<160x48xbf16>, vector<1x48xf32> -> vector<1x48xf32>
    %403 = arith.addf %397, %402 : vector<1x48xf32>
    %c10_314 = arith.constant 10 : index
    %c0_315 = arith.constant 0 : index
    %404 = vector.load %arg16[%c10_314, %c0_315] : memref<14x160xf32, #tpu.memory_space<vmem>>, vector<1x160xf32>
    %c1_316 = arith.constant 1 : index
    %c0_317 = arith.constant 0 : index
    %c0_318 = arith.constant 0 : index
    %405 = vector.load %arg3[%c1_316, %c0_317, %c0_318] : memref<3x160x48xbf16, #tpu.memory_space<vmem>>, vector<1x160x48xbf16>
    %406 = vector.shape_cast %405 : vector<1x160x48xbf16> to vector<160x48xbf16>
    %407 = arith.truncf %404 : vector<1x160xf32> to vector<1x160xbf16>
    %cst_319 = arith.constant dense<0.000000e+00> : vector<1x48xf32>
    %408 = tpu.matmul %407, %406, %cst_319 {dimension_numbers = #tpu.dot_dimension_numbers<[1], [0], [0], [1], [0, 0, 1, 1], [], []>} : vector<1x160xbf16>, vector<160x48xbf16>, vector<1x48xf32> -> vector<1x48xf32>
    %409 = arith.addf %403, %408 : vector<1x48xf32>
    %c11 = arith.constant 11 : index
    %c0_320 = arith.constant 0 : index
    %410 = vector.load %arg16[%c11, %c0_320] : memref<14x160xf32, #tpu.memory_space<vmem>>, vector<1x160xf32>
    %c2_321 = arith.constant 2 : index
    %c0_322 = arith.constant 0 : index
    %c0_323 = arith.constant 0 : index
    %411 = vector.load %arg3[%c2_321, %c0_322, %c0_323] : memref<3x160x48xbf16, #tpu.memory_space<vmem>>, vector<1x160x48xbf16>
    %412 = vector.shape_cast %411 : vector<1x160x48xbf16> to vector<160x48xbf16>
    %413 = arith.truncf %410 : vector<1x160xf32> to vector<1x160xbf16>
    %cst_324 = arith.constant dense<0.000000e+00> : vector<1x48xf32>
    %414 = tpu.matmul %413, %412, %cst_324 {dimension_numbers = #tpu.dot_dimension_numbers<[1], [0], [0], [1], [0, 0, 1, 1], [], []>} : vector<1x160xbf16>, vector<160x48xbf16>, vector<1x48xf32> -> vector<1x48xf32>
    %415 = arith.addf %409, %414 : vector<1x48xf32>
    %c0_325 = arith.constant 0 : index
    %c0_326 = arith.constant 0 : index
    %416 = vector.load %arg4[%c0_325, %c0_326] : memref<1x48xf32, #tpu.memory_space<vmem>>, vector<1x48xf32>
    %417 = arith.addf %415, %416 : vector<1x48xf32>
    %cst_327 = arith.constant 0.000000e+00 : f32
    %418 = vector.broadcast %cst_327 : f32 to vector<1x48xf32>
    %419 = arith.maximumf %417, %418 : vector<1x48xf32>
    %cst_328 = arith.constant 0.000000e+00 : f32
    %420 = vector.broadcast %cst_328 : f32 to vector<1x48xf32>
    %c11_329 = arith.constant 11 : index
    %c0_330 = arith.constant 0 : index
    %421 = vector.load %arg16[%c11_329, %c0_330] : memref<14x160xf32, #tpu.memory_space<vmem>>, vector<1x160xf32>
    %c0_331 = arith.constant 0 : index
    %c0_332 = arith.constant 0 : index
    %c0_333 = arith.constant 0 : index
    %422 = vector.load %arg3[%c0_331, %c0_332, %c0_333] : memref<3x160x48xbf16, #tpu.memory_space<vmem>>, vector<1x160x48xbf16>
    %423 = vector.shape_cast %422 : vector<1x160x48xbf16> to vector<160x48xbf16>
    %424 = arith.truncf %421 : vector<1x160xf32> to vector<1x160xbf16>
    %cst_334 = arith.constant dense<0.000000e+00> : vector<1x48xf32>
    %425 = tpu.matmul %424, %423, %cst_334 {dimension_numbers = #tpu.dot_dimension_numbers<[1], [0], [0], [1], [0, 0, 1, 1], [], []>} : vector<1x160xbf16>, vector<160x48xbf16>, vector<1x48xf32> -> vector<1x48xf32>
    %426 = arith.addf %420, %425 : vector<1x48xf32>
    %c12_335 = arith.constant 12 : index
    %c0_336 = arith.constant 0 : index
    %427 = vector.load %arg16[%c12_335, %c0_336] : memref<14x160xf32, #tpu.memory_space<vmem>>, vector<1x160xf32>
    %c1_337 = arith.constant 1 : index
    %c0_338 = arith.constant 0 : index
    %c0_339 = arith.constant 0 : index
    %428 = vector.load %arg3[%c1_337, %c0_338, %c0_339] : memref<3x160x48xbf16, #tpu.memory_space<vmem>>, vector<1x160x48xbf16>
    %429 = vector.shape_cast %428 : vector<1x160x48xbf16> to vector<160x48xbf16>
    %430 = arith.truncf %427 : vector<1x160xf32> to vector<1x160xbf16>
    %cst_340 = arith.constant dense<0.000000e+00> : vector<1x48xf32>
    %431 = tpu.matmul %430, %429, %cst_340 {dimension_numbers = #tpu.dot_dimension_numbers<[1], [0], [0], [1], [0, 0, 1, 1], [], []>} : vector<1x160xbf16>, vector<160x48xbf16>, vector<1x48xf32> -> vector<1x48xf32>
    %432 = arith.addf %426, %431 : vector<1x48xf32>
    %c13 = arith.constant 13 : index
    %c0_341 = arith.constant 0 : index
    %433 = vector.load %arg16[%c13, %c0_341] : memref<14x160xf32, #tpu.memory_space<vmem>>, vector<1x160xf32>
    %c2_342 = arith.constant 2 : index
    %c0_343 = arith.constant 0 : index
    %c0_344 = arith.constant 0 : index
    %434 = vector.load %arg3[%c2_342, %c0_343, %c0_344] : memref<3x160x48xbf16, #tpu.memory_space<vmem>>, vector<1x160x48xbf16>
    %435 = vector.shape_cast %434 : vector<1x160x48xbf16> to vector<160x48xbf16>
    %436 = arith.truncf %433 : vector<1x160xf32> to vector<1x160xbf16>
    %cst_345 = arith.constant dense<0.000000e+00> : vector<1x48xf32>
    %437 = tpu.matmul %436, %435, %cst_345 {dimension_numbers = #tpu.dot_dimension_numbers<[1], [0], [0], [1], [0, 0, 1, 1], [], []>} : vector<1x160xbf16>, vector<160x48xbf16>, vector<1x48xf32> -> vector<1x48xf32>
    %438 = arith.addf %432, %437 : vector<1x48xf32>
    %c0_346 = arith.constant 0 : index
    %c0_347 = arith.constant 0 : index
    %439 = vector.load %arg4[%c0_346, %c0_347] : memref<1x48xf32, #tpu.memory_space<vmem>>, vector<1x48xf32>
    %440 = arith.addf %438, %439 : vector<1x48xf32>
    %cst_348 = arith.constant 0.000000e+00 : f32
    %441 = vector.broadcast %cst_348 : f32 to vector<1x48xf32>
    %442 = arith.maximumf %440, %441 : vector<1x48xf32>
    %443 = arith.maximumf %396, %419 : vector<1x48xf32>
    %444 = arith.maximumf %419, %442 : vector<1x48xf32>
    %c0_349 = arith.constant 0 : index
    %c0_350 = arith.constant 0 : index
    %445 = vector.load %arg6[%c0_349, %c0_350] : memref<1x2xf32, #tpu.memory_space<vmem>>, vector<1x2xf32>
    %446 = vector.extract_strided_slice %443 {offsets = [0, 0], sizes = [1, 16], strides = [1, 1]} : vector<1x48xf32> to vector<1x16xf32>
    %447 = vector.extract_strided_slice %443 {offsets = [0, 16], sizes = [1, 16], strides = [1, 1]} : vector<1x48xf32> to vector<1x16xf32>
    %448 = arith.maximumf %446, %447 : vector<1x16xf32>
    %c0_351 = arith.constant 0 : index
    %c0_352 = arith.constant 0 : index
    %c0_353 = arith.constant 0 : index
    %449 = vector.load %arg5[%c0_351, %c0_352, %c0_353] : memref<4x16x2xbf16, #tpu.memory_space<vmem>>, vector<1x16x2xbf16>
    %450 = vector.shape_cast %449 : vector<1x16x2xbf16> to vector<16x2xbf16>
    %451 = arith.truncf %448 : vector<1x16xf32> to vector<1x16xbf16>
    %cst_354 = arith.constant dense<0.000000e+00> : vector<1x2xf32>
    %452 = tpu.matmul %451, %450, %cst_354 {dimension_numbers = #tpu.dot_dimension_numbers<[1], [0], [0], [1], [0, 0, 1, 1], [], []>} : vector<1x16xbf16>, vector<16x2xbf16>, vector<1x2xf32> -> vector<1x2xf32>
    %453 = arith.addf %445, %452 : vector<1x2xf32>
    %454 = vector.extract_strided_slice %443 {offsets = [0, 16], sizes = [1, 16], strides = [1, 1]} : vector<1x48xf32> to vector<1x16xf32>
    %455 = vector.extract_strided_slice %443 {offsets = [0, 32], sizes = [1, 16], strides = [1, 1]} : vector<1x48xf32> to vector<1x16xf32>
    %456 = arith.maximumf %454, %455 : vector<1x16xf32>
    %c1_355 = arith.constant 1 : index
    %c0_356 = arith.constant 0 : index
    %c0_357 = arith.constant 0 : index
    %457 = vector.load %arg5[%c1_355, %c0_356, %c0_357] : memref<4x16x2xbf16, #tpu.memory_space<vmem>>, vector<1x16x2xbf16>
    %458 = vector.shape_cast %457 : vector<1x16x2xbf16> to vector<16x2xbf16>
    %459 = arith.truncf %456 : vector<1x16xf32> to vector<1x16xbf16>
    %cst_358 = arith.constant dense<0.000000e+00> : vector<1x2xf32>
    %460 = tpu.matmul %459, %458, %cst_358 {dimension_numbers = #tpu.dot_dimension_numbers<[1], [0], [0], [1], [0, 0, 1, 1], [], []>} : vector<1x16xbf16>, vector<16x2xbf16>, vector<1x2xf32> -> vector<1x2xf32>
    %461 = arith.addf %453, %460 : vector<1x2xf32>
    %462 = vector.extract_strided_slice %444 {offsets = [0, 0], sizes = [1, 16], strides = [1, 1]} : vector<1x48xf32> to vector<1x16xf32>
    %463 = vector.extract_strided_slice %444 {offsets = [0, 16], sizes = [1, 16], strides = [1, 1]} : vector<1x48xf32> to vector<1x16xf32>
    %464 = arith.maximumf %462, %463 : vector<1x16xf32>
    %c2_359 = arith.constant 2 : index
    %c0_360 = arith.constant 0 : index
    %c0_361 = arith.constant 0 : index
    %465 = vector.load %arg5[%c2_359, %c0_360, %c0_361] : memref<4x16x2xbf16, #tpu.memory_space<vmem>>, vector<1x16x2xbf16>
    %466 = vector.shape_cast %465 : vector<1x16x2xbf16> to vector<16x2xbf16>
    %467 = arith.truncf %464 : vector<1x16xf32> to vector<1x16xbf16>
    %cst_362 = arith.constant dense<0.000000e+00> : vector<1x2xf32>
    %468 = tpu.matmul %467, %466, %cst_362 {dimension_numbers = #tpu.dot_dimension_numbers<[1], [0], [0], [1], [0, 0, 1, 1], [], []>} : vector<1x16xbf16>, vector<16x2xbf16>, vector<1x2xf32> -> vector<1x2xf32>
    %469 = arith.addf %461, %468 : vector<1x2xf32>
    %470 = vector.extract_strided_slice %444 {offsets = [0, 16], sizes = [1, 16], strides = [1, 1]} : vector<1x48xf32> to vector<1x16xf32>
    %471 = vector.extract_strided_slice %444 {offsets = [0, 32], sizes = [1, 16], strides = [1, 1]} : vector<1x48xf32> to vector<1x16xf32>
    %472 = arith.maximumf %470, %471 : vector<1x16xf32>
    %c3_363 = arith.constant 3 : index
    %c0_364 = arith.constant 0 : index
    %c0_365 = arith.constant 0 : index
    %473 = vector.load %arg5[%c3_363, %c0_364, %c0_365] : memref<4x16x2xbf16, #tpu.memory_space<vmem>>, vector<1x16x2xbf16>
    %474 = vector.shape_cast %473 : vector<1x16x2xbf16> to vector<16x2xbf16>
    %475 = arith.truncf %472 : vector<1x16xf32> to vector<1x16xbf16>
    %cst_366 = arith.constant dense<0.000000e+00> : vector<1x2xf32>
    %476 = tpu.matmul %475, %474, %cst_366 {dimension_numbers = #tpu.dot_dimension_numbers<[1], [0], [0], [1], [0, 0, 1, 1], [], []>} : vector<1x16xbf16>, vector<16x2xbf16>, vector<1x2xf32> -> vector<1x2xf32>
    %477 = arith.addf %469, %476 : vector<1x2xf32>
    %c0_367 = arith.constant 0 : index
    %c0_368 = arith.constant 0 : index
    %c0_369 = arith.constant 0 : index
    %478 = vector.load %arg7[%c0_367, %c0_368, %c0_369] : memref<2x2x32xbf16, #tpu.memory_space<vmem>>, vector<1x2x32xbf16>
    %479 = vector.shape_cast %478 : vector<1x2x32xbf16> to vector<2x32xbf16>
    %480 = arith.truncf %477 : vector<1x2xf32> to vector<1x2xbf16>
    %cst_370 = arith.constant dense<0.000000e+00> : vector<1x32xf32>
    %481 = tpu.matmul %480, %479, %cst_370 {dimension_numbers = #tpu.dot_dimension_numbers<[1], [0], [0], [1], [0, 0, 1, 1], [], []>} : vector<1x2xbf16>, vector<2x32xbf16>, vector<1x32xf32> -> vector<1x32xf32>
    %c0_371 = arith.constant 0 : index
    %c0_372 = arith.constant 0 : index
    %c0_373 = arith.constant 0 : index
    %482 = vector.load %arg8[%c0_371, %c0_372, %c0_373] : memref<2x1x32xf32, #tpu.memory_space<vmem>>, vector<1x1x32xf32>
    %483 = vector.shape_cast %482 : vector<1x1x32xf32> to vector<1x32xf32>
    %484 = arith.addf %481, %483 : vector<1x32xf32>
    %c9_374 = arith.constant 9 : index
    %c0_375 = arith.constant 0 : index
    %485 = vector.load %arg17[%c9_374, %c0_375] : memref<14x32xf32, #tpu.memory_space<vmem>>, vector<1x32xf32>
    tpu.vector_store %arg17[%c9_374, %c0_375], %484 {strides = array<i32>} : memref<14x32xf32, #tpu.memory_space<vmem>>, vector<1x32xf32>,
    %c1_376 = arith.constant 1 : index
    %c0_377 = arith.constant 0 : index
    %c0_378 = arith.constant 0 : index
    %486 = vector.load %arg7[%c1_376, %c0_377, %c0_378] : memref<2x2x32xbf16, #tpu.memory_space<vmem>>, vector<1x2x32xbf16>
    %487 = vector.shape_cast %486 : vector<1x2x32xbf16> to vector<2x32xbf16>
    %488 = arith.truncf %477 : vector<1x2xf32> to vector<1x2xbf16>
    %cst_379 = arith.constant dense<0.000000e+00> : vector<1x32xf32>
    %489 = tpu.matmul %488, %487, %cst_379 {dimension_numbers = #tpu.dot_dimension_numbers<[1], [0], [0], [1], [0, 0, 1, 1], [], []>} : vector<1x2xbf16>, vector<2x32xbf16>, vector<1x32xf32> -> vector<1x32xf32>
    %c1_380 = arith.constant 1 : index
    %c0_381 = arith.constant 0 : index
    %c0_382 = arith.constant 0 : index
    %490 = vector.load %arg8[%c1_380, %c0_381, %c0_382] : memref<2x1x32xf32, #tpu.memory_space<vmem>>, vector<1x1x32xf32>
    %491 = vector.shape_cast %490 : vector<1x1x32xf32> to vector<1x32xf32>
    %492 = arith.addf %489, %491 : vector<1x32xf32>
    %c11_383 = arith.constant 11 : index
    %c0_384 = arith.constant 0 : index
    %493 = vector.load %arg17[%c11_383, %c0_384] : memref<14x32xf32, #tpu.memory_space<vmem>>, vector<1x32xf32>
    tpu.vector_store %arg17[%c11_383, %c0_384], %492 {strides = array<i32>} : memref<14x32xf32, #tpu.memory_space<vmem>>, vector<1x32xf32>,
    %cst_385 = arith.constant 0.000000e+00 : f32
    %494 = vector.broadcast %cst_385 : f32 to vector<5x160xf32>
    %c7_386 = arith.constant 7 : index
    %c0_387 = arith.constant 0 : index
    %495 = vector.load %arg17[%c7_386, %c0_387] : memref<14x32xf32, #tpu.memory_space<vmem>>, vector<5x32xf32>
    %c0_388 = arith.constant 0 : index
    %c0_389 = arith.constant 0 : index
    %c0_390 = arith.constant 0 : index
    %496 = vector.load %arg9[%c0_388, %c0_389, %c0_390] : memref<3x32x160xbf16, #tpu.memory_space<vmem>>, vector<1x32x160xbf16>
    %497 = vector.shape_cast %496 : vector<1x32x160xbf16> to vector<32x160xbf16>
    %498 = arith.truncf %495 : vector<5x32xf32> to vector<5x32xbf16>
    %cst_391 = arith.constant dense<0.000000e+00> : vector<5x160xf32>
    %499 = tpu.matmul %498, %497, %cst_391 {dimension_numbers = #tpu.dot_dimension_numbers<[1], [0], [0], [1], [0, 0, 1, 1], [], []>} : vector<5x32xbf16>, vector<32x160xbf16>, vector<5x160xf32> -> vector<5x160xf32>
    %500 = arith.addf %494, %499 : vector<5x160xf32>
    %c8_392 = arith.constant 8 : index
    %c0_393 = arith.constant 0 : index
    %501 = vector.load %arg17[%c8_392, %c0_393] : memref<14x32xf32, #tpu.memory_space<vmem>>, vector<5x32xf32>
    %c1_394 = arith.constant 1 : index
    %c0_395 = arith.constant 0 : index
    %c0_396 = arith.constant 0 : index
    %502 = vector.load %arg9[%c1_394, %c0_395, %c0_396] : memref<3x32x160xbf16, #tpu.memory_space<vmem>>, vector<1x32x160xbf16>
    %503 = vector.shape_cast %502 : vector<1x32x160xbf16> to vector<32x160xbf16>
    %504 = arith.truncf %501 : vector<5x32xf32> to vector<5x32xbf16>
    %cst_397 = arith.constant dense<0.000000e+00> : vector<5x160xf32>
    %505 = tpu.matmul %504, %503, %cst_397 {dimension_numbers = #tpu.dot_dimension_numbers<[1], [0], [0], [1], [0, 0, 1, 1], [], []>} : vector<5x32xbf16>, vector<32x160xbf16>, vector<5x160xf32> -> vector<5x160xf32>
    %506 = arith.addf %500, %505 : vector<5x160xf32>
    %c9_398 = arith.constant 9 : index
    %c0_399 = arith.constant 0 : index
    %507 = vector.load %arg17[%c9_398, %c0_399] : memref<14x32xf32, #tpu.memory_space<vmem>>, vector<5x32xf32>
    %c2_400 = arith.constant 2 : index
    %c0_401 = arith.constant 0 : index
    %c0_402 = arith.constant 0 : index
    %508 = vector.load %arg9[%c2_400, %c0_401, %c0_402] : memref<3x32x160xbf16, #tpu.memory_space<vmem>>, vector<1x32x160xbf16>
    %509 = vector.shape_cast %508 : vector<1x32x160xbf16> to vector<32x160xbf16>
    %510 = arith.truncf %507 : vector<5x32xf32> to vector<5x32xbf16>
    %cst_403 = arith.constant dense<0.000000e+00> : vector<5x160xf32>
    %511 = tpu.matmul %510, %509, %cst_403 {dimension_numbers = #tpu.dot_dimension_numbers<[1], [0], [0], [1], [0, 0, 1, 1], [], []>} : vector<5x32xbf16>, vector<32x160xbf16>, vector<5x160xf32> -> vector<5x160xf32>
    %512 = arith.addf %506, %511 : vector<5x160xf32>
    %c0_404 = arith.constant 0 : index
    %c0_405 = arith.constant 0 : index
    %513 = vector.load %arg10[%c0_404, %c0_405] : memref<1x160xf32, #tpu.memory_space<vmem>>, vector<1x160xf32>
    %514 = vector.broadcast %513 : vector<1x160xf32> to vector<5x160xf32>
    %515 = arith.addf %512, %514 : vector<5x160xf32>
    %cst_406 = arith.constant 0.000000e+00 : f32
    %516 = vector.broadcast %cst_406 : f32 to vector<5x160xf32>
    %517 = arith.maximumf %515, %516 : vector<5x160xf32>
    %518 = vector.extract_strided_slice %517 {offsets = [0, 0], sizes = [1, 160], strides = [1, 1]} : vector<5x160xf32> to vector<1x160xf32>
    %c22_407 = arith.constant 22 : index
    %c0_408 = arith.constant 0 : index
    %519 = vector.load %arg18[%c22_407, %c0_408] : memref<38x160xf32, #tpu.memory_space<vmem>>, vector<1x160xf32>
    tpu.vector_store %arg18[%c22_407, %c0_408], %518 {strides = array<i32>} : memref<38x160xf32, #tpu.memory_space<vmem>>, vector<1x160xf32>,
    %520 = vector.extract_strided_slice %517 {offsets = [1, 0], sizes = [1, 160], strides = [1, 1]} : vector<5x160xf32> to vector<1x160xf32>
    %c25_409 = arith.constant 25 : index
    %c0_410 = arith.constant 0 : index
    %521 = vector.load %arg18[%c25_409, %c0_410] : memref<38x160xf32, #tpu.memory_space<vmem>>, vector<1x160xf32>
    tpu.vector_store %arg18[%c25_409, %c0_410], %520 {strides = array<i32>} : memref<38x160xf32, #tpu.memory_space<vmem>>, vector<1x160xf32>,
    %522 = vector.extract_strided_slice %517 {offsets = [2, 0], sizes = [1, 160], strides = [1, 1]} : vector<5x160xf32> to vector<1x160xf32>
    %c28_411 = arith.constant 28 : index
    %c0_412 = arith.constant 0 : index
    %523 = vector.load %arg18[%c28_411, %c0_412] : memref<38x160xf32, #tpu.memory_space<vmem>>, vector<1x160xf32>
    tpu.vector_store %arg18[%c28_411, %c0_412], %522 {strides = array<i32>} : memref<38x160xf32, #tpu.memory_space<vmem>>, vector<1x160xf32>,
    %524 = vector.extract_strided_slice %517 {offsets = [3, 0], sizes = [1, 160], strides = [1, 1]} : vector<5x160xf32> to vector<1x160xf32>
    %c31 = arith.constant 31 : index
    %c0_413 = arith.constant 0 : index
    %525 = vector.load %arg18[%c31, %c0_413] : memref<38x160xf32, #tpu.memory_space<vmem>>, vector<1x160xf32>
    tpu.vector_store %arg18[%c31, %c0_413], %524 {strides = array<i32>} : memref<38x160xf32, #tpu.memory_space<vmem>>, vector<1x160xf32>,
    %526 = vector.extract_strided_slice %517 {offsets = [4, 0], sizes = [1, 160], strides = [1, 1]} : vector<5x160xf32> to vector<1x160xf32>
    %c34 = arith.constant 34 : index
    %c0_414 = arith.constant 0 : index
    %527 = vector.load %arg18[%c34, %c0_414] : memref<38x160xf32, #tpu.memory_space<vmem>>, vector<1x160xf32>
    tpu.vector_store %arg18[%c34, %c0_414], %526 {strides = array<i32>} : memref<38x160xf32, #tpu.memory_space<vmem>>, vector<1x160xf32>,
    %cst_415 = arith.constant 0.000000e+00 : f32
    %528 = vector.broadcast %cst_415 : f32 to vector<15x600xf32>
    %c19 = arith.constant 19 : index
    %c0_416 = arith.constant 0 : index
    %529 = vector.load %arg18[%c19, %c0_416] : memref<38x160xf32, #tpu.memory_space<vmem>>, vector<15x160xf32>
    %c0_417 = arith.constant 0 : index
    %c0_418 = arith.constant 0 : index
    %c0_419 = arith.constant 0 : index
    %530 = vector.load %arg11[%c0_417, %c0_418, %c0_419] : memref<5x160x600xbf16, #tpu.memory_space<vmem>>, vector<1x160x600xbf16>
    %531 = vector.shape_cast %530 : vector<1x160x600xbf16> to vector<160x600xbf16>
    %532 = arith.truncf %529 : vector<15x160xf32> to vector<15x160xbf16>
    %cst_420 = arith.constant dense<0.000000e+00> : vector<15x600xf32>
    %533 = tpu.matmul %532, %531, %cst_420 {dimension_numbers = #tpu.dot_dimension_numbers<[1], [0], [0], [1], [0, 0, 1, 1], [], []>} : vector<15x160xbf16>, vector<160x600xbf16>, vector<15x600xf32> -> vector<15x600xf32>
    %534 = arith.addf %528, %533 : vector<15x600xf32>
    %c20_421 = arith.constant 20 : index
    %c0_422 = arith.constant 0 : index
    %535 = vector.load %arg18[%c20_421, %c0_422] : memref<38x160xf32, #tpu.memory_space<vmem>>, vector<15x160xf32>
    %c1_423 = arith.constant 1 : index
    %c0_424 = arith.constant 0 : index
    %c0_425 = arith.constant 0 : index
    %536 = vector.load %arg11[%c1_423, %c0_424, %c0_425] : memref<5x160x600xbf16, #tpu.memory_space<vmem>>, vector<1x160x600xbf16>
    %537 = vector.shape_cast %536 : vector<1x160x600xbf16> to vector<160x600xbf16>
    %538 = arith.truncf %535 : vector<15x160xf32> to vector<15x160xbf16>
    %cst_426 = arith.constant dense<0.000000e+00> : vector<15x600xf32>
    %539 = tpu.matmul %538, %537, %cst_426 {dimension_numbers = #tpu.dot_dimension_numbers<[1], [0], [0], [1], [0, 0, 1, 1], [], []>} : vector<15x160xbf16>, vector<160x600xbf16>, vector<15x600xf32> -> vector<15x600xf32>
    %540 = arith.addf %534, %539 : vector<15x600xf32>
    %c21 = arith.constant 21 : index
    %c0_427 = arith.constant 0 : index
    %541 = vector.load %arg18[%c21, %c0_427] : memref<38x160xf32, #tpu.memory_space<vmem>>, vector<15x160xf32>
    %c2_428 = arith.constant 2 : index
    %c0_429 = arith.constant 0 : index
    %c0_430 = arith.constant 0 : index
    %542 = vector.load %arg11[%c2_428, %c0_429, %c0_430] : memref<5x160x600xbf16, #tpu.memory_space<vmem>>, vector<1x160x600xbf16>
    %543 = vector.shape_cast %542 : vector<1x160x600xbf16> to vector<160x600xbf16>
    %544 = arith.truncf %541 : vector<15x160xf32> to vector<15x160xbf16>
    %cst_431 = arith.constant dense<0.000000e+00> : vector<15x600xf32>
    %545 = tpu.matmul %544, %543, %cst_431 {dimension_numbers = #tpu.dot_dimension_numbers<[1], [0], [0], [1], [0, 0, 1, 1], [], []>} : vector<15x160xbf16>, vector<160x600xbf16>, vector<15x600xf32> -> vector<15x600xf32>
    %546 = arith.addf %540, %545 : vector<15x600xf32>
    %c22_432 = arith.constant 22 : index
    %c0_433 = arith.constant 0 : index
    %547 = vector.load %arg18[%c22_432, %c0_433] : memref<38x160xf32, #tpu.memory_space<vmem>>, vector<15x160xf32>
    %c3_434 = arith.constant 3 : index
    %c0_435 = arith.constant 0 : index
    %c0_436 = arith.constant 0 : index
    %548 = vector.load %arg11[%c3_434, %c0_435, %c0_436] : memref<5x160x600xbf16, #tpu.memory_space<vmem>>, vector<1x160x600xbf16>
    %549 = vector.shape_cast %548 : vector<1x160x600xbf16> to vector<160x600xbf16>
    %550 = arith.truncf %547 : vector<15x160xf32> to vector<15x160xbf16>
    %cst_437 = arith.constant dense<0.000000e+00> : vector<15x600xf32>
    %551 = tpu.matmul %550, %549, %cst_437 {dimension_numbers = #tpu.dot_dimension_numbers<[1], [0], [0], [1], [0, 0, 1, 1], [], []>} : vector<15x160xbf16>, vector<160x600xbf16>, vector<15x600xf32> -> vector<15x600xf32>
    %552 = arith.addf %546, %551 : vector<15x600xf32>
    %c23 = arith.constant 23 : index
    %c0_438 = arith.constant 0 : index
    %553 = vector.load %arg18[%c23, %c0_438] : memref<38x160xf32, #tpu.memory_space<vmem>>, vector<15x160xf32>
    %c4_439 = arith.constant 4 : index
    %c0_440 = arith.constant 0 : index
    %c0_441 = arith.constant 0 : index
    %554 = vector.load %arg11[%c4_439, %c0_440, %c0_441] : memref<5x160x600xbf16, #tpu.memory_space<vmem>>, vector<1x160x600xbf16>
    %555 = vector.shape_cast %554 : vector<1x160x600xbf16> to vector<160x600xbf16>
    %556 = arith.truncf %553 : vector<15x160xf32> to vector<15x160xbf16>
    %cst_442 = arith.constant dense<0.000000e+00> : vector<15x600xf32>
    %557 = tpu.matmul %556, %555, %cst_442 {dimension_numbers = #tpu.dot_dimension_numbers<[1], [0], [0], [1], [0, 0, 1, 1], [], []>} : vector<15x160xbf16>, vector<160x600xbf16>, vector<15x600xf32> -> vector<15x600xf32>
    %558 = arith.addf %552, %557 : vector<15x600xf32>
    %c0_443 = arith.constant 0 : index
    %c0_444 = arith.constant 0 : index
    %559 = vector.load %arg12[%c0_443, %c0_444] : memref<1x600xf32, #tpu.memory_space<vmem>>, vector<1x600xf32>
    %560 = vector.broadcast %559 : vector<1x600xf32> to vector<15x600xf32>
    %561 = arith.addf %558, %560 : vector<15x600xf32>
    %cst_445 = arith.constant 0.000000e+00 : f32
    %562 = vector.broadcast %cst_445 : f32 to vector<15x600xf32>
    %563 = arith.maximumf %561, %562 : vector<15x600xf32>
    %564 = vector.extract_strided_slice %563 {offsets = [0, 0], sizes = [1, 600], strides = [1, 1]} : vector<15x600xf32> to vector<1x600xf32>
    %c29 = arith.constant 29 : index
    %c0_446 = arith.constant 0 : index
    %565 = vector.load %arg19[%c29, %c0_446] : memref<58x600xf32, #tpu.memory_space<vmem>>, vector<1x600xf32>
    tpu.vector_store %arg19[%c29, %c0_446], %564 {strides = array<i32>} : memref<58x600xf32, #tpu.memory_space<vmem>>, vector<1x600xf32>,
    %566 = vector.extract_strided_slice %563 {offsets = [1, 0], sizes = [1, 600], strides = [1, 1]} : vector<15x600xf32> to vector<1x600xf32>
    %c31_447 = arith.constant 31 : index
    %c0_448 = arith.constant 0 : index
    %567 = vector.load %arg19[%c31_447, %c0_448] : memref<58x600xf32, #tpu.memory_space<vmem>>, vector<1x600xf32>
    tpu.vector_store %arg19[%c31_447, %c0_448], %566 {strides = array<i32>} : memref<58x600xf32, #tpu.memory_space<vmem>>, vector<1x600xf32>,
    %568 = vector.extract_strided_slice %563 {offsets = [2, 0], sizes = [1, 600], strides = [1, 1]} : vector<15x600xf32> to vector<1x600xf32>
    %c33 = arith.constant 33 : index
    %c0_449 = arith.constant 0 : index
    %569 = vector.load %arg19[%c33, %c0_449] : memref<58x600xf32, #tpu.memory_space<vmem>>, vector<1x600xf32>
    tpu.vector_store %arg19[%c33, %c0_449], %568 {strides = array<i32>} : memref<58x600xf32, #tpu.memory_space<vmem>>, vector<1x600xf32>,
    %570 = vector.extract_strided_slice %563 {offsets = [3, 0], sizes = [1, 600], strides = [1, 1]} : vector<15x600xf32> to vector<1x600xf32>
    %c35_450 = arith.constant 35 : index
    %c0_451 = arith.constant 0 : index
    %571 = vector.load %arg19[%c35_450, %c0_451] : memref<58x600xf32, #tpu.memory_space<vmem>>, vector<1x600xf32>
    tpu.vector_store %arg19[%c35_450, %c0_451], %570 {strides = array<i32>} : memref<58x600xf32, #tpu.memory_space<vmem>>, vector<1x600xf32>,
    %572 = vector.extract_strided_slice %563 {offsets = [4, 0], sizes = [1, 600], strides = [1, 1]} : vector<15x600xf32> to vector<1x600xf32>
    %c37 = arith.constant 37 : index
    %c0_452 = arith.constant 0 : index
    %573 = vector.load %arg19[%c37, %c0_452] : memref<58x600xf32, #tpu.memory_space<vmem>>, vector<1x600xf32>
    tpu.vector_store %arg19[%c37, %c0_452], %572 {strides = array<i32>} : memref<58x600xf32, #tpu.memory_space<vmem>>, vector<1x600xf32>,
    %574 = vector.extract_strided_slice %563 {offsets = [5, 0], sizes = [1, 600], strides = [1, 1]} : vector<15x600xf32> to vector<1x600xf32>
    %c39 = arith.constant 39 : index
    %c0_453 = arith.constant 0 : index
    %575 = vector.load %arg19[%c39, %c0_453] : memref<58x600xf32, #tpu.memory_space<vmem>>, vector<1x600xf32>
    tpu.vector_store %arg19[%c39, %c0_453], %574 {strides = array<i32>} : memref<58x600xf32, #tpu.memory_space<vmem>>, vector<1x600xf32>,
    %576 = vector.extract_strided_slice %563 {offsets = [6, 0], sizes = [1, 600], strides = [1, 1]} : vector<15x600xf32> to vector<1x600xf32>
    %c41 = arith.constant 41 : index
    %c0_454 = arith.constant 0 : index
    %577 = vector.load %arg19[%c41, %c0_454] : memref<58x600xf32, #tpu.memory_space<vmem>>, vector<1x600xf32>
    tpu.vector_store %arg19[%c41, %c0_454], %576 {strides = array<i32>} : memref<58x600xf32, #tpu.memory_space<vmem>>, vector<1x600xf32>,
    %578 = vector.extract_strided_slice %563 {offsets = [7, 0], sizes = [1, 600], strides = [1, 1]} : vector<15x600xf32> to vector<1x600xf32>
    %c43 = arith.constant 43 : index
    %c0_455 = arith.constant 0 : index
    %579 = vector.load %arg19[%c43, %c0_455] : memref<58x600xf32, #tpu.memory_space<vmem>>, vector<1x600xf32>
    tpu.vector_store %arg19[%c43, %c0_455], %578 {strides = array<i32>} : memref<58x600xf32, #tpu.memory_space<vmem>>, vector<1x600xf32>,
    %580 = vector.extract_strided_slice %563 {offsets = [8, 0], sizes = [1, 600], strides = [1, 1]} : vector<15x600xf32> to vector<1x600xf32>
    %c45_456 = arith.constant 45 : index
    %c0_457 = arith.constant 0 : index
    %581 = vector.load %arg19[%c45_456, %c0_457] : memref<58x600xf32, #tpu.memory_space<vmem>>, vector<1x600xf32>
    tpu.vector_store %arg19[%c45_456, %c0_457], %580 {strides = array<i32>} : memref<58x600xf32, #tpu.memory_space<vmem>>, vector<1x600xf32>,
    %582 = vector.extract_strided_slice %563 {offsets = [9, 0], sizes = [1, 600], strides = [1, 1]} : vector<15x600xf32> to vector<1x600xf32>
    %c47 = arith.constant 47 : index
    %c0_458 = arith.constant 0 : index
    %583 = vector.load %arg19[%c47, %c0_458] : memref<58x600xf32, #tpu.memory_space<vmem>>, vector<1x600xf32>
    tpu.vector_store %arg19[%c47, %c0_458], %582 {strides = array<i32>} : memref<58x600xf32, #tpu.memory_space<vmem>>, vector<1x600xf32>,
    %584 = vector.extract_strided_slice %563 {offsets = [10, 0], sizes = [1, 600], strides = [1, 1]} : vector<15x600xf32> to vector<1x600xf32>
    %c49 = arith.constant 49 : index
    %c0_459 = arith.constant 0 : index
    %585 = vector.load %arg19[%c49, %c0_459] : memref<58x600xf32, #tpu.memory_space<vmem>>, vector<1x600xf32>
    tpu.vector_store %arg19[%c49, %c0_459], %584 {strides = array<i32>} : memref<58x600xf32, #tpu.memory_space<vmem>>, vector<1x600xf32>,
    %586 = vector.extract_strided_slice %563 {offsets = [11, 0], sizes = [1, 600], strides = [1, 1]} : vector<15x600xf32> to vector<1x600xf32>
    %c51 = arith.constant 51 : index
    %c0_460 = arith.constant 0 : index
    %587 = vector.load %arg19[%c51, %c0_460] : memref<58x600xf32, #tpu.memory_space<vmem>>, vector<1x600xf32>
    tpu.vector_store %arg19[%c51, %c0_460], %586 {strides = array<i32>} : memref<58x600xf32, #tpu.memory_space<vmem>>, vector<1x600xf32>,
    %588 = vector.extract_strided_slice %563 {offsets = [12, 0], sizes = [1, 600], strides = [1, 1]} : vector<15x600xf32> to vector<1x600xf32>
    %c53 = arith.constant 53 : index
    %c0_461 = arith.constant 0 : index
    %589 = vector.load %arg19[%c53, %c0_461] : memref<58x600xf32, #tpu.memory_space<vmem>>, vector<1x600xf32>
    tpu.vector_store %arg19[%c53, %c0_461], %588 {strides = array<i32>} : memref<58x600xf32, #tpu.memory_space<vmem>>, vector<1x600xf32>,
    %590 = vector.extract_strided_slice %563 {offsets = [13, 0], sizes = [1, 600], strides = [1, 1]} : vector<15x600xf32> to vector<1x600xf32>
    %c55_462 = arith.constant 55 : index
    %c0_463 = arith.constant 0 : index
    %591 = vector.load %arg19[%c55_462, %c0_463] : memref<58x600xf32, #tpu.memory_space<vmem>>, vector<1x600xf32>
    tpu.vector_store %arg19[%c55_462, %c0_463], %590 {strides = array<i32>} : memref<58x600xf32, #tpu.memory_space<vmem>>, vector<1x600xf32>,
    %592 = vector.extract_strided_slice %563 {offsets = [14, 0], sizes = [1, 600], strides = [1, 1]} : vector<15x600xf32> to vector<1x600xf32>
    %c57 = arith.constant 57 : index
    %c0_464 = arith.constant 0 : index
    %593 = vector.load %arg19[%c57, %c0_464] : memref<58x600xf32, #tpu.memory_space<vmem>>, vector<1x600xf32>
    tpu.vector_store %arg19[%c57, %c0_464], %592 {strides = array<i32>} : memref<58x600xf32, #tpu.memory_space<vmem>>, vector<1x600xf32>,
    %cst_465 = arith.constant 0.000000e+00 : f32
    %594 = vector.broadcast %cst_465 : f32 to vector<28x28xf32>
    %c29_466 = arith.constant 29 : index
    %c0_467 = arith.constant 0 : index
    %595 = vector.load %arg19[%c29_466, %c0_467] : memref<58x600xf32, #tpu.memory_space<vmem>>, vector<28x600xf32>
    %c0_468 = arith.constant 0 : index
    %c0_469 = arith.constant 0 : index
    %c0_470 = arith.constant 0 : index
    %596 = vector.load %arg13[%c0_468, %c0_469, %c0_470] : memref<2x600x28xbf16, #tpu.memory_space<vmem>>, vector<1x600x28xbf16>
    %597 = vector.shape_cast %596 : vector<1x600x28xbf16> to vector<600x28xbf16>
    %598 = arith.truncf %595 : vector<28x600xf32> to vector<28x600xbf16>
    %cst_471 = arith.constant dense<0.000000e+00> : vector<28x28xf32>
    %599 = tpu.matmul %598, %597, %cst_471 {dimension_numbers = #tpu.dot_dimension_numbers<[1], [0], [0], [1], [0, 0, 1, 1], [], []>} : vector<28x600xbf16>, vector<600x28xbf16>, vector<28x28xf32> -> vector<28x28xf32>
    %600 = arith.addf %594, %599 : vector<28x28xf32>
    %c30_472 = arith.constant 30 : index
    %c0_473 = arith.constant 0 : index
    %601 = vector.load %arg19[%c30_472, %c0_473] : memref<58x600xf32, #tpu.memory_space<vmem>>, vector<28x600xf32>
    %c1_474 = arith.constant 1 : index
    %c0_475 = arith.constant 0 : index
    %c0_476 = arith.constant 0 : index
    %602 = vector.load %arg13[%c1_474, %c0_475, %c0_476] : memref<2x600x28xbf16, #tpu.memory_space<vmem>>, vector<1x600x28xbf16>
    %603 = vector.shape_cast %602 : vector<1x600x28xbf16> to vector<600x28xbf16>
    %604 = arith.truncf %601 : vector<28x600xf32> to vector<28x600xbf16>
    %cst_477 = arith.constant dense<0.000000e+00> : vector<28x28xf32>
    %605 = tpu.matmul %604, %603, %cst_477 {dimension_numbers = #tpu.dot_dimension_numbers<[1], [0], [0], [1], [0, 0, 1, 1], [], []>} : vector<28x600xbf16>, vector<600x28xbf16>, vector<28x28xf32> -> vector<28x28xf32>
    %606 = arith.addf %600, %605 : vector<28x28xf32>
    %c0_478 = arith.constant 0 : index
    %c0_479 = arith.constant 0 : index
    %607 = vector.load %arg14[%c0_478, %c0_479] : memref<1x28xf32, #tpu.memory_space<vmem>>, vector<1x28xf32>
    %608 = vector.broadcast %607 : vector<1x28xf32> to vector<28x28xf32>
    %609 = arith.addf %606, %608 : vector<28x28xf32>
    %610 = math.tanh %609 : vector<28x28xf32>
    %c1_480 = arith.constant 1 : index
    %c0_481 = arith.constant 0 : index
    %c0_482 = arith.constant 0 : index
    %611 = vector.load %arg15[%c1_480, %c0_481, %c0_482] : memref<2x28x28xf32, #tpu.memory_space<vmem>>, vector<1x28x28xf32>
    %612 = vector.shape_cast %611 : vector<1x28x28xf32> to vector<28x28xf32>
    %613 = vector.shape_cast %610 : vector<28x28xf32> to vector<1x28x28xf32>
    tpu.vector_store %arg15[%c1_480, %c0_481, %c0_482], %613 {strides = array<i32>} : memref<2x28x28xf32, #tpu.memory_space<vmem>>, vector<1x28x28xf32>,
    return
  }
}

</mosaic_0001>

<bundles_post_ra>
// kernel: vae_forward.1
= control target key start
LH: loop header
LB: loop body
LE: loop exit
PB: predicated region body
PF: predicated region fallthrough
CT: control target
= control target key end

     0   :  { %20 = vsyncpa [#allocation7], 0  ;;  %s14904_s18 = smov [#allocation6]   ;;  %s17604_s0 = inlined_call_operand.vmem [shape: f32[60,28], index: 0, kind: input, shape index: {}]   ;;  %s17605_s1 = inlined_call_operand.vmem [shape: bf16[3,28,320], index: 1, kind: input, shape index: {}]   ;;  %s17606_s2 = inlined_call_operand.vmem [shape: f32[1,320], index: 2, kind: input, shape index: {}]   ;;  %s17607_s3 = inlined_call_operand.vmem [shape: bf16[3,160,48], index: 3, kind: input, shape index: {}]   ;;  %s17608_s4 = inlined_call_operand.vmem [shape: f32[1,48], index: 4, kind: input, shape index: {}]   ;;  %s17609_s5 = inlined_call_operand.vmem [shape: bf16[4,16,2], index: 5, kind: input, shape index: {}]   ;;  %s17610_s6 = inlined_call_operand.vmem [shape: f32[1,2], index: 6, kind: input, shape index: {}]   ;;  %s17611_s7 = inlined_call_operand.vmem [shape: bf16[2,2,32], index: 7, kind: input, shape index: {}]   ;;  %s17612_s8 = inlined_call_operand.vmem [shape: f32[2,1,32], index: 8, kind: input, shape index: {}]   ;;  %s17613_s9 = inlined_call_operand.vmem [shape: bf16[3,32,160], index: 9, kind: input, shape index: {}]   ;;  %s17614_s10 = inlined_call_operand.vmem [shape: f32[1,160], index: 10, kind: input, shape index: {}]   ;;  %s17615_s11 = inlined_call_operand.hbm [shape: bf16[5,160,600], index: 11, kind: input, shape index: {}]   ;;  %s17616_s12 = inlined_call_operand.vmem [shape: f32[1,600], index: 12, kind: input, shape index: {}]   ;;  %s17617_s13 = inlined_call_operand.vmem [shape: bf16[2,600,28], index: 13, kind: input, shape index: {}]   ;;  %s17618_s14 = inlined_call_operand.vmem [shape: f32[1,28], index: 14, kind: input, shape index: {}]   ;;  %s17619_s15 = inlined_call_operand.vmem [shape: f32[2,28,28], index: 15, kind: output, shape index: {}]  }
   0x1   :  { %s48_s19 = sshll.u32 %s14904_s18, 4  ;;  %s49_s19 = int_to_ptr.vmem [resolvable:$true] %s48_s19 }
   0x2   :  { %s14890_s20 = scalar_lea.vmem %s49_s19, 32000  ;;  %p14895_p1 = scmp.lt.s32.totalorder %s49_s19, %s49_s19 }
   0x3   :  { %p14891_p0 = scmp.ne.s32.totalorder %s49_s19, %s14890_s20  ;;  %p14896_p2 = scmp.lt.s32.totalorder %s14890_s20, %s14890_s20 }
   0x5   :  { %p14897_p3 = por %p14896_p2, %p14895_p1 }
   0x7   :  { %p14898_p4 = pnand %p14897_p3, %p14891_p0 }
   0x9   :  { %14901 = shalt.err (!%p14898_p4)
}
   0xa   :  { %s14905_s21 = smov 320   ;;  %s14906_s22 = smov 20  }
   0xb   :  { %54 = dma.hbm_to_vmem [thread:$0]  %s17615_s11, 32000, %s49_s19, [#allocation7], %s14905_s21, %s14905_s21, %s14906_s22  }
   0xc   :  { %14902 = dma.done.wait [#allocation7], 32000  }
   0xd   :  { %14903 = vsyncadd [#allocation7], 4294935296  ;;  %v14907_v0 = vmov 0   ;;  %v14908_v1 = vmov 0.0   ;;  %vm181_vm0 = vcmask 1045504   ;;  %vm17621_vm1 = vcmask 228352  }
   0xe   :  { %223 = vmatprep.mubr.bf16.mxu1 %v14907_v0  ;;  %345 = vmatprep.mubr.bf16.mxu0 %v14907_v0  ;;  %65 = vst [vmem:[#allocation2] sm:$0xff] %v14908_v1  ;;  %68 = vst [vmem:[#allocation2 + $0x10] sm:$0x3f] %v14908_v1  ;;  %v13841_v2 = vld [vmem:[%s17605_s1 + $0x4c] ss:$12 sps:$4 sm:$0x3f]   ;;  %v791_v56 = vlaneseq }
   0xf   :  { %73 = vst [vmem:[#allocation4] sm:$0xff] %v14908_v1  ;;  %75 = vst [vmem:[#allocation4 + $0x10] sm:$0xff] %v14908_v1  ;;  %v13843_v3 = vld [vmem:[%s17605_s1 + $0x1c] ss:$12 sps:$4 sm:$0x3f]   ;;  %12102 = vmatprep.subr.msk.bf16.mxu1 %vm181_vm0, %v13841_v2  ;;  %vm14909_vm2 = vmmov 0  }
  0x10   :  { %77 = vst [vmem:[#allocation4 + $0x20] sm:$0xff] %v14908_v1  ;;  %79 = vst [vmem:[#allocation4 + $0x30] sm:$0xff] %v14908_v1  ;;  %v13845_v4 = vld [vmem:[%s17605_s1 + $0x48] ss:$12 sps:$4 sm:$0x3f]   ;;  %12111 = vmatprep.subr.msk.bf16.mxu0 %vm181_vm0, %v13843_v3  ;;  %v15166_v61 = vshrl.u32 %v791_v56, 7 }
  0x11   :  { %81 = vst [vmem:[#allocation4 + $0x40] sm:$0x3f] %v14908_v1  ;;  %83 = vst [vmem:[#allocation5] sm:$0xff] %v14908_v1  ;;  %v13846_v5 = vld [vmem:[%s17605_s1 + $0x18] ss:$12 sps:$4 sm:$0x3f]  }
  0x12   :  { %84 = vst [vmem:[#allocation5 + $0x8] sm:$0xff] %v14908_v1  ;;  %85 = vst [vmem:[#allocation5 + $0x10] sm:$0xff] %v14908_v1  ;;  %v13847_v6 = vld [vmem:[%s17605_s1 + $0x34] ss:$12 sps:$4 sm:$0xff]   ;;  %v183_v7 = vsel %vm181_vm0, %v13845_v4, 0  ;;  %v305_v8 = vsel %vm181_vm0, %v13846_v5, 0 }
  0x13   :  { %86 = vst [vmem:[#allocation5 + $0x18] sm:$0xff] %v14908_v1  ;;  %89 = vst [vmem:[#allocation5 + $0x28] sm:$0xff] %v14908_v1  ;;  %v13849_v9 = vld [vmem:[%s17605_s1 + $0x4] ss:$12 sps:$4 sm:$0xff]   ;;  %204 = vmatpush1.bf16.msra.mxu1 %v183_v7  ;;  %326 = vmatpush1.bf16.msra.mxu0 %v305_v8  ;;  %v13852_v11 = vld [vmem:[%s17605_s1] ss:$12 sps:$4 sm:$0xff]  }
  0x14   :  { %90 = vst [vmem:[#allocation5 + $0x30] sm:$0xff] %v14908_v1  ;;  %91 = vst [vmem:[#allocation5 + $0x38] sm:$0xff] %v14908_v1  ;;  %v13851_v10 = vld [vmem:[%s17605_s1 + $0x30] ss:$12 sps:$4 sm:$0xff]   ;;  %v146_v12 = vld [vmem:[%s17604_s0 + $0x5] sm:$0x1f]  ;;  %205 = vmatprep.subr.bf16.mxu1 %v13847_v6  ;;  %327 = vmatprep.subr.bf16.mxu0 %v13849_v9 }
  0x15   :  { %92 = vst [vmem:[#allocation5 + $0x40] sm:$0xff] %v14908_v1  ;;  %94 = vst [vmem:[#allocation5 + $0x50] sm:$0xff] %v14908_v1  ;;  %v133_v13 = vld [vmem:[%s17604_s0] sm:$0x1f]  ;;  %v147_v15 = vpack.c.bf16 %v146_v12, %v146_v12  ;;  %v394_v19 = vld [vmem:[%s17604_s0 + $0x14] sm:$0x1f] }
  0x16   :  { %95 = vst [vmem:[#allocation5 + $0x58] sm:$0xff] %v14908_v1  ;;  %96 = vst [vmem:[#allocation5 + $0x60] sm:$0xff] %v14908_v1  ;;  %v13853_v14 = vld [vmem:[%s17605_s1 + $0x50] ss:$12 sps:$4 sm:$0x3f]   ;;  %v134_v16 = vpack.c.bf16 %v133_v13, %v133_v13  ;;  %v395_v22 = vpack.c.bf16 %v394_v19, %v394_v19  ;;  %v15172_v4 = vsub.s32 0, %v15166_v61 }
  0x17   :  { %97 = vst [vmem:[#allocation5 + $0x68] sm:$0xff] %v14908_v1  ;;  %99 = vst [vmem:[#allocation5 + $0x78] sm:$0xff] %v14908_v1  ;;  %206 = vmatpush1.bf16.msra.mxu1 %v13851_v10  ;;  %328 = vmatpush1.bf16.msra.mxu0 %v13852_v11  ;;  %v189_v17 = vsel %vm181_vm0, %v13853_v14, 0  ;;  %v13854_v18 = vld [vmem:[%s17605_s1 + $0x38] ss:$12 sps:$4 sm:$0xff]   ;;  %vm66_vm3 = vcmask 261120  }
  0x18   :  { %100 = vst [vmem:[#allocation5 + $0x80] sm:$0xff] %v14908_v1  ;;  %101 = vst [vmem:[#allocation5 + $0x88] sm:$0xff] %v14908_v1  ;;  %13594 = vmatprep.subr.bf16.mxu1 %v14908_v1  ;;  %12114 = vmatprep.subr.msk.bf16.mxu0 %vm181_vm0, %v13841_v2  ;;  %v13855_v20 = vld [vmem:[%s17605_s1 + $0x20] ss:$12 sps:$4 sm:$0x3f]   ;;  %s14910_s26 = smov 96  }
  0x19   :  { %102 = vst [vmem:[#allocation5 + $0x90] sm:$0xff] %v14908_v1  ;;  %104 = vst [vmem:[#allocation5 + $0xa0] sm:$0xff] %v14908_v1  ;;  %v13859_v21 = vld [vmem:[%s17605_s1 + $0x78] ss:$12 sps:$4 sm:$0x3f]   ;;  %v311_v23 = vsel %vm181_vm0, %v13855_v20, 0 }
  0x1a   :  { %105 = vst [vmem:[#allocation5 + $0xa8] sm:$0xff] %v14908_v1  ;;  %106 = vst [vmem:[#allocation5 + $0xb0] sm:$0xff] %v14908_v1  ;;  %12103 = vmatmul.mubr.msk.bf16.vlgmr.msra.gmra.mxu1 %vm17621_vm1, %v147_v15  ;;  %12112 = vmatmul.mubr.msk.bf16.vlgmr.msra.gmra.mxu0 %vm17621_vm1, %v134_v16  ;;  %v608_v24 = vsel %vm181_vm0, %v13859_v21, 0  ;;  %v13856_v25 = vld [vmem:[%s17605_s1 + $0x8] ss:$12 sps:$4 sm:$0xff]   ;;  %vm829_vm4 = vcmask 259073  }
  0x1b   :  { %107 = vst [vmem:[#allocation5 + $0xb8] sm:$0xff] %v14908_v1  ;;  %109 = vst [vmem:[#allocation5 + $0xc8] sm:$0xff] %v14908_v1  ;;  %13595 = vmatpush3.bf16.msra.mxu1 %v189_v17  ;;  %412 = vmatpush1.bf16.msra.mxu0 %v183_v7  ;;  %v135_v26 = vld [vmem:[%s17604_s0 + $0xf] sm:$0x1f]  ;;  %v573_v31 = vld [vmem:[%s17604_s0 + $0xa] sm:$0x1f] }
  0x1c   :  { %110 = vst [vmem:[#allocation5 + $0xd0] sm:$0xff] %v14908_v1  ;;  %111 = vst [vmem:[#allocation5 + $0xd8] sm:$0xff] %v14908_v1  ;;  %13596 = vmatprep.subr.bf16.mxu1 %v14908_v1  ;;  %413 = vmatprep.subr.bf16.mxu0 %v13847_v6  ;;  %v13857_v27 = vld [vmem:[%s17605_s1 + $0x7c] ss:$12 sps:$4 sm:$0x3f]   ;;  %v136_v28 = vpack.c.bf16 %v135_v26, %v135_v26  ;;  %v574_v32 = vpack.c.bf16 %v573_v31, %v573_v31  ;;  %s14911_s22 = smov 32  }
  0x1d   :  { %112 = vst [vmem:[#allocation5 + $0xe0] sm:$0xff] %v14908_v1  ;;  %114 = vst [vmem:[#allocation5 + $0xf0] sm:$0xff] %v14908_v1  ;;  %13598 = vmatprep.mubr.msk.bf16.mxu1 %vm14909_vm2, %v14908_v1  ;;  %431 = vmatprep.mubr.bf16.mxu0 %v14907_v0  ;;  %v13862_v29 = vld [vmem:[%s17605_s1 + $0x64] ss:$12 sps:$4 sm:$0xff]   ;;  %v13860_v30 = vld [vmem:[%s17605_s1 + $0x60] ss:$12 sps:$4 sm:$0xff]  }
  0x1e   :  { %115 = vst [vmem:[#allocation5 + $0xf8] sm:$0xff] %v14908_v1  ;;  %116 = vst [vmem:[#allocation5 + $0x100] sm:$0xff] %v14908_v1  ;;  %v700_v33 = vld [vmem:[%s17604_s0 + $0x19] sm:$0x1f]  ;;  %v13864_v37 = vld [vmem:[%s17605_s1 + $0x68] ss:$12 sps:$4 sm:$0xff]  }
  0x1f   :  { %117 = vst [vmem:[#allocation5 + $0x108] sm:$0xff] %v14908_v1  ;;  %119 = vst [vmem:[#allocation5 + $0x118] sm:$0x3] %v14908_v1  ;;  %13597 = vmatpush3.bf16.msra.mxu1 %v13854_v18  ;;  %414 = vmatpush1.bf16.msra.mxu0 %v13851_v10  ;;  %v13863_v34 = vld [vmem:[%s17605_s1 + $0x80] ss:$12 sps:$4 sm:$0x3f]   ;;  %v701_v35 = vpack.c.bf16 %v700_v33, %v700_v33 }
  0x20   :  { %120 = vst [vmem:[#allocation5 + $0x120] sm:$0x3] %v14908_v1  ;;  %121 = vst [vmem:[#allocation5 + $0x128] sm:$0x3] %v14908_v1  ;;  %13602 = vmatprep.subr.bf16.mxu1 %v14908_v1  ;;  %12117 = vmatprep.subr.msk.bf16.mxu0 %vm181_vm0, %v13843_v3  ;;  %v614_v36 = vsel %vm181_vm0, %v13863_v34, 0  ;;  %v14861_v34 = vld [vmem:[#allocation2] sm:$0xff] }
  0x21   :  { %122 = vst [vmem:[#allocation5 + $0x130] sm:$0x3] %v14908_v1  ;;  %v789_v3 = vld [vmem:[%s17606_s2] sm:$0x7]  ;;  %67 = vst.msk [vmem:[#allocation2 + $0x8] sm:$0xff] %vm66_vm3, %v14861_v34  ;;  %s14912_s23 = smov 64  }
  0x22   :  { %13599 = vmatmul.mubr.msk.bf16.vlgmr.msra.gmra.mxu1 %vm17621_vm1, %v147_v15  ;;  %12115 = vmatmul.mubr.msk.bf16.vlgmr.msra.gmra.mxu0 %vm17621_vm1, %v395_v22  ;;  %v794_v12 = vrot.slane %v789_v3, %v15172_v4  ;;  %71 = vst.msk [vmem:[#allocation3] sm:$0xff] %vm66_vm3, %v14861_v34  ;;  %74 = vst.msk [vmem:[#allocation4 + $0x8] sm:$0xff] %vm66_vm3, %v14861_v34  ;;  %vm834_vm5 = vcmask 521473   ;;  %vm846_vm6 = vcmask 783873   ;;  %vm851_vm7 = vcmask 1046273   ;;  %s14913_s20 = smov 112  }
  0x23   :  { %13603 = vmatpush3.bf16.msra.mxu1 %v311_v23  ;;  %496 = vmatpush1.bf16.msra.mxu0 %v305_v8  ;;  %v15175_v8 = vsub.s32 1, %v15166_v61  ;;  %76 = vst.msk [vmem:[#allocation4 + $0x18] sm:$0xff] %vm66_vm3, %v14861_v34  ;;  %78 = vst.msk [vmem:[#allocation4 + $0x28] sm:$0xff] %vm66_vm3, %v14861_v34  ;;  %vm1616_vm8 = vcmask 130048   ;;  %vm1839_vm9 = vcmask 1040384   ;;  %vm1835_vm10 = vcmask 15360  }
  0x24   :  { %13604 = vmatprep.subr.bf16.mxu1 %v14908_v1  ;;  %497 = vmatprep.subr.bf16.mxu0 %v13849_v9  ;;  %80 = vst.msk [vmem:[#allocation4 + $0x38] sm:$0xff] %vm66_vm3, %v14861_v34  ;;  %vm1883_vm11 = vcmask 253952   ;;  %vm15671_vm12 = vcmp.lt.s32.totalorder %v791_v56, 160  ;;  %vm3232_vm13 = vcmask 1046528   ;;  %vm3709_vm14 = vsmask.f32 6400 }
  0x25   :  { %13606 = vmatprep.mubr.msk.bf16.mxu1 %vm14909_vm2, %v14908_v1  ;;  %515 = vmatprep.mubr.bf16.mxu0 %v14907_v0  ;;  %vm87_vm15 = vcmask 719872  }
  0x27   :  { %13605 = vmatpush3.bf16.msra.mxu1 %v13856_v25  ;;  %498 = vmatpush1.bf16.msra.mxu0 %v13852_v11 }
  0x28   :  { %13610 = vmatprep.subr.bf16.mxu1 %v14908_v1  ;;  %12134 = vmatprep.subr.msk.bf16.mxu0 %vm181_vm0, %v13857_v27 }
  0x2a   :  { %13607 = vmatmul.mubr.msk.bf16.vlgmr.msra.gmra.mxu1 %vm17621_vm1, %v134_v16  ;;  %12118 = vmatmul.mubr.msk.bf16.vlgmr.msra.gmra.mxu0 %vm17621_vm1, %v136_v28 }
  0x2b   :  { %13611 = vmatpush3.bf16.msra.mxu1 %v189_v17  ;;  %629 = vmatpush1.bf16.msra.mxu0 %v608_v24  ;;  %v798_v17 = vrot.slane %v789_v3, %v15175_v8 }
  0x2c   :  { %13612 = vmatprep.subr.bf16.mxu1 %v14908_v1  ;;  %630 = vmatprep.subr.bf16.mxu0 %v13862_v29 }
  0x2d   :  { %13614 = vmatprep.mubr.msk.bf16.mxu1 %vm14909_vm2, %v14908_v1  ;;  %648 = vmatprep.mubr.bf16.mxu0 %v14907_v0 }
  0x2f   :  { %13613 = vmatpush3.bf16.msra.mxu1 %v13854_v18  ;;  %631 = vmatpush1.bf16.msra.mxu0 %v13860_v30 }
  0x30   :  { %13618 = vmatprep.subr.bf16.mxu1 %v14908_v1  ;;  %12137 = vmatprep.subr.msk.bf16.mxu0 %vm181_vm0, %v13857_v27 }
  0x32   :  { %13615 = vmatmul.mubr.msk.bf16.vlgmr.msra.gmra.mxu1 %vm17621_vm1, %v395_v22  ;;  %12135 = vmatmul.mubr.msk.bf16.vlgmr.msra.gmra.mxu0 %vm17621_vm1, %v574_v32 }
  0x33   :  { %13619 = vmatpush3.bf16.msra.mxu1 %v311_v23  ;;  %718 = vmatpush1.bf16.msra.mxu0 %v608_v24 }
  0x34   :  { %13620 = vmatprep.subr.bf16.mxu1 %v14908_v1  ;;  %719 = vmatprep.subr.bf16.mxu0 %v13862_v29 }
  0x35   :  { %13622 = vmatprep.mubr.msk.bf16.mxu1 %vm14909_vm2, %v14908_v1  ;;  %737 = vmatprep.mubr.bf16.mxu0 %v14907_v0 }
  0x37   :  { %13621 = vmatpush3.bf16.msra.mxu1 %v13856_v25  ;;  %720 = vmatpush1.bf16.msra.mxu0 %v13860_v30 }
  0x38   :  { %13626 = vmatprep.subr.bf16.mxu1 %v14908_v1  ;;  %995 = vmatprep.subr.bf16.mxu0 %v14907_v0 }
  0x3a   :  { %13623 = vmatmul.mubr.msk.bf16.vlgmr.msra.gmra.mxu1 %vm17621_vm1, %v136_v28  ;;  %12138 = vmatmul.mubr.msk.bf16.vlgmr.msra.gmra.mxu0 %vm17621_vm1, %v701_v35 }
  0x3b   :  { %13627 = vmatpush3.bf16.msra.mxu1 %v614_v36  ;;  %13630 = vmatprep.mubr.msk.bf16.mxu1 %vm14909_vm2, %v14908_v1 }
  0x3c   :  { %13628 = vmatprep.subr.bf16.mxu1 %v14908_v1 }
  0x3f   :  { %13629 = vmatpush3.bf16.msra.mxu1 %v13864_v37 }
  0x40   :  { %13634 = vmatprep.subr.bf16.mxu1 %v14908_v1 }
  0x42   :  { %13631 = vmatmul.mubr.msk.bf16.vlgmr.msra.gmra.mxu1 %vm17621_vm1, %v574_v32 }
  0x43   :  { %13635 = vmatpush3.bf16.msra.mxu1 %v614_v36  ;;  %13638 = vmatprep.mubr.msk.bf16.mxu1 %vm14909_vm2, %v14908_v1 }
  0x44   :  { %13636 = vmatprep.subr.bf16.mxu1 %v14908_v1 }
  0x47   :  { %13637 = vmatpush3.bf16.msra.mxu1 %v13864_v37 }
  0x48   :  { %1098 = vmatprep.subr.bf16.mxu1 %v14907_v0 }
  0x4a   :  { %13639 = vmatmul.mubr.msk.bf16.vlgmr.msra.gmra.mxu1 %vm17621_vm1, %v701_v35 }
  0xda   :  { %v225_v38 = vpop.f32.mrf.mxu1  ;;  %v347_v39 = vpop.f32.mrf.mxu0 }
  0xdb   :  { %v348_v7 = vadd.f32 %v347_v39, %v225_v38  ;;  %v15186_v39 = vsub.s32 2, %v15166_v61 }
  0xdc   :  { %v227_v40 = vpop.f32.mrf.mxu1  ;;  %v349_v41 = vpop.f32.mrf.mxu0 }
  0xdd   :  { %v350_v15 = vadd.f32 %v349_v41, %v227_v40 }
  0xde   :  { %v229_v42 = vpop.f32.mrf.mxu1  ;;  %v351_v43 = vpop.f32.mrf.mxu0 }
  0xe0   :  { %v230_v44 = vpop.f32.mrf.mxu1  ;;  %v352_v45 = vpop.f32.mrf.mxu0 }
  0xe1   :  { %v802_v45 = vrot.slane %v789_v3, %v15186_v39  ;;  %v13876_v3 = vld [vmem:[%s17607_s3 + $0x80] sm:$0xff]  }
  0xe2   :  { %v266_v46 = vpop.f32.mrf.mxu1  ;;  %v433_v47 = vpop.f32.mrf.mxu0 }
  0xe4   :  { %v13600_v48 = vpop.f32.mrf.mxu1  ;;  %v435_v49 = vpop.f32.mrf.mxu0 }
  0xe6   :  { %v269_v50 = vpop.f32.mrf.mxu1  ;;  %v437_v51 = vpop.f32.mrf.mxu0 }
  0xe8   :  { %v13601_v52 = vpop.f32.mrf.mxu1  ;;  %v438_v53 = vpop.f32.mrf.mxu0 }
  0xe9   :  { %v13865_v52 = vld [vmem:[%s17607_s3 + $0x38] sm:$0xff]  }
  0xea   :  { %v388_v54 = vpop.f32.mrf.mxu1  ;;  %v517_v55 = vpop.f32.mrf.mxu0  ;;  %1099 = vmatpush1.bf16.msra.mxu1 %v13865_v52  ;;  %v15342_v52 = vld [vmem:[%s17607_s3 + $0xd8] sm:$0xff]  }
  0xeb   :  { %v518_v16 = vadd.f32 %v517_v55, %v433_v47  ;;  %v389_v37 = vadd.f32 %v388_v54, %v266_v46  ;;  %v13866_v55 = vld [vmem:[%s17607_s3 + $0x30] sm:$0xff]   ;;  %1100 = vmatprep.subr.bf16.mxu1 %v14907_v0 }
  0xec   :  { %v13608_v57 = vpop.f32.mrf.mxu1  ;;  %v519_v58 = vpop.f32.mrf.mxu0 }
  0xed   :  { %v520_v20 = vadd.f32 %v519_v58, %v435_v49 }
  0xee   :  { %v391_v59 = vpop.f32.mrf.mxu1  ;;  %v521_v60 = vpop.f32.mrf.mxu0  ;;  %1101 = vmatpush1.bf16.msra.mxu1 %v13866_v55 }
  0xef   :  { %v862_v59 = vld [vmem:[#allocation2] ss:$8 sm:$0x3]  ;;  %1102 = vmatprep.subr.bf16.mxu1 %v14907_v0 }
  0xf0   :  { %v13609_v62 = vpop.f32.mrf.mxu1  ;;  %v522_v63 = vpop.f32.mrf.mxu0  ;;  %v13875_v60 = vld [vmem:[%s17607_s3 + $0x88] sm:$0xff]  }
  0xf1   :  { %v891_v63 = vrot.slane %v862_v59, %v15175_v8  ;;  %996 = vmatpush1.bf16.msra.mxu0 %v13875_v60 }
  0xf2   :  { %v474_v1 = vpop.f32.mrf.mxu1  ;;  %v650_v2 = vpop.f32.mrf.mxu0  ;;  %997 = vmatprep.subr.bf16.mxu0 %v14907_v0 }
  0xf3   :  { %v697_v11 = vadd.f32 %v650_v2, %v348_v7  ;;  %v13867_v2 = vld [vmem:[%s17607_s3 + $0x28] sm:$0xff]  }
  0xf4   :  { %v13616_v5 = vpop.f32.mrf.mxu1  ;;  %v652_v6 = vpop.f32.mrf.mxu0  ;;  %1103 = vmatpush1.bf16.msra.mxu1 %v13867_v2  ;;  %v15422_v2 = vld [vmem:[%s17607_s3 + $0xe8] sm:$0xff]  }
  0xf5   :  { %v806_v21 = vadd.f32 %v794_v12, %v697_v11  ;;  %v698_v22 = vadd.f32 %v652_v6, %v350_v15  ;;  %v895_v6 = vpack.c.bf16 %v891_v63, %v891_v63  ;;  %998 = vmatpush1.bf16.msra.mxu0 %v13876_v3  ;;  %1104 = vmatprep.subr.bf16.mxu1 %v14907_v0  ;;  %v13878_v11 = vld [vmem:[%s17607_s3 + $0x70] sm:$0xff]   ;;  %v13880_v15 = vld [vmem:[%s17607_s3 + $0x60] sm:$0xff]   ;;  %v15404_v63 = vld [vmem:[%s17607_s3 + $0xa8] sm:$0xff]  }
  0xf6   :  { %v477_v9 = vpop.f32.mrf.mxu1  ;;  %v654_v10 = vpop.f32.mrf.mxu0  ;;  %999 = vmatprep.subr.bf16.mxu0 %v14907_v0 }
  0xf7   :  { %v809_v30 = vmax.f32 %v806_v21, 0.0  ;;  %v807_v31 = vadd.f32 %v798_v17, %v698_v22  ;;  %v13877_v9 = vld [vmem:[%s17607_s3 + $0x78] sm:$0xff]   ;;  %v13868_v10 = vld [vmem:[%s17607_s3 + $0x20] sm:$0xff]   ;;  %12181 = vmatprep.mubr.msk.bf16.mxu1 %vm66_vm3, %v895_v6 }
  0xf8   :  { %v13617_v13 = vpop.f32.mrf.mxu1  ;;  %v655_v14 = vpop.f32.mrf.mxu0  ;;  %1105 = vmatpush1.bf16.msra.mxu1 %v13868_v10  ;;  %v15286_v22 = vld [vmem:[%s17607_s3 + $0x58] sm:$0xff]  }
  0xf9   :  { %v810_v42 = vmax.f32 %v807_v31, 0.0  ;;  %1000 = vmatpush1.bf16.msra.mxu0 %v13877_v9  ;;  %1106 = vmatprep.subr.bf16.mxu1 %v14907_v0  ;;  %v13879_v13 = vld [vmem:[%s17607_s3 + $0x68] sm:$0xff]   ;;  %v13870_v14 = vld [vmem:[%s17607_s3 + $0x10] sm:$0xff]  }
  0xfa   :  { %v558_v18 = vpop.f32.mrf.mxu1  ;;  %v739_v19 = vpop.f32.mrf.mxu0  ;;  %1001 = vmatprep.subr.bf16.mxu0 %v14907_v0 }
  0xfb   :  { %v786_v23 = vadd.f32 %v739_v19, %v518_v16  ;;  %v559_v46 = vadd.f32 %v558_v18, %v474_v1  ;;  %v13871_v16 = vld [vmem:[%s17607_s3 + $0x8] sm:$0xff]   ;;  %v15270_v19 = vld [vmem:[%s17607_s3 + $0x40] sm:$0xff]  }
  0xfc   :  { %v13624_v24 = vpop.f32.mrf.mxu1  ;;  %v741_v25 = vpop.f32.mrf.mxu0  ;;  %v15263_v18 = vld [vmem:[%s17607_s3 + $0x48] sm:$0xff]  }
  0xfd   :  { %v812_v26 = vadd.f32 %v794_v12, %v786_v23  ;;  %v787_v27 = vadd.f32 %v741_v25, %v520_v20  ;;  %v13869_v12 = vld [vmem:[%s17607_s3 + $0x18] sm:$0xff]   ;;  %1002 = vmatpush1.bf16.msra.mxu0 %v13878_v11  ;;  %v887_v20 = vrot.slane %v862_v59, %v15172_v4  ;;  %v15295_v23 = vld [vmem:[%s17607_s3 + $0x50] sm:$0xff]   ;;  %v15377_v59 = vld [vmem:[%s17607_s3 + $0xc0] sm:$0xff]  }
  0xfe   :  { %v561_v28 = vpop.f32.mrf.mxu1  ;;  %v743_v29 = vpop.f32.mrf.mxu0  ;;  %1107 = vmatpush1.bf16.msra.mxu1 %v13869_v12  ;;  %1003 = vmatprep.subr.bf16.mxu0 %v14907_v0  ;;  %v15300_v24 = vld [vmem:[%s17607_s3 + $0x98] sm:$0xff]  }
  0xff   :  { %v815_v32 = vmax.f32 %v812_v26, 0.0  ;;  %v813_v33 = vadd.f32 %v798_v17, %v787_v27  ;;  %1108 = vmatprep.subr.bf16.mxu1 %v14907_v0  ;;  %v15256_v17 = vld [vmem:[%s17607_s3] sm:$0xff]   ;;  %v894_v21 = vpack.c.bf16 %v887_v20, %v887_v20  ;;  %v15309_v26 = vld [vmem:[%s17607_s3 + $0x90] sm:$0xff]  }
 0x100   :  { %v13625_v35 = vpop.f32.mrf.mxu1  ;;  %v744_v36 = vpop.f32.mrf.mxu0  ;;  %v14865_v20 = vld [vmem:[%s17607_s3 + $0x20] sm:$0xff]  }
 0x101   :  { %v816_v38 = vmax.f32 %v813_v33, 0.0  ;;  %v15188_v40 = vmax.f32 %v809_v30, %v815_v32  ;;  %1004 = vmatpush1.bf16.msra.mxu0 %v13879_v13 }
 0x102   :  { %v691_v41 = vpop.f32.mrf.mxu1  ;;  %1109 = vmatpush1.bf16.msra.mxu1 %v13870_v14  ;;  %1005 = vmatprep.subr.bf16.mxu0 %v14907_v0  ;;  %v14862_v14 = vld [vmem:[%s17607_s3 + $0x38] sm:$0xff]  }
 0x103   :  { %822 = vrot.lane.b32.xlu0 %v15188_v40, %s14910_s26  ;;  %v699_v44 = vadd.f32 %v691_v41, %v389_v37  ;;  %v15193_v47 = vmax.f32 %v810_v42, %v816_v38  ;;  %1110 = vmatprep.subr.bf16.mxu1 %v14907_v0 }
 0x104   :  { %v13632_v43 = vpop.f32.mrf.mxu1 }
 0x105   :  { %v808_v50 = vadd.f32 %v802_v45, %v699_v44  ;;  %1006 = vmatpush1.bf16.msra.mxu0 %v13880_v15 }
 0x106   :  { %v694_v48 = vpop.f32.mrf.mxu1  ;;  %1111 = vmatpush1.bf16.msra.mxu1 %v13871_v16  ;;  %1007 = vmatprep.subr.bf16.mxu0 %v14907_v0  ;;  %v14864_v16 = vld [vmem:[%s17607_s3 + $0x28] sm:$0xff]  }
 0x107   :  { %837 = vrot.lane.b32.xlu0 %v15193_v47, %s14910_s26  ;;  %v811_v57 = vmax.f32 %v808_v50, 0.0  ;;  %1112 = vmatprep.subr.bf16.mxu1 %v14907_v0 }
 0x108   :  { %v13633_v49 = vpop.f32.mrf.mxu1 }
 0x109   :  { %1008 = vmatpush1.bf16.msra.mxu0 %v15286_v22 }
 0x10a   :  { %v780_v51 = vpop.f32.mrf.mxu1  ;;  %1113 = vmatpush1.bf16.msra.mxu1 %v15256_v17  ;;  %1009 = vmatprep.subr.bf16.mxu0 %v14907_v0 }
 0x10b   :  { %v788_v53 = vadd.f32 %v780_v51, %v559_v46  ;;  %1126 = vmatprep.subr.bf16.mxu1 %v14907_v0 }
 0x10c   :  { %v13640_v54 = vpop.f32.mrf.mxu1 }
 0x10d   :  { %v814_v58 = vadd.f32 %v802_v45, %v788_v53  ;;  %1010 = vmatpush1.bf16.msra.mxu0 %v15295_v23 }
 0x10e   :  { %v783_v62 = vpop.f32.mrf.mxu1  ;;  %1127 = vmatpush2.bf16.msra.mxu1 %v15263_v18  ;;  %1023 = vmatprep.subr.bf16.mxu0 %v14907_v0 }
 0x10f   :  { %v817_v1 = vmax.f32 %v814_v58, 0.0  ;;  %1128 = vmatprep.subr.bf16.mxu1 %v14907_v0  ;;  %v15368_v58 = vld [vmem:[%s17607_s3 + $0xc8] sm:$0xff]   ;;  %v15395_v62 = vld [vmem:[%s17607_s3 + $0xb0] sm:$0xff]  }
 0x110   :  { %v13641_v5 = vpop.f32.mrf.mxu1 }
 0x111   :  { %v15215_v7 = vmax.f32 %v811_v57, %v817_v1  ;;  %1024 = vmatpush2.bf16.msra.mxu0 %v15300_v24  ;;  %v15355_v57 = vld [vmem:[%s17607_s3 + $0xd0] sm:$0xff]   ;;  %v15413_v1 = vld [vmem:[%s17607_s3 + $0xa0] sm:$0xff]  }
 0x112   :  { %1129 = vmatpush2.bf16.msra.mxu1 %v15270_v19  ;;  %1025 = vmatprep.subr.bf16.mxu0 %v14907_v0  ;;  %v15433_v5 = vld [vmem:[%s17607_s3 + $0xe0] sm:$0xff]  }
 0x113   :  { %854 = vrot.lane.b32.xlu1 %v15215_v7, %s14910_s26  ;;  %1299 = vmatprep.subr.bf16.mxu1 %v14907_v0 }
 0x115   :  { %1131 = vmatmul.mubr.bf16.vlgmr.msra.gmra.mxu1 %v894_v21  ;;  %1026 = vmatpush2.bf16.msra.mxu0 %v15309_v26  ;;  %v14866_v21 = vld [vmem:[%s17607_s3 + $0x18] sm:$0xff]  }
 0x116   :  { %1300 = vmatpush1.bf16.msra.mxu1 %v13875_v60  ;;  %1237 = vmatprep.subr.bf16.mxu0 %v14907_v0  ;;  %v15386_v60 = vld [vmem:[%s17607_s3 + $0xb8] sm:$0xff]  }
 0x117   :  { %1301 = vmatprep.subr.bf16.mxu1 %v14907_v0 }
 0x11a   :  { %1302 = vmatpush1.bf16.msra.mxu1 %v13876_v3 }
 0x11b   :  { %1303 = vmatprep.subr.bf16.mxu1 %v14907_v0 }
 0x11e   :  { %1304 = vmatpush1.bf16.msra.mxu1 %v13877_v9 }
 0x11f   :  { %1305 = vmatprep.subr.bf16.mxu1 %v14907_v0 }
 0x122   :  { %1306 = vmatpush1.bf16.msra.mxu1 %v13878_v11 }
 0x123   :  { %1307 = vmatprep.subr.bf16.mxu1 %v14907_v0 }
 0x126   :  { %1308 = vmatpush1.bf16.msra.mxu1 %v13879_v13 }
 0x127   :  { %1309 = vmatprep.subr.bf16.mxu1 %v14907_v0 }
 0x12a   :  { %1310 = vmatpush1.bf16.msra.mxu1 %v13880_v15  ;;  %v14863_v15 = vld [vmem:[%s17607_s3 + $0x30] sm:$0xff]  }
 0x12b   :  { %1311 = vmatprep.subr.bf16.mxu1 %v14907_v0 }
 0x12e   :  { %1312 = vmatpush1.bf16.msra.mxu1 %v15286_v22 }
 0x12f   :  { %1313 = vmatprep.subr.bf16.mxu1 %v14907_v0 }
 0x132   :  { %1314 = vmatpush1.bf16.msra.mxu1 %v15295_v23 }
 0x133   :  { %1327 = vmatprep.subr.bf16.mxu1 %v14907_v0 }
 0x136   :  { %1328 = vmatpush2.bf16.msra.mxu1 %v15300_v24 }
 0x137   :  { %1329 = vmatprep.subr.bf16.mxu1 %v14907_v0 }
 0x13a   :  { %1330 = vmatpush2.bf16.msra.mxu1 %v15309_v26 }
 0x13b   :  { %1397 = vmatprep.subr.bf16.mxu1 %v14907_v0 }
 0x175   :  { %v823_v25 = vpop.permute.xlu0 %822 }
 0x176   :  { %v825_v27 = vmax.f32 %v15188_v40, %v823_v25  ;;  %v14867_v25 = vld [vmem:[%s17607_s3 + $0x10] sm:$0xff]  }
 0x178   :  { %v827_v28 = vrot.slane %v825_v27, 7  ;;  %v14868_v27 = vld [vmem:[%s17607_s3 + $0x8] sm:$0xff]  }
 0x179   :  { %v838_v29 = vpop.permute.xlu0 %837 }
 0x17a   :  { %v840_v30 = vmax.f32 %v15193_v47, %v838_v29  ;;  %831 = vrot.lane.b32.xlu1 %v827_v28, %s14910_s26  ;;  %830 = vst.msk [vmem:[#allocation2] sm:$0x3e] %vm829_vm4, %v827_v28 }
 0x17c   :  { %v842_v31 = vrot.slane %v840_v30, 7 }
 0x17e   :  { %848 = vrot.lane.b32.xlu1 %v842_v31, %s14911_s22  ;;  %843 = vrot.lane.b32.xlu0 %v842_v31, %s14912_s23  ;;  %v14872_v31 = vld [vmem:[%s17607_s3 + $0x78] sm:$0xff]  }
 0x185   :  { %v855_v32 = vpop.permute.xlu1 %854 }
 0x186   :  { %v857_v33 = vmax.f32 %v15215_v7, %v855_v32  ;;  %v14873_v32 = vld [vmem:[%s17607_s3 + $0x70] sm:$0xff]  }
 0x188   :  { %v859_v34 = vrot.slane %v857_v33, 7  ;;  %v14874_v33 = vld [vmem:[%s17607_s3 + $0x68] sm:$0xff]  }
 0x18a   :  { %861 = vst.msk [vmem:[#allocation2 + $0x8] sm:$0x3e] %vm829_vm4, %v859_v34  ;;  %v14875_v34 = vld [vmem:[%s17607_s3 + $0x60] sm:$0xff]   ;;  %vm5493_vm4 = vcmask 1043456  }
 0x1d5   :  { %v15426_v3 = vpop.f32.mrf.mxu1 }
 0x1d7   :  { %v1134_v9 = vpop.f32.mrf.mxu1 }
 0x1d9   :  { %v1135_v10 = vpop.f32.mrf.mxu1 }
 0x1db   :  { %v1136_v13 = vpop.f32.mrf.mxu1 }
 0x1ec   :  { %v832_v35 = vpop.permute.xlu1 %831 }
 0x1ed   :  { %835 = vst.msk [vmem:[#allocation2] sm:$0x3e] %vm834_vm5, %v832_v35  ;;  %v1539_v35 = vld [vmem:[#allocation2 + $0x6] ss:$8 sm:$0x3]  ;;  %vm15999_vm5 = vcmp.lt.s32.totalorder %v791_v56, 600 }
 0x1f0   :  { %v849_v36 = vpop.permute.xlu1 %848  ;;  %v844_v37 = vpop.permute.xlu0 %843 }
 0x1f1   :  { %847 = vst.msk [vmem:[#allocation2] sm:$0x3e] %vm846_vm6, %v844_v37  ;;  %vm5178_vm6 = vsmask.f32 7424 }
 0x1f2   :  { %852 = vst.msk [vmem:[#allocation2] sm:$0x3e] %vm851_vm7, %v849_v36  ;;  %v1548_v36 = vrot.slane %v1539_v35, %v15175_v8  ;;  %vm17620_vm7 = vcmask 224256  }
 0x1f9   :  { %v897_v38 = vld [vmem:[#allocation2 + $0x1] ss:$8 sm:$0x3]  ;;  %v1282_v40 = vld [vmem:[#allocation2 + $0x3] ss:$8 sm:$0x3] }
 0x1fa   :  { %v927_v41 = vrot.slane %v897_v38, %v15175_v8  ;;  %v1291_v42 = vrot.slane %v1282_v40, %v15175_v8  ;;  %v923_v43 = vrot.slane %v897_v38, %v15172_v4  ;;  %v1287_v44 = vrot.slane %v1282_v40, %v15172_v4  ;;  %v15331_v45 = vld [vmem:[#allocation2 + $0x2] ss:$8 sm:$0x3]  ;;  %v15333_v47 = vld [vmem:[#allocation2 + $0x4] ss:$8 sm:$0x3] }
 0x1fb   :  { %v1169_v48 = vrot.slane %v15331_v45, %v15175_v8  ;;  %v1389_v46 = vrot.slane %v15333_v47, %v15175_v8  ;;  %v1165_v6 = vrot.slane %v15331_v45, %v15172_v4  ;;  %v1385_v7 = vrot.slane %v15333_v47, %v15172_v4  ;;  %v1441_v28 = vld [vmem:[#allocation2 + $0x5] ss:$8 sm:$0x3] }
 0x1fc   :  { %v931_v49 = vpack.c.bf16 %v927_v41, %v927_v41  ;;  %v1295_v50 = vpack.c.bf16 %v1291_v42, %v1291_v42  ;;  %v930_v51 = vpack.c.bf16 %v923_v43, %v923_v43  ;;  %v1294_v53 = vpack.c.bf16 %v1287_v44, %v1287_v44 }
 0x1fd   :  { %v15346_v54 = vpack.c.bf16 %v1169_v48, %v1169_v48  ;;  %v15348_v55 = vpack.c.bf16 %v1389_v46, %v1389_v46  ;;  %v1172_v11 = vpack.c.bf16 %v1165_v6, %v1165_v6  ;;  %v1392_v12 = vpack.c.bf16 %v1385_v7, %v1385_v7 }
 0x1fe   :  { %12170 = vmatprep.mubr.msk.bf16.mxu0 %vm66_vm3, %v931_v49  ;;  %12213 = vmatprep.mubr.msk.bf16.mxu1 %vm66_vm3, %v1295_v50  ;;  %v1450_v29 = vrot.slane %v1441_v28, %v15175_v8  ;;  %v1446_v37 = vrot.slane %v1441_v28, %v15172_v4  ;;  %v1552_v38 = vpack.c.bf16 %v1548_v36, %v1548_v36 }
 0x1ff   :  { %1028 = vmatmul.mubr.bf16.vlgmr.msra.gmra.mxu0 %v930_v51  ;;  %1332 = vmatmul.mubr.bf16.vlgmr.msra.gmra.mxu1 %v1294_v53 }
 0x200   :  { %1238 = vmatpush1.bf16.msra.mxu0 %v15342_v52  ;;  %1398 = vmatpush1.bf16.msra.mxu1 %v15342_v52  ;;  %v1454_v30 = vpack.c.bf16 %v1450_v29, %v1450_v29  ;;  %v1453_v40 = vpack.c.bf16 %v1446_v37, %v1446_v37 }
 0x201   :  { %12212 = vmatprep.mubr.msk.bf16.mxu0 %vm66_vm3, %v15346_v54  ;;  %12215 = vmatprep.mubr.msk.bf16.mxu1 %vm66_vm3, %v15348_v55 }
 0x202   :  { %1239 = vmatprep.subr.bf16.mxu0 %v14907_v0  ;;  %1399 = vmatprep.subr.bf16.mxu1 %v14907_v0 }
 0x204   :  { %1240 = vmatpush1.bf16.msra.mxu0 %v15355_v57  ;;  %1400 = vmatpush1.bf16.msra.mxu1 %v15355_v57 }
 0x205   :  { %1241 = vmatprep.subr.bf16.mxu0 %v14907_v0  ;;  %1401 = vmatprep.subr.bf16.mxu1 %v14907_v0 }
 0x208   :  { %1242 = vmatpush1.bf16.msra.mxu0 %v15368_v58  ;;  %1402 = vmatpush1.bf16.msra.mxu1 %v15368_v58 }
 0x209   :  { %1243 = vmatprep.subr.bf16.mxu0 %v14907_v0  ;;  %1403 = vmatprep.subr.bf16.mxu1 %v14907_v0 }
 0x20c   :  { %1244 = vmatpush1.bf16.msra.mxu0 %v15377_v59  ;;  %1404 = vmatpush1.bf16.msra.mxu1 %v15377_v59 }
 0x20d   :  { %1245 = vmatprep.subr.bf16.mxu0 %v14907_v0  ;;  %1405 = vmatprep.subr.bf16.mxu1 %v14907_v0 }
 0x210   :  { %1246 = vmatpush1.bf16.msra.mxu0 %v15386_v60  ;;  %1406 = vmatpush1.bf16.msra.mxu1 %v15386_v60 }
 0x211   :  { %1247 = vmatprep.subr.bf16.mxu0 %v14907_v0  ;;  %1407 = vmatprep.subr.bf16.mxu1 %v14907_v0 }
 0x214   :  { %1248 = vmatpush1.bf16.msra.mxu0 %v15395_v62  ;;  %1408 = vmatpush1.bf16.msra.mxu1 %v15395_v62 }
 0x215   :  { %1249 = vmatprep.subr.bf16.mxu0 %v14907_v0  ;;  %1409 = vmatprep.subr.bf16.mxu1 %v14907_v0 }
 0x218   :  { %1250 = vmatpush1.bf16.msra.mxu0 %v15404_v63  ;;  %1410 = vmatpush1.bf16.msra.mxu1 %v15404_v63 }
 0x219   :  { %1251 = vmatprep.subr.bf16.mxu0 %v14907_v0  ;;  %1411 = vmatprep.subr.bf16.mxu1 %v14907_v0 }
 0x21c   :  { %1252 = vmatpush1.bf16.msra.mxu0 %v15413_v1  ;;  %1412 = vmatpush1.bf16.msra.mxu1 %v15413_v1 }
 0x21d   :  { %1265 = vmatprep.subr.bf16.mxu0 %v14907_v0  ;;  %1425 = vmatprep.subr.bf16.mxu1 %v14907_v0 }
 0x220   :  { %1266 = vmatpush2.bf16.msra.mxu0 %v15422_v2  ;;  %1426 = vmatpush2.bf16.msra.mxu1 %v15422_v2 }
 0x221   :  { %1267 = vmatprep.subr.bf16.mxu0 %v14907_v0  ;;  %1427 = vmatprep.subr.bf16.mxu1 %v14907_v0 }
 0x224   :  { %1268 = vmatpush2.bf16.msra.mxu0 %v15433_v5  ;;  %1428 = vmatpush2.bf16.msra.mxu1 %v15433_v5 }
 0x225   :  { %1339 = vmatprep.subr.bf16.mxu0 %v14907_v0  ;;  %1498 = vmatprep.subr.bf16.mxu1 %v14907_v0 }
 0x227   :  { %1270 = vmatmul.mubr.bf16.vlgmr.msra.gmra.mxu0 %v1172_v11  ;;  %1430 = vmatmul.mubr.bf16.vlgmr.msra.gmra.mxu1 %v1392_v12 }
 0x228   :  { %1340 = vmatpush1.bf16.msra.mxu0 %v14862_v14  ;;  %12214 = vmatprep.mubr.msk.bf16.mxu0 %vm66_vm3, %v15346_v54 }
 0x229   :  { %1499 = vmatpush1.bf16.msra.mxu1 %v14862_v14  ;;  %12217 = vmatprep.mubr.msk.bf16.mxu1 %vm66_vm3, %v15348_v55 }
 0x22a   :  { %1341 = vmatprep.subr.bf16.mxu0 %v14907_v0  ;;  %1500 = vmatprep.subr.bf16.mxu1 %v14907_v0 }
 0x22c   :  { %1342 = vmatpush1.bf16.msra.mxu0 %v14863_v15 }
 0x22d   :  { %1501 = vmatpush1.bf16.msra.mxu1 %v14863_v15  ;;  %1343 = vmatprep.subr.bf16.mxu0 %v14907_v0 }
 0x22e   :  { %1502 = vmatprep.subr.bf16.mxu1 %v14907_v0 }
 0x230   :  { %1344 = vmatpush1.bf16.msra.mxu0 %v14864_v16 }
 0x231   :  { %1503 = vmatpush1.bf16.msra.mxu1 %v14864_v16  ;;  %1345 = vmatprep.subr.bf16.mxu0 %v14907_v0 }
 0x232   :  { %1504 = vmatprep.subr.bf16.mxu1 %v14907_v0 }
 0x234   :  { %1346 = vmatpush1.bf16.msra.mxu0 %v14865_v20 }
 0x235   :  { %1505 = vmatpush1.bf16.msra.mxu1 %v14865_v20  ;;  %1347 = vmatprep.subr.bf16.mxu0 %v14907_v0 }
 0x236   :  { %1506 = vmatprep.subr.bf16.mxu1 %v14907_v0 }
 0x238   :  { %1348 = vmatpush1.bf16.msra.mxu0 %v14866_v21 }
 0x239   :  { %1507 = vmatpush1.bf16.msra.mxu1 %v14866_v21  ;;  %1349 = vmatprep.subr.bf16.mxu0 %v14907_v0 }
 0x23a   :  { %1508 = vmatprep.subr.bf16.mxu1 %v14907_v0 }
 0x23c   :  { %1350 = vmatpush1.bf16.msra.mxu0 %v14867_v25 }
 0x23d   :  { %1509 = vmatpush1.bf16.msra.mxu1 %v14867_v25  ;;  %1351 = vmatprep.subr.bf16.mxu0 %v14907_v0 }
 0x23e   :  { %1510 = vmatprep.subr.bf16.mxu1 %v14907_v0 }
 0x240   :  { %1352 = vmatpush1.bf16.msra.mxu0 %v14868_v27 }
 0x241   :  { %1511 = vmatpush1.bf16.msra.mxu1 %v14868_v27  ;;  %1353 = vmatprep.subr.bf16.mxu0 %v14907_v0 }
 0x242   :  { %1512 = vmatprep.subr.bf16.mxu1 %v14907_v0 }
 0x244   :  { %1354 = vmatpush1.bf16.msra.mxu0 %v15256_v17 }
 0x245   :  { %1513 = vmatpush1.bf16.msra.mxu1 %v15256_v17  ;;  %1367 = vmatprep.subr.bf16.mxu0 %v14907_v0  ;;  %v15496_v17 = vld [vmem:[#allocation4] sm:$0xff] }
 0x246   :  { %1526 = vmatprep.subr.bf16.mxu1 %v14907_v0 }
 0x248   :  { %1368 = vmatpush2.bf16.msra.mxu0 %v15263_v18 }
 0x249   :  { %1527 = vmatpush2.bf16.msra.mxu1 %v15263_v18  ;;  %1369 = vmatprep.subr.bf16.mxu0 %v14907_v0  ;;  %v14870_v18 = vld [vmem:[%s17607_s3 + $0x88] sm:$0xff]  }
 0x24a   :  { %1528 = vmatprep.subr.bf16.mxu1 %v14907_v0 }
 0x24c   :  { %1370 = vmatpush2.bf16.msra.mxu0 %v15270_v19 }
 0x24d   :  { %1529 = vmatpush2.bf16.msra.mxu1 %v15270_v19  ;;  %1458 = vmatprep.subr.bf16.mxu0 %v14907_v0  ;;  %v14871_v19 = vld [vmem:[%s17607_s3 + $0x80] sm:$0xff]  }
 0x24e   :  { %13642 = vmatprep.subr.bf16.mxu1 %v15496_v17 }
 0x24f   :  { %1372 = vmatmul.mubr.bf16.vlgmr.msra.gmra.mxu0 %v1172_v11 }
 0x250   :  { %1531 = vmatmul.mubr.bf16.vlgmr.msra.gmra.mxu1 %v1392_v12  ;;  %1459 = vmatpush1.bf16.msra.mxu0 %v14870_v18 }
 0x251   :  { %12216 = vmatprep.mubr.msk.bf16.mxu0 %vm66_vm3, %v1454_v30  ;;  %1460 = vmatprep.subr.bf16.mxu0 %v14907_v0 }
 0x252   :  { %13644 = vmatprep.mubr.msk.bf16.mxu1 %vm14909_vm2, %v15496_v17 }
 0x254   :  { %1461 = vmatpush1.bf16.msra.mxu0 %v14871_v19 }
 0x255   :  { %1462 = vmatprep.subr.bf16.mxu0 %v14907_v0 }
 0x258   :  { %1463 = vmatpush1.bf16.msra.mxu0 %v14872_v31 }
 0x259   :  { %1464 = vmatprep.subr.bf16.mxu0 %v14907_v0 }
 0x25c   :  { %1465 = vmatpush1.bf16.msra.mxu0 %v14873_v32 }
 0x25d   :  { %1466 = vmatprep.subr.bf16.mxu0 %v14907_v0 }
 0x260   :  { %1467 = vmatpush1.bf16.msra.mxu0 %v14874_v33 }
 0x261   :  { %1468 = vmatprep.subr.bf16.mxu0 %v14907_v0 }
 0x264   :  { %1469 = vmatpush1.bf16.msra.mxu0 %v14875_v34 }
 0x265   :  { %1470 = vmatprep.subr.bf16.mxu0 %v14907_v0 }
 0x268   :  { %1471 = vmatpush1.bf16.msra.mxu0 %v15286_v22  ;;  %v1544_v22 = vrot.slane %v1539_v35, %v15172_v4  ;;  %v13896_v35 = vld [vmem:[%s17609_s5 + $0x8] sm:$0xff]  }
 0x269   :  { %1472 = vmatprep.subr.bf16.mxu0 %v14907_v0 }
 0x26c   :  { %1473 = vmatpush1.bf16.msra.mxu0 %v15295_v23  ;;  %v1551_v23 = vpack.c.bf16 %v1544_v22, %v1544_v22  ;;  %v13897_v22 = vld [vmem:[%s17609_s5 + $0x10] sm:$0xff]  }
 0x26d   :  { %1486 = vmatprep.subr.bf16.mxu0 %v14907_v0 }
 0x270   :  { %1487 = vmatpush2.bf16.msra.mxu0 %v15300_v24 }
 0x271   :  { %1488 = vmatprep.subr.bf16.mxu0 %v14907_v0 }
 0x274   :  { %1489 = vmatpush2.bf16.msra.mxu0 %v15309_v26 }
 0x275   :  { %1556 = vmatprep.subr.bf16.mxu0 %v14907_v0 }
 0x277   :  { %1491 = vmatmul.mubr.bf16.vlgmr.msra.gmra.mxu0 %v1453_v40 }
 0x278   :  { %1557 = vmatpush1.bf16.msra.mxu0 %v15342_v52  ;;  %12218 = vmatprep.mubr.msk.bf16.mxu0 %vm66_vm3, %v1552_v38 }
 0x279   :  { %1558 = vmatprep.subr.bf16.mxu0 %v14907_v0 }
 0x27c   :  { %1559 = vmatpush1.bf16.msra.mxu0 %v15355_v57 }
 0x27d   :  { %1560 = vmatprep.subr.bf16.mxu0 %v14907_v0 }
 0x280   :  { %1561 = vmatpush1.bf16.msra.mxu0 %v15368_v58  ;;  %v1278_v58 = vld [vmem:[%s17608_s4] sm:$0x1] }
 0x281   :  { %1562 = vmatprep.subr.bf16.mxu0 %v14907_v0 }
 0x284   :  { %1563 = vmatpush1.bf16.msra.mxu0 %v15377_v59 }
 0x285   :  { %1564 = vmatprep.subr.bf16.mxu0 %v14907_v0 }
 0x288   :  { %1565 = vmatpush1.bf16.msra.mxu0 %v15386_v60  ;;  %v13895_v60 = vld [vmem:[%s17609_s5] sm:$0xff]  }
 0x289   :  { %1566 = vmatprep.subr.bf16.mxu0 %v14907_v0  ;;  %13643 = vmatpush3.bf16.msra.mxu1 %v13895_v60 }
 0x28a   :  { %13648 = vmatprep.subr.bf16.mxu1 %v15496_v17 }
 0x28c   :  { %1567 = vmatpush1.bf16.msra.mxu0 %v15395_v62 }
 0x28d   :  { %1568 = vmatprep.subr.bf16.mxu0 %v14907_v0 }
 0x290   :  { %1569 = vmatpush1.bf16.msra.mxu0 %v15404_v63 }
 0x291   :  { %1570 = vmatprep.subr.bf16.mxu0 %v14907_v0 }
 0x294   :  { %1571 = vmatpush1.bf16.msra.mxu0 %v15413_v1 }
 0x295   :  { %1584 = vmatprep.subr.bf16.mxu0 %v14907_v0 }
 0x298   :  { %1585 = vmatpush2.bf16.msra.mxu0 %v15422_v2 }
 0x299   :  { %1586 = vmatprep.subr.bf16.mxu0 %v14907_v0 }
 0x29c   :  { %1587 = vmatpush2.bf16.msra.mxu0 %v15433_v5 }
 0x29d   :  { %13672 = vmatprep.subr.bf16.mxu0 %v15496_v17 }
 0x29f   :  { %1589 = vmatmul.mubr.bf16.vlgmr.msra.gmra.mxu0 %v1551_v23 }
 0x2a0   :  { %13674 = vmatprep.mubr.msk.bf16.mxu0 %vm14909_vm2, %v15496_v17 }
 0x2bf   :  { %v1029_v24 = vpop.f32.mrf.mxu0  ;;  %v1333_v26 = vpop.f32.mrf.mxu1 }
 0x2c0   :  { %v1133_v55 = vadd.f32 %v15426_v3, %v1029_v24  ;;  %v13898_v24 = vld [vmem:[%s17609_s5 + $0x18] sm:$0xff]  }
 0x2c1   :  { %v1031_v41 = vpop.f32.mrf.mxu0  ;;  %v1335_v42 = vpop.f32.mrf.mxu1 }
 0x2c2   :  { %v1832_v42 = vld [vmem:[%s17611_s7] sm:$0x1] }
 0x2c3   :  { %v1032_v43 = vpop.f32.mrf.mxu0  ;;  %v1336_v44 = vpop.f32.mrf.mxu1 }
 0x2c4   :  { %v12234_v43 = vld [vmem:[%s17611_s7 + $0x1] sm:$0x1] }
 0x2c5   :  { %v1033_v45 = vpop.f32.mrf.mxu0  ;;  %v1337_v47 = vpop.f32.mrf.mxu1 }
 0x2c6   :  { %v1841_v45 = vsel %vm1839_vm9, %v1832_v42, 0  ;;  %v1890_v47 = vsel %vm1839_vm9, %v12234_v43, 0  ;;  %v13922_v42 = vld [vmem:[#allocation6 + $0x2b4] ss:$20 sps:$4 sm:$0xff]  }
 0x2c7   :  { %13673 = vmatpush3.bf16.msra.mxu0 %v1890_v47  ;;  %v13923_v43 = vld [vmem:[#allocation6 + $0x280] ss:$20 sps:$4 sm:$0xff]  }
 0x2c8   :  { %v13928_v47 = vld [vmem:[#allocation6 + $0x28c] ss:$20 sps:$4 sm:$0xff]  }
 0x2e7   :  { %v1271_v48 = vpop.f32.mrf.mxu0  ;;  %v1431_v46 = vpop.f32.mrf.mxu1 }
 0x2e8   :  { %v1277_v57 = vadd.f32 %v1271_v48, %v1133_v55 }
 0x2e9   :  { %v1273_v49 = vpop.f32.mrf.mxu0  ;;  %v1433_v50 = vpop.f32.mrf.mxu1 }
 0x2ea   :  { %v1279_v2 = vadd.f32 %v1278_v58, %v1277_v57  ;;  %v1601_v49 = vld [vmem:[%s17610_s6] sm:$0x1] }
 0x2eb   :  { %v1274_v51 = vpop.f32.mrf.mxu0  ;;  %v1434_v52 = vpop.f32.mrf.mxu1 }
 0x2ec   :  { %v1280_v11 = vmax.f32 %v1279_v2, 0.0 }
 0x2ed   :  { %v1275_v53 = vpop.f32.mrf.mxu0  ;;  %v1435_v54 = vpop.f32.mrf.mxu1 }
 0x30f   :  { %v1373_v59 = vpop.f32.mrf.mxu0 }
 0x310   :  { %v1374_v62 = vadd.f32 %v1373_v59, %v1333_v26  ;;  %v1532_v63 = vpop.f32.mrf.mxu1 }
 0x311   :  { %v1375_v1 = vpop.f32.mrf.mxu0 }
 0x312   :  { %v1437_v5 = vadd.f32 %v1431_v46, %v1374_v62  ;;  %v1534_v6 = vpop.f32.mrf.mxu1 }
 0x313   :  { %v1376_v3 = vpop.f32.mrf.mxu0 }
 0x314   :  { %v1438_v7 = vadd.f32 %v1437_v5, %v1278_v58  ;;  %v1535_v9 = vpop.f32.mrf.mxu1  ;;  %v13899_v3 = vld [vmem:[%s17613_s9 + $0x30] ss:$8 sps:$4 sm:$0xff]  }
 0x315   :  { %v1377_v10 = vpop.f32.mrf.mxu0  ;;  %v13902_v9 = vld [vmem:[%s17613_s9 + $0x10] ss:$8 sps:$4 sm:$0xff]  }
 0x316   :  { %v1439_v12 = vmax.f32 %v1438_v7, 0.0  ;;  %v1536_v13 = vpop.f32.mrf.mxu1  ;;  %v13901_v7 = vld [vmem:[%s17613_s9 + $0x34] ss:$8 sps:$4 sm:$0xff]  }
 0x317   :  { %v13904_v10 = vld [vmem:[%s17613_s9 + $0x14] ss:$8 sps:$4 sm:$0xff]   ;;  %v13910_v13 = vld [vmem:[%s17613_s9 + $0x4] ss:$8 sps:$4 sm:$0xff]  }
 0x318   :  { %v1599_v14 = vmax.f32 %v1280_v11, %v1439_v12  ;;  %v13907_v11 = vld [vmem:[%s17613_s9 + $0x24] ss:$8 sps:$4 sm:$0xff]   ;;  %2045 = vmatprep.subr.bf16.mxu0 %v13904_v10 }
 0x319   :  { %v13962_v10 = vld [vmem:[#allocation6 + $0x198] ss:$20 sps:$4 sm:$0xff]  }
 0x31a   :  { %1603 = vrot.lane.b32.xlu0 %v1599_v14, %s14913_s20 }
 0x337   :  { %v1492_v15 = vpop.f32.mrf.mxu0 }
 0x338   :  { %v1533_v25 = vadd.f32 %v1532_v63, %v1492_v15  ;;  %v13913_v15 = vld [vmem:[%s17613_s9 + $0x54] ss:$8 sps:$4 sm:$0xff]  }
 0x339   :  { %v1494_v16 = vpop.f32.mrf.mxu0 }
 0x33a   :  { %v1834_v16 = vld [vmem:[%s17612_s8] sm:$0x1] }
 0x33b   :  { %v1495_v20 = vpop.f32.mrf.mxu0 }
 0x33c   :  { %v12235_v20 = vld [vmem:[%s17612_s8 + $0x1] sm:$0x1] }
 0x33d   :  { %v1496_v21 = vpop.f32.mrf.mxu0 }
 0x35f   :  { %v1590_v27 = vpop.f32.mrf.mxu0 }
 0x360   :  { %v1596_v28 = vadd.f32 %v1590_v27, %v1533_v25 }
 0x361   :  { %v1592_v29 = vpop.f32.mrf.mxu0 }
 0x362   :  { %v1597_v30 = vadd.f32 %v1596_v28, %v1278_v58 }
 0x363   :  { %v1593_v18 = vpop.f32.mrf.mxu0 }
 0x364   :  { %v1598_v19 = vmax.f32 %v1597_v30, 0.0 }
 0x365   :  { %v1594_v31 = vpop.f32.mrf.mxu0 }
 0x366   :  { %v1600_v32 = vmax.f32 %v1439_v12, %v1598_v19  ;;  %v13905_v12 = vld [vmem:[%s17613_s9 + $0x20] ss:$8 sps:$4 sm:$0xff]  }
 0x368   :  { %1718 = vrot.lane.b32.xlu1 %v1600_v32, %s14913_s20 }
 0x38c   :  { %v1604_v33 = vpop.permute.xlu0 %1603 }
 0x38d   :  { %v1606_v34 = vmax.f32 %v1599_v14, %v1604_v33  ;;  %v13908_v14 = vld [vmem:[%s17613_s9] ss:$8 sps:$4 sm:$0xff]  }
 0x38f   :  { %v1609_v36 = vpack.c.bf16 %v1606_v34, %v1606_v34 }
 0x391   :  { %1665 = vrot.lane.b32.xlu0 %v1609_v36, %s14913_s20  ;;  %13645 = vmatmul.mubr.msk.bf16.vlgmr.msra.gmra.mxu1 %vm1616_vm8, %v1609_v36 }
 0x392   :  { %13649 = vmatpush3.bf16.msra.mxu1 %v13896_v35  ;;  %13650 = vmatprep.mubr.msk.bf16.mxu1 %vm14909_vm2, %v15496_v17  ;;  %v13911_v35 = vld [vmem:[%s17613_s9 + $0x50] ss:$8 sps:$4 sm:$0xff]  }
 0x393   :  { %13654 = vmatprep.subr.bf16.mxu1 %v15496_v17 }
 0x3da   :  { %v1719_v37 = vpop.permute.xlu1 %1718 }
 0x3db   :  { %v1721_v38 = vmax.f32 %v1600_v32, %v1719_v37 }
 0x3dd   :  { %v1725_v40 = vpack.c.bf16 %v1721_v38, %v1721_v38  ;;  %v13916_v38 = vld [vmem:[%s17613_s9 + $0x44] ss:$8 sps:$4 sm:$0xff]  }
 0x3df   :  { %1780 = vrot.lane.b32.xlu1 %v1725_v40, %s14913_s20 }
 0x403   :  { %v1666_v23 = vpop.permute.xlu0 %1665 }
 0x404   :  { %13651 = vmatmul.mubr.msk.bf16.vlgmr.msra.gmra.mxu1 %vm1616_vm8, %v1666_v23 }
 0x405   :  { %13655 = vmatpush3.bf16.msra.mxu1 %v13897_v22  ;;  %13656 = vmatprep.mubr.msk.bf16.mxu1 %vm14909_vm2, %v15496_v17 }
 0x406   :  { %13660 = vmatprep.subr.bf16.mxu1 %v15496_v17 }
 0x40c   :  { %13657 = vmatmul.mubr.msk.bf16.vlgmr.msra.gmra.mxu1 %vm1616_vm8, %v1725_v40  ;;  %v13914_v40 = vld [vmem:[%s17613_s9 + $0x40] ss:$8 sps:$4 sm:$0xff]  }
 0x40d   :  { %13661 = vmatpush3.bf16.msra.mxu1 %v13898_v24  ;;  %13662 = vmatprep.mubr.msk.bf16.mxu1 %vm14909_vm2, %v15496_v17  ;;  %v13917_v24 = vld [vmem:[#allocation6 + $0x2a8] ss:$20 sps:$4 sm:$0xff]  }
 0x40e   :  { %13666 = vmatprep.subr.bf16.mxu1 %v15496_v17 }
 0x451   :  { %v1781_v26 = vpop.permute.xlu1 %1780  ;;  %v1654_v41 = vpop.f32.mrf.mxu1 }
 0x452   :  { %13663 = vmatmul.mubr.msk.bf16.vlgmr.msra.gmra.mxu1 %vm1616_vm8, %v1781_v26  ;;  %v1660_v50 = vadd.f32 %v1654_v41, %v1601_v49  ;;  %v13919_v26 = vld [vmem:[#allocation6 + $0x2ac] ss:$20 sps:$4 sm:$0xff]   ;;  %v13920_v41 = vld [vmem:[#allocation6 + $0x2b0] ss:$20 sps:$4 sm:$0xff]  }
 0x453   :  { %v13646_v44 = vpop.f32.mrf.mxu1  ;;  %13668 = vmatprep.mubr.msk.bf16.mxu1 %vm14909_vm2, %v15496_v17  ;;  %13667 = vmatpush3.bf16.msra.mxu1 %v1841_v45  ;;  %v13926_v45 = vld [vmem:[#allocation6 + $0x288] ss:$20 sps:$4 sm:$0xff]   ;;  %v13929_v49 = vld [vmem:[#allocation6 + $0x258] ss:$20 sps:$4 sm:$0xff]  }
 0x454   :  { %1981 = vmatprep.subr.bf16.mxu1 %v13901_v7  ;;  %v13925_v44 = vld [vmem:[#allocation6 + $0x284] ss:$20 sps:$4 sm:$0xff]   ;;  %v13964_v7 = vld [vmem:[#allocation6 + $0x19c] ss:$20 sps:$4 sm:$0xff]  }
 0x455   :  { %v1657_v48 = vpop.f32.mrf.mxu1 }
 0x456   :  { %v13931_v48 = vld [vmem:[#allocation6 + $0x25c] ss:$20 sps:$4 sm:$0xff]  }
 0x457   :  { %v13647_v46 = vpop.f32.mrf.mxu1 }
 0x458   :  { %v13934_v46 = vld [vmem:[#allocation6 + $0x264] ss:$20 sps:$4 sm:$0xff]  }
 0x4c4   :  { %v1710_v51 = vpop.f32.mrf.mxu1 }
 0x4c5   :  { %v1716_v52 = vadd.f32 %v1710_v51, %v1660_v50  ;;  %v13932_v50 = vld [vmem:[#allocation6 + $0x260] ss:$20 sps:$4 sm:$0xff]  }
 0x4c6   :  { %v13652_v53 = vpop.f32.mrf.mxu1  ;;  %v13937_v51 = vld [vmem:[#allocation6 + $0x234] ss:$20 sps:$4 sm:$0xff]  }
 0x4c7   :  { %v13935_v53 = vld [vmem:[#allocation6 + $0x230] ss:$20 sps:$4 sm:$0xff]  }
 0x4c8   :  { %v1713_v54 = vpop.f32.mrf.mxu1 }
 0x4c9   :  { %v13938_v54 = vld [vmem:[#allocation6 + $0x238] ss:$20 sps:$4 sm:$0xff]  }
 0x4ca   :  { %v13653_v55 = vpop.f32.mrf.mxu1 }
 0x4cb   :  { %v13943_v55 = vld [vmem:[#allocation6 + $0x20c] ss:$20 sps:$4 sm:$0xff]  }
 0x4cc   :  { %v1769_v57 = vpop.f32.mrf.mxu1 }
 0x4cd   :  { %v1775_v58 = vadd.f32 %v1769_v57, %v1716_v52  ;;  %v13940_v52 = vld [vmem:[#allocation6 + $0x23c] ss:$20 sps:$4 sm:$0xff]   ;;  %v13946_v57 = vld [vmem:[#allocation6 + $0x214] ss:$20 sps:$4 sm:$0xff]  }
 0x4ce   :  { %v13658_v59 = vpop.f32.mrf.mxu1 }
 0x4cf   :  { %v13944_v59 = vld [vmem:[#allocation6 + $0x210] ss:$20 sps:$4 sm:$0xff]  }
 0x4d0   :  { %v1772_v60 = vpop.f32.mrf.mxu1 }
 0x4d1   :  { %v13949_v60 = vld [vmem:[#allocation6 + $0x1e4] ss:$20 sps:$4 sm:$0xff]  }
 0x4d2   :  { %v13659_v62 = vpop.f32.mrf.mxu1 }
 0x4d3   :  { %v13952_v62 = vld [vmem:[#allocation6 + $0x1ec] ss:$20 sps:$4 sm:$0xff]  }
 0x512   :  { %v1825_v17 = vpop.f32.mrf.mxu1 }
 0x513   :  { %v1831_v63 = vadd.f32 %v1825_v17, %v1775_v58  ;;  %v13941_v58 = vld [vmem:[#allocation6 + $0x208] ss:$20 sps:$4 sm:$0xff]   ;;  %v13947_v17 = vld [vmem:[#allocation6 + $0x1e0] ss:$20 sps:$4 sm:$0xff]  }
 0x514   :  { %v13664_v1 = vpop.f32.mrf.mxu1 }
 0x515   :  { %v1833_v2 = vpack.c.bf16 %v1831_v63, %v1831_v63  ;;  %v13950_v63 = vld [vmem:[#allocation6 + $0x1e8] ss:$20 sps:$4 sm:$0xff]   ;;  %v13953_v1 = vld [vmem:[#allocation6 + $0x1b8] ss:$20 sps:$4 sm:$0xff]  }
 0x516   :  { %v1828_v5 = vpop.f32.mrf.mxu1 }
 0x517   :  { %13669 = vmatmul.mubr.msk.bf16.vlgmr.msra.gmra.mxu1 %vm1835_vm10, %v1833_v2  ;;  %13675 = vmatmul.mubr.msk.bf16.vlgmr.msra.gmra.mxu0 %vm1835_vm10, %v1833_v2  ;;  %v13955_v2 = vld [vmem:[#allocation6 + $0x1bc] ss:$20 sps:$4 sm:$0xff]   ;;  %v13956_v5 = vld [vmem:[#allocation6 + $0x1c0] ss:$20 sps:$4 sm:$0xff]  }
 0x518   :  { %v13665_v6 = vpop.f32.mrf.mxu1  ;;  %2001 = vmatprep.mubr.bf16.mxu1 %v14907_v0  ;;  %2065 = vmatprep.mubr.bf16.mxu0 %v14907_v0 }
 0x519   :  { %1982 = vmatpush1.bf16.msra.mxu1 %v13899_v3  ;;  %2046 = vmatpush1.bf16.msra.mxu0 %v13902_v9  ;;  %v13958_v6 = vld [vmem:[#allocation6 + $0x1c4] ss:$20 sps:$4 sm:$0xff]   ;;  %v13961_v3 = vld [vmem:[#allocation6 + $0x194] ss:$20 sps:$4 sm:$0xff]  }
 0x51a   :  { %1983 = vmatprep.subr.bf16.mxu1 %v13907_v11  ;;  %2047 = vmatprep.subr.bf16.mxu0 %v13910_v13  ;;  %v13959_v9 = vld [vmem:[#allocation6 + $0x190] ss:$20 sps:$4 sm:$0xff]   ;;  %v13965_v13 = vld [vmem:[#allocation6 + $0x2f8] ss:$20 sps:$4 sm:$0xff]  }
 0x51b   :  { %v13967_v11 = vld [vmem:[#allocation6 + $0x2fc] ss:$20 sps:$4 sm:$0xff]  }
 0x51d   :  { %1984 = vmatpush1.bf16.msra.mxu1 %v13905_v12  ;;  %2048 = vmatpush1.bf16.msra.mxu0 %v13908_v14  ;;  %v13970_v12 = vld [vmem:[#allocation6 + $0x304] ss:$20 sps:$4 sm:$0xff]   ;;  %v13968_v14 = vld [vmem:[#allocation6 + $0x300] ss:$20 sps:$4 sm:$0xff]  }
 0x51e   :  { %2116 = vmatprep.subr.bf16.mxu1 %v13913_v15  ;;  %2640 = vmatprep.subr.bf16.mxu0 %v13919_v26  ;;  %v13973_v15 = vld [vmem:[#allocation6 + $0x2d4] ss:$20 sps:$4 sm:$0xff]  }
 0x5d7   :  { %v1877_v21 = vpop.f32.mrf.mxu1  ;;  %v1926_v25 = vpop.f32.mrf.mxu0 }
 0x5d8   :  { %v1878_v27 = vadd.f32 %v1877_v21, %v1834_v16  ;;  %v1927_v28 = vadd.f32 %v12235_v20, %v1926_v25  ;;  %v13976_v16 = vld [vmem:[#allocation6 + $0x2dc] ss:$20 sps:$4 sm:$0xff]   ;;  %v13974_v21 = vld [vmem:[#allocation6 + $0x2d8] ss:$20 sps:$4 sm:$0xff]  }
 0x5d9   :  { %v13670_v29 = vpop.f32.mrf.mxu1  ;;  %v13676_v30 = vpop.f32.mrf.mxu0  ;;  %v13971_v20 = vld [vmem:[#allocation6 + $0x2d0] ss:$20 sps:$4 sm:$0xff]  }
 0x5da   :  { %1884 = vst.msk [vmem:[#allocation3 + $0x2] sm:$0x1] %vm1883_vm11, %v1878_v27  ;;  %1932 = vst.msk [vmem:[#allocation3 + $0x4] sm:$0x1] %vm1883_vm11, %v1927_v28  ;;  %v13979_v25 = vld [vmem:[#allocation6 + $0x11c] ss:$20 sps:$4 sm:$0xff]  }
 0x5db   :  { %v1880_v18 = vpop.f32.mrf.mxu1  ;;  %v1929_v19 = vpop.f32.mrf.mxu0 }
 0x5dd   :  { %v13671_v31 = vpop.f32.mrf.mxu1  ;;  %v13677_v32 = vpop.f32.mrf.mxu0 }
 0x5de   :  { %v2147_v31 = vld [vmem:[%s17614_s10] sm:$0x3] }
 0x5e1   :  { %v1939_v33 = vld [vmem:[#allocation3 + $0x1] sm:$0x1f] }
 0x5e2   :  { %v1933_v34 = vld [vmem:[#allocation3] sm:$0x1f]  ;;  %v1945_v36 = vpack.c.bf16 %v1939_v33, %v1939_v33 }
 0x5e3   :  { %v1938_v37 = vpack.c.bf16 %v1933_v34, %v1933_v34  ;;  %v2074_v22 = vld [vmem:[#allocation3 + $0x2] sm:$0x1f]  ;;  %v14914_v34 = vmov 1966171168  }
 0x5e4   :  { %12245 = vmatmul.mubr.msk.bf16.vlgmr.msra.gmra.mxu1 %vm66_vm3, %v1945_v36  ;;  %v2080_v23 = vpack.c.bf16 %v2074_v22, %v2074_v22 }
 0x5e5   :  { %12250 = vmatmul.mubr.msk.bf16.vlgmr.msra.gmra.mxu0 %vm66_vm3, %v1938_v37  ;;  %2117 = vmatpush1.bf16.msra.mxu1 %v13911_v35  ;;  %v2167_v35 = vunpack.c.l.s4 %v14914_v34  ;;  %v2152_v37 = vrot.slane %v2147_v31, %v15172_v4  ;;  %v13993_v34 = vld [vmem:[#allocation6 + $0x78] ss:$20 sps:$4 sm:$0xff]  }
 0x5e6   :  { %2136 = vmatprep.mubr.bf16.mxu1 %v14907_v0  ;;  %2118 = vmatprep.subr.bf16.mxu1 %v13916_v38 }
 0x5e7   :  { %2641 = vmatpush1.bf16.msra.mxu0 %v13917_v24  ;;  %v2168_v26 = vunpack.c.0.s8 %v2167_v35  ;;  %v13996_v35 = vld [vmem:[#allocation6 + $0x218] ss:$20 sps:$4 sm:$0xff]  }
 0x5e8   :  { %2642 = vmatprep.subr.bf16.mxu0 %v13925_v44 }
 0x5e9   :  { %2119 = vmatpush1.bf16.msra.mxu1 %v13914_v40 }
 0x5ea   :  { %2683 = vmatprep.subr.bf16.mxu1 %v13922_v42 }
 0x5eb   :  { %2643 = vmatpush1.bf16.msra.mxu0 %v13923_v43 }
 0x5ec   :  { %12259 = vmatmul.mubr.msk.bf16.vlgmr.msra.gmra.mxu1 %vm66_vm3, %v2080_v23  ;;  %2644 = vmatprep.subr.bf16.mxu0 %v13931_v48  ;;  %v2156_v23 = vrot.slane %v2147_v31, %v15175_v8  ;;  %v13989_v31 = vld [vmem:[#allocation6 + $0xa0] ss:$20 sps:$4 sm:$0xff]  }
 0x5ed   :  { %2684 = vmatpush1.bf16.msra.mxu1 %v13920_v41 }
 0x5ee   :  { %2685 = vmatprep.subr.bf16.mxu1 %v13928_v47  ;;  %v15666_v47 = vsub.s32 %v2168_v26, %v15166_v61  ;;  %v14005_v26 = vld [vmem:[#allocation6] ss:$20 sps:$4 sm:$0xff]  }
 0x5ef   :  { %2645 = vmatpush1.bf16.msra.mxu0 %v13929_v49 }
 0x5f0   :  { %2646 = vmatprep.subr.bf16.mxu0 %v13937_v51 }
 0x5f1   :  { %2686 = vmatpush1.bf16.msra.mxu1 %v13926_v45 }
 0x5f2   :  { %2687 = vmatprep.subr.bf16.mxu1 %v13934_v46 }
 0x5f3   :  { %2647 = vmatpush1.bf16.msra.mxu0 %v13935_v53 }
 0x5f4   :  { %2648 = vmatprep.subr.bf16.mxu0 %v13943_v55 }
 0x5f5   :  { %2688 = vmatpush1.bf16.msra.mxu1 %v13932_v50 }
 0x5f6   :  { %2689 = vmatprep.subr.bf16.mxu1 %v13940_v52 }
 0x5f7   :  { %2649 = vmatpush1.bf16.msra.mxu0 %v13941_v58 }
 0x5f8   :  { %2650 = vmatprep.subr.bf16.mxu0 %v13949_v60 }
 0x5f9   :  { %2690 = vmatpush1.bf16.msra.mxu1 %v13938_v54 }
 0x5fa   :  { %2691 = vmatprep.subr.bf16.mxu1 %v13946_v57 }
 0x5fb   :  { %2651 = vmatpush1.bf16.msra.mxu0 %v13947_v17 }
 0x5fc   :  { %2652 = vmatprep.subr.bf16.mxu0 %v13955_v2 }
 0x5fd   :  { %2692 = vmatpush1.bf16.msra.mxu1 %v13944_v59 }
 0x5fe   :  { %2693 = vmatprep.subr.bf16.mxu1 %v13952_v62 }
 0x5ff   :  { %2653 = vmatpush1.bf16.msra.mxu0 %v13953_v1 }
 0x600   :  { %2654 = vmatprep.subr.bf16.mxu0 %v13961_v3 }
 0x601   :  { %2694 = vmatpush1.bf16.msra.mxu1 %v13950_v63 }
 0x602   :  { %2695 = vmatprep.subr.bf16.mxu1 %v13958_v6 }
 0x603   :  { %2655 = vmatpush1.bf16.msra.mxu0 %v13959_v9 }
 0x604   :  { %2668 = vmatprep.subr.bf16.mxu0 %v13967_v11 }
 0x605   :  { %2696 = vmatpush1.bf16.msra.mxu1 %v13956_v5 }
 0x606   :  { %2697 = vmatprep.subr.bf16.mxu1 %v13964_v7 }
 0x607   :  { %2669 = vmatpush2.bf16.msra.mxu0 %v13965_v13  ;;  %v13977_v13 = vld [vmem:[#allocation6 + $0x118] ss:$20 sps:$4 sm:$0xff]  }
 0x608   :  { %2670 = vmatprep.subr.bf16.mxu0 %v13973_v15  ;;  %v13980_v15 = vld [vmem:[#allocation6 + $0x2b8] ss:$20 sps:$4 sm:$0xff]  }
 0x609   :  { %2698 = vmatpush1.bf16.msra.mxu1 %v13962_v10 }
 0x60a   :  { %2711 = vmatprep.subr.bf16.mxu1 %v13970_v12 }
 0x60b   :  { %2671 = vmatpush2.bf16.msra.mxu0 %v13971_v20 }
 0x60c   :  { %2726 = vmatprep.subr.bf16.mxu0 %v14907_v0 }
 0x60d   :  { %2712 = vmatpush2.bf16.msra.mxu1 %v13968_v14 }
 0x60e   :  { %2713 = vmatprep.subr.bf16.mxu1 %v13976_v16 }
 0x611   :  { %2714 = vmatpush2.bf16.msra.mxu1 %v13974_v21  ;;  %v13983_v21 = vld [vmem:[#allocation6 + $0xf4] ss:$20 sps:$4 sm:$0xff]  }
 0x612   :  { %3030 = vmatprep.subr.bf16.mxu1 %v13979_v25 }
 0x6a4   :  { %v2003_v27 = vpop.f32.mrf.mxu1 }
 0x6a5   :  { %v2067_v28 = vpop.f32.mrf.mxu0 }
 0x6a6   :  { %v2005_v29 = vpop.f32.mrf.mxu1  ;;  %v2068_v36 = vadd.f32 %v2067_v28, %v2003_v27  ;;  %v13981_v27 = vld [vmem:[#allocation6 + $0xf0] ss:$20 sps:$4 sm:$0xff]  }
 0x6a7   :  { %v2069_v30 = vpop.f32.mrf.mxu0  ;;  %v13984_v28 = vld [vmem:[#allocation6 + $0x290] ss:$20 sps:$4 sm:$0xff]  }
 0x6a8   :  { %v2007_v18 = vpop.f32.mrf.mxu1  ;;  %v2070_v40 = vadd.f32 %v2069_v30, %v2005_v29  ;;  %v13987_v29 = vld [vmem:[#allocation6 + $0xcc] ss:$20 sps:$4 sm:$0xff]   ;;  %v13985_v30 = vld [vmem:[#allocation6 + $0xc8] ss:$20 sps:$4 sm:$0xff]  }
 0x6a9   :  { %v2071_v19 = vpop.f32.mrf.mxu0  ;;  %v13988_v18 = vld [vmem:[#allocation6 + $0x268] ss:$20 sps:$4 sm:$0xff]  }
 0x6aa   :  { %v2008_v32 = vpop.f32.mrf.mxu1  ;;  %v13991_v19 = vld [vmem:[#allocation6 + $0xa4] ss:$20 sps:$4 sm:$0xff]  }
 0x6ab   :  { %v2072_v33 = vpop.f32.mrf.mxu0  ;;  %v13992_v32 = vld [vmem:[#allocation6 + $0x240] ss:$20 sps:$4 sm:$0xff]  }
 0x6ac   :  { %v2138_v38 = vpop.f32.mrf.mxu1  ;;  %v13995_v33 = vld [vmem:[#allocation6 + $0x7c] ss:$20 sps:$4 sm:$0xff]  }
 0x6ad   :  { %v2145_v22 = vadd.f32 %v2138_v38, %v2068_v36  ;;  %v13999_v36 = vld [vmem:[#allocation6 + $0x54] ss:$20 sps:$4 sm:$0xff]   ;;  %v14000_v38 = vld [vmem:[#allocation6 + $0x1f0] ss:$20 sps:$4 sm:$0xff]  }
 0x6ae   :  { %v2140_v24 = vpop.f32.mrf.mxu1 }
 0x6af   :  { %v2159_v41 = vadd.f32 %v2152_v37, %v2145_v22  ;;  %v2146_v42 = vadd.f32 %v2140_v24, %v2070_v40  ;;  %v13997_v37 = vld [vmem:[#allocation6 + $0x50] ss:$20 sps:$4 sm:$0xff]   ;;  %v14003_v40 = vld [vmem:[#allocation6 + $0x2c] ss:$20 sps:$4 sm:$0xff]   ;;  %v14001_v22 = vld [vmem:[#allocation6 + $0x28] ss:$20 sps:$4 sm:$0xff]  }
 0x6b0   :  { %v2142_v43 = vpop.f32.mrf.mxu1  ;;  %v14007_v24 = vld [vmem:[#allocation6 + $0x4] ss:$20 sps:$4 sm:$0xff]  }
 0x6b1   :  { %v2160_v44 = vadd.f32 %v2156_v23, %v2146_v42  ;;  %v2161_v48 = vmax.f32 %v2159_v41, 0.0  ;;  %v14004_v23 = vld [vmem:[#allocation6 + $0x1c8] ss:$20 sps:$4 sm:$0xff]   ;;  %v14008_v41 = vld [vmem:[#allocation6 + $0x1a0] ss:$20 sps:$4 sm:$0xff]  }
 0x6b2   :  { %v2143_v45 = vpop.f32.mrf.mxu1  ;;  %v14011_v42 = vld [vmem:[#allocation6 + $0x16c] ss:$20 sps:$4 sm:$0xff]   ;;  %v14009_v43 = vld [vmem:[#allocation6 + $0x168] ss:$20 sps:$4 sm:$0xff]  }
 0x6b3   :  { %v2162_v46 = vmax.f32 %v2160_v44, 0.0  ;;  %v14012_v44 = vld [vmem:[#allocation6 + $0x308] ss:$20 sps:$4 sm:$0xff]   ;;  %v14015_v45 = vld [vmem:[#allocation6 + $0x144] ss:$20 sps:$4 sm:$0xff]  }
 0x6b5   :  { %v2165_v49 = vcombine.low %v2161_v48, %v2162_v46  ;;  %v2210_v50 = vcombine.high %v2161_v48, %v2162_v46  ;;  %v14013_v48 = vld [vmem:[#allocation6 + $0x140] ss:$20 sps:$4 sm:$0xff]  }
 0x6b6   :  { %v14016_v46 = vld [vmem:[#allocation6 + $0x2e0] ss:$20 sps:$4 sm:$0xff]  }
 0x6b7   :  { %v2172_v51 = vrot.slane %v2165_v49, %v15666_v47  ;;  %v2217_v52 = vrot.slane %v2210_v50, %v15666_v47  ;;  %v14019_v49 = vld [vmem:[#allocation6 + $0x124] ss:$20 sps:$4 sm:$0xff]  }
 0x6b9   :  { %v2179_v54 = vrot.slane %v2172_v51, %v15666_v47  ;;  %v2188_v55 = vcombine.high %v2172_v51, %v2172_v51  ;;  %v2224_v57 = vrot.slane %v2217_v52, %v15666_v47  ;;  %v14017_v52 = vld [vmem:[#allocation6 + $0x120] ss:$20 sps:$4 sm:$0xff]  }
 0x6bb   :  { %2186 = vst.msk [vmem:[#allocation4 + $0x3] ss:$8 sm:$0x3] %vm15671_vm12, %v2179_v54  ;;  %v2195_v58 = vrot.slane %v2188_v55, %v15666_v47  ;;  %v2200_v59 = vcombine.high %v2179_v54, %v2179_v54  ;;  %2227 = vst.msk [vmem:[#allocation4 + $0x17] ss:$8 sm:$0x3] %vm15671_vm12, %v2224_v57 }
 0x6bc   :  { %v14020_v55 = vld [vmem:[#allocation6 + $0x128] ss:$20 sps:$4 sm:$0xff]  }
 0x6bd   :  { %2198 = vst.msk [vmem:[#allocation4 + $0x6] ss:$8 sm:$0x3] %vm15671_vm12, %v2195_v58  ;;  %2203 = vst.msk [vmem:[#allocation4 + $0x11] ss:$8 sm:$0x3] %vm15671_vm12, %v2200_v59  ;;  %v2205_v60 = vcombine.high %v2195_v58, %v2195_v58 }
 0x6be   :  { %v14023_v57 = vld [vmem:[#allocation6 + $0xfc] ss:$20 sps:$4 sm:$0xff]   ;;  %v14021_v58 = vld [vmem:[#allocation6 + $0xf8] ss:$20 sps:$4 sm:$0xff]   ;;  %v14024_v59 = vld [vmem:[#allocation6 + $0x100] ss:$20 sps:$4 sm:$0xff]  }
 0x6bf   :  { %2208 = vst.msk [vmem:[#allocation4 + $0x14] ss:$8 sm:$0x3] %vm15671_vm12, %v2205_v60  ;;  %v14027_v60 = vld [vmem:[#allocation6 + $0xd4] ss:$20 sps:$4 sm:$0xff]  }
 0x6c4   :  { %v2296_v62 = vld [vmem:[#allocation4 + $0x8] sm:$0xfe]  ;;  %v2295_v63 = vld [vmem:[#allocation4] sm:$0xfe] }
 0x6c5   :  { %v2230_v20 = vld [vmem:[#allocation4 + $0x8] sm:$0xff]  ;;  %v2229_v51 = vld [vmem:[#allocation4] sm:$0xff] }
 0x6c6   :  { %v15688_v17 = vld [vmem:[#allocation4 + $0x18] sm:$0xff]  ;;  %v15690_v1 = vld [vmem:[#allocation4 + $0x10] sm:$0xff] }
 0x6c7   :  { %v2361_v2 = vpack.c.bf16 %v15688_v17, %v2296_v62  ;;  %v2360_v5 = vpack.c.bf16 %v15690_v1, %v2295_v63  ;;  %v2232_v16 = vld [vmem:[#allocation4 + $0x18] sm:$0x7f]  ;;  %v2231_v50 = vld [vmem:[#allocation4 + $0x10] sm:$0x7f] }
 0x6c8   :  { %v15700_v25 = vpack.c.bf16 %v2232_v16, %v2230_v20  ;;  %v15714_v54 = vpack.c.bf16 %v2231_v50, %v2229_v51  ;;  %v14025_v62 = vld [vmem:[#allocation6 + $0xd0] ss:$20 sps:$4 sm:$0xff]   ;;  %v14028_v63 = vld [vmem:[#allocation6 + $0xd8] ss:$20 sps:$4 sm:$0xff]   ;;  %v14045_v20 = vld [vmem:[#allocation6 + $0x8] ss:$20 sps:$4 sm:$0xff]  }
 0x6c9   :  { %v2372_v6 = vshll.u32 %v2361_v2, 16  ;;  %v2365_v3 = vshll.u32 %v2360_v5, 16  ;;  %v2370_v7 = vshrl.u32 %v2361_v2, 16  ;;  %v2363_v10 = vshrl.u32 %v2360_v5, 16  ;;  %v14031_v2 = vld [vmem:[#allocation6 + $0xac] ss:$20 sps:$4 sm:$0xff]  }
 0x6ca   :  { %v14029_v5 = vld [vmem:[#allocation6 + $0xa8] ss:$20 sps:$4 sm:$0xff]   ;;  %v14047_v16 = vld [vmem:[#allocation6 + $0xc] ss:$20 sps:$4 sm:$0xff]  }
 0x6cb   :  { %v2374_v9 = vrot.slane %v2372_v6, 1  ;;  %v2367_v11 = vrot.slane %v2365_v3, 1  ;;  %v14032_v6 = vld [vmem:[#allocation6 + $0xb0] ss:$20 sps:$4 sm:$0xff]   ;;  %v14078_v50 = vld [vmem:[#allocation6 + $0x3c8] ss:$20 sps:$4 sm:$0xff]  }
 0x6cc   :  { %v14035_v3 = vld [vmem:[#allocation6 + $0x84] ss:$20 sps:$4 sm:$0xff]   ;;  %v14083_v51 = vld [vmem:[#allocation6 + $0x39c] ss:$20 sps:$4 sm:$0xff]  }
 0x6cd   :  { %v2375_v12 = vor.u32 %v2374_v9, %v2370_v7  ;;  %v15694_v14 = vor.u32 %v2367_v11, %v2363_v10  ;;  %v14033_v7 = vld [vmem:[#allocation6 + $0x80] ss:$20 sps:$4 sm:$0xff]   ;;  %v14036_v9 = vld [vmem:[#allocation6 + $0x88] ss:$20 sps:$4 sm:$0xff]   ;;  %v14037_v11 = vld [vmem:[#allocation6 + $0x58] ss:$20 sps:$4 sm:$0xff]  }
 0x6ce   :  { %v14039_v10 = vld [vmem:[#allocation6 + $0x5c] ss:$20 sps:$4 sm:$0xff]  }
 0x6cf   :  { %12310 = vmatprep.mubr.msk.bf16.mxu0 %vm66_vm3, %v2375_v12  ;;  %12311 = vmatprep.mubr.msk.bf16.mxu1 %vm66_vm3, %v2375_v12 }
 0x6d0   :  { %2673 = vmatmul.mubr.bf16.vlgmr.msra.gmra.mxu0 %v15694_v14  ;;  %2716 = vmatmul.mubr.bf16.vlgmr.msra.gmra.mxu1 %v15694_v14 }
 0x6d1   :  { %2727 = vmatpush1.bf16.msra.mxu0 %v13980_v15  ;;  %3031 = vmatpush1.bf16.msra.mxu1 %v13977_v13  ;;  %v14043_v13 = vld [vmem:[#allocation6 + $0x34] ss:$20 sps:$4 sm:$0xff]   ;;  %v14044_v15 = vld [vmem:[#allocation6 + $0x38] ss:$20 sps:$4 sm:$0xff]  }
 0x6d2   :  { %12312 = vmatprep.mubr.msk.bf16.mxu0 %vm66_vm3, %v2375_v12  ;;  %12363 = vmatprep.mubr.msk.bf16.mxu1 %vm66_vm3, %v15700_v25  ;;  %v14040_v12 = vld [vmem:[#allocation6 + $0x60] ss:$20 sps:$4 sm:$0xff]  }
 0x6d3   :  { %2728 = vmatprep.subr.bf16.mxu0 %v14907_v0  ;;  %3032 = vmatprep.subr.bf16.mxu1 %v13983_v21  ;;  %v14048_v21 = vld [vmem:[#allocation6 + $0x10] ss:$20 sps:$4 sm:$0xff]  }
 0x6d5   :  { %2729 = vmatpush1.bf16.msra.mxu0 %v13984_v28  ;;  %3033 = vmatpush1.bf16.msra.mxu1 %v13981_v27  ;;  %v14049_v27 = vld [vmem:[#allocation6 + $0x170] ss:$20 sps:$4 sm:$0xff]   ;;  %v14052_v28 = vld [vmem:[#allocation6 + $0x178] ss:$20 sps:$4 sm:$0xff]  }
 0x6d6   :  { %2730 = vmatprep.subr.bf16.mxu0 %v14907_v0  ;;  %3034 = vmatprep.subr.bf16.mxu1 %v13987_v29  ;;  %v14055_v29 = vld [vmem:[#allocation6 + $0x14c] ss:$20 sps:$4 sm:$0xff]  }
 0x6d9   :  { %2731 = vmatpush1.bf16.msra.mxu0 %v13988_v18  ;;  %3035 = vmatpush1.bf16.msra.mxu1 %v13985_v30  ;;  %v3162_v30 = vld [vmem:[#allocation4 + $0x28] sm:$0x1]  ;;  %v3158_v18 = vld [vmem:[#allocation4 + $0x8] sm:$0xfc] }
 0x6da   :  { %2732 = vmatprep.subr.bf16.mxu0 %v14907_v0  ;;  %3036 = vmatprep.subr.bf16.mxu1 %v13991_v19  ;;  %v14053_v19 = vld [vmem:[#allocation6 + $0x148] ss:$20 sps:$4 sm:$0xff]  }
 0x6dd   :  { %2733 = vmatpush1.bf16.msra.mxu0 %v13992_v32  ;;  %3037 = vmatpush1.bf16.msra.mxu1 %v13989_v31  ;;  %v3225_v31 = vpack.c.bf16 %v15688_v17, %v3158_v18  ;;  %v3227_v32 = vpack.c.bf16 %v3162_v30, %v3162_v30 }
 0x6de   :  { %2734 = vmatprep.subr.bf16.mxu0 %v14907_v0  ;;  %3038 = vmatprep.subr.bf16.mxu1 %v13995_v33  ;;  %v14056_v33 = vld [vmem:[#allocation6 + $0x150] ss:$20 sps:$4 sm:$0xff]  }
 0x6e1   :  { %2735 = vmatpush1.bf16.msra.mxu0 %v13996_v35  ;;  %3039 = vmatpush1.bf16.msra.mxu1 %v13993_v34  ;;  %v14059_v34 = vld [vmem:[#allocation6 + $0x43c] ss:$20 sps:$4 sm:$0xff]   ;;  %v14062_v35 = vld [vmem:[#allocation6 + $0x444] ss:$20 sps:$4 sm:$0xff]  }
 0x6e2   :  { %2736 = vmatprep.subr.bf16.mxu0 %v14907_v0  ;;  %3040 = vmatprep.subr.bf16.mxu1 %v13999_v36  ;;  %v14057_v36 = vld [vmem:[#allocation6 + $0x438] ss:$20 sps:$4 sm:$0xff]  }
 0x6e5   :  { %2737 = vmatpush1.bf16.msra.mxu0 %v14000_v38  ;;  %3041 = vmatpush1.bf16.msra.mxu1 %v13997_v37  ;;  %v3236_v37 = vrot.slane %v3225_v31, 1  ;;  %v3237_v38 = vrot.slane %v3227_v32, 1 }
 0x6e6   :  { %2738 = vmatprep.subr.bf16.mxu0 %v14907_v0  ;;  %3042 = vmatprep.subr.bf16.mxu1 %v14003_v40  ;;  %v14060_v40 = vld [vmem:[#allocation6 + $0x440] ss:$20 sps:$4 sm:$0xff]  }
 0x6e9   :  { %2739 = vmatpush1.bf16.msra.mxu0 %v14004_v23  ;;  %3043 = vmatpush1.bf16.msra.mxu1 %v14001_v22  ;;  %v14065_v22 = vld [vmem:[#allocation6 + $0x414] ss:$20 sps:$4 sm:$0xff]   ;;  %v14068_v23 = vld [vmem:[#allocation6 + $0x41c] ss:$20 sps:$4 sm:$0xff]  }
 0x6ea   :  { %2740 = vmatprep.subr.bf16.mxu0 %v14907_v0  ;;  %3044 = vmatprep.subr.bf16.mxu1 %v14007_v24  ;;  %v15736_v24 = vsel %vm3232_vm13, %v3236_v37, %v3237_v38 }
 0x6ed   :  { %2741 = vmatpush1.bf16.msra.mxu0 %v14008_v41  ;;  %3045 = vmatpush1.bf16.msra.mxu1 %v14005_v26  ;;  %v14063_v26 = vld [vmem:[#allocation6 + $0x410] ss:$20 sps:$4 sm:$0xff]   ;;  %v14066_v41 = vld [vmem:[#allocation6 + $0x418] ss:$20 sps:$4 sm:$0xff]  }
 0x6ee   :  { %2754 = vmatprep.subr.bf16.mxu0 %v14907_v0  ;;  %3058 = vmatprep.subr.bf16.mxu1 %v14011_v42  ;;  %v14071_v42 = vld [vmem:[#allocation6 + $0x3ec] ss:$20 sps:$4 sm:$0xff]  }
 0x6f1   :  { %2755 = vmatpush2.bf16.msra.mxu0 %v14012_v44  ;;  %3059 = vmatpush2.bf16.msra.mxu1 %v14009_v43  ;;  %v14074_v43 = vld [vmem:[#allocation6 + $0x3f4] ss:$20 sps:$4 sm:$0xff]  }
 0x6f2   :  { %2756 = vmatprep.subr.bf16.mxu0 %v14907_v0  ;;  %3060 = vmatprep.subr.bf16.mxu1 %v14015_v45  ;;  %v14069_v44 = vld [vmem:[#allocation6 + $0x3e8] ss:$20 sps:$4 sm:$0xff]   ;;  %v14072_v45 = vld [vmem:[#allocation6 + $0x3f0] ss:$20 sps:$4 sm:$0xff]  }
 0x6f5   :  { %2757 = vmatpush2.bf16.msra.mxu0 %v14016_v46  ;;  %3061 = vmatpush2.bf16.msra.mxu1 %v14013_v48  ;;  %v14077_v48 = vld [vmem:[#allocation6 + $0x3c4] ss:$20 sps:$4 sm:$0xff]   ;;  %v14080_v46 = vld [vmem:[#allocation6 + $0x3cc] ss:$20 sps:$4 sm:$0xff]  }
 0x6f6   :  { %3073 = vmatprep.subr.bf16.mxu0 %v14019_v49  ;;  %3116 = vmatprep.subr.bf16.mxu1 %v14907_v0  ;;  %v14075_v49 = vld [vmem:[#allocation6 + $0x3c0] ss:$20 sps:$4 sm:$0xff]  }
 0x6f8   :  { %2759 = vmatmul.mubr.bf16.vlgmr.msra.gmra.mxu0 %v15694_v14  ;;  %3063 = vmatmul.mubr.bf16.vlgmr.msra.gmra.mxu1 %v15714_v54  ;;  %v14041_v14 = vld [vmem:[#allocation6 + $0x30] ss:$20 sps:$4 sm:$0xff]  }
 0x6f9   :  { %3074 = vmatpush1.bf16.msra.mxu0 %v14017_v52  ;;  %12364 = vmatprep.mubr.msk.bf16.mxu0 %vm66_vm3, %v15700_v25  ;;  %v14086_v52 = vld [vmem:[#allocation6 + $0x3a4] ss:$20 sps:$4 sm:$0xff]  }
 0x6fa   :  { %3117 = vmatpush1.bf16.msra.mxu1 %v14020_v55  ;;  %12365 = vmatprep.mubr.msk.bf16.mxu1 %vm66_vm3, %v15700_v25  ;;  %v14051_v25 = vld [vmem:[#allocation6 + $0x174] ss:$20 sps:$4 sm:$0xff]  }
 0x6fb   :  { %3075 = vmatprep.subr.bf16.mxu0 %v14023_v57  ;;  %3118 = vmatprep.subr.bf16.mxu1 %v14907_v0  ;;  %v14084_v55 = vld [vmem:[#allocation6 + $0x3a0] ss:$20 sps:$4 sm:$0xff]  }
 0x6fc   :  { %v14089_v57 = vld [vmem:[#allocation6 + $0x374] ss:$20 sps:$4 sm:$0xff]  }
 0x6fd   :  { %3076 = vmatpush1.bf16.msra.mxu0 %v14021_v58  ;;  %v14092_v58 = vld [vmem:[#allocation6 + $0x37c] ss:$20 sps:$4 sm:$0xff]  }
 0x6fe   :  { %3119 = vmatpush1.bf16.msra.mxu1 %v14024_v59  ;;  %3077 = vmatprep.subr.bf16.mxu0 %v14027_v60  ;;  %v14087_v59 = vld [vmem:[#allocation6 + $0x370] ss:$20 sps:$4 sm:$0xff]   ;;  %v14090_v60 = vld [vmem:[#allocation6 + $0x378] ss:$20 sps:$4 sm:$0xff]  }
 0x6ff   :  { %3120 = vmatprep.subr.bf16.mxu1 %v14907_v0 }
 0x701   :  { %3078 = vmatpush1.bf16.msra.mxu0 %v14025_v62  ;;  %v14095_v62 = vld [vmem:[#allocation6 + $0x34c] ss:$20 sps:$4 sm:$0xff]  }
 0x702   :  { %3121 = vmatpush1.bf16.msra.mxu1 %v14028_v63  ;;  %3079 = vmatprep.subr.bf16.mxu0 %v14031_v2  ;;  %v14098_v63 = vld [vmem:[#allocation6 + $0x354] ss:$20 sps:$4 sm:$0xff]  }
 0x703   :  { %3122 = vmatprep.subr.bf16.mxu1 %v14907_v0  ;;  %v14093_v2 = vld [vmem:[#allocation6 + $0x348] ss:$20 sps:$4 sm:$0xff]  }
 0x705   :  { %3080 = vmatpush1.bf16.msra.mxu0 %v14029_v5  ;;  %v14096_v5 = vld [vmem:[#allocation6 + $0x350] ss:$20 sps:$4 sm:$0xff]  }
 0x706   :  { %3123 = vmatpush1.bf16.msra.mxu1 %v14032_v6  ;;  %3081 = vmatprep.subr.bf16.mxu0 %v14035_v3  ;;  %v14101_v6 = vld [vmem:[#allocation6 + $0x324] ss:$20 sps:$4 sm:$0xff]  }
 0x707   :  { %3124 = vmatprep.subr.bf16.mxu1 %v14907_v0  ;;  %v3643_v3 = vld [vmem:[#allocation4 + $0x28] sm:$0x3] }
 0x709   :  { %3082 = vmatpush1.bf16.msra.mxu0 %v14033_v7  ;;  %v14104_v7 = vld [vmem:[#allocation6 + $0x32c] ss:$20 sps:$4 sm:$0xff]  }
 0x70a   :  { %3125 = vmatpush1.bf16.msra.mxu1 %v14036_v9  ;;  %3083 = vmatprep.subr.bf16.mxu0 %v14039_v10  ;;  %v14099_v9 = vld [vmem:[#allocation6 + $0x320] ss:$20 sps:$4 sm:$0xff]   ;;  %v3641_v10 = vld [vmem:[#allocation4 + $0x8] sm:$0xf8] }
 0x70b   :  { %3126 = vmatprep.subr.bf16.mxu1 %v14907_v0 }
 0x70d   :  { %3084 = vmatpush1.bf16.msra.mxu0 %v14037_v11  ;;  %v3708_v11 = vpack.c.bf16 %v3643_v3, %v3643_v3  ;;  %v14141_v3 = vld [vmem:[#allocation6 + $0x4d8] ss:$20 sps:$4 sm:$0xff]  }
 0x70e   :  { %3127 = vmatpush1.bf16.msra.mxu1 %v14040_v12  ;;  %3085 = vmatprep.subr.bf16.mxu0 %v14043_v13  ;;  %v14102_v12 = vld [vmem:[#allocation6 + $0x328] ss:$20 sps:$4 sm:$0xff]   ;;  %v14107_v13 = vld [vmem:[#allocation6 + $0x48c] ss:$20 sps:$4 sm:$0xff]  }
 0x70f   :  { %3128 = vmatprep.subr.bf16.mxu1 %v14907_v0 }
 0x711   :  { %3086 = vmatpush1.bf16.msra.mxu0 %v14041_v14  ;;  %v3706_v14 = vpack.c.bf16 %v15688_v17, %v3641_v10 }
 0x712   :  { %3129 = vmatpush1.bf16.msra.mxu1 %v14044_v15  ;;  %3087 = vmatprep.subr.bf16.mxu0 %v14047_v16  ;;  %v14110_v15 = vld [vmem:[#allocation6 + $0x494] ss:$20 sps:$4 sm:$0xff]   ;;  %v3161_v16 = vld [vmem:[#allocation4 + $0x20] sm:$0x1] }
 0x713   :  { %3130 = vmatprep.subr.bf16.mxu1 %v14907_v0  ;;  %v3728_v30 = vshrl.u32 %v3706_v14, 16  ;;  %v3731_v18 = vshll.u32 %v3706_v14, 16  ;;  %v3226_v32 = vpack.c.bf16 %v3161_v16, %v3161_v16  ;;  %v14151_v14 = vld [vmem:[#allocation6 + $0x61c] ss:$20 sps:$4 sm:$0xff]  }
 0x715   :  { %3088 = vmatpush1.bf16.msra.mxu0 %v14045_v20  ;;  %v14105_v20 = vld [vmem:[#allocation6 + $0x488] ss:$20 sps:$4 sm:$0xff]  }
 0x716   :  { %3131 = vmatpush1.bf16.msra.mxu1 %v14048_v21  ;;  %3101 = vmatprep.subr.bf16.mxu0 %v14051_v25  ;;  %v14108_v21 = vld [vmem:[#allocation6 + $0x490] ss:$20 sps:$4 sm:$0xff]   ;;  %v3736_v25 = vshrl.u32 %v3708_v11, 16 }
 0x717   :  { %3144 = vmatprep.subr.bf16.mxu1 %v14907_v0 }
 0x718   :  { %v3738_v37 = vrot.slane %v3736_v25, 1  ;;  %v14152_v25 = vld [vmem:[#allocation6 + $0x498] ss:$20 sps:$4 sm:$0xff]  }
 0x719   :  { %3102 = vmatpush2.bf16.msra.mxu0 %v14049_v27  ;;  %v3739_v27 = vshll.u32 %v3708_v11, 16 }
 0x71a   :  { %3145 = vmatpush2.bf16.msra.mxu1 %v14052_v28  ;;  %3103 = vmatprep.subr.bf16.mxu0 %v14055_v29  ;;  %v14113_v28 = vld [vmem:[#allocation6 + $0x464] ss:$20 sps:$4 sm:$0xff]   ;;  %v3157_v29 = vld [vmem:[#allocation4] sm:$0xfc] }
 0x71b   :  { %3146 = vmatprep.subr.bf16.mxu1 %v14907_v0  ;;  %v3224_v31 = vpack.c.bf16 %v15690_v1, %v3157_v29  ;;  %v3741_v38 = vrot.slane %v3739_v27, 2  ;;  %v14149_v27 = vld [vmem:[#allocation6 + $0x618] ss:$20 sps:$4 sm:$0xff]  }
 0x71d   :  { %3104 = vmatpush2.bf16.msra.mxu0 %v14053_v19  ;;  %v14116_v19 = vld [vmem:[#allocation6 + $0x46c] ss:$20 sps:$4 sm:$0xff]  }
 0x71e   :  { %3147 = vmatpush2.bf16.msra.mxu1 %v14056_v33  ;;  %3503 = vmatprep.subr.bf16.mxu0 %v14059_v34  ;;  %v14111_v33 = vld [vmem:[#allocation6 + $0x460] ss:$20 sps:$4 sm:$0xff]   ;;  %v14114_v34 = vld [vmem:[#allocation6 + $0x468] ss:$20 sps:$4 sm:$0xff]  }
 0x71f   :  { %3546 = vmatprep.subr.bf16.mxu1 %v14062_v35  ;;  %v3730_v35 = vrot.slane %v3728_v30, 1 }
 0x720   :  { %3106 = vmatmul.mubr.bf16.vlgmr.msra.gmra.mxu0 %v15714_v54 }
 0x721   :  { %3149 = vmatmul.mubr.bf16.vlgmr.msra.gmra.mxu1 %v15714_v54  ;;  %3504 = vmatpush1.bf16.msra.mxu0 %v14057_v36  ;;  %v14081_v54 = vld [vmem:[#allocation6 + $0x398] ss:$20 sps:$4 sm:$0xff]   ;;  %v3733_v36 = vrot.slane %v3731_v18, 2 }
 0x722   :  { %12416 = vmatprep.mubr.msk.bf16.mxu0 %vm66_vm3, %v15736_v24  ;;  %3547 = vmatpush1.bf16.msra.mxu1 %v14060_v40  ;;  %v3233_v40 = vrot.slane %v3224_v31, 1  ;;  %v14153_v31 = vld [vmem:[#allocation6 + $0x5f0] ss:$20 sps:$4 sm:$0xff]  }
 0x723   :  { %12417 = vmatprep.mubr.msk.bf16.mxu1 %vm66_vm3, %v15736_v24  ;;  %3505 = vmatprep.subr.bf16.mxu0 %v14065_v22  ;;  %v3234_v22 = vrot.slane %v3226_v32, 1  ;;  %v14159_v32 = vld [vmem:[#allocation6 + $0x5d4] ss:$20 sps:$4 sm:$0xff]  }
 0x724   :  { %3548 = vmatprep.subr.bf16.mxu1 %v14068_v23  ;;  %v14119_v23 = vld [vmem:[#allocation6 + $0x5cc] ss:$20 sps:$4 sm:$0xff]  }
 0x725   :  { %3506 = vmatpush1.bf16.msra.mxu0 %v14063_v26  ;;  %v14120_v26 = vld [vmem:[#allocation6 + $0x448] ss:$20 sps:$4 sm:$0xff]  }
 0x726   :  { %3549 = vmatpush1.bf16.msra.mxu1 %v14066_v41  ;;  %3507 = vmatprep.subr.bf16.mxu0 %v14071_v42  ;;  %v14117_v41 = vld [vmem:[#allocation6 + $0x5c8] ss:$20 sps:$4 sm:$0xff]   ;;  %v3734_v42 = vor.u32 %v3733_v36, %v3730_v35  ;;  %v14157_v35 = vld [vmem:[#allocation6 + $0x5d0] ss:$20 sps:$4 sm:$0xff]   ;;  %v14160_v36 = vld [vmem:[#allocation6 + $0x5d8] ss:$20 sps:$4 sm:$0xff]  }
 0x727   :  { %3550 = vmatprep.subr.bf16.mxu1 %v14074_v43  ;;  %v3742_v43 = vor.u32 %v3741_v38, %v3738_v37  ;;  %v14163_v37 = vld [vmem:[#allocation6 + $0x5ac] ss:$20 sps:$4 sm:$0xff]  }
 0x729   :  { %3508 = vmatpush1.bf16.msra.mxu0 %v14069_v44  ;;  %v15746_v44 = vsel %vm3232_vm13, %v3233_v40, %v3234_v22  ;;  %v14161_v40 = vld [vmem:[#allocation6 + $0x5a8] ss:$20 sps:$4 sm:$0xff]   ;;  %v14164_v22 = vld [vmem:[#allocation6 + $0x5b0] ss:$20 sps:$4 sm:$0xff]   ;;  %vm69_vm13 = vcmask 259072  }
 0x72a   :  { %3551 = vmatpush1.bf16.msra.mxu1 %v14072_v45  ;;  %3509 = vmatprep.subr.bf16.mxu0 %v14077_v48  ;;  %v14123_v45 = vld [vmem:[#allocation6 + $0x5a4] ss:$20 sps:$4 sm:$0xff]   ;;  %v14124_v48 = vld [vmem:[#allocation6 + $0x420] ss:$20 sps:$4 sm:$0xff]  }
 0x72b   :  { %3552 = vmatprep.subr.bf16.mxu1 %v14080_v46  ;;  %v15753_v46 = vsel %vm3709_vm14, %v3734_v42, %v3742_v43  ;;  %v14171_v42 = vld [vmem:[#allocation6 + $0x55c] ss:$20 sps:$4 sm:$0xff]   ;;  %v14169_v43 = vld [vmem:[#allocation6 + $0x558] ss:$20 sps:$4 sm:$0xff]  }
 0x72d   :  { %3510 = vmatpush1.bf16.msra.mxu0 %v14075_v49  ;;  %v14121_v49 = vld [vmem:[#allocation6 + $0x5a0] ss:$20 sps:$4 sm:$0xff]  }
 0x72e   :  { %3553 = vmatpush1.bf16.msra.mxu1 %v14078_v50  ;;  %3511 = vmatprep.subr.bf16.mxu0 %v14083_v51  ;;  %v14127_v50 = vld [vmem:[#allocation6 + $0x57c] ss:$20 sps:$4 sm:$0xff]   ;;  %v14128_v51 = vld [vmem:[#allocation6 + $0x3f8] ss:$20 sps:$4 sm:$0xff]  }
 0x72f   :  { %3554 = vmatprep.subr.bf16.mxu1 %v14086_v52  ;;  %v14125_v52 = vld [vmem:[#allocation6 + $0x578] ss:$20 sps:$4 sm:$0xff]  }
 0x731   :  { %3512 = vmatpush1.bf16.msra.mxu0 %v14081_v54  ;;  %v14132_v54 = vld [vmem:[#allocation6 + $0x3d0] ss:$20 sps:$4 sm:$0xff]  }
 0x732   :  { %3555 = vmatpush1.bf16.msra.mxu1 %v14084_v55  ;;  %3513 = vmatprep.subr.bf16.mxu0 %v14089_v57  ;;  %v14129_v55 = vld [vmem:[#allocation6 + $0x550] ss:$20 sps:$4 sm:$0xff]   ;;  %v14135_v57 = vld [vmem:[#allocation6 + $0x52c] ss:$20 sps:$4 sm:$0xff]  }
 0x733   :  { %3556 = vmatprep.subr.bf16.mxu1 %v14092_v58  ;;  %v14136_v58 = vld [vmem:[#allocation6 + $0x3a8] ss:$20 sps:$4 sm:$0xff]  }
 0x735   :  { %3514 = vmatpush1.bf16.msra.mxu0 %v14087_v59  ;;  %v14133_v59 = vld [vmem:[#allocation6 + $0x528] ss:$20 sps:$4 sm:$0xff]  }
 0x736   :  { %3557 = vmatpush1.bf16.msra.mxu1 %v14090_v60  ;;  %3515 = vmatprep.subr.bf16.mxu0 %v14095_v62  ;;  %v14139_v60 = vld [vmem:[#allocation6 + $0x504] ss:$20 sps:$4 sm:$0xff]   ;;  %v14140_v62 = vld [vmem:[#allocation6 + $0x380] ss:$20 sps:$4 sm:$0xff]  }
 0x737   :  { %3558 = vmatprep.subr.bf16.mxu1 %v14098_v63  ;;  %v14137_v63 = vld [vmem:[#allocation6 + $0x500] ss:$20 sps:$4 sm:$0xff]  }
 0x739   :  { %3516 = vmatpush1.bf16.msra.mxu0 %v14093_v2  ;;  %v14143_v2 = vld [vmem:[#allocation6 + $0x4dc] ss:$20 sps:$4 sm:$0xff]  }
 0x73a   :  { %3559 = vmatpush1.bf16.msra.mxu1 %v14096_v5  ;;  %3517 = vmatprep.subr.bf16.mxu0 %v14101_v6  ;;  %v14144_v5 = vld [vmem:[#allocation6 + $0x358] ss:$20 sps:$4 sm:$0xff]   ;;  %v3642_v6 = vld [vmem:[#allocation4 + $0x20] sm:$0x3] }
 0x73b   :  { %3560 = vmatprep.subr.bf16.mxu1 %v14104_v7  ;;  %v14147_v7 = vld [vmem:[#allocation6 + $0x4b4] ss:$20 sps:$4 sm:$0xff]   ;;  %v3707_v11 = vpack.c.bf16 %v3642_v6, %v3642_v6  ;;  %v14193_v6 = vld [vmem:[#allocation6 + $0x5f8] ss:$20 sps:$4 sm:$0xff]  }
 0x73d   :  { %3518 = vmatpush1.bf16.msra.mxu0 %v14099_v9  ;;  %v3640_v9 = vld [vmem:[#allocation4] sm:$0xf8] }
 0x73e   :  { %3561 = vmatpush1.bf16.msra.mxu1 %v14102_v12  ;;  %3531 = vmatprep.subr.bf16.mxu0 %v14107_v13  ;;  %v3705_v10 = vpack.c.bf16 %v15690_v1, %v3640_v9  ;;  %v14148_v12 = vld [vmem:[#allocation6 + $0x330] ss:$20 sps:$4 sm:$0xff]   ;;  %v14155_v1 = vld [vmem:[#allocation6 + $0x5f4] ss:$20 sps:$4 sm:$0xff]  }
 0x73f   :  { %3574 = vmatprep.subr.bf16.mxu1 %v14110_v15  ;;  %v14145_v13 = vld [vmem:[#allocation6 + $0x4b0] ss:$20 sps:$4 sm:$0xff]   ;;  %v14196_v9 = vld [vmem:[#allocation6 + $0x600] ss:$20 sps:$4 sm:$0xff]  }
 0x740   :  { %v3711_v15 = vshrl.u32 %v3705_v10, 16  ;;  %v3714_v16 = vshll.u32 %v3705_v10, 16  ;;  %v14199_v10 = vld [vmem:[#allocation6 + $0x75c] ss:$20 sps:$4 sm:$0xff]  }
 0x741   :  { %3532 = vmatpush2.bf16.msra.mxu0 %v14105_v20  ;;  %v3719_v20 = vshrl.u32 %v3707_v11, 16 }
 0x742   :  { %3575 = vmatpush2.bf16.msra.mxu1 %v14108_v21  ;;  %3533 = vmatprep.subr.bf16.mxu0 %v14113_v28  ;;  %v3722_v21 = vshll.u32 %v3707_v11, 16  ;;  %v3713_v28 = vrot.slane %v3711_v15, 1  ;;  %v3716_v29 = vrot.slane %v3714_v16, 2  ;;  %v14202_v11 = vld [vmem:[#allocation6 + $0x764] ss:$20 sps:$4 sm:$0xff]  }
 0x743   :  { %3576 = vmatprep.subr.bf16.mxu1 %v14116_v19  ;;  %v3721_v30 = vrot.slane %v3719_v20, 1  ;;  %v14156_v19 = vld [vmem:[#allocation6 + $0x470] ss:$20 sps:$4 sm:$0xff]   ;;  %v14200_v15 = vld [vmem:[#allocation6 + $0x760] ss:$20 sps:$4 sm:$0xff]  }
 0x744   :  { %v3724_v18 = vrot.slane %v3722_v21, 2  ;;  %v14205_v16 = vld [vmem:[#allocation6 + $0x734] ss:$20 sps:$4 sm:$0xff]   ;;  %v14203_v21 = vld [vmem:[#allocation6 + $0x730] ss:$20 sps:$4 sm:$0xff]  }
 0x745   :  { %3534 = vmatpush2.bf16.msra.mxu0 %v14111_v33  ;;  %v3717_v33 = vor.u32 %v3716_v29, %v3713_v28  ;;  %v14209_v28 = vld [vmem:[#allocation6 + $0x708] ss:$20 sps:$4 sm:$0xff]   ;;  %v14212_v29 = vld [vmem:[#allocation6 + $0x710] ss:$20 sps:$4 sm:$0xff]  }
 0x746   :  { %3577 = vmatpush2.bf16.msra.mxu1 %v14114_v34  ;;  %3589 = vmatprep.subr.bf16.mxu0 %v14907_v0  ;;  %v3725_v34 = vor.u32 %v3724_v18, %v3721_v30  ;;  %v14217_v30 = vld [vmem:[#allocation6 + $0x6e4] ss:$20 sps:$4 sm:$0xff]   ;;  %v14220_v18 = vld [vmem:[#allocation6 + $0x6ec] ss:$20 sps:$4 sm:$0xff]  }
 0x747   :  { %4008 = vmatprep.subr.bf16.mxu1 %v14119_v23  ;;  %v14167_v23 = vld [vmem:[#allocation6 + $0x584] ss:$20 sps:$4 sm:$0xff]  }
 0x748   :  { %3536 = vmatmul.mubr.bf16.vlgmr.msra.gmra.mxu0 %v15746_v44  ;;  %v15770_v38 = vsel %vm3709_vm14, %v3717_v33, %v3725_v34  ;;  %v14226_v33 = vld [vmem:[#allocation6 + $0x6c4] ss:$20 sps:$4 sm:$0xff]  }
 0x749   :  { %3579 = vmatmul.mubr.bf16.vlgmr.msra.gmra.mxu1 %v15746_v44  ;;  %3590 = vmatpush1.bf16.msra.mxu0 %v14120_v26  ;;  %v14165_v26 = vld [vmem:[#allocation6 + $0x580] ss:$20 sps:$4 sm:$0xff]   ;;  %v14221_v34 = vld [vmem:[#allocation6 + $0x6b8] ss:$20 sps:$4 sm:$0xff]  }
 0x74a   :  { %12418 = vmatprep.mubr.msk.bf16.mxu0 %vm66_vm3, %v15736_v24  ;;  %4009 = vmatpush1.bf16.msra.mxu1 %v14117_v41  ;;  %v14131_v24 = vld [vmem:[#allocation6 + $0x554] ss:$20 sps:$4 sm:$0xff]  }
 0x74b   :  { %12469 = vmatprep.mubr.msk.bf16.mxu1 %vm66_vm3, %v15753_v46  ;;  %3591 = vmatprep.subr.bf16.mxu0 %v14907_v0  ;;  %v14168_v41 = vld [vmem:[#allocation6 + $0x588] ss:$20 sps:$4 sm:$0xff]  }
 0x74c   :  { %4010 = vmatprep.subr.bf16.mxu1 %v14123_v45  ;;  %v14175_v45 = vld [vmem:[#allocation6 + $0x534] ss:$20 sps:$4 sm:$0xff]  }
 0x74d   :  { %3592 = vmatpush1.bf16.msra.mxu0 %v14124_v48  ;;  %v14173_v48 = vld [vmem:[#allocation6 + $0x530] ss:$20 sps:$4 sm:$0xff]  }
 0x74e   :  { %4011 = vmatpush1.bf16.msra.mxu1 %v14121_v49  ;;  %3593 = vmatprep.subr.bf16.mxu0 %v14907_v0  ;;  %v14179_v49 = vld [vmem:[#allocation6 + $0x50c] ss:$20 sps:$4 sm:$0xff]  }
 0x74f   :  { %4012 = vmatprep.subr.bf16.mxu1 %v14127_v50  ;;  %v14177_v50 = vld [vmem:[#allocation6 + $0x508] ss:$20 sps:$4 sm:$0xff]  }
 0x751   :  { %3594 = vmatpush1.bf16.msra.mxu0 %v14128_v51  ;;  %v14180_v51 = vld [vmem:[#allocation6 + $0x510] ss:$20 sps:$4 sm:$0xff]  }
 0x752   :  { %4013 = vmatpush1.bf16.msra.mxu1 %v14125_v52  ;;  %3595 = vmatprep.subr.bf16.mxu0 %v14907_v0  ;;  %v14183_v52 = vld [vmem:[#allocation6 + $0x4e4] ss:$20 sps:$4 sm:$0xff]  }
 0x753   :  { %4014 = vmatprep.subr.bf16.mxu1 %v14131_v24  ;;  %v14181_v24 = vld [vmem:[#allocation6 + $0x4e0] ss:$20 sps:$4 sm:$0xff]  }
 0x755   :  { %3596 = vmatpush1.bf16.msra.mxu0 %v14132_v54  ;;  %v14184_v54 = vld [vmem:[#allocation6 + $0x4e8] ss:$20 sps:$4 sm:$0xff]  }
 0x756   :  { %4015 = vmatpush1.bf16.msra.mxu1 %v14129_v55  ;;  %3597 = vmatprep.subr.bf16.mxu0 %v14907_v0  ;;  %v14187_v55 = vld [vmem:[#allocation6 + $0x4bc] ss:$20 sps:$4 sm:$0xff]  }
 0x757   :  { %4016 = vmatprep.subr.bf16.mxu1 %v14135_v57  ;;  %v14185_v57 = vld [vmem:[#allocation6 + $0x4b8] ss:$20 sps:$4 sm:$0xff]  }
 0x759   :  { %3598 = vmatpush1.bf16.msra.mxu0 %v14136_v58  ;;  %v14188_v58 = vld [vmem:[#allocation6 + $0x4c0] ss:$20 sps:$4 sm:$0xff]  }
 0x75a   :  { %4017 = vmatpush1.bf16.msra.mxu1 %v14133_v59  ;;  %3599 = vmatprep.subr.bf16.mxu0 %v14907_v0  ;;  %v14191_v59 = vld [vmem:[#allocation6 + $0x624] ss:$20 sps:$4 sm:$0xff]  }
 0x75b   :  { %4018 = vmatprep.subr.bf16.mxu1 %v14139_v60  ;;  %v14189_v60 = vld [vmem:[#allocation6 + $0x620] ss:$20 sps:$4 sm:$0xff]  }
 0x75d   :  { %3600 = vmatpush1.bf16.msra.mxu0 %v14140_v62  ;;  %v14192_v62 = vld [vmem:[#allocation6 + $0x628] ss:$20 sps:$4 sm:$0xff]  }
 0x75e   :  { %4019 = vmatpush1.bf16.msra.mxu1 %v14137_v63  ;;  %3601 = vmatprep.subr.bf16.mxu0 %v14907_v0  ;;  %v14195_v63 = vld [vmem:[#allocation6 + $0x5fc] ss:$20 sps:$4 sm:$0xff]  }
 0x75f   :  { %4020 = vmatprep.subr.bf16.mxu1 %v14143_v2  ;;  %v4148_v2 = vld [vmem:[#allocation4 + $0x28] sm:$0x7] }
 0x761   :  { %3602 = vmatpush1.bf16.msra.mxu0 %v14144_v5  ;;  %v4146_v5 = vld [vmem:[#allocation4 + $0x8] sm:$0xf0] }
 0x762   :  { %4021 = vmatpush1.bf16.msra.mxu1 %v14141_v3  ;;  %3603 = vmatprep.subr.bf16.mxu0 %v14907_v0  ;;  %v4211_v3 = vpack.c.bf16 %v15688_v17, %v4146_v5  ;;  %v14208_v17 = vld [vmem:[#allocation6 + $0x73c] ss:$20 sps:$4 sm:$0xff]   ;;  %v14876_v5 = vld [vmem:[#allocation4 + $0x10] sm:$0xff] }
 0x763   :  { %4022 = vmatprep.subr.bf16.mxu1 %v14147_v7  ;;  %v4213_v7 = vpack.c.bf16 %v4148_v2, %v4148_v2  ;;  %v14256_v2 = vld [vmem:[#allocation6 + $0x78c] ss:$20 sps:$4 sm:$0xff]  }
 0x765   :  { %3604 = vmatpush1.bf16.msra.mxu0 %v14148_v12  ;;  %v14197_v12 = vld [vmem:[#allocation6 + $0x758] ss:$20 sps:$4 sm:$0xff]  }
 0x766   :  { %4023 = vmatpush1.bf16.msra.mxu1 %v14145_v13  ;;  %3617 = vmatprep.subr.bf16.mxu0 %v14907_v0  ;;  %v4222_v13 = vrot.slane %v4211_v3, 2 }
 0x767   :  { %4036 = vmatprep.subr.bf16.mxu1 %v14151_v14  ;;  %v4223_v14 = vrot.slane %v4213_v7, 2 }
 0x769   :  { %3618 = vmatpush2.bf16.msra.mxu0 %v14152_v25  ;;  %v15790_v20 = vsel %vm181_vm0, %v4222_v13, %v4223_v14  ;;  %v14206_v25 = vld [vmem:[#allocation6 + $0x738] ss:$20 sps:$4 sm:$0xff]   ;;  %v14254_v14 = vld [vmem:[#allocation6 + $0x788] ss:$20 sps:$4 sm:$0xff]  }
 0x76a   :  { %4037 = vmatpush2.bf16.msra.mxu1 %v14149_v27  ;;  %3619 = vmatprep.subr.bf16.mxu0 %v14907_v0  ;;  %v14211_v27 = vld [vmem:[#allocation6 + $0x70c] ss:$20 sps:$4 sm:$0xff]  }
 0x76b   :  { %4038 = vmatprep.subr.bf16.mxu1 %v14155_v1  ;;  %v14214_v1 = vld [vmem:[#allocation6 + $0x714] ss:$20 sps:$4 sm:$0xff]  }
 0x76d   :  { %3620 = vmatpush2.bf16.msra.mxu0 %v14156_v19  ;;  %v14215_v19 = vld [vmem:[#allocation6 + $0x6e0] ss:$20 sps:$4 sm:$0xff]  }
 0x76e   :  { %4039 = vmatpush2.bf16.msra.mxu1 %v14153_v31  ;;  %4051 = vmatprep.subr.bf16.mxu0 %v14159_v32  ;;  %v14218_v31 = vld [vmem:[#allocation6 + $0x6e8] ss:$20 sps:$4 sm:$0xff]  }
 0x76f   :  { %4094 = vmatprep.subr.bf16.mxu1 %v14907_v0  ;;  %v14223_v32 = vld [vmem:[#allocation6 + $0x6bc] ss:$20 sps:$4 sm:$0xff]  }
 0x770   :  { %3622 = vmatmul.mubr.bf16.vlgmr.msra.gmra.mxu0 %v15746_v44  ;;  %v14172_v44 = vld [vmem:[#allocation6 + $0x560] ss:$20 sps:$4 sm:$0xff]  }
 0x771   :  { %4041 = vmatmul.mubr.bf16.vlgmr.msra.gmra.mxu1 %v15770_v38  ;;  %4052 = vmatpush1.bf16.msra.mxu0 %v14157_v35  ;;  %v14224_v35 = vld [vmem:[#allocation6 + $0x6c0] ss:$20 sps:$4 sm:$0xff]  }
 0x772   :  { %12470 = vmatprep.mubr.msk.bf16.mxu0 %vm66_vm3, %v15753_v46  ;;  %4095 = vmatpush1.bf16.msra.mxu1 %v14160_v36  ;;  %v14229_v36 = vld [vmem:[#allocation6 + $0x694] ss:$20 sps:$4 sm:$0xff]  }
 0x773   :  { %12471 = vmatprep.mubr.msk.bf16.mxu1 %vm66_vm3, %v15753_v46  ;;  %4053 = vmatprep.subr.bf16.mxu0 %v14163_v37  ;;  %v14176_v46 = vld [vmem:[#allocation6 + $0x538] ss:$20 sps:$4 sm:$0xff]   ;;  %v14232_v37 = vld [vmem:[#allocation6 + $0x69c] ss:$20 sps:$4 sm:$0xff]  }
 0x774   :  { %4096 = vmatprep.subr.bf16.mxu1 %v14907_v0 }
 0x775   :  { %4054 = vmatpush1.bf16.msra.mxu0 %v14161_v40 }
 0x776   :  { %4097 = vmatpush1.bf16.msra.mxu1 %v14164_v22  ;;  %4055 = vmatprep.subr.bf16.mxu0 %v14167_v23  ;;  %v14230_v23 = vld [vmem:[#allocation6 + $0x698] ss:$20 sps:$4 sm:$0xff]  }
 0x777   :  { %4098 = vmatprep.subr.bf16.mxu1 %v14907_v0 }
 0x779   :  { %4056 = vmatpush1.bf16.msra.mxu0 %v14165_v26  ;;  %v14235_v26 = vld [vmem:[#allocation6 + $0x66c] ss:$20 sps:$4 sm:$0xff]  }
 0x77a   :  { %4099 = vmatpush1.bf16.msra.mxu1 %v14168_v41  ;;  %4057 = vmatprep.subr.bf16.mxu0 %v14171_v42  ;;  %v14238_v41 = vld [vmem:[#allocation6 + $0x674] ss:$20 sps:$4 sm:$0xff]  }
 0x77b   :  { %4100 = vmatprep.subr.bf16.mxu1 %v14907_v0  ;;  %v14233_v42 = vld [vmem:[#allocation6 + $0x668] ss:$20 sps:$4 sm:$0xff]  }
 0x77d   :  { %4058 = vmatpush1.bf16.msra.mxu0 %v14169_v43 }
 0x77e   :  { %4101 = vmatpush1.bf16.msra.mxu1 %v14172_v44  ;;  %4059 = vmatprep.subr.bf16.mxu0 %v14175_v45  ;;  %v14236_v45 = vld [vmem:[#allocation6 + $0x670] ss:$20 sps:$4 sm:$0xff]  }
 0x77f   :  { %4102 = vmatprep.subr.bf16.mxu1 %v14907_v0 }
 0x781   :  { %4060 = vmatpush1.bf16.msra.mxu0 %v14173_v48  ;;  %v14241_v48 = vld [vmem:[#allocation6 + $0x644] ss:$20 sps:$4 sm:$0xff]  }
 0x782   :  { %4103 = vmatpush1.bf16.msra.mxu1 %v14176_v46  ;;  %4061 = vmatprep.subr.bf16.mxu0 %v14179_v49  ;;  %v14244_v46 = vld [vmem:[#allocation6 + $0x64c] ss:$20 sps:$4 sm:$0xff]  }
 0x783   :  { %4104 = vmatprep.subr.bf16.mxu1 %v14907_v0  ;;  %v14239_v49 = vld [vmem:[#allocation6 + $0x640] ss:$20 sps:$4 sm:$0xff]  }
 0x785   :  { %4062 = vmatpush1.bf16.msra.mxu0 %v14177_v50 }
 0x786   :  { %4105 = vmatpush1.bf16.msra.mxu1 %v14180_v51  ;;  %4063 = vmatprep.subr.bf16.mxu0 %v14183_v52  ;;  %v14242_v52 = vld [vmem:[#allocation6 + $0x648] ss:$20 sps:$4 sm:$0xff]  }
 0x787   :  { %4106 = vmatprep.subr.bf16.mxu1 %v14907_v0 }
 0x789   :  { %4064 = vmatpush1.bf16.msra.mxu0 %v14181_v24  ;;  %v14247_v24 = vld [vmem:[#allocation6 + $0x7ac] ss:$20 sps:$4 sm:$0xff]  }
 0x78a   :  { %4107 = vmatpush1.bf16.msra.mxu1 %v14184_v54  ;;  %4065 = vmatprep.subr.bf16.mxu0 %v14187_v55  ;;  %v14250_v54 = vld [vmem:[#allocation6 + $0x7b4] ss:$20 sps:$4 sm:$0xff]   ;;  %v4147_v55 = vld [vmem:[#allocation4 + $0x20] sm:$0x7] }
 0x78b   :  { %4108 = vmatprep.subr.bf16.mxu1 %v14907_v0  ;;  %v4212_v3 = vpack.c.bf16 %v4147_v55, %v4147_v55 }
 0x78d   :  { %4066 = vmatpush1.bf16.msra.mxu0 %v14185_v57  ;;  %v14245_v57 = vld [vmem:[#allocation6 + $0x7a8] ss:$20 sps:$4 sm:$0xff]  }
 0x78e   :  { %4109 = vmatpush1.bf16.msra.mxu1 %v14188_v58  ;;  %4079 = vmatprep.subr.bf16.mxu0 %v14191_v59 }
 0x78f   :  { %4122 = vmatprep.subr.bf16.mxu1 %v14907_v0 }
 0x790   :  { %v2674_v40 = vpop.f32.mrf.mxu0  ;;  %v15796_v22 = vpop.f32.mrf.mxu1 }
 0x791   :  { %4080 = vmatpush2.bf16.msra.mxu0 %v14189_v60  ;;  %v14248_v60 = vld [vmem:[#allocation6 + $0x7b0] ss:$20 sps:$4 sm:$0xff]  }
 0x792   :  { %4123 = vmatpush2.bf16.msra.mxu1 %v14192_v62  ;;  %4081 = vmatprep.subr.bf16.mxu0 %v14195_v63  ;;  %v2676_v43 = vpop.f32.mrf.mxu0  ;;  %v15798_v44 = vpop.f32.mrf.mxu1  ;;  %v14253_v62 = vld [vmem:[#allocation6 + $0x784] ss:$20 sps:$4 sm:$0xff]   ;;  %v4145_v63 = vld [vmem:[#allocation4] sm:$0xf0] }
 0x793   :  { %4124 = vmatprep.subr.bf16.mxu1 %v14907_v0 }
 0x794   :  { %v2678_v50 = vpop.f32.mrf.mxu0  ;;  %v15800_v51 = vpop.f32.mrf.mxu1 }
 0x795   :  { %4082 = vmatpush2.bf16.msra.mxu0 %v14193_v6  ;;  %v4210_v6 = vpack.c.bf16 %v14876_v5, %v4145_v63 }
 0x796   :  { %4125 = vmatpush2.bf16.msra.mxu1 %v14196_v9  ;;  %4489 = vmatprep.subr.bf16.mxu0 %v14199_v10  ;;  %v15802_v58 = vpop.f32.mrf.mxu0  ;;  %v15804_v59 = vpop.f32.mrf.mxu1 }
 0x797   :  { %4532 = vmatprep.subr.bf16.mxu1 %v14202_v11  ;;  %v14251_v11 = vld [vmem:[#allocation6 + $0x780] ss:$20 sps:$4 sm:$0xff]  }
 0x798   :  { %4084 = vmatmul.mubr.bf16.vlgmr.msra.gmra.mxu0 %v15770_v38 }
 0x799   :  { %4127 = vmatmul.mubr.bf16.vlgmr.msra.gmra.mxu1 %v15770_v38  ;;  %4490 = vmatpush1.bf16.msra.mxu0 %v14197_v12  ;;  %v14227_v38 = vld [vmem:[#allocation6 + $0x690] ss:$20 sps:$4 sm:$0xff]  }
 0x79a   :  { %12522 = vmatprep.mubr.msk.bf16.mxu0 %vm66_vm3, %v15790_v20  ;;  %4533 = vmatpush1.bf16.msra.mxu1 %v14200_v15 }
 0x79b   :  { %12523 = vmatprep.mubr.msk.bf16.mxu1 %vm66_vm3, %v15790_v20  ;;  %4491 = vmatprep.subr.bf16.mxu0 %v14205_v16  ;;  %v4219_v16 = vrot.slane %v4210_v6, 2 }
 0x79c   :  { %4534 = vmatprep.subr.bf16.mxu1 %v14208_v17  ;;  %v4220_v17 = vrot.slane %v4212_v3, 2  ;;  %v15838_v3 = vld [vmem:[#allocation4 + $0x20] sm:$0xff] }
 0x79d   :  { %4492 = vmatpush1.bf16.msra.mxu0 %v14203_v21  ;;  %88 = vst.msk [vmem:[#allocation5 + $0x20] sm:$0xff] %vm87_vm15, %v15838_v3  ;;  %93 = vst.msk [vmem:[#allocation5 + $0x48] sm:$0xff] %vm87_vm15, %v15838_v3 }
 0x79e   :  { %4535 = vmatpush1.bf16.msra.mxu1 %v14206_v25  ;;  %4493 = vmatprep.subr.bf16.mxu0 %v14211_v27  ;;  %98 = vst.msk [vmem:[#allocation5 + $0x70] sm:$0xff] %vm87_vm15, %v15838_v3  ;;  %103 = vst.msk [vmem:[#allocation5 + $0x98] sm:$0xff] %vm87_vm15, %v15838_v3 }
 0x79f   :  { %4536 = vmatprep.subr.bf16.mxu1 %v14214_v1  ;;  %v14257_v1 = vld [vmem:[#allocation6 + $0x768] ss:$20 sps:$4 sm:$0xff]   ;;  %108 = vst.msk [vmem:[#allocation5 + $0xc0] sm:$0xff] %vm87_vm15, %v15838_v3  ;;  %113 = vst.msk [vmem:[#allocation5 + $0xe8] sm:$0xff] %vm87_vm15, %v15838_v3 }
 0x7a0   :  { %118 = vst.msk [vmem:[#allocation5 + $0x110] sm:$0xff] %vm87_vm15, %v15838_v3 }
 0x7a1   :  { %4494 = vmatpush1.bf16.msra.mxu0 %v14209_v28 }
 0x7a2   :  { %4537 = vmatpush1.bf16.msra.mxu1 %v14212_v29  ;;  %4495 = vmatprep.subr.bf16.mxu0 %v14217_v30  ;;  %v4221_v29 = vsel %vm181_vm0, %v4219_v16, %v4220_v17  ;;  %v14258_v30 = vld [vmem:[#allocation6 + $0x740] ss:$20 sps:$4 sm:$0xff]  }
 0x7a3   :  { %4538 = vmatprep.subr.bf16.mxu1 %v14220_v18  ;;  %v14259_v18 = vld [vmem:[#allocation6 + $0x718] ss:$20 sps:$4 sm:$0xff]   ;;  %v14270_v17 = vld [vmem:[%s17617_s13 + $0x15c] sm:$0xff]  }
 0x7a5   :  { %4496 = vmatpush1.bf16.msra.mxu0 %v14215_v19  ;;  %v14260_v19 = vld [vmem:[#allocation6 + $0x6f0] ss:$20 sps:$4 sm:$0xff]  }
 0x7a6   :  { %4539 = vmatpush1.bf16.msra.mxu1 %v14218_v31  ;;  %4497 = vmatprep.subr.bf16.mxu0 %v14223_v32  ;;  %v14261_v31 = vld [vmem:[#allocation6 + $0x6c8] ss:$20 sps:$4 sm:$0xff]   ;;  %v14262_v32 = vld [vmem:[#allocation6 + $0x6a0] ss:$20 sps:$4 sm:$0xff]  }
 0x7a7   :  { %4540 = vmatprep.subr.bf16.mxu1 %v14226_v33  ;;  %v14264_v33 = vld [vmem:[#allocation6 + $0x650] ss:$20 sps:$4 sm:$0xff]  }
 0x7a9   :  { %4498 = vmatpush1.bf16.msra.mxu0 %v14221_v34  ;;  %v14265_v34 = vld [vmem:[#allocation6 + $0x7b8] ss:$20 sps:$4 sm:$0xff]  }
 0x7aa   :  { %4541 = vmatpush1.bf16.msra.mxu1 %v14224_v35  ;;  %4499 = vmatprep.subr.bf16.mxu0 %v14229_v36 }
 0x7ab   :  { %4542 = vmatprep.subr.bf16.mxu1 %v14232_v37  ;;  %v14266_v37 = vld [vmem:[#allocation6 + $0x790] ss:$20 sps:$4 sm:$0xff]  }
 0x7ad   :  { %4500 = vmatpush1.bf16.msra.mxu0 %v14227_v38 }
 0x7ae   :  { %4543 = vmatpush1.bf16.msra.mxu1 %v14230_v23  ;;  %4501 = vmatprep.subr.bf16.mxu0 %v14235_v26 }
 0x7af   :  { %4544 = vmatprep.subr.bf16.mxu1 %v14238_v41 }
 0x7b1   :  { %4502 = vmatpush1.bf16.msra.mxu0 %v14233_v42 }
 0x7b2   :  { %4545 = vmatpush1.bf16.msra.mxu1 %v14236_v45  ;;  %4503 = vmatprep.subr.bf16.mxu0 %v14241_v48 }
 0x7b3   :  { %4546 = vmatprep.subr.bf16.mxu1 %v14244_v46 }
 0x7b5   :  { %4504 = vmatpush1.bf16.msra.mxu0 %v14239_v49 }
 0x7b6   :  { %4547 = vmatpush1.bf16.msra.mxu1 %v14242_v52  ;;  %4517 = vmatprep.subr.bf16.mxu0 %v14247_v24 }
 0x7b7   :  { %4560 = vmatprep.subr.bf16.mxu1 %v14250_v54 }
 0x7b8   :  { %v2760_v7 = vpop.f32.mrf.mxu0  ;;  %v3064_v9 = vpop.f32.mrf.mxu1 }
 0x7b9   :  { %v15806_v10 = vadd.f32 %v3064_v9, %v2674_v40  ;;  %4518 = vmatpush2.bf16.msra.mxu0 %v14245_v57  ;;  %v14268_v9 = vld [vmem:[%s17617_s13 + $0x164] sm:$0xff]  }
 0x7ba   :  { %4561 = vmatpush2.bf16.msra.mxu1 %v14248_v60  ;;  %v2762_v12 = vpop.f32.mrf.mxu0  ;;  %v3066_v13 = vpop.f32.mrf.mxu1  ;;  %4519 = vmatprep.subr.bf16.mxu0 %v14253_v62 }
 0x7bb   :  { %v15808_v15 = vadd.f32 %v3066_v13, %v2676_v43  ;;  %4562 = vmatprep.subr.bf16.mxu1 %v14256_v2 }
 0x7bc   :  { %v2763_v21 = vpop.f32.mrf.mxu0  ;;  %v3068_v25 = vpop.f32.mrf.mxu1 }
 0x7bd   :  { %v3069_v27 = vadd.f32 %v3068_v25, %v2678_v50  ;;  %4520 = vmatpush2.bf16.msra.mxu0 %v14251_v11 }
 0x7be   :  { %4563 = vmatpush2.bf16.msra.mxu1 %v14254_v14  ;;  %v2765_v28 = vpop.f32.mrf.mxu0  ;;  %4575 = vmatprep.subr.bf16.mxu0 %v14907_v0  ;;  %v15822_v35 = vpop.f32.mrf.mxu1 }
 0x7c0   :  { %4522 = vmatmul.mubr.bf16.vlgmr.msra.gmra.mxu0 %v4221_v29 }
 0x7c1   :  { %4565 = vmatmul.mubr.bf16.vlgmr.msra.gmra.mxu1 %v4221_v29  ;;  %4576 = vmatpush1.bf16.msra.mxu0 %v14257_v1 }
 0x7c2   :  { %12524 = vmatprep.mubr.msk.bf16.mxu0 %vm66_vm3, %v15790_v20  ;;  %4577 = vmatprep.subr.bf16.mxu0 %v14907_v0  ;;  %v14263_v20 = vld [vmem:[#allocation6 + $0x678] ss:$20 sps:$4 sm:$0xff]  }
 0x7c5   :  { %4578 = vmatpush1.bf16.msra.mxu0 %v14258_v30  ;;  %v14271_v30 = vld [vmem:[%s17617_s13 + $0x194] sm:$0xff]  }
 0x7c6   :  { %4579 = vmatprep.subr.bf16.mxu0 %v14907_v0 }
 0x7c9   :  { %4580 = vmatpush1.bf16.msra.mxu0 %v14259_v18  ;;  %v14272_v18 = vld [vmem:[%s17617_s13 + $0x254] ss:$0 sps:$4 sm:$0xff]  }
 0x7ca   :  { %4581 = vmatprep.subr.bf16.mxu0 %v14907_v0 }
 0x7cd   :  { %4582 = vmatpush1.bf16.msra.mxu0 %v14260_v19  ;;  %v14273_v19 = vld [vmem:[%s17617_s13 + $0x154] sm:$0xff]  }
 0x7ce   :  { %4583 = vmatprep.subr.bf16.mxu0 %v14907_v0 }
 0x7d1   :  { %4584 = vmatpush1.bf16.msra.mxu0 %v14261_v31  ;;  %v5495_v31 = vsel %vm5493_vm4, %v14272_v18, 0 }
 0x7d2   :  { %4585 = vmatprep.subr.bf16.mxu0 %v14907_v0 }
 0x7d5   :  { %4586 = vmatpush1.bf16.msra.mxu0 %v14262_v32  ;;  %v14274_v32 = vld [vmem:[%s17617_s13 + $0x18c] sm:$0xff]  }
 0x7d6   :  { %4587 = vmatprep.subr.bf16.mxu0 %v14907_v0 }
 0x7d9   :  { %4588 = vmatpush1.bf16.msra.mxu0 %v14263_v20  ;;  %v14275_v20 = vld [vmem:[%s17617_s13 + $0x24c] sm:$0xff]  }
 0x7da   :  { %4589 = vmatprep.subr.bf16.mxu0 %v14907_v0 }
 0x7dd   :  { %4590 = vmatpush1.bf16.msra.mxu0 %v14264_v33  ;;  %v14276_v33 = vld [vmem:[%s17617_s13 + $0x14c] sm:$0xff]  }
 0x7de   :  { %4603 = vmatprep.subr.bf16.mxu0 %v14907_v0 }
 0x7e0   :  { %v3107_v42 = vpop.f32.mrf.mxu0 }
 0x7e1   :  { %v3150_v36 = vpop.f32.mrf.mxu1  ;;  %4604 = vmatpush2.bf16.msra.mxu0 %v14265_v34  ;;  %v3108_v46 = vadd.f32 %v3107_v42, %v15796_v22  ;;  %v14277_v34 = vld [vmem:[%s17617_s13 + $0x184] sm:$0xff]   ;;  %v14285_v42 = vld [vmem:[%s17617_s13 + $0x134] sm:$0xff]  }
 0x7e2   :  { %v3151_v38 = vadd.f32 %v3150_v36, %v2760_v7  ;;  %4605 = vmatprep.subr.bf16.mxu0 %v14907_v0  ;;  %v3109_v43 = vpop.f32.mrf.mxu0  ;;  %v14278_v36 = vld [vmem:[%s17617_s13 + $0x244] sm:$0xff]  }
 0x7e3   :  { %v3152_v40 = vpop.f32.mrf.mxu1  ;;  %v3110_v24 = vadd.f32 %v3109_v43, %v15798_v44  ;;  %v14286_v43 = vld [vmem:[%s17617_s13 + $0x16c] sm:$0xff]  }
 0x7e4   :  { %v3111_v45 = vpop.f32.mrf.mxu0  ;;  %v14281_v40 = vld [vmem:[%s17617_s13 + $0x23c] sm:$0xff]  }
 0x7e5   :  { %v3153_v23 = vpop.f32.mrf.mxu1  ;;  %4606 = vmatpush2.bf16.msra.mxu0 %v14266_v37  ;;  %v3112_v62 = vadd.f32 %v3111_v45, %v15800_v51  ;;  %v14267_v51 = vld [vmem:[%s17617_s13 + $0x1a4] sm:$0xff]   ;;  %v14287_v45 = vld [vmem:[%s17617_s13 + $0x22c] sm:$0xff]  }
 0x7e6   :  { %v3154_v26 = vadd.f32 %v3153_v23, %v2763_v21  ;;  %v15825_v48 = vpop.f32.mrf.mxu0  ;;  %13308 = vmatprep.subr.bf16.mxu1 %v14267_v51  ;;  %13826 = vmatprep.subr.msk.bf16.mxu0 %vm5493_vm4, %v14272_v18  ;;  %v14279_v37 = vld [vmem:[%s17617_s13 + $0x144] sm:$0xff]   ;;  %v14282_v23 = vld [vmem:[%s17617_s13 + $0x13c] sm:$0xff]  }
 0x7e7   :  { %v3155_v41 = vpop.f32.mrf.mxu1  ;;  %13309 = vmatpush3.bf16.msra.mxu1 %v14268_v9  ;;  %v15948_v9 = vld [vmem:[%s17616_s12] sm:$0x1f] }
 0x7e8   :  { %4608 = vmatmul.mubr.bf16.vlgmr.msra.gmra.mxu0 %v4221_v29  ;;  %v14284_v41 = vld [vmem:[%s17617_s13 + $0x234] sm:$0xff]  }
 0x7e9   :  { %13679 = vmatpush3.bf16.msra.mxu0 %v5495_v31 }
 0x7ea   :  { %13680 = vmatprep.subr.bf16.mxu0 %v14275_v20 }
 0x7ed   :  { %13681 = vmatpush3.bf16.msra.mxu0 %v14275_v20 }
 0x7ee   :  { %13682 = vmatprep.subr.bf16.mxu0 %v14278_v36 }
 0x7f1   :  { %13683 = vmatpush3.bf16.msra.mxu0 %v14278_v36 }
 0x7f2   :  { %13684 = vmatprep.subr.bf16.mxu0 %v14281_v40 }
 0x7f5   :  { %13685 = vmatpush3.bf16.msra.mxu0 %v14281_v40 }
 0x7f6   :  { %13686 = vmatprep.subr.bf16.mxu0 %v14284_v41 }
 0x7f9   :  { %13687 = vmatpush3.bf16.msra.mxu0 %v14284_v41 }
 0x7fa   :  { %13688 = vmatprep.subr.bf16.mxu0 %v14287_v45 }
 0x7fd   :  { %13689 = vmatpush3.bf16.msra.mxu0 %v14287_v45 }
 0x808   :  { %v3537_v49 = vpop.f32.mrf.mxu0 }
 0x809   :  { %v3630_v50 = vadd.f32 %v3537_v49, %v15806_v10  ;;  %v3580_v52 = vpop.f32.mrf.mxu1  ;;  %v14289_v49 = vld [vmem:[%s17617_s13 + $0x224] sm:$0xff]  }
 0x80a   :  { %v15830_v54 = vadd.f32 %v3580_v52, %v3108_v46  ;;  %v3539_v55 = vpop.f32.mrf.mxu0  ;;  %v14288_v46 = vld [vmem:[%s17617_s13 + $0x12c] sm:$0xff]  }
 0x80b   :  { %v3631_v57 = vadd.f32 %v3539_v55, %v15808_v15  ;;  %v3582_v60 = vpop.f32.mrf.mxu1  ;;  %v14269_v15 = vld [vmem:[%s17617_s13 + $0x19c] sm:$0xff]  }
 0x80c   :  { %v15834_v63 = vadd.f32 %v3582_v60, %v3110_v24  ;;  %v3541_v2 = vpop.f32.mrf.mxu0  ;;  %13310 = vmatprep.subr.bf16.mxu1 %v14269_v15 }
 0x80d   :  { %v3635_v5 = vadd.f32 %v3541_v2, %v3069_v27  ;;  %v3584_v6 = vpop.f32.mrf.mxu1  ;;  %13311 = vmatpush3.bf16.msra.mxu1 %v14270_v17  ;;  %v3071_v17 = vadd.f32 %v15822_v35, %v15802_v58 }
 0x80e   :  { %v15836_v22 = vadd.f32 %v3584_v6, %v3112_v62  ;;  %v15854_v44 = vpop.f32.mrf.mxu0  ;;  %13312 = vmatprep.subr.bf16.mxu1 %v14271_v30 }
 0x80f   :  { %v15859_v7 = vpop.f32.mrf.mxu1  ;;  %v3636_v31 = vadd.f32 %v15854_v44, %v3071_v17 }
 0x811   :  { %13313 = vmatpush3.bf16.msra.mxu1 %v14273_v19 }
 0x812   :  { %13314 = vmatprep.subr.bf16.mxu1 %v14274_v32 }
 0x815   :  { %13315 = vmatpush3.bf16.msra.mxu1 %v14276_v33 }
 0x816   :  { %13316 = vmatprep.subr.bf16.mxu1 %v14277_v34 }
 0x819   :  { %13317 = vmatpush3.bf16.msra.mxu1 %v14279_v37 }
 0x830   :  { %v3623_v10 = vpop.f32.mrf.mxu0 }
 0x831   :  { %v15864_v11 = vadd.f32 %v3623_v10, %v3151_v38  ;;  %v4042_v12 = vpop.f32.mrf.mxu1  ;;  %v14280_v38 = vld [vmem:[%s17617_s13 + $0x17c] sm:$0xff]  }
 0x832   :  { %v15866_v13 = vadd.f32 %v4042_v12, %v3630_v50  ;;  %v3625_v14 = vpop.f32.mrf.mxu0  ;;  %13318 = vmatprep.subr.bf16.mxu1 %v14280_v38  ;;  %v14290_v50 = vld [vmem:[%s17617_s13 + $0x78] sm:$0xff]   ;;  %v4642_v12 = vsub.s32 3, %v15166_v61 }
 0x833   :  { %v4044_v16 = vpop.f32.mrf.mxu1  ;;  %13319 = vmatpush3.bf16.msra.mxu1 %v14282_v23  ;;  %13372 = vmatprep.subr.bf16.mxu0 %v14290_v50 }
 0x834   :  { %v15874_v21 = vadd.f32 %v4044_v16, %v3631_v57  ;;  %v3626_v25 = vpop.f32.mrf.mxu0  ;;  %v4639_v16 = vrot.slane %v15948_v9, %v15186_v39  ;;  %v4643_v19 = vrot.slane %v15948_v9, %v4642_v12 }
 0x835   :  { %v3639_v27 = vadd.f32 %v3626_v25, %v3154_v26  ;;  %v4046_v1 = vpop.f32.mrf.mxu1  ;;  %v14283_v26 = vld [vmem:[%s17617_s13 + $0x174] sm:$0xff]  }
 0x836   :  { %v15876_v28 = vadd.f32 %v4046_v1, %v3635_v5  ;;  %v3628_v29 = vpop.f32.mrf.mxu0  ;;  %13320 = vmatprep.subr.bf16.mxu1 %v14283_v26  ;;  %v4635_v1 = vrot.slane %v15948_v9, %v15175_v8 }
 0x837   :  { %13321 = vmatpush3.bf16.msra.mxu1 %v14285_v42  ;;  %v4048_v52 = vpop.f32.mrf.mxu1  ;;  %v3114_v29 = vadd.f32 %v15825_v48, %v15804_v59 }
 0x838   :  { %13322 = vmatprep.subr.bf16.mxu1 %v14286_v43 }
 0x839   :  { %v3638_v32 = vadd.f32 %v15859_v7, %v3114_v29 }
 0x83b   :  { %13323 = vmatpush3.bf16.msra.mxu1 %v14288_v46 }
 0x83c   :  { %13336 = vmatprep.subr.bf16.mxu1 %v14289_v49 }
 0x858   :  { %v4085_v5 = vpop.f32.mrf.mxu0 }
 0x859   :  { %v4128_v24 = vpop.f32.mrf.mxu1  ;;  %v4137_v14 = vadd.f32 %v4085_v5, %v15830_v54 }
 0x85a   :  { %v15941_v55 = vadd.f32 %v4128_v24, %v15864_v11  ;;  %v4087_v6 = vpop.f32.mrf.mxu0  ;;  %v4631_v11 = vrot.slane %v15948_v9, %v15172_v4 }
 0x85b   :  { %v4130_v57 = vpop.f32.mrf.mxu1  ;;  %v4138_v30 = vadd.f32 %v4087_v6, %v15834_v63  ;;  %v4141_v63 = vadd.f32 %v4048_v52, %v3636_v31 }
 0x85c   :  { %v4089_v51 = vpop.f32.mrf.mxu0 }
 0x85d   :  { %v4131_v60 = vpop.f32.mrf.mxu1  ;;  %v4142_v20 = vadd.f32 %v4089_v51, %v15836_v22 }
 0x85e   :  { %v15943_v62 = vadd.f32 %v4131_v60, %v3639_v27  ;;  %v4091_v10 = vpop.f32.mrf.mxu0 }
 0x85f   :  { %v4133_v2 = vpop.f32.mrf.mxu1  ;;  %v4143_v38 = vadd.f32 %v4091_v10, %v3638_v32 }
 0x880   :  { %v4523_v15 = vpop.f32.mrf.mxu0 }
 0x881   :  { %v4616_v25 = vadd.f32 %v4523_v15, %v15866_v13  ;;  %v4566_v27 = vpop.f32.mrf.mxu1 }
 0x882   :  { %v4618_v18 = vadd.f32 %v4566_v27, %v4137_v14  ;;  %v4525_v54 = vpop.f32.mrf.mxu0 }
 0x883   :  { %v4653_v58 = vadd.f32 %v4631_v11, %v4616_v25  ;;  %v4617_v35 = vadd.f32 %v4525_v54, %v15874_v21  ;;  %v4568_v13 = vpop.f32.mrf.mxu1 }
 0x884   :  { %v4655_v33 = vadd.f32 %v4639_v16, %v4618_v18  ;;  %v4619_v59 = vadd.f32 %v4568_v13, %v4138_v30  ;;  %v4527_v48 = vpop.f32.mrf.mxu0 }
 0x885   :  { %v4654_v34 = vadd.f32 %v4635_v1, %v4617_v35  ;;  %v4621_v36 = vadd.f32 %v4527_v48, %v15876_v28  ;;  %v4570_v37 = vpop.f32.mrf.mxu1  ;;  %v4663_v26 = vmax.f32 %v4653_v58, 0.0 }
 0x886   :  { %v4656_v40 = vadd.f32 %v4643_v19, %v4619_v59  ;;  %v4623_v23 = vadd.f32 %v4570_v37, %v4142_v20  ;;  %v4529_v44 = vpop.f32.mrf.mxu0  ;;  %v4665_v7 = vmax.f32 %v4655_v33, 0.0  ;;  %v4646_v20 = vsub.s32 4, %v15166_v61 }
 0x887   :  { %v4664_v41 = vmax.f32 %v4654_v34, 0.0  ;;  %v4658_v21 = vadd.f32 %v4631_v11, %v4621_v36  ;;  %v4622_v42 = vadd.f32 %v4529_v44, %v4141_v63  ;;  %v4572_v43 = vpop.f32.mrf.mxu1 }
 0x888   :  { %v4666_v45 = vmax.f32 %v4656_v40, 0.0  ;;  %v4624_v22 = vadd.f32 %v4572_v43, %v4143_v38  ;;  %v4660_v50 = vadd.f32 %v4639_v16, %v4623_v23  ;;  %v4647_v33 = vrot.slane %v15948_v9, %v4646_v20 }
 0x889   :  { %v4678_v46 = vcombine.low %v4663_v26, %v4664_v41  ;;  %v4753_v49 = vcombine.high %v4663_v26, %v4664_v41  ;;  %v4659_v52 = vadd.f32 %v4635_v1, %v4622_v42  ;;  %v4668_v5 = vmax.f32 %v4658_v21, 0.0 }
 0x88a   :  { %v4679_v24 = vcombine.low %v4665_v7, %v4666_v45  ;;  %v4754_v57 = vcombine.high %v4665_v7, %v4666_v45  ;;  %v4661_v28 = vadd.f32 %v4643_v19, %v4624_v22  ;;  %v4670_v14 = vmax.f32 %v4660_v50, 0.0 }
 0x88b   :  { %v4686_v60 = vrot.slane %v4678_v46, %v15666_v47  ;;  %v4762_v2 = vrot.slane %v4753_v49, %v15666_v47  ;;  %v4669_v6 = vmax.f32 %v4659_v52, 0.0 }
 0x88c   :  { %v4693_v51 = vrot.slane %v4679_v24, %v15666_v47  ;;  %v4769_v10 = vrot.slane %v4754_v57, %v15666_v47  ;;  %v4671_v11 = vmax.f32 %v4661_v28, 0.0 }
 0x88d   :  { %v4833_v15 = vcombine.low %v4668_v5, %v4669_v6  ;;  %v4907_v17 = vcombine.high %v4668_v5, %v4669_v6 }
 0x88e   :  { %v4701_v25 = vcombine.low %v4686_v60, %v4693_v51  ;;  %v4722_v16 = vcombine.high %v4686_v60, %v4693_v51  ;;  %v4777_v27 = vcombine.low %v4762_v2, %v4769_v10  ;;  %v4797_v1 = vcombine.high %v4762_v2, %v4769_v10 }
 0x88f   :  { %v4841_v29 = vrot.slane %v4833_v15, %v15666_v47  ;;  %v15978_v30 = vrot.slane %v4907_v17, %v15666_v47  ;;  %v4834_v18 = vcombine.low %v4670_v14, %v4671_v11  ;;  %v4908_v54 = vcombine.high %v4670_v14, %v4671_v11 }
 0x890   :  { %v4708_v41 = vrot.slane %v4701_v25, %v15666_v47  ;;  %v4784_v7 = vrot.slane %v4777_v27, %v15666_v47  ;;  %v4805_v45 = vrot.slane %v4797_v1, %v15666_v47 }
 0x891   :  { %v4848_v19 = vrot.slane %v4834_v18, %v15666_v47  ;;  %v15982_v31 = vrot.slane %v4908_v54, %v15666_v47 }
 0x893   :  { %v4856_v58 = vcombine.low %v4841_v29, %v4848_v19  ;;  %v4876_v35 = vcombine.high %v4841_v29, %v4848_v19  ;;  %v4931_v13 = vcombine.low %v15978_v30, %v15982_v31  ;;  %v4951_v32 = vcombine.high %v15978_v30, %v15982_v31 }
 0x895   :  { %v4863_v56 = vrot.slane %v4856_v58, %v15666_v47  ;;  %v4884_v14 = vrot.slane %v4876_v35, %v15666_v47  ;;  %v4938_v27 = vrot.slane %v4931_v13, %v15666_v47  ;;  %v4959_v58 = vrot.slane %v4951_v32, %v15666_v47 }
 0x8a8   :  { %v4609_v59 = vpop.f32.mrf.mxu0 }
 0x8a9   :  { %v4620_v48 = vadd.f32 %v4609_v59, %v15941_v55 }
 0x8aa   :  { %v4611_v63 = vpop.f32.mrf.mxu0 }
 0x8ab   :  { %v4657_v34 = vadd.f32 %v4647_v33, %v4620_v48 }
 0x8ac   :  { %v4612_v36 = vpop.f32.mrf.mxu0 }
 0x8ad   :  { %v4667_v37 = vmax.f32 %v4657_v34, 0.0  ;;  %v4625_v38 = vadd.f32 %v4612_v36, %v15943_v62  ;;  %v4730_v62 = vrot.slane %v4722_v16, %v15666_v47 }
 0x8ae   :  { %v4614_v40 = vpop.f32.mrf.mxu0 }
 0x8af   :  { %v4700_v23 = vrot.slane %v4667_v37, %v15666_v47  ;;  %v4755_v44 = vcombine.high %v4667_v37, %v4667_v37  ;;  %v4662_v26 = vadd.f32 %v4647_v33, %v4625_v38 }
 0x8b1   :  { %v4715_v21 = vrot.slane %v4700_v23, %v15666_v47  ;;  %v4723_v42 = vcombine.high %v4700_v23, %v4700_v23  ;;  %v4776_v9 = vrot.slane %v4755_v44, %v15666_v47  ;;  %v4672_v43 = vmax.f32 %v4662_v26, 0.0 }
 0x8b3   :  { %v4716_v22 = vcombine.low %v4708_v41, %v4715_v21  ;;  %v4737_v46 = vrot.slane %v4723_v42, %v15666_v47  ;;  %v4743_v49 = vcombine.high %v4708_v41, %v4715_v21  ;;  %v4791_v50 = vrot.slane %v4776_v9, %v15666_v47 }
 0x8b4   :  { %v4798_v52 = vcombine.high %v4776_v9, %v4776_v9  ;;  %v4855_v24 = vrot.slane %v4672_v43, %v15666_v47  ;;  %v4909_v57 = vcombine.high %v4672_v43, %v4672_v43 }
 0x8b5   :  { %4720 = vst.msk [vmem:[#allocation5] ss:$8 sm:$0xf] %vm15999_vm5, %v4716_v22  ;;  %4721 = vst.msk [vmem:[#allocation5] ss:$8 sm:$0x10] %vm15999_vm5, %v4716_v22  ;;  %v4738_v28 = vcombine.low %v4730_v62, %v4737_v46  ;;  %v4748_v60 = vcombine.high %v4730_v62, %v4737_v46  ;;  %v4792_v2 = vcombine.low %v4784_v7, %v4791_v50 }
 0x8b6   :  { %4746 = vst.msk [vmem:[#allocation5 + $0x4] ss:$8 sm:$0xf] %vm15999_vm5, %v4743_v49  ;;  %4747 = vst.msk [vmem:[#allocation5 + $0x4] ss:$8 sm:$0x10] %vm15999_vm5, %v4743_v49  ;;  %v4818_v5 = vcombine.high %v4784_v7, %v4791_v50  ;;  %v4812_v6 = vrot.slane %v4798_v52, %v15666_v47  ;;  %v4870_v51 = vrot.slane %v4855_v24, %v15666_v47 }
 0x8b7   :  { %v4877_v10 = vcombine.high %v4855_v24, %v4855_v24  ;;  %v4930_v11 = vrot.slane %v4909_v57, %v15666_v47  ;;  %4741 = vst.msk [vmem:[#allocation5 + $0x2] ss:$8 sm:$0xf] %vm15999_vm5, %v4738_v28  ;;  %4742 = vst.msk [vmem:[#allocation5 + $0x2] ss:$8 sm:$0x10] %vm15999_vm5, %v4738_v28 }
 0x8b8   :  { %4751 = vst.msk [vmem:[#allocation5 + $0x6] ss:$8 sm:$0xf] %vm15999_vm5, %v4748_v60  ;;  %4752 = vst.msk [vmem:[#allocation5 + $0x6] ss:$8 sm:$0x10] %vm15999_vm5, %v4748_v60  ;;  %v4813_v15 = vcombine.low %v4805_v45, %v4812_v6  ;;  %v4823_v17 = vcombine.high %v4805_v45, %v4812_v6  ;;  %v4871_v25 = vcombine.low %v4863_v56, %v4870_v51 }
 0x8b9   :  { %4795 = vst.msk [vmem:[#allocation5 + $0x28] ss:$8 sm:$0xf] %vm15999_vm5, %v4792_v2  ;;  %4796 = vst.msk [vmem:[#allocation5 + $0x28] ss:$8 sm:$0x10] %vm15999_vm5, %v4792_v2  ;;  %v4891_v16 = vrot.slane %v4877_v10, %v15666_v47  ;;  %v4897_v1 = vcombine.high %v4863_v56, %v4870_v51  ;;  %v4945_v29 = vrot.slane %v4930_v11, %v15666_v47 }
 0x8ba   :  { %4821 = vst.msk [vmem:[#allocation5 + $0x2c] ss:$8 sm:$0xf] %vm15999_vm5, %v4818_v5  ;;  %4822 = vst.msk [vmem:[#allocation5 + $0x2c] ss:$8 sm:$0x10] %vm15999_vm5, %v4818_v5  ;;  %v4952_v18 = vcombine.high %v4930_v11, %v4930_v11 }
 0x8bb   :  { %4816 = vst.msk [vmem:[#allocation5 + $0x2a] ss:$8 sm:$0xf] %vm15999_vm5, %v4813_v15  ;;  %4817 = vst.msk [vmem:[#allocation5 + $0x2a] ss:$8 sm:$0x10] %vm15999_vm5, %v4813_v15  ;;  %v4892_v54 = vcombine.low %v4884_v14, %v4891_v16  ;;  %v4902_v19 = vcombine.high %v4884_v14, %v4891_v16  ;;  %v4946_v35 = vcombine.low %v4938_v27, %v4945_v29 }
 0x8bc   :  { %4826 = vst.msk [vmem:[#allocation5 + $0x2e] ss:$8 sm:$0xf] %vm15999_vm5, %v4823_v17  ;;  %4827 = vst.msk [vmem:[#allocation5 + $0x2e] ss:$8 sm:$0x10] %vm15999_vm5, %v4823_v17  ;;  %v4966_v13 = vrot.slane %v4952_v18, %v15666_v47  ;;  %v4972_v33 = vcombine.high %v4938_v27, %v4945_v29 }
 0x8bd   :  { %4874 = vst.msk [vmem:[#allocation5 + $0x50] ss:$8 sm:$0xf] %vm15999_vm5, %v4871_v25  ;;  %4875 = vst.msk [vmem:[#allocation5 + $0x50] ss:$8 sm:$0x10] %vm15999_vm5, %v4871_v25 }
 0x8be   :  { %4900 = vst.msk [vmem:[#allocation5 + $0x54] ss:$8 sm:$0xf] %vm15999_vm5, %v4897_v1  ;;  %4901 = vst.msk [vmem:[#allocation5 + $0x54] ss:$8 sm:$0x10] %vm15999_vm5, %v4897_v1  ;;  %v4967_v30 = vcombine.low %v4959_v58, %v4966_v13 }
 0x8bf   :  { %4895 = vst.msk [vmem:[#allocation5 + $0x52] ss:$8 sm:$0xf] %vm15999_vm5, %v4892_v54  ;;  %4896 = vst.msk [vmem:[#allocation5 + $0x52] ss:$8 sm:$0x10] %vm15999_vm5, %v4892_v54 }
 0x8c0   :  { %4905 = vst.msk [vmem:[#allocation5 + $0x56] ss:$8 sm:$0xf] %vm15999_vm5, %v4902_v19  ;;  %4906 = vst.msk [vmem:[#allocation5 + $0x56] ss:$8 sm:$0x10] %vm15999_vm5, %v4902_v19 }
 0x8c1   :  { %4949 = vst.msk [vmem:[#allocation5 + $0x78] ss:$8 sm:$0xf] %vm15999_vm5, %v4946_v35  ;;  %4950 = vst.msk [vmem:[#allocation5 + $0x78] ss:$8 sm:$0x10] %vm15999_vm5, %v4946_v35 }
 0x8c2   :  { %4975 = vst.msk [vmem:[#allocation5 + $0x7c] ss:$8 sm:$0xf] %vm15999_vm5, %v4972_v33  ;;  %4976 = vst.msk [vmem:[#allocation5 + $0x7c] ss:$8 sm:$0x10] %vm15999_vm5, %v4972_v33 }
 0x8c3   :  { %4970 = vst.msk [vmem:[#allocation5 + $0x7a] ss:$8 sm:$0xf] %vm15999_vm5, %v4967_v30  ;;  %4971 = vst.msk [vmem:[#allocation5 + $0x7a] ss:$8 sm:$0x10] %vm15999_vm5, %v4967_v30 }
 0x8c4   :  { %v5083_v31 = vld [vmem:[#allocation5 + $0x8] sm:$0xfe]  ;;  %v5086_v32 = vld [vmem:[#allocation5 + $0x20] sm:$0xfe]  ;;  %v16082_v48 = vld [vmem:[#allocation5 + $0x30] sm:$0xff] }
 0x8c5   :  { %v5082_v59 = vld [vmem:[#allocation5] sm:$0xfe]  ;;  %v16084_v63 = vld [vmem:[#allocation5 + $0x48] sm:$0xff]  ;;  %v5169_v36 = vpack.c.bf16 %v16082_v48, %v5083_v31  ;;  %v5085_v24 = vld [vmem:[#allocation5 + $0x18] sm:$0xfe] }
 0x8c6   :  { %v16086_v34 = vld [vmem:[#allocation5 + $0x28] sm:$0xff]  ;;  %v5172_v37 = vpack.c.bf16 %v16084_v63, %v5086_v32  ;;  %v16091_v26 = vld [vmem:[#allocation5 + $0x40] sm:$0xff]  ;;  %v14292_v54 = vld [vmem:[%s17617_s13 + $0x38] sm:$0xff]  }
 0x8c7   :  { %v5168_v38 = vpack.c.bf16 %v16086_v34, %v5082_v59  ;;  %v5194_v40 = vshll.u32 %v5169_v36, 16  ;;  %v16093_v41 = vld [vmem:[#allocation5 + $0x58] sm:$0xff]  ;;  %v16095_v9 = vld [vmem:[#allocation5 + $0x70] sm:$0xff]  ;;  %v5192_v46 = vshrl.u32 %v5169_v36, 16  ;;  %v5171_v60 = vpack.c.bf16 %v16091_v26, %v5085_v24  ;;  %v16103_v10 = vld [vmem:[#allocation5 + $0x68] sm:$0xff] }
 0x8c8   :  { %v5230_v23 = vshll.u32 %v5172_v37, 16  ;;  %v16098_v45 = vld [vmem:[#allocation5 + $0x50] sm:$0xff]  ;;  %v5228_v28 = vshrl.u32 %v5172_v37, 16  ;;  %v14291_v29 = vld [vmem:[%s17617_s13 + $0x1e4] sm:$0xff]   ;;  %v14293_v30 = vld [vmem:[%s17617_s13 + $0x21c] sm:$0xff]  }
 0x8c9   :  { %v5182_v44 = vshll.u32 %v5168_v38, 16  ;;  %v5196_v42 = vrot.slane %v5194_v40, 1  ;;  %v5180_v6 = vshrl.u32 %v5168_v38, 16  ;;  %v5218_v58 = vshll.u32 %v5171_v60, 16  ;;  %v4978_v31 = vld [vmem:[#allocation5 + $0x8] sm:$0xff]  ;;  %v14294_v32 = vld [vmem:[%s17617_s13 + $0x70] sm:$0xff]  }
 0x8ca   :  { %v5088_v21 = vld [vmem:[#allocation5 + $0x80] sm:$0x1f]  ;;  %v5091_v62 = vld [vmem:[#allocation5 + $0x98] sm:$0x1f]  ;;  %v5232_v7 = vrot.slane %v5230_v23, 1  ;;  %v5073_v36 = vpack.c.bf16 %v16082_v48, %v4978_v31  ;;  %v14296_v38 = vld [vmem:[%s17617_s13 + $0x30] sm:$0xff]  }
 0x8cb   :  { %v5174_v43 = vpack.c.bf16 %v5088_v21, %v16093_v41  ;;  %v5087_v22 = vld [vmem:[#allocation5 + $0x78] sm:$0x1f]  ;;  %v5177_v49 = vpack.c.bf16 %v5091_v62, %v16095_v9  ;;  %v5184_v52 = vrot.slane %v5182_v44, 1  ;;  %v5090_v56 = vld [vmem:[#allocation5 + $0x90] sm:$0x1f]  ;;  %v5197_v2 = vor.u32 %v5196_v42, %v5192_v46  ;;  %v14298_v48 = vld [vmem:[%s17617_s13 + $0x68] sm:$0xff]  }
 0x8cc   :  { %v5173_v50 = vpack.c.bf16 %v5087_v22, %v16098_v45  ;;  %v5233_v14 = vor.u32 %v5232_v7, %v5228_v28  ;;  %v16106_v17 = vpack.c.bf16 %v5090_v56, %v16103_v10  ;;  %v14295_v37 = vld [vmem:[%s17617_s13 + $0x1dc] sm:$0xff]   ;;  %v14297_v40 = vld [vmem:[%s17617_s13 + $0x214] sm:$0xff]   ;;  %v5220_v23 = vrot.slane %v5218_v58, 1  ;;  %v14300_v7 = vld [vmem:[%s17617_s13 + $0x28] sm:$0xff]  }
 0x8cd   :  { %v5199_v57 = vshll.u32 %v5174_v43, 16  ;;  %v5235_v5 = vshll.u32 %v5177_v49, 16  ;;  %v5242_v15 = vshrl.u32 %v5174_v43, 16  ;;  %v5251_v16 = vshrl.u32 %v5177_v49, 16  ;;  %v14299_v43 = vld [vmem:[%s17617_s13 + $0x1d4] sm:$0xff]   ;;  %v14301_v46 = vld [vmem:[%s17617_s13 + $0x20c] sm:$0xff]  }
 0x8ce   :  { %v5187_v51 = vshll.u32 %v5173_v50, 16  ;;  %v5185_v27 = vor.u32 %v5184_v52, %v5180_v6  ;;  %v5223_v59 = vshll.u32 %v16106_v17, 16  ;;  %v5239_v44 = vshrl.u32 %v5173_v50, 16  ;;  %v14302_v49 = vld [vmem:[%s17617_s13 + $0x60] sm:$0xff]   ;;  %v14303_v52 = vld [vmem:[%s17617_s13 + $0x1cc] sm:$0xff]  }
 0x8cf   :  { %v5201_v11 = vrot.slane %v5199_v57, 1  ;;  %v5237_v25 = vrot.slane %v5235_v5, 1  ;;  %v5216_v21 = vshrl.u32 %v5171_v60, 16  ;;  %v14304_v24 = vld [vmem:[%s17617_s13 + $0x20] sm:$0xff]   ;;  %v14306_v57 = vld [vmem:[%s17617_s13 + $0x58] sm:$0xff]   ;;  %v14310_v6 = vld [vmem:[%s17617_s13 + $0x50] sm:$0xff]  }
 0x8d0   :  { %v5189_v1 = vrot.slane %v5187_v51, 1  ;;  %v16139_v42 = vrot.slane %v5223_v59, 1  ;;  %v14305_v56 = vld [vmem:[%s17617_s13 + $0x204] sm:$0xff]   ;;  %v14308_v60 = vld [vmem:[%s17617_s13 + $0x18] sm:$0xff]   ;;  %v5084_v51 = vld [vmem:[#allocation5 + $0x10] sm:$0xfe] }
 0x8d1   :  { %v5202_v18 = vsel %vm5178_vm6, %v5197_v2, %v5201_v11  ;;  %v5244_v19 = vor.u32 %v5242_v15, %v5201_v11  ;;  %v5238_v35 = vsel %vm5178_vm6, %v5233_v14, %v5237_v25  ;;  %v5253_v13 = vor.u32 %v5251_v16, %v5237_v25  ;;  %v14307_v28 = vld [vmem:[%s17617_s13 + $0x1c4] sm:$0xff]   ;;  %v14309_v2 = vld [vmem:[%s17617_s13 + $0x1fc] sm:$0xff]   ;;  %v14312_v25 = vld [vmem:[%s17617_s13 + $0x10] sm:$0xff]  }
 0x8d2   :  { %5529 = vmatprep.mubr.bf16.mxu1 %v5202_v18  ;;  %v5190_v33 = vsel %vm5178_vm6, %v5185_v27, %v5189_v1  ;;  %13690 = vmatprep.mubr.msk.bf16.mxu0 %vm87_vm15, %v5238_v35  ;;  %v5241_v62 = vor.u32 %v5239_v44, %v5189_v1  ;;  %v5221_v22 = vor.u32 %v5220_v23, %v5216_v21  ;;  %v16176_v5 = vld [vmem:[#allocation5 + $0x38] sm:$0xff]  ;;  %v5089_v11 = vld [vmem:[#allocation5 + $0x88] sm:$0x1f]  ;;  %v16191_v27 = vld [vmem:[#allocation5 + $0x60] sm:$0xff] }
 0x8d3   :  { %5530 = vmatmul.mubr.bf16.vlgmr.msra.gmra.mxu1 %v5190_v33  ;;  %13691 = vmatmul.mubr.msk.bf16.vlgmr.msra.gmra.mxu0 %vm87_vm15, %v5253_v13  ;;  %v14311_v14 = vld [vmem:[%s17617_s13 + $0x1bc] sm:$0xff]   ;;  %v5170_v15 = vpack.c.bf16 %v16176_v5, %v5084_v51  ;;  %v14313_v16 = vld [vmem:[%s17617_s13 + $0x1f4] sm:$0xff]   ;;  %v14314_v1 = vld [vmem:[%s17617_s13 + $0x48] sm:$0xff]  }
 0x8d4   :  { %13337 = vmatpush3.bf16.msra.mxu1 %v14291_v29  ;;  %13373 = vmatpush3.bf16.msra.mxu0 %v14292_v54  ;;  %v5226_v50 = vsel %vm5178_vm6, %v5221_v22, %v16139_v42  ;;  %v5175_v29 = vpack.c.bf16 %v5089_v11, %v16191_v27  ;;  %v14315_v18 = vld [vmem:[%s17617_s13 + $0x1b4] sm:$0xff]   ;;  %v14317_v58 = vld [vmem:[%s17617_s13 + $0x1ec] sm:$0xff]   ;;  %v14318_v35 = vld [vmem:[%s17617_s13 + $0x40] sm:$0xff]  }
 0x8d5   :  { %5537 = vmatprep.mubr.bf16.mxu1 %v5244_v19  ;;  %5910 = vmatprep.mubr.bf16.mxu0 %v5073_v36  ;;  %v5206_v54 = vshll.u32 %v5170_v15, 16  ;;  %v14316_v19 = vld [vmem:[%s17617_s13 + $0x8] sm:$0xff]   ;;  %v14320_v31 = vld [vmem:[%s17617_s13] sm:$0xff]   ;;  %v5204_v59 = vshrl.u32 %v5170_v15, 16  ;;  %v14323_v44 = vld [vmem:[%s17617_s13 + $0xb8] sm:$0xff]  }
 0x8d6   :  { %13338 = vmatprep.subr.bf16.mxu1 %v14293_v30  ;;  %13374 = vmatprep.subr.bf16.mxu0 %v14294_v32  ;;  %v5211_v13 = vshll.u32 %v5175_v29, 16  ;;  %v14319_v33 = vld [vmem:[%s17617_s13 + $0x1ac] sm:$0xff]   ;;  %v14321_v32 = vld [vmem:[%s17617_s13 + $0xf8] sm:$0xff]   ;;  %v4993_v23 = vld [vmem:[#allocation5 + $0x80] sm:$0xf] }
 0x8d7   :  { %v5208_v30 = vrot.slane %v5206_v54, 1  ;;  %v14331_v51 = vld [vmem:[%s17617_s13 + $0x110] sm:$0xff]   ;;  %v14335_v11 = vld [vmem:[%s17617_s13 + $0x98] sm:$0xff]   ;;  %v14337_v15 = vld [vmem:[%s17617_s13 + $0x100] sm:$0xff]  }
 0x8d8   :  { %13339 = vmatpush3.bf16.msra.mxu1 %v14295_v37  ;;  %13375 = vmatpush3.bf16.msra.mxu0 %v14296_v38  ;;  %v5213_v36 = vrot.slane %v5211_v13, 1  ;;  %v14322_v37 = vld [vmem:[%s17617_s13 + $0x128] ss:$0 sps:$4 sm:$0xff]   ;;  %v14347_v13 = vld [vmem:[%s17605_s1 + $0x4] ss:$12 sps:$4 sm:$0xff]  }
 0x8d9   :  { %13340 = vmatprep.subr.bf16.mxu1 %v14297_v40  ;;  %13376 = vmatprep.subr.bf16.mxu0 %v14298_v48  ;;  %v5209_v38 = vor.u32 %v5208_v30, %v5204_v59  ;;  %v5248_v40 = vshrl.u32 %v16106_v17, 16  ;;  %v4977_v48 = vld [vmem:[#allocation5] sm:$0xff]  ;;  %v14324_v17 = vld [vmem:[%s17617_s13 + $0xf0] sm:$0xff]   ;;  %v5876_v22 = vsel %vm5493_vm4, %v14322_v37, 0  ;;  %v14342_v54 = vld [vmem:[%s17617_s13 + $0x88] sm:$0xff]  }
 0x8da   :  { %v6053_v30 = vld [vmem:[%s17604_s0 + $0x1e] sm:$0x1f]  ;;  %v4995_v59 = vld [vmem:[#allocation5 + $0x90] sm:$0xf] }
 0x8db   :  { %5538 = vmatmul.mubr.bf16.gmra.mxu1 %v5241_v62  ;;  %v5214_v21 = vsel %vm5178_vm6, %v5209_v38, %v5213_v36  ;;  %v5250_v62 = vor.u32 %v5248_v40, %v16139_v42  ;;  %v5245_v42 = vshrl.u32 %v5175_v29, 16  ;;  %v14343_v29 = vld [vmem:[%s17605_s1 + $0x18] ss:$12 sps:$4 sm:$0x3f]   ;;  %v5080_v40 = vpack.c.bf16 %v4995_v59, %v16103_v10  ;;  %v6311_v10 = vld [vmem:[%s17604_s0 + $0x32] sm:$0x1f] }
 0x8dc   :  { %13341 = vmatpush3.bf16.msra.mxu1 %v14299_v43  ;;  %5578 = vmatprep.mubr.bf16.mxu1 %v5226_v50  ;;  %v5072_v43 = vpack.c.bf16 %v16086_v34, %v4977_v48  ;;  %v14326_v34 = vld [vmem:[%s17617_s13 + $0xb0] sm:$0xff]   ;;  %v14328_v50 = vld [vmem:[%s17617_s13 + $0x118] sm:$0xff]   ;;  %vm6742_vm6 = vcmask 258048  }
 0x8dd   :  { %13377 = vmatpush3.bf16.msra.mxu0 %v14300_v7  ;;  %13342 = vmatprep.subr.bf16.mxu1 %v14301_v46  ;;  %v5078_v7 = vpack.c.bf16 %v4993_v23, %v16093_v41  ;;  %v14325_v46 = vld [vmem:[%s17617_s13 + $0x120] sm:$0xff]   ;;  %v14327_v41 = vld [vmem:[%s17617_s13 + $0xe8] sm:$0xff]  }
 0x8de   :  { %13378 = vmatprep.subr.bf16.mxu0 %v14302_v49  ;;  %v4992_v49 = vld [vmem:[#allocation5 + $0x78] sm:$0xf]  ;;  %v14354_v48 = vld [vmem:[%s17605_s1 + $0x34] ss:$12 sps:$4 sm:$0xff]  }
 0x8e0   :  { %13343 = vmatpush3.bf16.msra.mxu1 %v14303_v52  ;;  %v5247_v52 = vor.u32 %v5245_v42, %v5213_v36  ;;  %v4979_v36 = vld [vmem:[#allocation5 + $0x10] sm:$0xff] }
 0x8e1   :  { %13379 = vmatpush3.bf16.msra.mxu0 %v14304_v24  ;;  %13344 = vmatprep.subr.bf16.mxu1 %v14305_v56  ;;  %v14329_v24 = vld [vmem:[%s17617_s13 + $0xa8] sm:$0xff]   ;;  %v4980_v56 = vld [vmem:[#allocation5 + $0x18] sm:$0xff]  ;;  %v5074_v38 = vpack.c.bf16 %v16176_v5, %v4979_v36  ;;  %v14361_v42 = vld [vmem:[%s17605_s1 + $0x64] ss:$12 sps:$4 sm:$0xff]  }
 0x8e2   :  { %13380 = vmatprep.subr.bf16.mxu0 %v14306_v57  ;;  %v5077_v57 = vpack.c.bf16 %v4992_v49, %v16098_v45  ;;  %v14333_v45 = vld [vmem:[%s17617_s13 + $0xd8] sm:$0xff]   ;;  %v14359_v49 = vld [vmem:[%s17605_s1 + $0x60] ss:$12 sps:$4 sm:$0xff]  }
 0x8e3   :  { %v14352_v5 = vld [vmem:[%s17605_s1 + $0x30] ss:$12 sps:$4 sm:$0xff]  }
 0x8e4   :  { %13345 = vmatpush3.bf16.msra.mxu1 %v14307_v28  ;;  %v5075_v28 = vpack.c.bf16 %v16091_v26, %v4980_v56  ;;  %v14332_v26 = vld [vmem:[%s17617_s13 + $0xa0] sm:$0xff]  }
 0x8e5   :  { %13381 = vmatpush3.bf16.msra.mxu0 %v14308_v60  ;;  %13346 = vmatprep.subr.bf16.mxu1 %v14309_v2  ;;  %v4981_v60 = vld [vmem:[#allocation5 + $0x20] sm:$0xff] }
 0x8e6   :  { %13382 = vmatprep.subr.bf16.mxu0 %v14310_v6  ;;  %v14330_v2 = vld [vmem:[%s17617_s13 + $0xe0] sm:$0xff]   ;;  %v5076_v6 = vpack.c.bf16 %v16084_v63, %v4981_v60  ;;  %v14334_v63 = vld [vmem:[%s17617_s13 + $0x108] sm:$0xff]  }
 0x8e7   :  { %v14363_v56 = vld [vmem:[%s17605_s1 + $0x20] ss:$12 sps:$4 sm:$0x3f]   ;;  %v14364_v60 = vld [vmem:[%s17605_s1 + $0x8] ss:$12 sps:$4 sm:$0xff]  }
 0x8e8   :  { %13347 = vmatpush3.bf16.msra.mxu1 %v14311_v14  ;;  %v14336_v14 = vld [vmem:[%s17617_s13 + $0xd0] sm:$0xff]  }
 0x8e9   :  { %13383 = vmatpush3.bf16.msra.mxu0 %v14312_v25  ;;  %13348 = vmatprep.subr.bf16.mxu1 %v14313_v16  ;;  %v14338_v25 = vld [vmem:[%s17617_s13 + $0x90] sm:$0xff]   ;;  %v14339_v16 = vld [vmem:[%s17617_s13 + $0xc8] sm:$0xff]  }
 0x8ea   :  { %13384 = vmatprep.subr.bf16.mxu0 %v14314_v1  ;;  %v14340_v1 = vld [vmem:[%s17605_s1 + $0x1c] ss:$12 sps:$4 sm:$0x3f]  }
 0x8ec   :  { %13349 = vmatpush3.bf16.msra.mxu1 %v14315_v18  ;;  %v4996_v18 = vld [vmem:[#allocation5 + $0x98] sm:$0xf] }
 0x8ed   :  { %13385 = vmatpush3.bf16.msra.mxu0 %v14316_v19  ;;  %13350 = vmatprep.subr.bf16.mxu1 %v14317_v58  ;;  %v14344_v19 = vld [vmem:[%s17617_s13 + $0xc0] sm:$0xff]   ;;  %v5081_v58 = vpack.c.bf16 %v4996_v18, %v16095_v9 }
 0x8ee   :  { %13386 = vmatprep.subr.bf16.mxu0 %v14318_v35  ;;  %v6222_v35 = vsel %vm181_vm0, %v14343_v29, 0  ;;  %v14345_v9 = vld [vmem:[%s17605_s1] ss:$12 sps:$4 sm:$0xff]  }
 0x8f0   :  { %13351 = vmatpush3.bf16.msra.mxu1 %v14319_v33  ;;  %v14348_v33 = vld [vmem:[%s17617_s13 + $0x80] sm:$0xff]  }
 0x8f1   :  { %13387 = vmatpush3.bf16.msra.mxu0 %v14320_v31  ;;  %13400 = vmatprep.subr.bf16.mxu1 %v14321_v32  ;;  %v14349_v31 = vld [vmem:[%s17605_s1 + $0x4c] ss:$12 sps:$4 sm:$0x3f]   ;;  %v14351_v32 = vld [vmem:[%s17605_s1 + $0x48] ss:$12 sps:$4 sm:$0x3f]  }
 0x8f2   :  { %13827 = vmatprep.subr.msk.bf16.mxu0 %vm5493_vm4, %v14322_v37  ;;  %v16318_v37 = vpack.c.bf16 %v6053_v30, %v6053_v30  ;;  %v6100_v23 = vsel %vm181_vm0, %v14351_v32, 0 }
 0x8f3   :  { %5579 = vmatmul.mubr.bf16.vlgmr.msra.gmra.mxu1 %v5214_v21  ;;  %v16337_v21 = vpack.c.bf16 %v6311_v10, %v6311_v10 }
 0x8f4   :  { %5911 = vmatmul.mubr.bf16.vlgmr.msra.gmra.mxu0 %v5072_v43  ;;  %5586 = vmatprep.mubr.bf16.mxu1 %v5250_v62  ;;  %v6065_v62 = vld [vmem:[%s17604_s0 + $0x23] sm:$0x1f] }
 0x8f5   :  { %5918 = vmatprep.mubr.bf16.mxu0 %v5078_v7  ;;  %13401 = vmatpush3.bf16.msra.mxu1 %v14323_v44  ;;  %v4994_v44 = vld [vmem:[#allocation5 + $0x88] sm:$0xf]  ;;  %v14358_v7 = vld [vmem:[%s17605_s1 + $0x78] ss:$12 sps:$4 sm:$0x3f]  }
 0x8f6   :  { %13695 = vmatpush3.bf16.msra.mxu0 %v5876_v22  ;;  %13402 = vmatprep.subr.bf16.mxu1 %v14324_v17  ;;  %v5079_v43 = vpack.c.bf16 %v4994_v44, %v16191_v27  ;;  %v6055_v27 = vld [vmem:[%s17604_s0 + $0x2d] sm:$0x1f]  ;;  %v14355_v17 = vld [vmem:[%s17605_s1 + $0x7c] ss:$12 sps:$4 sm:$0x3f]   ;;  %v6066_v22 = vpack.c.bf16 %v6065_v62, %v6065_v62 }
 0x8f7   :  { %13696 = vmatprep.subr.bf16.mxu0 %v14325_v46 }
 0x8f9   :  { %13403 = vmatpush3.bf16.msra.mxu1 %v14326_v34 }
 0x8fa   :  { %13697 = vmatpush3.bf16.msra.mxu0 %v14325_v46  ;;  %13404 = vmatprep.subr.bf16.mxu1 %v14327_v41  ;;  %v6056_v46 = vpack.c.bf16 %v6055_v27, %v6055_v27  ;;  %v6524_v41 = vsel %vm181_vm0, %v14358_v7, 0 }
 0x8fb   :  { %5587 = vmatmul.mubr.bf16.gmra.mxu1 %v5247_v52  ;;  %13698 = vmatprep.subr.bf16.mxu0 %v14328_v50  ;;  %v16375_v52 = vld [vmem:[#allocation4 + $0x20] sm:$0xff] }
 0x8fc   :  { %5919 = vmatmul.mubr.bf16.gmra.mxu0 %v5077_v57  ;;  %5959 = vmatprep.mubr.bf16.mxu1 %v5075_v28  ;;  %v6228_v28 = vsel %vm181_vm0, %v14363_v56, 0  ;;  %70 = vst.msk [vmem:[#allocation2 + $0x18] sm:$0x3f] %vm69_vm13, %v16375_v52  ;;  %82 = vst.msk [vmem:[#allocation4 + $0x48] sm:$0x3f] %vm69_vm13, %v16375_v52 }
 0x8fd   :  { %13405 = vmatpush3.bf16.msra.mxu1 %v14329_v24  ;;  %13706 = vmatprep.mubr.msk.bf16.mxu0 %vm87_vm15, %v5076_v6  ;;  %v6489_v24 = vld [vmem:[%s17604_s0 + $0x28] sm:$0x1f]  ;;  %72 = vst.msk [vmem:[#allocation3 + $0x8] sm:$0x3f] %vm69_vm13, %v16375_v52  ;;  %vm6748_vm13 = vcmask 520448  }
 0x8fe   :  { %13699 = vmatpush3.bf16.msra.mxu0 %v14328_v50  ;;  %13406 = vmatprep.subr.bf16.mxu1 %v14330_v2  ;;  %v14362_v50 = vld [vmem:[%s17605_s1 + $0x38] ss:$12 sps:$4 sm:$0xff]   ;;  %v6490_v57 = vpack.c.bf16 %v6489_v24, %v6489_v24 }
 0x8ff   :  { %13700 = vmatprep.subr.bf16.mxu0 %v14331_v51  ;;  %v6616_v2 = vld [vmem:[%s17604_s0 + $0x37] sm:$0x1f] }
 0x900   :  { %v6617_v6 = vpack.c.bf16 %v6616_v2, %v6616_v2 }
 0x901   :  { %13407 = vmatpush3.bf16.msra.mxu1 %v14332_v26 }
 0x902   :  { %13701 = vmatpush3.bf16.msra.mxu0 %v14331_v51  ;;  %13408 = vmatprep.subr.bf16.mxu1 %v14333_v45  ;;  %v14365_v51 = vld [vmem:[%s17605_s1 + $0x80] ss:$12 sps:$4 sm:$0x3f]   ;;  %v14366_v45 = vld [vmem:[%s17605_s1 + $0x68] ss:$12 sps:$4 sm:$0xff]  }
 0x903   :  { %13702 = vmatprep.subr.bf16.mxu0 %v14334_v63  ;;  %v6530_v26 = vsel %vm181_vm0, %v14365_v51, 0 }
 0x905   :  { %13409 = vmatpush3.bf16.msra.mxu1 %v14335_v11 }
 0x906   :  { %13703 = vmatpush3.bf16.msra.mxu0 %v14334_v63  ;;  %13410 = vmatprep.subr.bf16.mxu1 %v14336_v14 }
 0x907   :  { %13704 = vmatprep.subr.bf16.mxu0 %v14337_v15 }
 0x909   :  { %13411 = vmatpush3.bf16.msra.mxu1 %v14338_v25 }
 0x90a   :  { %13705 = vmatpush3.bf16.msra.mxu0 %v14337_v15  ;;  %13412 = vmatprep.subr.bf16.mxu1 %v14339_v16 }
 0x90b   :  { %12704 = vmatprep.subr.msk.bf16.mxu0 %vm181_vm0, %v14340_v1 }
 0x90d   :  { %13707 = vmatmul.mubr.msk.bf16.vlgmr.msra.gmra.mxu0 %vm87_vm15, %v5081_v58  ;;  %13413 = vmatpush3.bf16.msra.mxu1 %v14342_v54 }
 0x90e   :  { %6243 = vmatpush1.bf16.msra.mxu0 %v6222_v35  ;;  %13414 = vmatprep.subr.bf16.mxu1 %v14344_v19 }
 0x90f   :  { %6244 = vmatprep.subr.bf16.mxu0 %v14347_v13  ;;  %6262 = vmatprep.mubr.bf16.mxu0 %v14907_v0 }
 0x911   :  { %13415 = vmatpush3.bf16.msra.mxu1 %v14348_v33 }
 0x912   :  { %6245 = vmatpush1.bf16.msra.mxu0 %v14345_v9  ;;  %12695 = vmatprep.subr.msk.bf16.mxu1 %vm181_vm0, %v14349_v31 }
 0x913   :  { %12707 = vmatprep.subr.msk.bf16.mxu0 %vm181_vm0, %v14349_v31 }
 0x914   :  { %5960 = vmatmul.mubr.bf16.vlgmr.msra.gmra.mxu1 %v5074_v38 }
 0x915   :  { %12705 = vmatmul.mubr.msk.bf16.vlgmr.msra.gmra.mxu0 %vm17621_vm1, %v16318_v37  ;;  %5967 = vmatprep.mubr.bf16.mxu1 %v5080_v40 }
 0x916   :  { %6329 = vmatpush1.bf16.msra.mxu0 %v6100_v23  ;;  %6348 = vmatprep.mubr.bf16.mxu0 %v14907_v0 }
 0x917   :  { %6330 = vmatprep.subr.bf16.mxu0 %v14354_v48  ;;  %6121 = vmatpush1.bf16.msra.mxu1 %v6100_v23 }
 0x918   :  { %6122 = vmatprep.subr.bf16.mxu1 %v14354_v48 }
 0x91a   :  { %6331 = vmatpush1.bf16.msra.mxu0 %v14352_v5 }
 0x91b   :  { %12710 = vmatprep.subr.msk.bf16.mxu0 %vm181_vm0, %v14340_v1  ;;  %6123 = vmatpush1.bf16.msra.mxu1 %v14352_v5 }
 0x91c   :  { %5968 = vmatmul.mubr.bf16.gmra.mxu1 %v5079_v43  ;;  %13710 = vmatprep.subr.bf16.mxu1 %v15838_v3  ;;  %v14357_v3 = vld [vmem:[%s17605_s1 + $0x50] ss:$12 sps:$4 sm:$0x3f]  }
 0x91d   :  { %12708 = vmatmul.mubr.msk.bf16.vlgmr.msra.gmra.mxu0 %vm17621_vm1, %v16337_v21  ;;  %6140 = vmatprep.mubr.bf16.mxu1 %v14907_v0  ;;  %v6106_v34 = vsel %vm181_vm0, %v14357_v3, 0 }
 0x91e   :  { %6413 = vmatpush1.bf16.msra.mxu0 %v6222_v35  ;;  %6432 = vmatprep.mubr.bf16.mxu0 %v14907_v0 }
 0x91f   :  { %6414 = vmatprep.subr.bf16.mxu0 %v14347_v13 }
 0x922   :  { %6415 = vmatpush1.bf16.msra.mxu0 %v14345_v9 }
 0x923   :  { %12727 = vmatprep.subr.msk.bf16.mxu0 %vm181_vm0, %v14355_v17 }
 0x924   :  { %12696 = vmatmul.mubr.msk.bf16.vlgmr.msra.gmra.mxu1 %vm17621_vm1, %v6066_v22 }
 0x925   :  { %12711 = vmatmul.mubr.msk.bf16.vlgmr.msra.gmra.mxu0 %vm17621_vm1, %v6056_v46  ;;  %13711 = vmatpush3.bf16.msra.mxu1 %v6106_v34 }
 0x926   :  { %6545 = vmatpush1.bf16.msra.mxu0 %v6524_v41  ;;  %13712 = vmatprep.subr.bf16.mxu1 %v16375_v52 }
 0x927   :  { %6546 = vmatprep.subr.bf16.mxu0 %v14361_v42  ;;  %13714 = vmatprep.mubr.msk.bf16.mxu1 %vm14909_vm2, %v16375_v52 }
 0x928   :  { %6564 = vmatprep.mubr.bf16.mxu0 %v14907_v0 }
 0x929   :  { %13713 = vmatpush3.bf16.msra.mxu1 %v14362_v50 }
 0x92a   :  { %6547 = vmatpush1.bf16.msra.mxu0 %v14359_v49  ;;  %13718 = vmatprep.subr.bf16.mxu1 %v16375_v52 }
 0x92b   :  { %12730 = vmatprep.subr.msk.bf16.mxu0 %vm181_vm0, %v14355_v17 }
 0x92c   :  { %13715 = vmatmul.mubr.msk.bf16.vlgmr.msra.gmra.mxu1 %vm17621_vm1, %v6066_v22 }
 0x92d   :  { %12728 = vmatmul.mubr.msk.bf16.vlgmr.msra.gmra.mxu0 %vm17621_vm1, %v6490_v57  ;;  %13719 = vmatpush3.bf16.msra.mxu1 %v6228_v28 }
 0x92e   :  { %6634 = vmatpush1.bf16.msra.mxu0 %v6524_v41  ;;  %13720 = vmatprep.subr.bf16.mxu1 %v16375_v52 }
 0x92f   :  { %6635 = vmatprep.subr.bf16.mxu0 %v14361_v42  ;;  %13722 = vmatprep.mubr.msk.bf16.mxu1 %vm14909_vm2, %v16375_v52 }
 0x930   :  { %6653 = vmatprep.mubr.bf16.mxu0 %v14907_v0 }
 0x931   :  { %13721 = vmatpush3.bf16.msra.mxu1 %v14364_v60 }
 0x932   :  { %6636 = vmatpush1.bf16.msra.mxu0 %v14359_v49  ;;  %13726 = vmatprep.subr.bf16.mxu1 %v16375_v52 }
 0x933   :  { %6905 = vmatprep.subr.bf16.mxu0 %v14907_v0 }
 0x934   :  { %13723 = vmatmul.mubr.msk.bf16.vlgmr.msra.gmra.mxu1 %vm17621_vm1, %v16318_v37 }
 0x935   :  { %12731 = vmatmul.mubr.msk.bf16.vlgmr.msra.gmra.mxu0 %vm17621_vm1, %v6617_v6  ;;  %13727 = vmatpush3.bf16.msra.mxu1 %v6106_v34 }
 0x936   :  { %13728 = vmatprep.subr.bf16.mxu1 %v16375_v52  ;;  %13730 = vmatprep.mubr.msk.bf16.mxu1 %vm14909_vm2, %v16375_v52 }
 0x939   :  { %13729 = vmatpush3.bf16.msra.mxu1 %v14362_v50 }
 0x93a   :  { %13734 = vmatprep.subr.bf16.mxu1 %v16375_v52 }
 0x93c   :  { %13731 = vmatmul.mubr.msk.bf16.vlgmr.msra.gmra.mxu1 %vm17621_vm1, %v16337_v21 }
 0x93d   :  { %13735 = vmatpush3.bf16.msra.mxu1 %v6228_v28  ;;  %13738 = vmatprep.mubr.msk.bf16.mxu1 %vm14909_vm2, %v16375_v52 }
 0x93e   :  { %13736 = vmatprep.subr.bf16.mxu1 %v16375_v52 }
 0x941   :  { %13737 = vmatpush3.bf16.msra.mxu1 %v14364_v60 }
 0x942   :  { %13742 = vmatprep.subr.bf16.mxu1 %v16375_v52 }
 0x944   :  { %13739 = vmatmul.mubr.msk.bf16.vlgmr.msra.gmra.mxu1 %vm17621_vm1, %v6056_v46 }
 0x945   :  { %13743 = vmatpush3.bf16.msra.mxu1 %v6530_v26  ;;  %13746 = vmatprep.mubr.msk.bf16.mxu1 %vm14909_vm2, %v16375_v52 }
 0x946   :  { %13744 = vmatprep.subr.bf16.mxu1 %v16375_v52 }
 0x949   :  { %13745 = vmatpush3.bf16.msra.mxu1 %v14366_v45 }
 0x94a   :  { %13750 = vmatprep.subr.bf16.mxu1 %v16375_v52 }
 0x94c   :  { %13747 = vmatmul.mubr.msk.bf16.vlgmr.msra.gmra.mxu1 %vm17621_vm1, %v6490_v57 }
 0x94d   :  { %13751 = vmatpush3.bf16.msra.mxu1 %v6530_v26  ;;  %13754 = vmatprep.mubr.msk.bf16.mxu1 %vm14909_vm2, %v16375_v52 }
 0x94e   :  { %13752 = vmatprep.subr.bf16.mxu1 %v16375_v52 }
 0x951   :  { %13753 = vmatpush3.bf16.msra.mxu1 %v14366_v45 }
 0x952   :  { %7008 = vmatprep.subr.bf16.mxu1 %v14907_v0 }
 0x954   :  { %13755 = vmatmul.mubr.msk.bf16.vlgmr.msra.gmra.mxu1 %vm17621_vm1, %v6617_v6 }
 0x993   :  { %v13324_v63 = vpop.f32.mrf.mxu1  ;;  %v13692_v25 = vpop.f32.mrf.mxu0 }
 0x995   :  { %v13325_v11 = vpop.f32.mrf.mxu1  ;;  %v5629_v1 = vpop.f32.mrf.mxu0 }
 0x996   :  { %v13326_v10 = vadd.f32 %v13325_v11, %v13324_v63 }
 0x997   :  { %v13327_v14 = vpop.f32.mrf.mxu1  ;;  %v16435_v18 = vpop.f32.mrf.mxu0 }
 0x999   :  { %v13328_v15 = vpop.f32.mrf.mxu1  ;;  %v5632_v19 = vpop.f32.mrf.mxu0 }
 0x99a   :  { %v13329_v3 = vadd.f32 %v13328_v15, %v13327_v14 }
 0x99b   :  { %v13330_v16 = vpop.f32.mrf.mxu1 }
 0x99d   :  { %v13331_v29 = vpop.f32.mrf.mxu1 }
 0x99e   :  { %v13332_v42 = vadd.f32 %v13331_v29, %v13330_v16  ;;  %v12680_v16 = vld [vmem:[%s17618_s14] ss:$0 sm:$0xff] }
 0x99f   :  { %v13333_v54 = vpop.f32.mrf.mxu1 }
 0x9a1   :  { %v13334_v58 = vpop.f32.mrf.mxu1 }
 0x9a2   :  { %v13335_v45 = vadd.f32 %v13334_v58, %v13333_v54 }
 0x9b3   :  { %v13352_v13 = vpop.f32.mrf.mxu1 }
 0x9b4   :  { %v13388_v35 = vpop.f32.mrf.mxu0 }
 0x9b5   :  { %v13353_v30 = vpop.f32.mrf.mxu1 }
 0x9b6   :  { %v13389_v33 = vpop.f32.mrf.mxu0  ;;  %v13354_v48 = vadd.f32 %v13353_v30, %v13352_v13 }
 0x9b7   :  { %v13355_v32 = vpop.f32.mrf.mxu1  ;;  %v13390_v50 = vadd.f32 %v13389_v33, %v13388_v35 }
 0x9b8   :  { %v13391_v9 = vpop.f32.mrf.mxu0  ;;  %v5581_v43 = vadd.f32 %v13354_v48, %v13326_v10 }
 0x9b9   :  { %v13356_v36 = vpop.f32.mrf.mxu1 }
 0x9ba   :  { %v13392_v31 = vpop.f32.mrf.mxu0  ;;  %v13357_v62 = vadd.f32 %v13356_v36, %v13355_v32  ;;  %v5630_v46 = vadd.f32 %v5629_v1, %v5581_v43 }
 0x9bb   :  { %v13358_v38 = vpop.f32.mrf.mxu1  ;;  %v13393_v63 = vadd.f32 %v13392_v31, %v13391_v9 }
 0x9bc   :  { %v13394_v59 = vpop.f32.mrf.mxu0  ;;  %v5584_v34 = vadd.f32 %v13357_v62, %v13329_v3  ;;  %v5913_v28 = vadd.f32 %v13390_v50, %v5630_v46 }
 0x9bd   :  { %v13359_v23 = vpop.f32.mrf.mxu1 }
 0x9be   :  { %v13395_v37 = vpop.f32.mrf.mxu0  ;;  %v13360_v7 = vadd.f32 %v13359_v23, %v13358_v38  ;;  %v5633_v60 = vadd.f32 %v5632_v19, %v5584_v34 }
 0x9bf   :  { %v13361_v21 = vpop.f32.mrf.mxu1  ;;  %v13396_v30 = vadd.f32 %v13395_v37, %v13394_v59 }
 0x9c0   :  { %v13397_v40 = vpop.f32.mrf.mxu0  ;;  %v5589_v56 = vadd.f32 %v13360_v7, %v13332_v42  ;;  %v5916_v29 = vadd.f32 %v13393_v63, %v5633_v60 }
 0x9c1   :  { %v13362_v22 = vpop.f32.mrf.mxu1 }
 0x9c2   :  { %v13398_v5 = vpop.f32.mrf.mxu0  ;;  %v13363_v2 = vadd.f32 %v13362_v22, %v13361_v21  ;;  %v5638_v15 = vadd.f32 %v13692_v25, %v5589_v56 }
 0x9c3   :  { %v13399_v21 = vadd.f32 %v13398_v5, %v13397_v40 }
 0x9c4   :  { %v5592_v35 = vadd.f32 %v13363_v2, %v13335_v45  ;;  %v5921_v54 = vadd.f32 %v13396_v30, %v5638_v15 }
 0x9c6   :  { %v5641_v9 = vadd.f32 %v16435_v18, %v5592_v35 }
 0x9c8   :  { %v5924_v7 = vadd.f32 %v13399_v21, %v5641_v9 }
 0x9cd   :  { %v13708_v44 = vpop.f32.mrf.mxu0 }
 0x9cf   :  { %v6010_v27 = vpop.f32.mrf.mxu0 }
 0x9d1   :  { %v13709_v17 = vpop.f32.mrf.mxu0 }
 0x9d3   :  { %v6013_v41 = vpop.f32.mrf.mxu0 }
 0x9d4   :  { %v13416_v49 = vpop.f32.mrf.mxu1 }
 0x9d5   :  { %v16437_v24 = vpop.f32.mrf.mxu0 }
 0x9d6   :  { %v13417_v57 = vpop.f32.mrf.mxu1 }
 0x9d7   :  { %v13418_v6 = vadd.f32 %v13417_v57, %v13416_v49  ;;  %v16439_v51 = vpop.f32.mrf.mxu0 }
 0x9d8   :  { %v13419_v26 = vpop.f32.mrf.mxu1 }
 0x9d9   :  { %v5962_v11 = vadd.f32 %v13418_v6, %v5913_v28  ;;  %v6268_v14 = vpop.f32.mrf.mxu0 }
 0x9da   :  { %v13420_v1 = vpop.f32.mrf.mxu1 }
 0x9db   :  { %v6011_v13 = vadd.f32 %v6010_v27, %v5962_v11  ;;  %v13421_v33 = vadd.f32 %v13420_v1, %v13419_v26  ;;  %v6269_v19 = vpop.f32.mrf.mxu0 }
 0x9dc   :  { %v13422_v32 = vpop.f32.mrf.mxu1 }
 0x9dd   :  { %v6032_v36 = vadd.f32 %v12680_v16, %v6011_v13  ;;  %v5965_v38 = vadd.f32 %v13421_v33, %v5916_v29  ;;  %v6350_v23 = vpop.f32.mrf.mxu0 }
 0x9de   :  { %v13423_v58 = vpop.f32.mrf.mxu1 }
 0x9df   :  { %14845 = vtanh.f32 %v6032_v36  ;;  %v6014_v25 = vadd.f32 %v6013_v41, %v5965_v38  ;;  %v13424_v31 = vadd.f32 %v13423_v58, %v13422_v32  ;;  %v6352_v48 = vpop.f32.mrf.mxu0 }
 0x9e0   :  { %v13425_v10 = vpop.f32.mrf.mxu1 }
 0x9e1   :  { %v6033_v43 = vadd.f32 %v12680_v16, %v6014_v25  ;;  %v5970_v62 = vadd.f32 %v13424_v31, %v5921_v54  ;;  %v6354_v27 = vpop.f32.mrf.mxu0 }
 0x9e2   :  { %v13426_v3 = vpop.f32.mrf.mxu1 }
 0x9e3   :  { %14847 = vtanh.f32 %v6033_v43  ;;  %v6019_v59 = vadd.f32 %v13708_v44, %v5970_v62  ;;  %v13427_v37 = vadd.f32 %v13426_v3, %v13425_v10  ;;  %v6355_v22 = vpop.f32.mrf.mxu0 }
 0x9e4   :  { %v6142_v46 = vpop.f32.mrf.mxu1 }
 0x9e5   :  { %v6034_v34 = vadd.f32 %v12680_v16, %v6019_v59  ;;  %v5973_v42 = vadd.f32 %v13427_v37, %v5924_v7  ;;  %v6434_v49 = vpop.f32.mrf.mxu0  ;;  %v6265_v63 = vadd.f32 %v16437_v24, %v6142_v46 }
 0x9e6   :  { %v6144_v18 = vpop.f32.mrf.mxu1  ;;  %v6435_v33 = vadd.f32 %v6434_v49, %v6350_v23 }
 0x9e7   :  { %14849 = vtanh.f32 %v6034_v34  ;;  %v6022_v41 = vadd.f32 %v13709_v17, %v5973_v42  ;;  %v6436_v50 = vpop.f32.mrf.mxu0  ;;  %v6705_v17 = vld [vmem:[%s17606_s2] sm:$0x7]  ;;  %v6267_v15 = vadd.f32 %v16439_v51, %v6144_v18 }
 0x9e8   :  { %v6146_v56 = vpop.f32.mrf.mxu1  ;;  %v6710_v1 = vrot.slane %v6705_v17, %v15172_v4  ;;  %v6714_v30 = vrot.slane %v6705_v17, %v15175_v8  ;;  %v6437_v36 = vadd.f32 %v6436_v50, %v6352_v48 }
 0x9e9   :  { %v6035_v57 = vadd.f32 %v12680_v16, %v6022_v41  ;;  %v6438_v40 = vpop.f32.mrf.mxu0 }
 0x9ea   :  { %v6147_v5 = vpop.f32.mrf.mxu1 }
 0x9eb   :  { %14851 = vtanh.f32 %v6035_v57  ;;  %v6439_v28 = vpop.f32.mrf.mxu0 }
 0x9ec   :  { %v14846_v60 = vpop.eup %14845  ;;  %v6183_v2 = vpop.f32.mrf.mxu1 }
 0x9ed   :  { %6040 = vst.msk [vmem:[%s17619_s15] sm:$0xff] %vm17621_vm1, %v14846_v60  ;;  %v6566_v44 = vpop.f32.mrf.mxu0  ;;  %v6718_v60 = vrot.slane %v6705_v17, %v15186_v39  ;;  %v6773_v17 = vld [vmem:[#allocation2 + $0x7] ss:$8 sm:$0x3] }
 0x9ee   :  { %v13716_v6 = vpop.f32.mrf.mxu1  ;;  %v6613_v16 = vadd.f32 %v6566_v44, %v6265_v63 }
 0x9ef   :  { %v6568_v26 = vpop.f32.mrf.mxu0 }
 0x9f0   :  { %v14848_v45 = vpop.eup %14847  ;;  %v6186_v11 = vpop.f32.mrf.mxu1  ;;  %v6614_v19 = vadd.f32 %v6568_v26, %v6267_v15  ;;  %v6722_v51 = vadd.f32 %v6710_v1, %v6613_v16  ;;  %v16495_v15 = vld [vmem:[%s17607_s3 + $0x88] sm:$0xff]  }
 0x9f1   :  { %6041 = vst.msk [vmem:[%s17619_s15 + $0x8] sm:$0xff] %vm17621_vm1, %v14848_v45  ;;  %v6570_v14 = vpop.f32.mrf.mxu0  ;;  %v16483_v45 = vld [vmem:[%s17607_s3 + $0x38] sm:$0xff]   ;;  %6906 = vmatpush1.bf16.msra.mxu0 %v16495_v15 }
 0x9f2   :  { %v13717_v29 = vpop.f32.mrf.mxu1  ;;  %v6723_v25 = vadd.f32 %v6714_v30, %v6614_v19  ;;  %v6725_v21 = vmax.f32 %v6722_v51, 0.0  ;;  %7009 = vmatpush1.bf16.msra.mxu1 %v16483_v45  ;;  %v16508_v19 = vld [vmem:[%s17607_s3 + $0x28] sm:$0xff]   ;;  %6907 = vmatprep.subr.bf16.mxu0 %v14907_v0  ;;  %v16519_v51 = vld [vmem:[%s17607_s3 + $0x78] sm:$0xff]  }
 0x9f3   :  { %v6571_v35 = vpop.f32.mrf.mxu0  ;;  %7010 = vmatprep.subr.bf16.mxu1 %v14907_v0 }
 0x9f4   :  { %v14850_v13 = vpop.eup %14849  ;;  %v6305_v24 = vpop.f32.mrf.mxu1  ;;  %v6726_v7 = vmax.f32 %v6723_v25, 0.0  ;;  %v16555_v25 = vld [vmem:[%s17607_s3 + $0x10] sm:$0xff]  }
 0x9f5   :  { %6042 = vst.msk [vmem:[%s17619_s15 + $0x10] sm:$0xff] %vm17621_vm1, %v14850_v13  ;;  %v6655_v32 = vpop.f32.mrf.mxu0  ;;  %v6306_v57 = vadd.f32 %v6305_v24, %v6183_v2  ;;  %v16489_v2 = vld [vmem:[%s17607_s3 + $0x30] sm:$0xff]   ;;  %v16502_v13 = vld [vmem:[%s17607_s3 + $0x80] sm:$0xff]   ;;  %vm6764_vm1 = vcmask 1045248  }
 0x9f6   :  { %v6702_v38 = vadd.f32 %v6655_v32, %v6435_v33  ;;  %v13724_v54 = vpop.f32.mrf.mxu1  ;;  %7011 = vmatpush1.bf16.msra.mxu1 %v16489_v2  ;;  %6908 = vmatpush1.bf16.msra.mxu0 %v16502_v13 }
 0x9f7   :  { %v6657_v58 = vpop.f32.mrf.mxu0  ;;  %7012 = vmatprep.subr.bf16.mxu1 %v14907_v0  ;;  %6909 = vmatprep.subr.bf16.mxu0 %v14907_v0  ;;  %v16535_v54 = vld [vmem:[%s17607_s3 + $0x70] sm:$0xff]  }
 0x9f8   :  { %v14852_v9 = vpop.eup %14851  ;;  %v6728_v23 = vadd.f32 %v6710_v1, %v6702_v38  ;;  %v6703_v31 = vadd.f32 %v6657_v58, %v6437_v36  ;;  %v6308_v10 = vpop.f32.mrf.mxu1  ;;  %v6802_v1 = vrot.slane %v6773_v17, %v15175_v8  ;;  %v16525_v38 = vld [vmem:[%s17607_s3 + $0x20] sm:$0xff]   ;;  %v16541_v58 = vld [vmem:[%s17607_s3 + $0x18] sm:$0xff]  }
 0x9f9   :  { %6044 = vst.msk [vmem:[%s17619_s15 + $0x18] sm:$0xf] %vm17620_vm7, %v14852_v9  ;;  %v6659_v48 = vpop.f32.mrf.mxu0  ;;  %v16549_v9 = vld [vmem:[%s17607_s3 + $0x68] sm:$0xff]   ;;  %v16578_v10 = vld [vmem:[%s17607_s3] sm:$0xff]   ;;  %vm6759_vm7 = vcmask 782848  }
 0x9fa   :  { %v6731_v43 = vmax.f32 %v6728_v23, 0.0  ;;  %v6729_v62 = vadd.f32 %v6714_v30, %v6703_v31  ;;  %v13725_v27 = vpop.f32.mrf.mxu1  ;;  %v6806_v30 = vpack.c.bf16 %v6802_v1, %v6802_v1  ;;  %7013 = vmatpush1.bf16.msra.mxu1 %v16508_v19  ;;  %6910 = vmatpush1.bf16.msra.mxu0 %v16519_v51  ;;  %v16563_v23 = vld [vmem:[%s17607_s3 + $0x60] sm:$0xff]   ;;  %v16569_v31 = vld [vmem:[%s17607_s3 + $0x8] sm:$0xff]   ;;  %v16664_v1 = vld [vmem:[%s17607_s3 + $0xd8] sm:$0xff]  }
 0x9fb   :  { %v6660_v3 = vpop.f32.mrf.mxu0  ;;  %7014 = vmatprep.subr.bf16.mxu1 %v14907_v0  ;;  %6911 = vmatprep.subr.bf16.mxu0 %v14907_v0  ;;  %v16586_v48 = vld [vmem:[%s17607_s3 + $0x48] sm:$0xff]   ;;  %v16614_v27 = vld [vmem:[%s17607_s3 + $0x58] sm:$0xff]  }
 0x9fc   :  { %v6732_v59 = vmax.f32 %v6729_v62, 0.0  ;;  %v6391_v37 = vpop.f32.mrf.mxu1  ;;  %v16471_v22 = vmax.f32 %v6725_v21, %v6731_v43  ;;  %12774 = vmatprep.mubr.msk.bf16.mxu1 %vm66_vm3, %v6806_v30  ;;  %v6798_v21 = vrot.slane %v6773_v17, %v15172_v4  ;;  %v16594_v43 = vld [vmem:[%s17607_s3 + $0x40] sm:$0xff]   ;;  %v16623_v3 = vld [vmem:[%s17607_s3 + $0x50] sm:$0xff]   ;;  %v16690_v30 = vld [vmem:[%s17607_s3 + $0xc8] sm:$0xff]  }
 0x9fe   :  { %6738 = vrot.lane.b32.xlu0 %v16471_v22, %s14910_s26  ;;  %v13732_v46 = vpop.f32.mrf.mxu1  ;;  %v16475_v34 = vmax.f32 %v6726_v7, %v6732_v59  ;;  %7015 = vmatpush1.bf16.msra.mxu1 %v16525_v38  ;;  %v6805_v62 = vpack.c.bf16 %v6798_v21, %v6798_v21  ;;  %v16630_v7 = vld [vmem:[%s17607_s3 + $0x98] sm:$0xff]   ;;  %v16726_v21 = vld [vmem:[%s17607_s3 + $0xa8] sm:$0xff]  }
 0x9ff   :  { %7016 = vmatprep.subr.bf16.mxu1 %v14907_v0  ;;  %6912 = vmatpush1.bf16.msra.mxu0 %v16535_v54  ;;  %v16640_v46 = vld [vmem:[%s17607_s3 + $0x90] sm:$0xff]  }
 0xa00   :  { %6751 = vrot.lane.b32.xlu1 %v16475_v34, %s14910_s26  ;;  %v6394_v42 = vpop.f32.mrf.mxu1  ;;  %6913 = vmatprep.subr.bf16.mxu0 %v14907_v0 }
 0xa02   :  { %v13733_v49 = vpop.f32.mrf.mxu1  ;;  %7017 = vmatpush1.bf16.msra.mxu1 %v16541_v58 }
 0xa03   :  { %7018 = vmatprep.subr.bf16.mxu1 %v14907_v0  ;;  %6914 = vmatpush1.bf16.msra.mxu0 %v16549_v9 }
 0xa04   :  { %v6475_v18 = vpop.f32.mrf.mxu1  ;;  %6915 = vmatprep.subr.bf16.mxu0 %v14907_v0 }
 0xa05   :  { %v6476_v6 = vadd.f32 %v6475_v18, %v6391_v37 }
 0xa06   :  { %v13740_v41 = vpop.f32.mrf.mxu1  ;;  %7019 = vmatpush1.bf16.msra.mxu1 %v16555_v25 }
 0xa07   :  { %7020 = vmatprep.subr.bf16.mxu1 %v14907_v0  ;;  %6916 = vmatpush1.bf16.msra.mxu0 %v16563_v23 }
 0xa08   :  { %v6478_v50 = vpop.f32.mrf.mxu1  ;;  %6917 = vmatprep.subr.bf16.mxu0 %v14907_v0 }
 0xa0a   :  { %v13741_v56 = vpop.f32.mrf.mxu1  ;;  %7021 = vmatpush1.bf16.msra.mxu1 %v16569_v31 }
 0xa0b   :  { %7022 = vmatprep.subr.bf16.mxu1 %v14907_v0  ;;  %6918 = vmatpush1.bf16.msra.mxu0 %v16614_v27 }
 0xa0c   :  { %v6607_v40 = vpop.f32.mrf.mxu1  ;;  %6919 = vmatprep.subr.bf16.mxu0 %v14907_v0 }
 0xa0d   :  { %v6615_v28 = vadd.f32 %v6607_v40, %v6306_v57 }
 0xa0e   :  { %v13748_v5 = vpop.f32.mrf.mxu1  ;;  %7023 = vmatpush1.bf16.msra.mxu1 %v16578_v10 }
 0xa0f   :  { %v6724_v63 = vadd.f32 %v6718_v60, %v6615_v28  ;;  %7036 = vmatprep.subr.bf16.mxu1 %v14907_v0  ;;  %6920 = vmatpush1.bf16.msra.mxu0 %v16623_v3 }
 0xa10   :  { %v6610_v44 = vpop.f32.mrf.mxu1  ;;  %6933 = vmatprep.subr.bf16.mxu0 %v14907_v0 }
 0xa11   :  { %v6727_v29 = vmax.f32 %v6724_v63, 0.0 }
 0xa12   :  { %v13749_v26 = vpop.f32.mrf.mxu1  ;;  %7037 = vmatpush2.bf16.msra.mxu1 %v16586_v48 }
 0xa13   :  { %7038 = vmatprep.subr.bf16.mxu1 %v14907_v0  ;;  %6934 = vmatpush2.bf16.msra.mxu0 %v16630_v7 }
 0xa14   :  { %v6696_v11 = vpop.f32.mrf.mxu1  ;;  %6935 = vmatprep.subr.bf16.mxu0 %v14907_v0 }
 0xa15   :  { %v6704_v14 = vadd.f32 %v6696_v11, %v6476_v6 }
 0xa16   :  { %v13756_v16 = vpop.f32.mrf.mxu1  ;;  %7039 = vmatpush2.bf16.msra.mxu1 %v16594_v43 }
 0xa17   :  { %v6730_v35 = vadd.f32 %v6718_v60, %v6704_v14  ;;  %7208 = vmatprep.subr.bf16.mxu1 %v14907_v0  ;;  %6936 = vmatpush2.bf16.msra.mxu0 %v16640_v46 }
 0xa18   :  { %v6699_v33 = vpop.f32.mrf.mxu1  ;;  %7146 = vmatprep.subr.bf16.mxu0 %v14907_v0 }
 0xa19   :  { %v6733_v24 = vmax.f32 %v6730_v35, 0.0  ;;  %7041 = vmatmul.mubr.bf16.vlgmr.msra.gmra.mxu1 %v6805_v62  ;;  %v16677_v33 = vld [vmem:[%s17607_s3 + $0xd0] sm:$0xff]   ;;  %v16735_v62 = vld [vmem:[%s17607_s3 + $0xa0] sm:$0xff]  }
 0xa1a   :  { %v13757_v32 = vpop.f32.mrf.mxu1  ;;  %7209 = vmatpush1.bf16.msra.mxu1 %v16495_v15 }
 0xa1b   :  { %v16513_v36 = vmax.f32 %v6727_v29, %v6733_v24  ;;  %7210 = vmatprep.subr.bf16.mxu1 %v14907_v0  ;;  %v16699_v24 = vld [vmem:[%s17607_s3 + $0xc0] sm:$0xff]   ;;  %v16708_v32 = vld [vmem:[%s17607_s3 + $0xb8] sm:$0xff]  }
 0xa1d   :  { %6767 = vrot.lane.b32.xlu1 %v16513_v36, %s14910_s26 }
 0xa1e   :  { %7211 = vmatpush1.bf16.msra.mxu1 %v16502_v13 }
 0xa1f   :  { %7212 = vmatprep.subr.bf16.mxu1 %v14907_v0 }
 0xa22   :  { %7213 = vmatpush1.bf16.msra.mxu1 %v16519_v51 }
 0xa23   :  { %7214 = vmatprep.subr.bf16.mxu1 %v14907_v0 }
 0xa26   :  { %7215 = vmatpush1.bf16.msra.mxu1 %v16535_v54 }
 0xa27   :  { %7216 = vmatprep.subr.bf16.mxu1 %v14907_v0 }
 0xa2a   :  { %7217 = vmatpush1.bf16.msra.mxu1 %v16549_v9 }
 0xa2b   :  { %7218 = vmatprep.subr.bf16.mxu1 %v14907_v0 }
 0xa2e   :  { %7219 = vmatpush1.bf16.msra.mxu1 %v16563_v23 }
 0xa2f   :  { %7220 = vmatprep.subr.bf16.mxu1 %v14907_v0 }
 0xa32   :  { %7221 = vmatpush1.bf16.msra.mxu1 %v16614_v27 }
 0xa33   :  { %7222 = vmatprep.subr.bf16.mxu1 %v14907_v0 }
 0xa36   :  { %7223 = vmatpush1.bf16.msra.mxu1 %v16623_v3 }
 0xa37   :  { %7236 = vmatprep.subr.bf16.mxu1 %v14907_v0 }
 0xa3a   :  { %7237 = vmatpush2.bf16.msra.mxu1 %v16630_v7 }
 0xa3b   :  { %7238 = vmatprep.subr.bf16.mxu1 %v14907_v0 }
 0xa3e   :  { %7239 = vmatpush2.bf16.msra.mxu1 %v16640_v46 }
 0xa3f   :  { %7306 = vmatprep.subr.bf16.mxu1 %v14907_v0 }
 0xa70   :  { %v6739_v59 = vpop.permute.xlu0 %6738 }
 0xa71   :  { %v6741_v37 = vmax.f32 %v16471_v22, %v6739_v59  ;;  %v16744_v59 = vld [vmem:[%s17607_s3 + $0xe8] sm:$0xff]  }
 0xa72   :  { %v6752_v42 = vpop.permute.xlu1 %6751 }
 0xa73   :  { %v6754_v49 = vmax.f32 %v16475_v34, %v6752_v42  ;;  %6745 = vrot.lane.b32.xlu0 %v6741_v37, %s14910_s26  ;;  %6743 = vst.msk [vmem:[#allocation2 + $0x10] sm:$0x1f] %vm6742_vm6, %v6741_v37  ;;  %v16755_v42 = vld [vmem:[%s17607_s3 + $0xe0] sm:$0xff]  }
 0xa75   :  { %6761 = vrot.lane.b32.xlu1 %v6754_v49, %s14911_s22 }
 0xa77   :  { %6756 = vrot.lane.b32.xlu0 %v6754_v49, %s14912_s23 }
 0xa8f   :  { %v6768_v22 = vpop.permute.xlu1 %6767 }
 0xa90   :  { %v6770_v18 = vmax.f32 %v16513_v36, %v6768_v22  ;;  %v16717_v36 = vld [vmem:[%s17607_s3 + $0xb0] sm:$0xff]  }
 0xa92   :  { %6771 = vst.msk [vmem:[#allocation2 + $0x18] sm:$0x1f] %vm6742_vm6, %v6770_v18 }
 0xad9   :  { %v16748_v37 = vpop.f32.mrf.mxu1 }
 0xadb   :  { %v7044_v18 = vpop.f32.mrf.mxu1 }
 0xae5   :  { %v6746_v34 = vpop.permute.xlu0 %6745 }
 0xae6   :  { %6749 = vst.msk [vmem:[#allocation2 + $0x10] sm:$0x1f] %vm6748_vm13, %v6746_v34  ;;  %v7045_v34 = vpop.f32.mrf.mxu1 }
 0xae7   :  { %v6762_v50 = vpop.permute.xlu1 %6761 }
 0xae9   :  { %v6757_v41 = vpop.permute.xlu0 %6756 }
 0xaea   :  { %6760 = vst.msk [vmem:[#allocation2 + $0x10] sm:$0x1f] %vm6759_vm7, %v6757_v41 }
 0xaeb   :  { %6765 = vst.msk [vmem:[#allocation2 + $0x10] sm:$0x1f] %vm6764_vm1, %v6762_v50  ;;  %vm9663_vm1 = vcmask 1044480  }
 0xaf2   :  { %v6808_v56 = vld [vmem:[#allocation2 + $0x10] ss:$8 sm:$0x3]  ;;  %v7191_v57 = vld [vmem:[#allocation2 + $0x12] ss:$8 sm:$0x3] }
 0xaf3   :  { %v6833_v40 = vrot.slane %v6808_v56, %v15172_v4  ;;  %v6837_v5 = vrot.slane %v6808_v56, %v15175_v8  ;;  %v7196_v28 = vrot.slane %v7191_v57, %v15172_v4  ;;  %v7200_v60 = vrot.slane %v7191_v57, %v15175_v8  ;;  %v7049_v44 = vld [vmem:[#allocation2 + $0x11] ss:$8 sm:$0x3]  ;;  %v7289_v6 = vld [vmem:[#allocation2 + $0x13] ss:$8 sm:$0x3]  ;;  %v7046_v56 = vpop.f32.mrf.mxu1 }
 0xaf4   :  { %v7078_v26 = vrot.slane %v7049_v44, %v15175_v8  ;;  %v7298_v63 = vrot.slane %v7289_v6, %v15175_v8  ;;  %v7074_v49 = vrot.slane %v7049_v44, %v15172_v4  ;;  %v7294_v22 = vrot.slane %v7289_v6, %v15172_v4 }
 0xaf5   :  { %v6840_v11 = vpack.c.bf16 %v6833_v40, %v6833_v40  ;;  %v6841_v14 = vpack.c.bf16 %v6837_v5, %v6837_v5  ;;  %v7203_v17 = vpack.c.bf16 %v7196_v28, %v7196_v28  ;;  %v7204_v16 = vpack.c.bf16 %v7200_v60, %v7200_v60 }
 0xaf6   :  { %v16668_v29 = vpack.c.bf16 %v7078_v26, %v7078_v26  ;;  %v16670_v35 = vpack.c.bf16 %v7298_v63, %v7298_v63  ;;  %v7081_v41 = vpack.c.bf16 %v7074_v49, %v7074_v49  ;;  %v7301_v50 = vpack.c.bf16 %v7294_v22, %v7294_v22  ;;  %v7187_v63 = vld [vmem:[%s17608_s4] sm:$0x1] }
 0xaf7   :  { %12763 = vmatprep.mubr.msk.bf16.mxu0 %vm66_vm3, %v6841_v14  ;;  %12806 = vmatprep.mubr.msk.bf16.mxu1 %vm66_vm3, %v7204_v16  ;;  %v14397_v14 = vld [vmem:[%s17609_s5] sm:$0xff]  }
 0xaf8   :  { %6938 = vmatmul.mubr.bf16.vlgmr.msra.gmra.mxu0 %v6840_v11  ;;  %7241 = vmatmul.mubr.bf16.vlgmr.msra.gmra.mxu1 %v7203_v17 }
 0xaf9   :  { %7147 = vmatpush1.bf16.msra.mxu0 %v16664_v1  ;;  %7307 = vmatpush1.bf16.msra.mxu1 %v16664_v1 }
 0xafa   :  { %12805 = vmatprep.mubr.msk.bf16.mxu0 %vm66_vm3, %v16668_v29  ;;  %12808 = vmatprep.mubr.msk.bf16.mxu1 %vm66_vm3, %v16670_v35 }
 0xafb   :  { %7148 = vmatprep.subr.bf16.mxu0 %v14907_v0  ;;  %7308 = vmatprep.subr.bf16.mxu1 %v14907_v0 }
 0xafd   :  { %7149 = vmatpush1.bf16.msra.mxu0 %v16677_v33  ;;  %7309 = vmatpush1.bf16.msra.mxu1 %v16677_v33 }
 0xafe   :  { %7150 = vmatprep.subr.bf16.mxu0 %v14907_v0  ;;  %7310 = vmatprep.subr.bf16.mxu1 %v14907_v0 }
 0xb01   :  { %7151 = vmatpush1.bf16.msra.mxu0 %v16690_v30  ;;  %7311 = vmatpush1.bf16.msra.mxu1 %v16690_v30 }
 0xb02   :  { %7152 = vmatprep.subr.bf16.mxu0 %v14907_v0  ;;  %7312 = vmatprep.subr.bf16.mxu1 %v14907_v0 }
 0xb05   :  { %7153 = vmatpush1.bf16.msra.mxu0 %v16699_v24  ;;  %7313 = vmatpush1.bf16.msra.mxu1 %v16699_v24 }
 0xb06   :  { %7154 = vmatprep.subr.bf16.mxu0 %v14907_v0  ;;  %7314 = vmatprep.subr.bf16.mxu1 %v14907_v0 }
 0xb09   :  { %7155 = vmatpush1.bf16.msra.mxu0 %v16708_v32  ;;  %7315 = vmatpush1.bf16.msra.mxu1 %v16708_v32 }
 0xb0a   :  { %7156 = vmatprep.subr.bf16.mxu0 %v14907_v0  ;;  %7316 = vmatprep.subr.bf16.mxu1 %v14907_v0 }
 0xb0d   :  { %7157 = vmatpush1.bf16.msra.mxu0 %v16717_v36  ;;  %7317 = vmatpush1.bf16.msra.mxu1 %v16717_v36 }
 0xb0e   :  { %7158 = vmatprep.subr.bf16.mxu0 %v14907_v0  ;;  %7318 = vmatprep.subr.bf16.mxu1 %v14907_v0 }
 0xb11   :  { %7159 = vmatpush1.bf16.msra.mxu0 %v16726_v21  ;;  %7319 = vmatpush1.bf16.msra.mxu1 %v16726_v21 }
 0xb12   :  { %7160 = vmatprep.subr.bf16.mxu0 %v14907_v0  ;;  %7320 = vmatprep.subr.bf16.mxu1 %v14907_v0 }
 0xb15   :  { %7161 = vmatpush1.bf16.msra.mxu0 %v16735_v62  ;;  %7321 = vmatpush1.bf16.msra.mxu1 %v16735_v62 }
 0xb16   :  { %7174 = vmatprep.subr.bf16.mxu0 %v14907_v0  ;;  %7334 = vmatprep.subr.bf16.mxu1 %v14907_v0 }
 0xb19   :  { %7175 = vmatpush2.bf16.msra.mxu0 %v16744_v59  ;;  %7335 = vmatpush2.bf16.msra.mxu1 %v16744_v59 }
 0xb1a   :  { %7176 = vmatprep.subr.bf16.mxu0 %v14907_v0  ;;  %7336 = vmatprep.subr.bf16.mxu1 %v14907_v0 }
 0xb1d   :  { %7177 = vmatpush2.bf16.msra.mxu0 %v16755_v42  ;;  %7337 = vmatpush2.bf16.msra.mxu1 %v16755_v42 }
 0xb1e   :  { %7248 = vmatprep.subr.bf16.mxu0 %v14907_v0  ;;  %7407 = vmatprep.subr.bf16.mxu1 %v14907_v0 }
 0xb20   :  { %7179 = vmatmul.mubr.bf16.vlgmr.msra.gmra.mxu0 %v7081_v41  ;;  %7339 = vmatmul.mubr.bf16.vlgmr.msra.gmra.mxu1 %v7301_v50 }
 0xb21   :  { %7249 = vmatpush1.bf16.msra.mxu0 %v16483_v45  ;;  %12807 = vmatprep.mubr.msk.bf16.mxu0 %vm66_vm3, %v16668_v29 }
 0xb22   :  { %7408 = vmatpush1.bf16.msra.mxu1 %v16483_v45  ;;  %12810 = vmatprep.mubr.msk.bf16.mxu1 %vm66_vm3, %v16670_v35  ;;  %v7350_v45 = vld [vmem:[#allocation2 + $0x14] ss:$8 sm:$0x3] }
 0xb23   :  { %7250 = vmatprep.subr.bf16.mxu0 %v14907_v0  ;;  %7409 = vmatprep.subr.bf16.mxu1 %v14907_v0 }
 0xb25   :  { %7251 = vmatpush1.bf16.msra.mxu0 %v16489_v2 }
 0xb26   :  { %7410 = vmatpush1.bf16.msra.mxu1 %v16489_v2  ;;  %7252 = vmatprep.subr.bf16.mxu0 %v14907_v0  ;;  %v7359_v2 = vrot.slane %v7350_v45, %v15175_v8 }
 0xb27   :  { %7411 = vmatprep.subr.bf16.mxu1 %v14907_v0 }
 0xb29   :  { %7253 = vmatpush1.bf16.msra.mxu0 %v16508_v19 }
 0xb2a   :  { %7412 = vmatpush1.bf16.msra.mxu1 %v16508_v19  ;;  %7254 = vmatprep.subr.bf16.mxu0 %v14907_v0  ;;  %v7363_v19 = vpack.c.bf16 %v7359_v2, %v7359_v2 }
 0xb2b   :  { %7413 = vmatprep.subr.bf16.mxu1 %v14907_v0 }
 0xb2d   :  { %7255 = vmatpush1.bf16.msra.mxu0 %v16525_v38 }
 0xb2e   :  { %7414 = vmatpush1.bf16.msra.mxu1 %v16525_v38  ;;  %7256 = vmatprep.subr.bf16.mxu0 %v14907_v0 }
 0xb2f   :  { %7415 = vmatprep.subr.bf16.mxu1 %v14907_v0 }
 0xb31   :  { %7257 = vmatpush1.bf16.msra.mxu0 %v16541_v58 }
 0xb32   :  { %7416 = vmatpush1.bf16.msra.mxu1 %v16541_v58  ;;  %7258 = vmatprep.subr.bf16.mxu0 %v14907_v0 }
 0xb33   :  { %7417 = vmatprep.subr.bf16.mxu1 %v14907_v0 }
 0xb35   :  { %7259 = vmatpush1.bf16.msra.mxu0 %v16555_v25 }
 0xb36   :  { %7418 = vmatpush1.bf16.msra.mxu1 %v16555_v25  ;;  %7260 = vmatprep.subr.bf16.mxu0 %v14907_v0 }
 0xb37   :  { %7419 = vmatprep.subr.bf16.mxu1 %v14907_v0 }
 0xb39   :  { %7261 = vmatpush1.bf16.msra.mxu0 %v16569_v31 }
 0xb3a   :  { %7420 = vmatpush1.bf16.msra.mxu1 %v16569_v31  ;;  %7262 = vmatprep.subr.bf16.mxu0 %v14907_v0 }
 0xb3b   :  { %7421 = vmatprep.subr.bf16.mxu1 %v14907_v0 }
 0xb3d   :  { %7263 = vmatpush1.bf16.msra.mxu0 %v16578_v10 }
 0xb3e   :  { %7422 = vmatpush1.bf16.msra.mxu1 %v16578_v10  ;;  %7276 = vmatprep.subr.bf16.mxu0 %v14907_v0 }
 0xb3f   :  { %7435 = vmatprep.subr.bf16.mxu1 %v14907_v0 }
 0xb41   :  { %7277 = vmatpush2.bf16.msra.mxu0 %v16586_v48 }
 0xb42   :  { %7436 = vmatpush2.bf16.msra.mxu1 %v16586_v48  ;;  %7278 = vmatprep.subr.bf16.mxu0 %v14907_v0 }
 0xb43   :  { %7437 = vmatprep.subr.bf16.mxu1 %v14907_v0 }
 0xb45   :  { %7279 = vmatpush2.bf16.msra.mxu0 %v16594_v43 }
 0xb46   :  { %7438 = vmatpush2.bf16.msra.mxu1 %v16594_v43  ;;  %7367 = vmatprep.subr.bf16.mxu0 %v14907_v0 }
 0xb47   :  { %13758 = vmatprep.subr.bf16.mxu1 %v16375_v52 }
 0xb48   :  { %7281 = vmatmul.mubr.bf16.vlgmr.msra.gmra.mxu0 %v7081_v41 }
 0xb49   :  { %7440 = vmatmul.mubr.bf16.vlgmr.msra.gmra.mxu1 %v7301_v50  ;;  %7368 = vmatpush1.bf16.msra.mxu0 %v16495_v15 }
 0xb4a   :  { %12809 = vmatprep.mubr.msk.bf16.mxu0 %vm66_vm3, %v7363_v19  ;;  %7369 = vmatprep.subr.bf16.mxu0 %v14907_v0 }
 0xb4b   :  { %13760 = vmatprep.mubr.msk.bf16.mxu1 %vm14909_vm2, %v16375_v52  ;;  %v7448_v52 = vld [vmem:[#allocation2 + $0x15] ss:$8 sm:$0x3]  ;;  %13759 = vmatpush3.bf16.msra.mxu1 %v14397_v14 }
 0xb4c   :  { %v7457_v15 = vrot.slane %v7448_v52, %v15175_v8 }
 0xb4d   :  { %7370 = vmatpush1.bf16.msra.mxu0 %v16502_v13  ;;  %v7355_v13 = vrot.slane %v7350_v45, %v15172_v4 }
 0xb4e   :  { %7371 = vmatprep.subr.bf16.mxu0 %v14907_v0 }
 0xb4f   :  { %v7362_v38 = vpack.c.bf16 %v7355_v13, %v7355_v13 }
 0xb51   :  { %7372 = vmatpush1.bf16.msra.mxu0 %v16519_v51  ;;  %v7461_v51 = vpack.c.bf16 %v7457_v15, %v7457_v15 }
 0xb52   :  { %7373 = vmatprep.subr.bf16.mxu0 %v14907_v0 }
 0xb55   :  { %7374 = vmatpush1.bf16.msra.mxu0 %v16535_v54  ;;  %v7453_v54 = vrot.slane %v7448_v52, %v15172_v4 }
 0xb56   :  { %7375 = vmatprep.subr.bf16.mxu0 %v14907_v0 }
 0xb57   :  { %v7460_v58 = vpack.c.bf16 %v7453_v54, %v7453_v54 }
 0xb59   :  { %7376 = vmatpush1.bf16.msra.mxu0 %v16549_v9  ;;  %v16856_v9 = vld [vmem:[#allocation4 + $0x20] sm:$0xff] }
 0xb5a   :  { %7377 = vmatprep.subr.bf16.mxu0 %v14907_v0  ;;  %13764 = vmatprep.subr.bf16.mxu1 %v16856_v9 }
 0xb5d   :  { %7378 = vmatpush1.bf16.msra.mxu0 %v16563_v23 }
 0xb5e   :  { %7379 = vmatprep.subr.bf16.mxu0 %v14907_v0 }
 0xb61   :  { %7380 = vmatpush1.bf16.msra.mxu0 %v16614_v27 }
 0xb62   :  { %7381 = vmatprep.subr.bf16.mxu0 %v14907_v0 }
 0xb65   :  { %7382 = vmatpush1.bf16.msra.mxu0 %v16623_v3 }
 0xb66   :  { %7395 = vmatprep.subr.bf16.mxu0 %v14907_v0 }
 0xb69   :  { %7396 = vmatpush2.bf16.msra.mxu0 %v16630_v7 }
 0xb6a   :  { %7397 = vmatprep.subr.bf16.mxu0 %v14907_v0 }
 0xb6d   :  { %7398 = vmatpush2.bf16.msra.mxu0 %v16640_v46 }
 0xb6e   :  { %7465 = vmatprep.subr.bf16.mxu0 %v14907_v0 }
 0xb70   :  { %7400 = vmatmul.mubr.bf16.vlgmr.msra.gmra.mxu0 %v7362_v38  ;;  %v14398_v38 = vld [vmem:[%s17609_s5 + $0x8] sm:$0xff]  }
 0xb71   :  { %7466 = vmatpush1.bf16.msra.mxu0 %v16664_v1  ;;  %12811 = vmatprep.mubr.msk.bf16.mxu0 %vm66_vm3, %v7461_v51 }
 0xb72   :  { %7467 = vmatprep.subr.bf16.mxu0 %v14907_v0 }
 0xb75   :  { %7468 = vmatpush1.bf16.msra.mxu0 %v16677_v33 }
 0xb76   :  { %7469 = vmatprep.subr.bf16.mxu0 %v14907_v0 }
 0xb79   :  { %7470 = vmatpush1.bf16.msra.mxu0 %v16690_v30 }
 0xb7a   :  { %7471 = vmatprep.subr.bf16.mxu0 %v14907_v0 }
 0xb7d   :  { %7472 = vmatpush1.bf16.msra.mxu0 %v16699_v24 }
 0xb7e   :  { %7473 = vmatprep.subr.bf16.mxu0 %v14907_v0 }
 0xb81   :  { %7474 = vmatpush1.bf16.msra.mxu0 %v16708_v32 }
 0xb82   :  { %7475 = vmatprep.subr.bf16.mxu0 %v14907_v0 }
 0xb85   :  { %7476 = vmatpush1.bf16.msra.mxu0 %v16717_v36 }
 0xb86   :  { %7477 = vmatprep.subr.bf16.mxu0 %v14907_v0 }
 0xb89   :  { %7478 = vmatpush1.bf16.msra.mxu0 %v16726_v21 }
 0xb8a   :  { %7479 = vmatprep.subr.bf16.mxu0 %v14907_v0 }
 0xb8d   :  { %7480 = vmatpush1.bf16.msra.mxu0 %v16735_v62 }
 0xb8e   :  { %7493 = vmatprep.subr.bf16.mxu0 %v14907_v0 }
 0xb91   :  { %7494 = vmatpush2.bf16.msra.mxu0 %v16744_v59 }
 0xb92   :  { %7495 = vmatprep.subr.bf16.mxu0 %v14907_v0 }
 0xb95   :  { %7496 = vmatpush2.bf16.msra.mxu0 %v16755_v42 }
 0xb96   :  { %13788 = vmatprep.subr.bf16.mxu0 %v16856_v9 }
 0xb98   :  { %7498 = vmatmul.mubr.bf16.vlgmr.msra.gmra.mxu0 %v7460_v58 }
 0xb99   :  { %13790 = vmatprep.mubr.msk.bf16.mxu0 %vm14909_vm2, %v16856_v9 }
 0xbb8   :  { %v6939_v25 = vpop.f32.mrf.mxu0  ;;  %v7242_v23 = vpop.f32.mrf.mxu1 }
 0xbb9   :  { %v7043_v6 = vadd.f32 %v16748_v37, %v6939_v25 }
 0xbba   :  { %v6941_v31 = vpop.f32.mrf.mxu0  ;;  %v7244_v10 = vpop.f32.mrf.mxu1 }
 0xbbb   :  { %v14399_v31 = vld [vmem:[%s17609_s5 + $0x10] sm:$0xff]  }
 0xbbc   :  { %v6942_v48 = vpop.f32.mrf.mxu0  ;;  %v7245_v43 = vpop.f32.mrf.mxu1 }
 0xbbd   :  { %v14400_v48 = vld [vmem:[%s17609_s5 + $0x18] sm:$0xff]  }
 0xbbe   :  { %v6943_v27 = vpop.f32.mrf.mxu0  ;;  %v7246_v3 = vpop.f32.mrf.mxu1 }
 0xbbf   :  { %v7737_v3 = vld [vmem:[%s17611_s7] sm:$0x1] }
 0xbe0   :  { %v7180_v7 = vpop.f32.mrf.mxu0  ;;  %v7340_v46 = vpop.f32.mrf.mxu1 }
 0xbe1   :  { %v7186_v26 = vadd.f32 %v7180_v7, %v7043_v6  ;;  %v12827_v7 = vld [vmem:[%s17611_s7 + $0x1] sm:$0x1] }
 0xbe2   :  { %v7182_v57 = vpop.f32.mrf.mxu0  ;;  %v7342_v40 = vpop.f32.mrf.mxu1 }
 0xbe3   :  { %v7188_v29 = vadd.f32 %v7187_v63, %v7186_v26  ;;  %v7744_v57 = vsel %vm1839_vm9, %v7737_v3, 0  ;;  %v7790_v40 = vsel %vm1839_vm9, %v12827_v7, 0  ;;  %v14419_v7 = vld [vmem:[#allocation6 + $0x2a8] ss:$20 sps:$4 sm:$0xff]  }
 0xbe4   :  { %v7183_v5 = vpop.f32.mrf.mxu0  ;;  %v7343_v28 = vpop.f32.mrf.mxu1  ;;  %13789 = vmatpush3.bf16.msra.mxu0 %v7790_v40  ;;  %v14424_v40 = vld [vmem:[#allocation6 + $0x2b4] ss:$20 sps:$4 sm:$0xff]  }
 0xbe5   :  { %v7189_v21 = vmax.f32 %v7188_v29, 0.0 }
 0xbe6   :  { %v7184_v60 = vpop.f32.mrf.mxu0  ;;  %v7344_v44 = vpop.f32.mrf.mxu1 }
 0xbe7   :  { %v7510_v60 = vld [vmem:[%s17610_s6] sm:$0x1] }
 0xc08   :  { %v7282_v11 = vpop.f32.mrf.mxu0 }
 0xc09   :  { %v7283_v17 = vadd.f32 %v7282_v11, %v7242_v23  ;;  %v7441_v16 = vpop.f32.mrf.mxu1 }
 0xc0a   :  { %v7284_v1 = vpop.f32.mrf.mxu0 }
 0xc0b   :  { %v7346_v35 = vadd.f32 %v7340_v46, %v7283_v17  ;;  %v7443_v33 = vpop.f32.mrf.mxu1 }
 0xc0c   :  { %v7285_v30 = vpop.f32.mrf.mxu0 }
 0xc0d   :  { %v7347_v24 = vadd.f32 %v7346_v35, %v7187_v63  ;;  %v7444_v32 = vpop.f32.mrf.mxu1 }
 0xc0e   :  { %v7286_v36 = vpop.f32.mrf.mxu0 }
 0xc0f   :  { %v7348_v62 = vmax.f32 %v7347_v24, 0.0  ;;  %v7445_v59 = vpop.f32.mrf.mxu1 }
 0xc10   :  { %v14404_v59 = vld [vmem:[%s17613_s9 + $0x10] ss:$8 sps:$4 sm:$0xff]  }
 0xc11   :  { %v7508_v37 = vmax.f32 %v7189_v21, %v7348_v62  ;;  %v14401_v21 = vld [vmem:[%s17613_s9 + $0x30] ss:$8 sps:$4 sm:$0xff]  }
 0xc13   :  { %7512 = vrot.lane.b32.xlu0 %v7508_v37, %s14913_s20 }
 0xc30   :  { %v7401_v42 = vpop.f32.mrf.mxu0 }
 0xc31   :  { %v7442_v34 = vadd.f32 %v7441_v16, %v7401_v42  ;;  %v14409_v42 = vld [vmem:[%s17613_s9 + $0x24] ss:$8 sps:$4 sm:$0xff]  }
 0xc32   :  { %v7403_v49 = vpop.f32.mrf.mxu0 }
 0xc33   :  { %v14407_v49 = vld [vmem:[%s17613_s9 + $0x20] ss:$8 sps:$4 sm:$0xff]  }
 0xc34   :  { %v7404_v22 = vpop.f32.mrf.mxu0 }
 0xc35   :  { %v14412_v22 = vld [vmem:[%s17613_s9 + $0x4] ss:$8 sps:$4 sm:$0xff]  }
 0xc36   :  { %v7405_v18 = vpop.f32.mrf.mxu0 }
 0xc37   :  { %v14410_v18 = vld [vmem:[%s17613_s9] ss:$8 sps:$4 sm:$0xff]  }
 0xc58   :  { %v7499_v41 = vpop.f32.mrf.mxu0 }
 0xc59   :  { %v7505_v50 = vadd.f32 %v7499_v41, %v7442_v34  ;;  %v14415_v34 = vld [vmem:[%s17613_s9 + $0x54] ss:$8 sps:$4 sm:$0xff]   ;;  %v7739_v41 = vld [vmem:[%s17612_s8] sm:$0x1] }
 0xc5a   :  { %v7501_v56 = vpop.f32.mrf.mxu0 }
 0xc5b   :  { %v7506_v45 = vadd.f32 %v7505_v50, %v7187_v63  ;;  %v12828_v50 = vld [vmem:[%s17612_s8 + $0x1] sm:$0x1] }
 0xc5c   :  { %v7502_v2 = vpop.f32.mrf.mxu0 }
 0xc5d   :  { %v7507_v19 = vmax.f32 %v7506_v45, 0.0 }
 0xc5e   :  { %v7503_v52 = vpop.f32.mrf.mxu0 }
 0xc5f   :  { %v7509_v15 = vmax.f32 %v7348_v62, %v7507_v19  ;;  %v14403_v62 = vld [vmem:[%s17613_s9 + $0x34] ss:$8 sps:$4 sm:$0xff]  }
 0xc61   :  { %7625 = vrot.lane.b32.xlu1 %v7509_v15, %s14913_s20 }
 0xc85   :  { %v7513_v13 = vpop.permute.xlu0 %7512 }
 0xc86   :  { %v7515_v51 = vmax.f32 %v7508_v37, %v7513_v13  ;;  %v14406_v37 = vld [vmem:[%s17613_s9 + $0x14] ss:$8 sps:$4 sm:$0xff]  }
 0xc87   :  { %7944 = vmatprep.subr.bf16.mxu0 %v14406_v37  ;;  %v14460_v37 = vld [vmem:[#allocation6 + $0x1c4] ss:$20 sps:$4 sm:$0xff]  }
 0xc88   :  { %v7518_v54 = vpack.c.bf16 %v7515_v51, %v7515_v51 }
 0xc8a   :  { %7572 = vrot.lane.b32.xlu0 %v7518_v54, %s14913_s20  ;;  %13761 = vmatmul.mubr.msk.bf16.vlgmr.msra.gmra.mxu1 %vm1616_vm8, %v7518_v54 }
 0xc8b   :  { %13765 = vmatpush3.bf16.msra.mxu1 %v14398_v38  ;;  %13766 = vmatprep.mubr.msk.bf16.mxu1 %vm14909_vm2, %v16856_v9 }
 0xc8c   :  { %13770 = vmatprep.subr.bf16.mxu1 %v16856_v9 }
 0xcd3   :  { %v7626_v58 = vpop.permute.xlu1 %7625 }
 0xcd4   :  { %v7628_v25 = vmax.f32 %v7509_v15, %v7626_v58 }
 0xcd6   :  { %v7631_v23 = vpack.c.bf16 %v7628_v25, %v7628_v25 }
 0xcd8   :  { %7685 = vrot.lane.b32.xlu1 %v7631_v23, %s14913_s20 }
 0xcfc   :  { %v7573_v10 = vpop.permute.xlu0 %7572 }
 0xcfd   :  { %13767 = vmatmul.mubr.msk.bf16.vlgmr.msra.gmra.mxu1 %vm1616_vm8, %v7573_v10 }
 0xcfe   :  { %13771 = vmatpush3.bf16.msra.mxu1 %v14399_v31  ;;  %13772 = vmatprep.mubr.msk.bf16.mxu1 %vm14909_vm2, %v16856_v9 }
 0xcff   :  { %13776 = vmatprep.subr.bf16.mxu1 %v16856_v9 }
 0xd05   :  { %13773 = vmatmul.mubr.msk.bf16.vlgmr.msra.gmra.mxu1 %vm1616_vm8, %v7631_v23  ;;  %v14413_v23 = vld [vmem:[%s17613_s9 + $0x50] ss:$8 sps:$4 sm:$0xff]  }
 0xd06   :  { %13777 = vmatpush3.bf16.msra.mxu1 %v14400_v48  ;;  %13778 = vmatprep.mubr.msk.bf16.mxu1 %vm14909_vm2, %v16856_v9  ;;  %v14418_v48 = vld [vmem:[%s17613_s9 + $0x44] ss:$8 sps:$4 sm:$0xff]  }
 0xd07   :  { %13782 = vmatprep.subr.bf16.mxu1 %v16856_v9 }
 0xd4a   :  { %v7686_v43 = vpop.permute.xlu1 %7685  ;;  %v7562_v27 = vpop.f32.mrf.mxu1 }
 0xd4b   :  { %13779 = vmatmul.mubr.msk.bf16.vlgmr.msra.gmra.mxu1 %vm1616_vm8, %v7686_v43  ;;  %v7568_v44 = vadd.f32 %v7562_v27, %v7510_v60  ;;  %v14416_v43 = vld [vmem:[%s17613_s9 + $0x40] ss:$8 sps:$4 sm:$0xff]   ;;  %vm17626_vm8 = vcmask 228352  }
 0xd4c   :  { %v13762_v46 = vpop.f32.mrf.mxu1  ;;  %13784 = vmatprep.mubr.msk.bf16.mxu1 %vm14909_vm2, %v16856_v9  ;;  %13783 = vmatpush3.bf16.msra.mxu1 %v7744_v57  ;;  %v14422_v57 = vld [vmem:[#allocation6 + $0x2b0] ss:$20 sps:$4 sm:$0xff]   ;;  %v14428_v60 = vld [vmem:[#allocation6 + $0x288] ss:$20 sps:$4 sm:$0xff]   ;;  %vm10139_vm2 = vsmask.f32 4352  ;;  %vm17627_vm9 = vmmov %vm17626_vm8 }
 0xd4d   :  { %7880 = vmatprep.subr.bf16.mxu1 %v14403_v62  ;;  %v14421_v46 = vld [vmem:[#allocation6 + $0x2ac] ss:$20 sps:$4 sm:$0xff]   ;;  %v14457_v62 = vld [vmem:[#allocation6 + $0x1bc] ss:$20 sps:$4 sm:$0xff]  }
 0xd4e   :  { %v7565_v5 = vpop.f32.mrf.mxu1 }
 0xd4f   :  { %v14425_v5 = vld [vmem:[#allocation6 + $0x280] ss:$20 sps:$4 sm:$0xff]  }
 0xd50   :  { %v13763_v28 = vpop.f32.mrf.mxu1 }
 0xd51   :  { %v14427_v28 = vld [vmem:[#allocation6 + $0x284] ss:$20 sps:$4 sm:$0xff]  }
 0xdbd   :  { %v7617_v6 = vpop.f32.mrf.mxu1 }
 0xdbe   :  { %v7623_v26 = vadd.f32 %v7617_v6, %v7568_v44  ;;  %v14430_v44 = vld [vmem:[#allocation6 + $0x28c] ss:$20 sps:$4 sm:$0xff]   ;;  %v14433_v6 = vld [vmem:[#allocation6 + $0x25c] ss:$20 sps:$4 sm:$0xff]  }
 0xdbf   :  { %v13768_v63 = vpop.f32.mrf.mxu1 }
 0xdc0   :  { %v14431_v63 = vld [vmem:[#allocation6 + $0x258] ss:$20 sps:$4 sm:$0xff]  }
 0xdc1   :  { %v7620_v11 = vpop.f32.mrf.mxu1 }
 0xdc2   :  { %v14434_v11 = vld [vmem:[#allocation6 + $0x260] ss:$20 sps:$4 sm:$0xff]  }
 0xdc3   :  { %v13769_v14 = vpop.f32.mrf.mxu1 }
 0xdc4   :  { %v14439_v14 = vld [vmem:[#allocation6 + $0x234] ss:$20 sps:$4 sm:$0xff]  }
 0xdc5   :  { %v7675_v17 = vpop.f32.mrf.mxu1 }
 0xdc6   :  { %v7681_v16 = vadd.f32 %v7675_v17, %v7623_v26  ;;  %v14436_v26 = vld [vmem:[#allocation6 + $0x264] ss:$20 sps:$4 sm:$0xff]   ;;  %v14442_v17 = vld [vmem:[#allocation6 + $0x23c] ss:$20 sps:$4 sm:$0xff]  }
 0xdc7   :  { %v13774_v1 = vpop.f32.mrf.mxu1 }
 0xdc8   :  { %v14440_v1 = vld [vmem:[#allocation6 + $0x238] ss:$20 sps:$4 sm:$0xff]  }
 0xdc9   :  { %v7678_v29 = vpop.f32.mrf.mxu1 }
 0xdca   :  { %v14445_v29 = vld [vmem:[#allocation6 + $0x20c] ss:$20 sps:$4 sm:$0xff]  }
 0xdcb   :  { %v13775_v35 = vpop.f32.mrf.mxu1 }
 0xdcc   :  { %v14448_v35 = vld [vmem:[#allocation6 + $0x214] ss:$20 sps:$4 sm:$0xff]  }
 0xe0b   :  { %v7730_v9 = vpop.f32.mrf.mxu1 }
 0xe0c   :  { %v7736_v33 = vadd.f32 %v7730_v9, %v7681_v16  ;;  %v14437_v16 = vld [vmem:[#allocation6 + $0x230] ss:$20 sps:$4 sm:$0xff]   ;;  %v14443_v9 = vld [vmem:[#allocation6 + $0x208] ss:$20 sps:$4 sm:$0xff]  }
 0xe0d   :  { %v13780_v30 = vpop.f32.mrf.mxu1 }
 0xe0e   :  { %v7738_v24 = vpack.c.bf16 %v7736_v33, %v7736_v33  ;;  %v14446_v33 = vld [vmem:[#allocation6 + $0x210] ss:$20 sps:$4 sm:$0xff]  }
 0xe0f   :  { %v7733_v32 = vpop.f32.mrf.mxu1  ;;  %v14451_v30 = vld [vmem:[#allocation6 + $0x1e4] ss:$20 sps:$4 sm:$0xff]  }
 0xe10   :  { %13785 = vmatmul.mubr.msk.bf16.vlgmr.msra.gmra.mxu1 %vm1835_vm10, %v7738_v24  ;;  %13791 = vmatmul.mubr.msk.bf16.vlgmr.msra.gmra.mxu0 %vm1835_vm10, %v7738_v24  ;;  %v14454_v24 = vld [vmem:[#allocation6 + $0x1ec] ss:$20 sps:$4 sm:$0xff]   ;;  %vm17628_vm10 = vmmov %vm17626_vm8 }
 0xe11   :  { %v13781_v36 = vpop.f32.mrf.mxu1  ;;  %7900 = vmatprep.mubr.bf16.mxu1 %v14907_v0  ;;  %7964 = vmatprep.mubr.bf16.mxu0 %v14907_v0  ;;  %v14449_v32 = vld [vmem:[#allocation6 + $0x1e0] ss:$20 sps:$4 sm:$0xff]  }
 0xe12   :  { %7881 = vmatpush1.bf16.msra.mxu1 %v14401_v21  ;;  %7945 = vmatpush1.bf16.msra.mxu0 %v14404_v59  ;;  %v14452_v36 = vld [vmem:[#allocation6 + $0x1e8] ss:$20 sps:$4 sm:$0xff]   ;;  %v14455_v21 = vld [vmem:[#allocation6 + $0x1b8] ss:$20 sps:$4 sm:$0xff]   ;;  %v14458_v59 = vld [vmem:[#allocation6 + $0x1c0] ss:$20 sps:$4 sm:$0xff]  }
 0xe13   :  { %7882 = vmatprep.subr.bf16.mxu1 %v14409_v42  ;;  %7946 = vmatprep.subr.bf16.mxu0 %v14412_v22  ;;  %v14463_v42 = vld [vmem:[#allocation6 + $0x194] ss:$20 sps:$4 sm:$0xff]   ;;  %v14461_v22 = vld [vmem:[#allocation6 + $0x190] ss:$20 sps:$4 sm:$0xff]  }
 0xe16   :  { %7883 = vmatpush1.bf16.msra.mxu1 %v14407_v49  ;;  %7947 = vmatpush1.bf16.msra.mxu0 %v14410_v18  ;;  %v14466_v49 = vld [vmem:[#allocation6 + $0x19c] ss:$20 sps:$4 sm:$0xff]   ;;  %v14464_v18 = vld [vmem:[#allocation6 + $0x198] ss:$20 sps:$4 sm:$0xff]  }
 0xe17   :  { %8014 = vmatprep.subr.bf16.mxu1 %v14415_v34  ;;  %8535 = vmatprep.subr.bf16.mxu0 %v14421_v46  ;;  %v14469_v34 = vld [vmem:[#allocation6 + $0x2fc] ss:$20 sps:$4 sm:$0xff]  }
 0xed0   :  { %v7780_v56 = vpop.f32.mrf.mxu1  ;;  %v7826_v45 = vpop.f32.mrf.mxu0 }
 0xed1   :  { %v7781_v2 = vadd.f32 %v7780_v56, %v7739_v41  ;;  %v7827_v19 = vadd.f32 %v12828_v50, %v7826_v45  ;;  %v14472_v41 = vld [vmem:[#allocation6 + $0x304] ss:$20 sps:$4 sm:$0xff]   ;;  %v14470_v56 = vld [vmem:[#allocation6 + $0x300] ss:$20 sps:$4 sm:$0xff]  }
 0xed2   :  { %v13786_v52 = vpop.f32.mrf.mxu1  ;;  %v13792_v15 = vpop.f32.mrf.mxu0  ;;  %v14467_v50 = vld [vmem:[#allocation6 + $0x2f8] ss:$20 sps:$4 sm:$0xff]   ;;  %v14475_v45 = vld [vmem:[#allocation6 + $0x2d4] ss:$20 sps:$4 sm:$0xff]  }
 0xed3   :  { %7786 = vst.msk [vmem:[#allocation3 + $0x9] sm:$0x1] %vm1883_vm11, %v7781_v2  ;;  %7832 = vst.msk [vmem:[#allocation3 + $0xb] sm:$0x1] %vm1883_vm11, %v7827_v19  ;;  %v14478_v2 = vld [vmem:[#allocation6 + $0x2dc] ss:$20 sps:$4 sm:$0xff]  }
 0xed4   :  { %v7783_v13 = vpop.f32.mrf.mxu1  ;;  %v7829_v51 = vpop.f32.mrf.mxu0  ;;  %v14473_v19 = vld [vmem:[#allocation6 + $0x2d0] ss:$20 sps:$4 sm:$0xff]   ;;  %v14476_v52 = vld [vmem:[#allocation6 + $0x2d8] ss:$20 sps:$4 sm:$0xff]   ;;  %vm17629_vm11 = vcmask 224256  }
 0xed5   :  { %v14481_v15 = vld [vmem:[#allocation6 + $0x11c] ss:$20 sps:$4 sm:$0xff]  }
 0xed6   :  { %v13787_v38 = vpop.f32.mrf.mxu1  ;;  %v13793_v54 = vpop.f32.mrf.mxu0 }
 0xeda   :  { %v7839_v58 = vld [vmem:[#allocation3 + $0x8] sm:$0x1f] }
 0xedb   :  { %v7833_v25 = vld [vmem:[#allocation3 + $0x7] sm:$0x1f]  ;;  %v7844_v31 = vpack.c.bf16 %v7839_v58, %v7839_v58 }
 0xedc   :  { %v7838_v10 = vpack.c.bf16 %v7833_v25, %v7833_v25  ;;  %v7973_v27 = vld [vmem:[#allocation3 + $0x9] sm:$0x1f] }
 0xedd   :  { %12838 = vmatmul.mubr.msk.bf16.vlgmr.msra.gmra.mxu1 %vm66_vm3, %v7844_v31  ;;  %v7978_v3 = vpack.c.bf16 %v7973_v27, %v7973_v27 }
 0xede   :  { %12843 = vmatmul.mubr.msk.bf16.vlgmr.msra.gmra.mxu0 %vm66_vm3, %v7838_v10  ;;  %8015 = vmatpush1.bf16.msra.mxu1 %v14413_v23  ;;  %v8045_v23 = vld [vmem:[%s17614_s10] sm:$0x3] }
 0xedf   :  { %8034 = vmatprep.mubr.bf16.mxu1 %v14907_v0  ;;  %8016 = vmatprep.subr.bf16.mxu1 %v14418_v48  ;;  %v8054_v46 = vrot.slane %v8045_v23, %v15175_v8 }
 0xee0   :  { %8536 = vmatpush1.bf16.msra.mxu0 %v14419_v7 }
 0xee1   :  { %8537 = vmatprep.subr.bf16.mxu0 %v14427_v28 }
 0xee2   :  { %8017 = vmatpush1.bf16.msra.mxu1 %v14416_v43  ;;  %v8050_v43 = vrot.slane %v8045_v23, %v15172_v4 }
 0xee3   :  { %8578 = vmatprep.subr.bf16.mxu1 %v14424_v40 }
 0xee4   :  { %8538 = vmatpush1.bf16.msra.mxu0 %v14425_v5 }
 0xee5   :  { %12852 = vmatmul.mubr.msk.bf16.vlgmr.msra.gmra.mxu1 %vm66_vm3, %v7978_v3  ;;  %8539 = vmatprep.subr.bf16.mxu0 %v14433_v6 }
 0xee6   :  { %8579 = vmatpush1.bf16.msra.mxu1 %v14422_v57 }
 0xee7   :  { %8580 = vmatprep.subr.bf16.mxu1 %v14430_v44 }
 0xee8   :  { %8540 = vmatpush1.bf16.msra.mxu0 %v14431_v63 }
 0xee9   :  { %8541 = vmatprep.subr.bf16.mxu0 %v14439_v14 }
 0xeea   :  { %8581 = vmatpush1.bf16.msra.mxu1 %v14428_v60 }
 0xeeb   :  { %8582 = vmatprep.subr.bf16.mxu1 %v14436_v26 }
 0xeec   :  { %8542 = vmatpush1.bf16.msra.mxu0 %v14437_v16 }
 0xeed   :  { %8543 = vmatprep.subr.bf16.mxu0 %v14445_v29 }
 0xeee   :  { %8583 = vmatpush1.bf16.msra.mxu1 %v14434_v11 }
 0xeef   :  { %8584 = vmatprep.subr.bf16.mxu1 %v14442_v17 }
 0xef0   :  { %8544 = vmatpush1.bf16.msra.mxu0 %v14443_v9 }
 0xef1   :  { %8545 = vmatprep.subr.bf16.mxu0 %v14451_v30 }
 0xef2   :  { %8585 = vmatpush1.bf16.msra.mxu1 %v14440_v1 }
 0xef3   :  { %8586 = vmatprep.subr.bf16.mxu1 %v14448_v35 }
 0xef4   :  { %8546 = vmatpush1.bf16.msra.mxu0 %v14449_v32 }
 0xef5   :  { %8547 = vmatprep.subr.bf16.mxu0 %v14457_v62 }
 0xef6   :  { %8587 = vmatpush1.bf16.msra.mxu1 %v14446_v33  ;;  %v8128_v33 = vld [vmem:[#allocation4 + $0x48] sm:$0x3] }
 0xef7   :  { %8588 = vmatprep.subr.bf16.mxu1 %v14454_v24  ;;  %v8192_v24 = vpack.c.bf16 %v8128_v33, %v8128_v33 }
 0xef8   :  { %8548 = vmatpush1.bf16.msra.mxu0 %v14455_v21 }
 0xef9   :  { %8549 = vmatprep.subr.bf16.mxu0 %v14463_v42  ;;  %v8691_v21 = vshll.u32 %v8192_v24, 16 }
 0xefa   :  { %8589 = vmatpush1.bf16.msra.mxu1 %v14452_v36  ;;  %v8688_v36 = vshrl.u32 %v8192_v24, 16  ;;  %v14507_v24 = vld [vmem:[#allocation6] ss:$20 sps:$4 sm:$0xff]  }
 0xefb   :  { %8590 = vmatprep.subr.bf16.mxu1 %v14460_v37 }
 0xefc   :  { %8550 = vmatpush1.bf16.msra.mxu0 %v14461_v22 }
 0xefd   :  { %8563 = vmatprep.subr.bf16.mxu0 %v14469_v34 }
 0xefe   :  { %8591 = vmatpush1.bf16.msra.mxu1 %v14458_v59 }
 0xeff   :  { %8592 = vmatprep.subr.bf16.mxu1 %v14466_v49 }
 0xf00   :  { %8564 = vmatpush2.bf16.msra.mxu0 %v14467_v50  ;;  %v8693_v50 = vrot.slane %v8691_v21, 2 }
 0xf01   :  { %8565 = vmatprep.subr.bf16.mxu0 %v14475_v45 }
 0xf02   :  { %8593 = vmatpush1.bf16.msra.mxu1 %v14464_v18 }
 0xf03   :  { %8606 = vmatprep.subr.bf16.mxu1 %v14472_v41  ;;  %v8690_v41 = vrot.slane %v8688_v36, 1  ;;  %v14513_v36 = vld [vmem:[#allocation6 + $0x16c] ss:$20 sps:$4 sm:$0xff]  }
 0xf04   :  { %8566 = vmatpush2.bf16.msra.mxu0 %v14473_v19 }
 0xf05   :  { %8621 = vmatprep.subr.bf16.mxu0 %v14907_v0 }
 0xf06   :  { %8607 = vmatpush2.bf16.msra.mxu1 %v14470_v56 }
 0xf07   :  { %8608 = vmatprep.subr.bf16.mxu1 %v14478_v2 }
 0xf0a   :  { %8609 = vmatpush2.bf16.msra.mxu1 %v14476_v52 }
 0xf0b   :  { %8960 = vmatprep.subr.bf16.mxu1 %v14481_v15 }
 0xf9d   :  { %v7902_v13 = vpop.f32.mrf.mxu1 }
 0xf9e   :  { %v7966_v51 = vpop.f32.mrf.mxu0 }
 0xf9f   :  { %v7904_v38 = vpop.f32.mrf.mxu1  ;;  %v7967_v48 = vadd.f32 %v7966_v51, %v7902_v13 }
 0xfa0   :  { %v7968_v54 = vpop.f32.mrf.mxu0 }
 0xfa1   :  { %v7906_v58 = vpop.f32.mrf.mxu1  ;;  %v7969_v3 = vadd.f32 %v7968_v54, %v7904_v38  ;;  %v14479_v38 = vld [vmem:[#allocation6 + $0x118] ss:$20 sps:$4 sm:$0xff]  }
 0xfa2   :  { %v7970_v25 = vpop.f32.mrf.mxu0  ;;  %v14482_v54 = vld [vmem:[#allocation6 + $0x2b8] ss:$20 sps:$4 sm:$0xff]   ;;  %v8694_v58 = vor.u32 %v8693_v50, %v8690_v41 }
 0xfa3   :  { %v7907_v31 = vpop.f32.mrf.mxu1 }
 0xfa4   :  { %v7971_v10 = vpop.f32.mrf.mxu0 }
 0xfa5   :  { %v8036_v27 = vpop.f32.mrf.mxu1 }
 0xfa6   :  { %v8043_v7 = vadd.f32 %v8036_v27, %v7967_v48  ;;  %v14485_v48 = vld [vmem:[#allocation6 + $0xf4] ss:$20 sps:$4 sm:$0xff]   ;;  %v14483_v27 = vld [vmem:[#allocation6 + $0xf0] ss:$20 sps:$4 sm:$0xff]  }
 0xfa7   :  { %v8038_v57 = vpop.f32.mrf.mxu1 }
 0xfa8   :  { %v8057_v40 = vadd.f32 %v8050_v43, %v8043_v7  ;;  %v8044_v5 = vadd.f32 %v8038_v57, %v7969_v3  ;;  %v14486_v3 = vld [vmem:[#allocation6 + $0x290] ss:$20 sps:$4 sm:$0xff]   ;;  %v14487_v57 = vld [vmem:[#allocation6 + $0xc8] ss:$20 sps:$4 sm:$0xff]  }
 0xfa9   :  { %v8040_v28 = vpop.f32.mrf.mxu1 }
 0xfaa   :  { %v8058_v60 = vadd.f32 %v8054_v46, %v8044_v5  ;;  %v8059_v6 = vmax.f32 %v8057_v40, 0.0  ;;  %v14489_v46 = vld [vmem:[#allocation6 + $0xcc] ss:$20 sps:$4 sm:$0xff]   ;;  %v14490_v40 = vld [vmem:[#allocation6 + $0x268] ss:$20 sps:$4 sm:$0xff]  }
 0xfab   :  { %v8041_v44 = vpop.f32.mrf.mxu1  ;;  %v14493_v5 = vld [vmem:[#allocation6 + $0xa4] ss:$20 sps:$4 sm:$0xff]   ;;  %v14491_v28 = vld [vmem:[#allocation6 + $0xa0] ss:$20 sps:$4 sm:$0xff]  }
 0xfac   :  { %v8060_v26 = vmax.f32 %v8058_v60, 0.0  ;;  %v14494_v60 = vld [vmem:[#allocation6 + $0x240] ss:$20 sps:$4 sm:$0xff]   ;;  %v14497_v44 = vld [vmem:[#allocation6 + $0x7c] ss:$20 sps:$4 sm:$0xff]  }
 0xfae   :  { %v8063_v63 = vcombine.low %v8059_v6, %v8060_v26  ;;  %v8104_v11 = vcombine.high %v8059_v6, %v8060_v26  ;;  %v14495_v6 = vld [vmem:[#allocation6 + $0x78] ss:$20 sps:$4 sm:$0xff]  }
 0xfaf   :  { %v14498_v26 = vld [vmem:[#allocation6 + $0x218] ss:$20 sps:$4 sm:$0xff]  }
 0xfb0   :  { %v8070_v14 = vrot.slane %v8063_v63, %v15666_v47  ;;  %v8111_v17 = vrot.slane %v8104_v11, %v15666_v47  ;;  %v14501_v63 = vld [vmem:[#allocation6 + $0x54] ss:$20 sps:$4 sm:$0xff]   ;;  %v14499_v11 = vld [vmem:[#allocation6 + $0x50] ss:$20 sps:$4 sm:$0xff]  }
 0xfb2   :  { %v8077_v16 = vrot.slane %v8070_v14, %v15666_v47  ;;  %v8082_v1 = vcombine.high %v8070_v14, %v8070_v14  ;;  %v8118_v29 = vrot.slane %v8111_v17, %v15666_v47  ;;  %v14502_v14 = vld [vmem:[#allocation6 + $0x1f0] ss:$20 sps:$4 sm:$0xff]   ;;  %v14505_v17 = vld [vmem:[#allocation6 + $0x2c] ss:$20 sps:$4 sm:$0xff]  }
 0xfb4   :  { %8080 = vst.msk [vmem:[#allocation4 + $0x26] ss:$8 sm:$0x3] %vm15671_vm12, %v8077_v16  ;;  %v8089_v35 = vrot.slane %v8082_v1, %v15666_v47  ;;  %v8094_v9 = vcombine.high %v8077_v16, %v8077_v16  ;;  %8121 = vst.msk [vmem:[#allocation4 + $0x42] ss:$8 sm:$0x3] %vm15671_vm12, %v8118_v29 }
 0xfb5   :  { %v8127_v16 = vld [vmem:[#allocation4 + $0x40] sm:$0x3]  ;;  %v14503_v1 = vld [vmem:[#allocation6 + $0x28] ss:$20 sps:$4 sm:$0xff]  }
 0xfb6   :  { %8092 = vst.msk [vmem:[#allocation4 + $0x31] ss:$8 sm:$0x3] %vm15671_vm12, %v8089_v35  ;;  %8097 = vst.msk [vmem:[#allocation4 + $0x34] ss:$8 sm:$0x3] %vm15671_vm12, %v8094_v9  ;;  %v8099_v30 = vcombine.high %v8089_v35, %v8089_v35 }
 0xfb7   :  { %v14506_v29 = vld [vmem:[#allocation6 + $0x1c8] ss:$20 sps:$4 sm:$0xff]   ;;  %v14509_v35 = vld [vmem:[#allocation6 + $0x4] ss:$20 sps:$4 sm:$0xff]  }
 0xfb8   :  { %8102 = vst.msk [vmem:[#allocation4 + $0x37] ss:$8 sm:$0x3] %vm15671_vm12, %v8099_v30  ;;  %v8191_v30 = vpack.c.bf16 %v8127_v16, %v8127_v16  ;;  %v14553_v16 = vld [vmem:[#allocation6 + $0x174] ss:$20 sps:$4 sm:$0xff]  }
 0xfbb   :  { %v8196_v32 = vld [vmem:[#allocation4 + $0x48] sm:$0x7]  ;;  %v8195_v62 = vld [vmem:[#allocation4 + $0x40] sm:$0x7]  ;;  %v8194_v42 = vld [vmem:[#allocation4 + $0x28] sm:$0xf0] }
 0xfbc   :  { %v8260_v59 = vpack.c.bf16 %v8196_v32, %v8196_v32  ;;  %v8259_v37 = vpack.c.bf16 %v8195_v62, %v8195_v62  ;;  %v8193_v49 = vld [vmem:[#allocation4 + $0x20] sm:$0xf0]  ;;  %v8124_v34 = vld [vmem:[#allocation4 + $0x28] sm:$0xf8] }
 0xfbd   :  { %v8123_v9 = vld [vmem:[#allocation4 + $0x20] sm:$0xf8] }
 0xfbe   :  { %v8269_v2 = vrot.slane %v8260_v59, 2  ;;  %v8266_v19 = vrot.slane %v8259_v37, 2  ;;  %v14510_v32 = vld [vmem:[#allocation6 + $0x1a0] ss:$20 sps:$4 sm:$0xff]   ;;  %v8671_v59 = vshrl.u32 %v8191_v30, 16  ;;  %v8674_v37 = vshll.u32 %v8191_v30, 16 }
 0xfbf   :  { %v16981_v22 = vld [vmem:[#allocation4 + $0x38] sm:$0xff]  ;;  %v16983_v18 = vld [vmem:[#allocation4 + $0x30] sm:$0xff] }
 0xfc0   :  { %v8258_v56 = vpack.c.bf16 %v16981_v22, %v8194_v42  ;;  %v8257_v53 = vpack.c.bf16 %v16983_v18, %v8193_v49  ;;  %v8190_v45 = vpack.c.bf16 %v16981_v22, %v8124_v34  ;;  %v8189_v33 = vpack.c.bf16 %v16983_v18, %v8123_v9  ;;  %v14511_v42 = vld [vmem:[#allocation6 + $0x168] ss:$20 sps:$4 sm:$0xff]   ;;  %v14517_v34 = vld [vmem:[#allocation6 + $0x144] ss:$20 sps:$4 sm:$0xff]   ;;  %v14557_v30 = vld [vmem:[#allocation6 + $0x14c] ss:$20 sps:$4 sm:$0xff]  }
 0xfc1   :  { %v14514_v49 = vld [vmem:[#allocation6 + $0x308] ss:$20 sps:$4 sm:$0xff]  }
 0xfc2   :  { %v8268_v52 = vrot.slane %v8258_v56, 2  ;;  %v8265_v15 = vrot.slane %v8257_v53, 2  ;;  %v8680_v13 = vshrl.u32 %v8190_v45, 16  ;;  %v8683_v51 = vshll.u32 %v8190_v45, 16  ;;  %v14515_v45 = vld [vmem:[#allocation6 + $0x140] ss:$20 sps:$4 sm:$0xff]  }
 0xfc3   :  { %v8663_v21 = vshrl.u32 %v8189_v33, 16  ;;  %v8666_v62 = vshll.u32 %v8189_v33, 16  ;;  %v8673_v56 = vrot.slane %v8671_v59, 1  ;;  %v8676_v53 = vrot.slane %v8674_v37, 2  ;;  %v14554_v33 = vld [vmem:[#allocation6 + $0x178] ss:$20 sps:$4 sm:$0xff]  }
 0xfc4   :  { %v8270_v25 = vsel %vm181_vm0, %v8268_v52, %v8269_v2  ;;  %v16990_v23 = vsel %vm181_vm0, %v8265_v15, %v8266_v19  ;;  %v8682_v31 = vrot.slane %v8680_v13, 1  ;;  %v8685_v10 = vrot.slane %v8683_v51, 2  ;;  %v14518_v2 = vld [vmem:[#allocation6 + $0x2e0] ss:$20 sps:$4 sm:$0xff]   ;;  %v14521_v19 = vld [vmem:[#allocation6 + $0x124] ss:$20 sps:$4 sm:$0xff]  }
 0xfc5   :  { %12903 = vmatprep.mubr.msk.bf16.mxu0 %vm66_vm3, %v8270_v25  ;;  %12904 = vmatprep.mubr.msk.bf16.mxu1 %vm66_vm3, %v8270_v25  ;;  %v8665_v41 = vrot.slane %v8663_v21, 1  ;;  %v8668_v50 = vrot.slane %v8666_v62, 2  ;;  %v8677_v15 = vor.u32 %v8676_v53, %v8673_v56  ;;  %v14519_v13 = vld [vmem:[#allocation6 + $0x120] ss:$20 sps:$4 sm:$0xff]   ;;  %v14522_v51 = vld [vmem:[#allocation6 + $0x128] ss:$20 sps:$4 sm:$0xff]  }
 0xfc6   :  { %8568 = vmatmul.mubr.bf16.vlgmr.msra.gmra.mxu0 %v16990_v23  ;;  %8611 = vmatmul.mubr.bf16.vlgmr.msra.gmra.mxu1 %v16990_v23  ;;  %v8686_v43 = vor.u32 %v8685_v10, %v8682_v31  ;;  %v14529_v31 = vld [vmem:[#allocation6 + $0xd4] ss:$20 sps:$4 sm:$0xff]   ;;  %v14527_v10 = vld [vmem:[#allocation6 + $0xd0] ss:$20 sps:$4 sm:$0xff]   ;;  %vm9155_vm0 = vsmask.f32 5376 }
 0xfc7   :  { %8622 = vmatpush1.bf16.msra.mxu0 %v14482_v54  ;;  %8961 = vmatpush1.bf16.msra.mxu1 %v14479_v38  ;;  %v8669_v52 = vor.u32 %v8668_v50, %v8665_v41  ;;  %v14525_v54 = vld [vmem:[#allocation6 + $0xfc] ss:$20 sps:$4 sm:$0xff]   ;;  %v14559_v41 = vld [vmem:[#allocation6 + $0x438] ss:$20 sps:$4 sm:$0xff]   ;;  %v14562_v56 = vld [vmem:[#allocation6 + $0x440] ss:$20 sps:$4 sm:$0xff]  }
 0xfc8   :  { %12905 = vmatprep.mubr.msk.bf16.mxu0 %vm66_vm3, %v8270_v25  ;;  %8623 = vmatprep.subr.bf16.mxu0 %v14907_v0  ;;  %v16999_v7 = vsel %vm3709_vm14, %v8686_v43, %v8694_v58  ;;  %v14523_v58 = vld [vmem:[#allocation6 + $0xf8] ss:$20 sps:$4 sm:$0xff]   ;;  %v14526_v25 = vld [vmem:[#allocation6 + $0x100] ss:$20 sps:$4 sm:$0xff]   ;;  %v14531_v43 = vld [vmem:[#allocation6 + $0xa8] ss:$20 sps:$4 sm:$0xff]  }
 0xfc9   :  { %8962 = vmatprep.subr.bf16.mxu1 %v14485_v48  ;;  %12956 = vmatprep.mubr.msk.bf16.mxu1 %vm66_vm3, %v16999_v7  ;;  %v17014_v38 = vsel %vm3709_vm14, %v8669_v52, %v8677_v15  ;;  %v14533_v48 = vld [vmem:[#allocation6 + $0xac] ss:$20 sps:$4 sm:$0xff]   ;;  %v14558_v59 = vld [vmem:[#allocation6 + $0x150] ss:$20 sps:$4 sm:$0xff]  }
 0xfca   :  { %v14561_v37 = vld [vmem:[#allocation6 + $0x43c] ss:$20 sps:$4 sm:$0xff]   ;;  %v14568_v15 = vld [vmem:[#allocation6 + $0x418] ss:$20 sps:$4 sm:$0xff]  }
 0xfcb   :  { %8624 = vmatpush1.bf16.msra.mxu0 %v14486_v3  ;;  %8963 = vmatpush1.bf16.msra.mxu1 %v14483_v27  ;;  %v14534_v27 = vld [vmem:[#allocation6 + $0xb0] ss:$20 sps:$4 sm:$0xff]  }
 0xfcc   :  { %8625 = vmatprep.subr.bf16.mxu0 %v14907_v0  ;;  %8964 = vmatprep.subr.bf16.mxu1 %v14489_v46  ;;  %v14537_v3 = vld [vmem:[#allocation6 + $0x84] ss:$20 sps:$4 sm:$0xff]   ;;  %v14538_v46 = vld [vmem:[#allocation6 + $0x88] ss:$20 sps:$4 sm:$0xff]  }
 0xfcd   :  { %v14565_v52 = vld [vmem:[#allocation6 + $0x410] ss:$20 sps:$4 sm:$0xff]  }
 0xfcf   :  { %8626 = vmatpush1.bf16.msra.mxu0 %v14490_v40  ;;  %8965 = vmatpush1.bf16.msra.mxu1 %v14487_v57  ;;  %v14541_v57 = vld [vmem:[#allocation6 + $0x5c] ss:$20 sps:$4 sm:$0xff]   ;;  %v14539_v40 = vld [vmem:[#allocation6 + $0x58] ss:$20 sps:$4 sm:$0xff]  }
 0xfd0   :  { %8627 = vmatprep.subr.bf16.mxu0 %v14907_v0  ;;  %8966 = vmatprep.subr.bf16.mxu1 %v14493_v5  ;;  %v14542_v5 = vld [vmem:[#allocation6 + $0x60] ss:$20 sps:$4 sm:$0xff]  }
 0xfd3   :  { %8628 = vmatpush1.bf16.msra.mxu0 %v14494_v60  ;;  %8967 = vmatpush1.bf16.msra.mxu1 %v14491_v28  ;;  %v14545_v28 = vld [vmem:[#allocation6 + $0x34] ss:$20 sps:$4 sm:$0xff]   ;;  %v14543_v60 = vld [vmem:[#allocation6 + $0x30] ss:$20 sps:$4 sm:$0xff]  }
 0xfd4   :  { %8629 = vmatprep.subr.bf16.mxu0 %v14907_v0  ;;  %8968 = vmatprep.subr.bf16.mxu1 %v14497_v44  ;;  %v14546_v44 = vld [vmem:[#allocation6 + $0x38] ss:$20 sps:$4 sm:$0xff]  }
 0xfd7   :  { %8630 = vmatpush1.bf16.msra.mxu0 %v14498_v26  ;;  %8969 = vmatpush1.bf16.msra.mxu1 %v14495_v6  ;;  %v14549_v6 = vld [vmem:[#allocation6 + $0xc] ss:$20 sps:$4 sm:$0xff]   ;;  %v9088_v26 = vld [vmem:[#allocation4 + $0x28] sm:$0xe0] }
 0xfd8   :  { %8631 = vmatprep.subr.bf16.mxu0 %v14907_v0  ;;  %8970 = vmatprep.subr.bf16.mxu1 %v14501_v63  ;;  %v9090_v63 = vld [vmem:[#allocation4 + $0x48] sm:$0xf] }
 0xfdb   :  { %8632 = vmatpush1.bf16.msra.mxu0 %v14502_v14  ;;  %8971 = vmatpush1.bf16.msra.mxu1 %v14499_v11  ;;  %v14547_v11 = vld [vmem:[#allocation6 + $0x8] ss:$20 sps:$4 sm:$0xff]   ;;  %v9152_v14 = vpack.c.bf16 %v16981_v22, %v9088_v26  ;;  %v9089_v26 = vld [vmem:[#allocation4 + $0x40] sm:$0xf] }
 0xfdc   :  { %8633 = vmatprep.subr.bf16.mxu0 %v14907_v0  ;;  %8972 = vmatprep.subr.bf16.mxu1 %v14505_v17  ;;  %v14550_v17 = vld [vmem:[#allocation6 + $0x10] ss:$20 sps:$4 sm:$0xff]  }
 0xfdd   :  { %v9177_v9 = vshll.u32 %v9152_v14, 16 }
 0xfdf   :  { %8634 = vmatpush1.bf16.msra.mxu0 %v14506_v29  ;;  %8973 = vmatpush1.bf16.msra.mxu1 %v14503_v1  ;;  %v9154_v1 = vpack.c.bf16 %v9090_v63, %v9090_v63  ;;  %v14551_v29 = vld [vmem:[#allocation6 + $0x170] ss:$20 sps:$4 sm:$0xff]   ;;  %v9179_v62 = vrot.slane %v9177_v9, 3  ;;  %v14606_v63 = vld [vmem:[#allocation6 + $0x32c] ss:$20 sps:$4 sm:$0xff]  }
 0xfe0   :  { %8635 = vmatprep.subr.bf16.mxu0 %v14907_v0  ;;  %8974 = vmatprep.subr.bf16.mxu1 %v14509_v35  ;;  %v9174_v35 = vshrl.u32 %v9152_v14, 16  ;;  %v14601_v14 = vld [vmem:[#allocation6 + $0x320] ss:$20 sps:$4 sm:$0xff]  }
 0xfe2   :  { %v9176_v21 = vrot.slane %v9174_v35, 2 }
 0xfe3   :  { %8636 = vmatpush1.bf16.msra.mxu0 %v14510_v32  ;;  %8975 = vmatpush1.bf16.msra.mxu1 %v14507_v24  ;;  %v9182_v24 = vshrl.u32 %v9154_v1, 16  ;;  %v9185_v32 = vshll.u32 %v9154_v1, 16  ;;  %v14609_v1 = vld [vmem:[#allocation6 + $0x48c] ss:$20 sps:$4 sm:$0xff]  }
 0xfe4   :  { %8649 = vmatprep.subr.bf16.mxu0 %v14907_v0  ;;  %8988 = vmatprep.subr.bf16.mxu1 %v14513_v36  ;;  %v14555_v36 = vld [vmem:[#allocation6 + $0x148] ss:$20 sps:$4 sm:$0xff]   ;;  %v9180_v50 = vor.u32 %v9179_v62, %v9176_v21  ;;  %v14618_v21 = vld [vmem:[#allocation6 + $0x46c] ss:$20 sps:$4 sm:$0xff]  }
 0xfe7   :  { %8650 = vmatpush2.bf16.msra.mxu0 %v14514_v49  ;;  %8989 = vmatpush2.bf16.msra.mxu1 %v14511_v42  ;;  %v14564_v42 = vld [vmem:[#allocation6 + $0x444] ss:$20 sps:$4 sm:$0xff]   ;;  %v9184_v49 = vrot.slane %v9182_v24, 2 }
 0xfe8   :  { %8651 = vmatprep.subr.bf16.mxu0 %v14907_v0  ;;  %8990 = vmatprep.subr.bf16.mxu1 %v14517_v34  ;;  %v9187_v34 = vrot.slane %v9185_v32, 3  ;;  %v14610_v32 = vld [vmem:[#allocation6 + $0x490] ss:$20 sps:$4 sm:$0xff]  }
 0xfea   :  { %v9188_v53 = vor.u32 %v9187_v34, %v9184_v49  ;;  %v9592_v34 = vld [vmem:[#allocation4 + $0x28] sm:$0xc0] }
 0xfeb   :  { %8652 = vmatpush2.bf16.msra.mxu0 %v14518_v2  ;;  %8991 = vmatpush2.bf16.msra.mxu1 %v14515_v45  ;;  %v14567_v45 = vld [vmem:[#allocation6 + $0x414] ss:$20 sps:$4 sm:$0xff]   ;;  %v14570_v2 = vld [vmem:[#allocation6 + $0x41c] ss:$20 sps:$4 sm:$0xff]  }
 0xfec   :  { %9003 = vmatprep.subr.bf16.mxu0 %v14521_v19  ;;  %9046 = vmatprep.subr.bf16.mxu1 %v14907_v0  ;;  %v17035_v19 = vsel %vm9155_vm0, %v9180_v50, %v9188_v53  ;;  %v14616_v50 = vld [vmem:[#allocation6 + $0x468] ss:$20 sps:$4 sm:$0xff]  }
 0xfee   :  { %8654 = vmatmul.mubr.bf16.vlgmr.msra.gmra.mxu0 %v16990_v23  ;;  %8993 = vmatmul.mubr.bf16.vlgmr.msra.gmra.mxu1 %v17014_v38  ;;  %v14530_v23 = vld [vmem:[#allocation6 + $0xd8] ss:$20 sps:$4 sm:$0xff]  }
 0xfef   :  { %9004 = vmatpush1.bf16.msra.mxu0 %v14519_v13  ;;  %12957 = vmatprep.mubr.msk.bf16.mxu0 %vm66_vm3, %v16999_v7  ;;  %v14573_v13 = vld [vmem:[#allocation6 + $0x3ec] ss:$20 sps:$4 sm:$0xff]  }
 0xff0   :  { %9047 = vmatpush1.bf16.msra.mxu1 %v14522_v51  ;;  %12958 = vmatprep.mubr.msk.bf16.mxu1 %vm66_vm3, %v16999_v7  ;;  %v14535_v7 = vld [vmem:[#allocation6 + $0x80] ss:$20 sps:$4 sm:$0xff]  }
 0xff1   :  { %9005 = vmatprep.subr.bf16.mxu0 %v14525_v54  ;;  %9048 = vmatprep.subr.bf16.mxu1 %v14907_v0  ;;  %v14576_v51 = vld [vmem:[#allocation6 + $0x3f4] ss:$20 sps:$4 sm:$0xff]  }
 0xff2   :  { %v14571_v54 = vld [vmem:[#allocation6 + $0x3e8] ss:$20 sps:$4 sm:$0xff]  }
 0xff3   :  { %9006 = vmatpush1.bf16.msra.mxu0 %v14523_v58  ;;  %v14579_v58 = vld [vmem:[#allocation6 + $0x3c4] ss:$20 sps:$4 sm:$0xff]  }
 0xff4   :  { %9049 = vmatpush1.bf16.msra.mxu1 %v14526_v25  ;;  %9007 = vmatprep.subr.bf16.mxu0 %v14529_v31  ;;  %v14582_v25 = vld [vmem:[#allocation6 + $0x3cc] ss:$20 sps:$4 sm:$0xff]  }
 0xff5   :  { %9050 = vmatprep.subr.bf16.mxu1 %v14907_v0  ;;  %v14577_v31 = vld [vmem:[#allocation6 + $0x3c0] ss:$20 sps:$4 sm:$0xff]  }
 0xff7   :  { %9008 = vmatpush1.bf16.msra.mxu0 %v14527_v10  ;;  %v14580_v10 = vld [vmem:[#allocation6 + $0x3c8] ss:$20 sps:$4 sm:$0xff]  }
 0xff8   :  { %9051 = vmatpush1.bf16.msra.mxu1 %v14530_v23  ;;  %9009 = vmatprep.subr.bf16.mxu0 %v14533_v48  ;;  %v14585_v23 = vld [vmem:[#allocation6 + $0x39c] ss:$20 sps:$4 sm:$0xff]   ;;  %v14588_v48 = vld [vmem:[#allocation6 + $0x3a4] ss:$20 sps:$4 sm:$0xff]  }
 0xff9   :  { %9052 = vmatprep.subr.bf16.mxu1 %v14907_v0 }
 0xffb   :  { %9010 = vmatpush1.bf16.msra.mxu0 %v14531_v43  ;;  %v14583_v43 = vld [vmem:[#allocation6 + $0x398] ss:$20 sps:$4 sm:$0xff]  }
 0xffc   :  { %9053 = vmatpush1.bf16.msra.mxu1 %v14534_v27  ;;  %9011 = vmatprep.subr.bf16.mxu0 %v14537_v3  ;;  %v14586_v27 = vld [vmem:[#allocation6 + $0x3a0] ss:$20 sps:$4 sm:$0xff]  }
 0xffd   :  { %9054 = vmatprep.subr.bf16.mxu1 %v14907_v0  ;;  %v14591_v3 = vld [vmem:[#allocation6 + $0x374] ss:$20 sps:$4 sm:$0xff]  }
 0xfff   :  { %9012 = vmatpush1.bf16.msra.mxu0 %v14535_v7  ;;  %v14594_v7 = vld [vmem:[#allocation6 + $0x37c] ss:$20 sps:$4 sm:$0xff]  }
0x1000   :  { %9055 = vmatpush1.bf16.msra.mxu1 %v14538_v46  ;;  %9013 = vmatprep.subr.bf16.mxu0 %v14541_v57  ;;  %v14589_v46 = vld [vmem:[#allocation6 + $0x370] ss:$20 sps:$4 sm:$0xff]   ;;  %v14592_v57 = vld [vmem:[#allocation6 + $0x378] ss:$20 sps:$4 sm:$0xff]  }
0x1001   :  { %9056 = vmatprep.subr.bf16.mxu1 %v14907_v0 }
0x1003   :  { %9014 = vmatpush1.bf16.msra.mxu0 %v14539_v40  ;;  %v14597_v40 = vld [vmem:[#allocation6 + $0x34c] ss:$20 sps:$4 sm:$0xff]  }
0x1004   :  { %9057 = vmatpush1.bf16.msra.mxu1 %v14542_v5  ;;  %9015 = vmatprep.subr.bf16.mxu0 %v14545_v28  ;;  %v14600_v5 = vld [vmem:[#allocation6 + $0x354] ss:$20 sps:$4 sm:$0xff]  }
0x1005   :  { %9058 = vmatprep.subr.bf16.mxu1 %v14907_v0  ;;  %v14595_v28 = vld [vmem:[#allocation6 + $0x348] ss:$20 sps:$4 sm:$0xff]  }
0x1007   :  { %9016 = vmatpush1.bf16.msra.mxu0 %v14543_v60  ;;  %v14598_v60 = vld [vmem:[#allocation6 + $0x350] ss:$20 sps:$4 sm:$0xff]  }
0x1008   :  { %9059 = vmatpush1.bf16.msra.mxu1 %v14546_v44  ;;  %9017 = vmatprep.subr.bf16.mxu0 %v14549_v6  ;;  %v14603_v44 = vld [vmem:[#allocation6 + $0x324] ss:$20 sps:$4 sm:$0xff]   ;;  %v9087_v6 = vld [vmem:[#allocation4 + $0x20] sm:$0xe0] }
0x1009   :  { %9060 = vmatprep.subr.bf16.mxu1 %v14907_v0 }
0x100b   :  { %9018 = vmatpush1.bf16.msra.mxu0 %v14547_v11  ;;  %v9151_v11 = vpack.c.bf16 %v16983_v18, %v9087_v6  ;;  %v14643_v6 = vld [vmem:[#allocation6 + $0x4d8] ss:$20 sps:$4 sm:$0xff]  }
0x100c   :  { %9061 = vmatpush1.bf16.msra.mxu1 %v14550_v17  ;;  %9031 = vmatprep.subr.bf16.mxu0 %v14553_v16  ;;  %v9153_v17 = vpack.c.bf16 %v9089_v26, %v9089_v26  ;;  %v14604_v16 = vld [vmem:[#allocation6 + $0x328] ss:$20 sps:$4 sm:$0xff]  }
0x100d   :  { %9074 = vmatprep.subr.bf16.mxu1 %v14907_v0  ;;  %v9157_v35 = vshrl.u32 %v9151_v11, 16  ;;  %v9160_v9 = vshll.u32 %v9151_v11, 16  ;;  %v14649_v26 = vld [vmem:[#allocation6 + $0x4b4] ss:$20 sps:$4 sm:$0xff]   ;;  %v14647_v11 = vld [vmem:[#allocation6 + $0x4b0] ss:$20 sps:$4 sm:$0xff]  }
0x100e   :  { %v9168_v24 = vshll.u32 %v9153_v17, 16 }
0x100f   :  { %9032 = vmatpush2.bf16.msra.mxu0 %v14551_v29  ;;  %v14612_v29 = vld [vmem:[#allocation6 + $0x494] ss:$20 sps:$4 sm:$0xff]   ;;  %v9159_v62 = vrot.slane %v9157_v35, 2 }
0x1010   :  { %9075 = vmatpush2.bf16.msra.mxu1 %v14554_v33  ;;  %9033 = vmatprep.subr.bf16.mxu0 %v14557_v30  ;;  %v14607_v33 = vld [vmem:[#allocation6 + $0x488] ss:$20 sps:$4 sm:$0xff]   ;;  %v9165_v30 = vshrl.u32 %v9153_v17, 16  ;;  %v9170_v49 = vrot.slane %v9168_v24, 3  ;;  %v14654_v17 = vld [vmem:[#allocation6 + $0x498] ss:$20 sps:$4 sm:$0xff]  }
0x1011   :  { %9076 = vmatprep.subr.bf16.mxu1 %v14907_v0  ;;  %v9593_v35 = vld [vmem:[#allocation4 + $0x40] sm:$0x1f] }
0x1012   :  { %v9657_v24 = vpack.c.bf16 %v9593_v35, %v9593_v35 }
0x1013   :  { %9034 = vmatpush2.bf16.msra.mxu0 %v14555_v36  ;;  %v14615_v36 = vld [vmem:[#allocation6 + $0x464] ss:$20 sps:$4 sm:$0xff]  }
0x1014   :  { %9077 = vmatpush2.bf16.msra.mxu1 %v14558_v59  ;;  %9454 = vmatprep.subr.bf16.mxu0 %v14561_v37  ;;  %v9162_v59 = vrot.slane %v9160_v9, 3  ;;  %v14613_v37 = vld [vmem:[#allocation6 + $0x460] ss:$20 sps:$4 sm:$0xff]  }
0x1015   :  { %9497 = vmatprep.subr.bf16.mxu1 %v14564_v42  ;;  %v9167_v42 = vrot.slane %v9165_v30, 2  ;;  %v14655_v30 = vld [vmem:[#allocation6 + $0x5f0] ss:$20 sps:$4 sm:$0xff]  }
0x1016   :  { %9036 = vmatmul.mubr.bf16.vlgmr.msra.gmra.mxu0 %v17014_v38  ;;  %v9163_v53 = vor.u32 %v9162_v59, %v9159_v62  ;;  %v9665_v62 = vrot.slane %v9657_v24, 3  ;;  %v14662_v59 = vld [vmem:[#allocation6 + $0x5d8] ss:$20 sps:$4 sm:$0xff]   ;;  %v14705_v24 = vld [vmem:[#allocation6 + $0x730] ss:$20 sps:$4 sm:$0xff]  }
0x1017   :  { %9079 = vmatmul.mubr.bf16.vlgmr.msra.gmra.mxu1 %v17014_v38  ;;  %9455 = vmatpush1.bf16.msra.mxu0 %v14559_v41  ;;  %v14574_v38 = vld [vmem:[#allocation6 + $0x3f0] ss:$20 sps:$4 sm:$0xff]   ;;  %v9594_v41 = vld [vmem:[#allocation4 + $0x48] sm:$0x1f] }
0x1018   :  { %13009 = vmatprep.mubr.msk.bf16.mxu0 %vm66_vm3, %v17035_v19  ;;  %9498 = vmatpush1.bf16.msra.mxu1 %v14562_v56  ;;  %v9656_v56 = vpack.c.bf16 %v16981_v22, %v9592_v34  ;;  %v14669_v34 = vld [vmem:[#allocation6 + $0x584] ss:$20 sps:$4 sm:$0xff]  }
0x1019   :  { %13010 = vmatprep.mubr.msk.bf16.mxu1 %vm66_vm3, %v17035_v19  ;;  %9456 = vmatprep.subr.bf16.mxu0 %v14567_v45  ;;  %v14621_v45 = vld [vmem:[#allocation6 + $0x5cc] ss:$20 sps:$4 sm:$0xff]  }
0x101a   :  { %9499 = vmatprep.subr.bf16.mxu1 %v14570_v2  ;;  %v9658_v2 = vpack.c.bf16 %v9594_v41, %v9594_v41  ;;  %v14667_v41 = vld [vmem:[#allocation6 + $0x580] ss:$20 sps:$4 sm:$0xff]  }
0x101b   :  { %9457 = vmatpush1.bf16.msra.mxu0 %v14565_v52  ;;  %v9171_v52 = vor.u32 %v9170_v49, %v9167_v42  ;;  %v14663_v42 = vld [vmem:[#allocation6 + $0x5a8] ss:$20 sps:$4 sm:$0xff]   ;;  %v14666_v49 = vld [vmem:[#allocation6 + $0x5b0] ss:$20 sps:$4 sm:$0xff]  }
0x101c   :  { %9500 = vmatpush1.bf16.msra.mxu1 %v14568_v15  ;;  %9458 = vmatprep.subr.bf16.mxu0 %v14573_v13  ;;  %v14622_v15 = vld [vmem:[#allocation6 + $0x448] ss:$20 sps:$4 sm:$0xff]  }
0x101d   :  { %9501 = vmatprep.subr.bf16.mxu1 %v14576_v51  ;;  %v14619_v13 = vld [vmem:[#allocation6 + $0x5c8] ss:$20 sps:$4 sm:$0xff]   ;;  %v9667_v51 = vrot.slane %v9656_v56, 3 }
0x101e   :  { %v14673_v56 = vld [vmem:[#allocation6 + $0x55c] ss:$20 sps:$4 sm:$0xff]  }
0x101f   :  { %9459 = vmatpush1.bf16.msra.mxu0 %v14571_v54  ;;  %v17045_v54 = vsel %vm9155_vm0, %v9163_v53, %v9171_v52  ;;  %v14671_v53 = vld [vmem:[#allocation6 + $0x558] ss:$20 sps:$4 sm:$0xff]   ;;  %v14675_v52 = vld [vmem:[#allocation6 + $0x530] ss:$20 sps:$4 sm:$0xff]  }
0x1020   :  { %9502 = vmatpush1.bf16.msra.mxu1 %v14574_v38  ;;  %9460 = vmatprep.subr.bf16.mxu0 %v14579_v58  ;;  %v9668_v38 = vrot.slane %v9658_v2, 3  ;;  %v14625_v58 = vld [vmem:[#allocation6 + $0x5a4] ss:$20 sps:$4 sm:$0xff]   ;;  %v14677_v2 = vld [vmem:[#allocation6 + $0x534] ss:$20 sps:$4 sm:$0xff]  }
0x1021   :  { %9503 = vmatprep.subr.bf16.mxu1 %v14582_v25  ;;  %v14626_v25 = vld [vmem:[#allocation6 + $0x420] ss:$20 sps:$4 sm:$0xff]  }
0x1023   :  { %9461 = vmatpush1.bf16.msra.mxu0 %v14577_v31  ;;  %v17052_v31 = vsel %vm9663_vm1, %v9667_v51, %v9668_v38  ;;  %v14679_v51 = vld [vmem:[#allocation6 + $0x508] ss:$20 sps:$4 sm:$0xff]   ;;  %v14685_v38 = vld [vmem:[#allocation6 + $0x4e4] ss:$20 sps:$4 sm:$0xff]  }
0x1024   :  { %9504 = vmatpush1.bf16.msra.mxu1 %v14580_v10  ;;  %9462 = vmatprep.subr.bf16.mxu0 %v14585_v23  ;;  %v14623_v10 = vld [vmem:[#allocation6 + $0x5a0] ss:$20 sps:$4 sm:$0xff]   ;;  %v14629_v23 = vld [vmem:[#allocation6 + $0x57c] ss:$20 sps:$4 sm:$0xff]  }
0x1025   :  { %9505 = vmatprep.subr.bf16.mxu1 %v14588_v48  ;;  %v14630_v48 = vld [vmem:[#allocation6 + $0x3f8] ss:$20 sps:$4 sm:$0xff]  }
0x1027   :  { %9463 = vmatpush1.bf16.msra.mxu0 %v14583_v43  ;;  %v14627_v43 = vld [vmem:[#allocation6 + $0x578] ss:$20 sps:$4 sm:$0xff]  }
0x1028   :  { %9506 = vmatpush1.bf16.msra.mxu1 %v14586_v27  ;;  %9464 = vmatprep.subr.bf16.mxu0 %v14591_v3  ;;  %v14634_v27 = vld [vmem:[#allocation6 + $0x3d0] ss:$20 sps:$4 sm:$0xff]  }
0x1029   :  { %9507 = vmatprep.subr.bf16.mxu1 %v14594_v7  ;;  %v14631_v3 = vld [vmem:[#allocation6 + $0x550] ss:$20 sps:$4 sm:$0xff]   ;;  %v14637_v7 = vld [vmem:[#allocation6 + $0x52c] ss:$20 sps:$4 sm:$0xff]  }
0x102b   :  { %9465 = vmatpush1.bf16.msra.mxu0 %v14589_v46  ;;  %v14638_v46 = vld [vmem:[#allocation6 + $0x3a8] ss:$20 sps:$4 sm:$0xff]  }
0x102c   :  { %9508 = vmatpush1.bf16.msra.mxu1 %v14592_v57  ;;  %9466 = vmatprep.subr.bf16.mxu0 %v14597_v40  ;;  %v14635_v57 = vld [vmem:[#allocation6 + $0x528] ss:$20 sps:$4 sm:$0xff]   ;;  %v14641_v40 = vld [vmem:[#allocation6 + $0x504] ss:$20 sps:$4 sm:$0xff]  }
0x102d   :  { %9509 = vmatprep.subr.bf16.mxu1 %v14600_v5  ;;  %v14642_v5 = vld [vmem:[#allocation6 + $0x380] ss:$20 sps:$4 sm:$0xff]  }
0x102f   :  { %9467 = vmatpush1.bf16.msra.mxu0 %v14595_v28  ;;  %v14639_v28 = vld [vmem:[#allocation6 + $0x500] ss:$20 sps:$4 sm:$0xff]  }
0x1030   :  { %9510 = vmatpush1.bf16.msra.mxu1 %v14598_v60  ;;  %9468 = vmatprep.subr.bf16.mxu0 %v14603_v44  ;;  %v14645_v60 = vld [vmem:[#allocation6 + $0x4dc] ss:$20 sps:$4 sm:$0xff]   ;;  %v14646_v44 = vld [vmem:[#allocation6 + $0x358] ss:$20 sps:$4 sm:$0xff]  }
0x1031   :  { %9511 = vmatprep.subr.bf16.mxu1 %v14606_v63  ;;  %v14650_v63 = vld [vmem:[#allocation6 + $0x330] ss:$20 sps:$4 sm:$0xff]  }
0x1033   :  { %9469 = vmatpush1.bf16.msra.mxu0 %v14601_v14  ;;  %v14653_v14 = vld [vmem:[#allocation6 + $0x61c] ss:$20 sps:$4 sm:$0xff]  }
0x1034   :  { %9512 = vmatpush1.bf16.msra.mxu1 %v14604_v16  ;;  %9482 = vmatprep.subr.bf16.mxu0 %v14609_v1  ;;  %v14651_v16 = vld [vmem:[#allocation6 + $0x618] ss:$20 sps:$4 sm:$0xff]   ;;  %v14657_v1 = vld [vmem:[#allocation6 + $0x5f4] ss:$20 sps:$4 sm:$0xff]  }
0x1035   :  { %9525 = vmatprep.subr.bf16.mxu1 %v14612_v29  ;;  %v9591_v29 = vld [vmem:[#allocation4 + $0x20] sm:$0xc0] }
0x1036   :  { %v9655_v9 = vpack.c.bf16 %v16983_v18, %v9591_v29  ;;  %v14702_v29 = vld [vmem:[#allocation6 + $0x760] ss:$20 sps:$4 sm:$0xff]  }
0x1037   :  { %9483 = vmatpush2.bf16.msra.mxu0 %v14607_v33  ;;  %v14658_v33 = vld [vmem:[#allocation6 + $0x470] ss:$20 sps:$4 sm:$0xff]  }
0x1038   :  { %9526 = vmatpush2.bf16.msra.mxu1 %v14610_v32  ;;  %9484 = vmatprep.subr.bf16.mxu0 %v14615_v36  ;;  %v14661_v32 = vld [vmem:[#allocation6 + $0x5d4] ss:$20 sps:$4 sm:$0xff]   ;;  %v9664_v36 = vrot.slane %v9655_v9, 3 }
0x1039   :  { %9527 = vmatprep.subr.bf16.mxu1 %v14618_v21  ;;  %v14659_v21 = vld [vmem:[#allocation6 + $0x5d0] ss:$20 sps:$4 sm:$0xff]   ;;  %v14707_v9 = vld [vmem:[#allocation6 + $0x734] ss:$20 sps:$4 sm:$0xff]  }
0x103a   :  { %v17069_v18 = vsel %vm9663_vm1, %v9664_v36, %v9665_v62  ;;  %v14713_v36 = vld [vmem:[#allocation6 + $0x70c] ss:$20 sps:$4 sm:$0xff]   ;;  %v14711_v62 = vld [vmem:[#allocation6 + $0x708] ss:$20 sps:$4 sm:$0xff]  }
0x103b   :  { %9485 = vmatpush2.bf16.msra.mxu0 %v14613_v37  ;;  %v14665_v37 = vld [vmem:[#allocation6 + $0x5ac] ss:$20 sps:$4 sm:$0xff]  }
0x103c   :  { %9528 = vmatpush2.bf16.msra.mxu1 %v14616_v50  ;;  %9540 = vmatprep.subr.bf16.mxu0 %v14907_v0  ;;  %v14670_v50 = vld [vmem:[#allocation6 + $0x588] ss:$20 sps:$4 sm:$0xff]  }
0x103d   :  { %9934 = vmatprep.subr.bf16.mxu1 %v14621_v45  ;;  %v14674_v45 = vld [vmem:[#allocation6 + $0x560] ss:$20 sps:$4 sm:$0xff]  }
0x103e   :  { %9487 = vmatmul.mubr.bf16.vlgmr.msra.gmra.mxu0 %v17045_v54 }
0x103f   :  { %9530 = vmatmul.mubr.bf16.vlgmr.msra.gmra.mxu1 %v17045_v54  ;;  %9541 = vmatpush1.bf16.msra.mxu0 %v14622_v15  ;;  %v14678_v15 = vld [vmem:[#allocation6 + $0x538] ss:$20 sps:$4 sm:$0xff]  }
0x1040   :  { %13011 = vmatprep.mubr.msk.bf16.mxu0 %vm66_vm3, %v17035_v19  ;;  %9935 = vmatpush1.bf16.msra.mxu1 %v14619_v13  ;;  %v14633_v19 = vld [vmem:[#allocation6 + $0x554] ss:$20 sps:$4 sm:$0xff]   ;;  %v14681_v13 = vld [vmem:[#allocation6 + $0x50c] ss:$20 sps:$4 sm:$0xff]  }
0x1041   :  { %13062 = vmatprep.mubr.msk.bf16.mxu1 %vm66_vm3, %v17052_v31  ;;  %9542 = vmatprep.subr.bf16.mxu0 %v14907_v0 }
0x1042   :  { %9936 = vmatprep.subr.bf16.mxu1 %v14625_v58  ;;  %v14683_v58 = vld [vmem:[#allocation6 + $0x4e0] ss:$20 sps:$4 sm:$0xff]  }
0x1043   :  { %9543 = vmatpush1.bf16.msra.mxu0 %v14626_v25  ;;  %v14686_v25 = vld [vmem:[#allocation6 + $0x4e8] ss:$20 sps:$4 sm:$0xff]  }
0x1044   :  { %9937 = vmatpush1.bf16.msra.mxu1 %v14623_v10  ;;  %9544 = vmatprep.subr.bf16.mxu0 %v14907_v0  ;;  %v10072_v10 = vld [vmem:[#allocation4 + $0x28] sm:$0x80] }
0x1045   :  { %9938 = vmatprep.subr.bf16.mxu1 %v14629_v23  ;;  %v10074_v23 = vld [vmem:[#allocation4 + $0x48] sm:$0x3f] }
0x1047   :  { %9545 = vmatpush1.bf16.msra.mxu0 %v14630_v48  ;;  %v14687_v48 = vld [vmem:[#allocation6 + $0x4b8] ss:$20 sps:$4 sm:$0xff]  }
0x1048   :  { %9939 = vmatpush1.bf16.msra.mxu1 %v14627_v43  ;;  %9546 = vmatprep.subr.bf16.mxu0 %v14907_v0  ;;  %v10136_v43 = vpack.c.bf16 %v16981_v22, %v10072_v10  ;;  %v14695_v22 = vld [vmem:[#allocation6 + $0x5f8] ss:$20 sps:$4 sm:$0xff]   ;;  %v14738_v10 = vld [vmem:[#allocation6 + $0x670] ss:$20 sps:$4 sm:$0xff]  }
0x1049   :  { %9940 = vmatprep.subr.bf16.mxu1 %v14633_v19  ;;  %v14690_v19 = vld [vmem:[#allocation6 + $0x4c0] ss:$20 sps:$4 sm:$0xff]  }
0x104b   :  { %9547 = vmatpush1.bf16.msra.mxu0 %v14634_v27  ;;  %v14693_v27 = vld [vmem:[#allocation6 + $0x624] ss:$20 sps:$4 sm:$0xff]  }
0x104c   :  { %9941 = vmatpush1.bf16.msra.mxu1 %v14631_v3  ;;  %9548 = vmatprep.subr.bf16.mxu0 %v14907_v0  ;;  %v10138_v3 = vpack.c.bf16 %v10074_v23, %v10074_v23  ;;  %v14743_v23 = vld [vmem:[#allocation6 + $0x644] ss:$20 sps:$4 sm:$0xff]  }
0x104d   :  { %9942 = vmatprep.subr.bf16.mxu1 %v14637_v7  ;;  %v14691_v7 = vld [vmem:[#allocation6 + $0x620] ss:$20 sps:$4 sm:$0xff]  }
0x104f   :  { %9549 = vmatpush1.bf16.msra.mxu0 %v14638_v46  ;;  %v10158_v46 = vshrl.u32 %v10136_v43, 16 }
0x1050   :  { %9943 = vmatpush1.bf16.msra.mxu1 %v14635_v57  ;;  %9550 = vmatprep.subr.bf16.mxu0 %v14907_v0  ;;  %v10161_v57 = vshll.u32 %v10136_v43, 16  ;;  %v14746_v43 = vld [vmem:[#allocation6 + $0x64c] ss:$20 sps:$4 sm:$0xff]  }
0x1051   :  { %9944 = vmatprep.subr.bf16.mxu1 %v14641_v40  ;;  %v14694_v40 = vld [vmem:[#allocation6 + $0x628] ss:$20 sps:$4 sm:$0xff]  }
0x1053   :  { %9551 = vmatpush1.bf16.msra.mxu0 %v14642_v5  ;;  %v14697_v5 = vld [vmem:[#allocation6 + $0x5fc] ss:$20 sps:$4 sm:$0xff]  }
0x1054   :  { %9945 = vmatpush1.bf16.msra.mxu1 %v14639_v28  ;;  %9552 = vmatprep.subr.bf16.mxu0 %v14907_v0  ;;  %v10166_v28 = vshrl.u32 %v10138_v3, 16 }
0x1055   :  { %9946 = vmatprep.subr.bf16.mxu1 %v14645_v60  ;;  %v10169_v60 = vshll.u32 %v10138_v3, 16  ;;  %v14741_v3 = vld [vmem:[#allocation6 + $0x640] ss:$20 sps:$4 sm:$0xff]  }
0x1057   :  { %9553 = vmatpush1.bf16.msra.mxu0 %v14646_v44  ;;  %v10160_v44 = vrot.slane %v10158_v46, 3 }
0x1058   :  { %9947 = vmatpush1.bf16.msra.mxu1 %v14643_v6  ;;  %9554 = vmatprep.subr.bf16.mxu0 %v14907_v0  ;;  %v10163_v6 = vrot.slane %v10161_v57, 4 }
0x1059   :  { %9948 = vmatprep.subr.bf16.mxu1 %v14649_v26  ;;  %v14698_v26 = vld [vmem:[#allocation6 + $0x600] ss:$20 sps:$4 sm:$0xff]  }
0x105b   :  { %9555 = vmatpush1.bf16.msra.mxu0 %v14650_v63  ;;  %v14701_v63 = vld [vmem:[#allocation6 + $0x75c] ss:$20 sps:$4 sm:$0xff]  }
0x105c   :  { %9949 = vmatpush1.bf16.msra.mxu1 %v14647_v11  ;;  %9568 = vmatprep.subr.bf16.mxu0 %v14907_v0  ;;  %v14704_v11 = vld [vmem:[#allocation6 + $0x764] ss:$20 sps:$4 sm:$0xff]  }
0x105d   :  { %9962 = vmatprep.subr.bf16.mxu1 %v14653_v14  ;;  %v10168_v14 = vrot.slane %v10166_v28, 3  ;;  %v14752_v28 = vld [vmem:[#allocation6 + $0x7b4] ss:$20 sps:$4 sm:$0xff]  }
0x105f   :  { %9569 = vmatpush2.bf16.msra.mxu0 %v14654_v17  ;;  %v10171_v17 = vrot.slane %v10169_v60, 4 }
0x1060   :  { %9963 = vmatpush2.bf16.msra.mxu1 %v14651_v16  ;;  %9570 = vmatprep.subr.bf16.mxu0 %v14907_v0  ;;  %v14699_v16 = vld [vmem:[#allocation6 + $0x758] ss:$20 sps:$4 sm:$0xff]  }
0x1061   :  { %9964 = vmatprep.subr.bf16.mxu1 %v14657_v1  ;;  %v10164_v1 = vor.u32 %v10163_v6, %v10160_v44  ;;  %v10172_v35 = vor.u32 %v10171_v17, %v10168_v14  ;;  %v14747_v44 = vld [vmem:[#allocation6 + $0x7a8] ss:$20 sps:$4 sm:$0xff]   ;;  %v14750_v14 = vld [vmem:[#allocation6 + $0x7b0] ss:$20 sps:$4 sm:$0xff]  }
0x1062   :  { %v14755_v17 = vld [vmem:[#allocation6 + $0x784] ss:$20 sps:$4 sm:$0xff]  }
0x1063   :  { %9571 = vmatpush2.bf16.msra.mxu0 %v14658_v33  ;;  %v14710_v33 = vld [vmem:[#allocation6 + $0x73c] ss:$20 sps:$4 sm:$0xff]  }
0x1064   :  { %9965 = vmatpush2.bf16.msra.mxu1 %v14655_v30  ;;  %9977 = vmatprep.subr.bf16.mxu0 %v14661_v32  ;;  %v17089_v30 = vsel %vm10139_vm2, %v10164_v1, %v10172_v35  ;;  %v14708_v32 = vld [vmem:[#allocation6 + $0x738] ss:$20 sps:$4 sm:$0xff]  }
0x1065   :  { %10020 = vmatprep.subr.bf16.mxu1 %v14907_v0 }
0x1066   :  { %9573 = vmatmul.mubr.bf16.vlgmr.msra.gmra.mxu0 %v17045_v54  ;;  %v14682_v54 = vld [vmem:[#allocation6 + $0x510] ss:$20 sps:$4 sm:$0xff]  }
0x1067   :  { %9967 = vmatmul.mubr.bf16.vlgmr.msra.gmra.mxu1 %v17069_v18  ;;  %9978 = vmatpush1.bf16.msra.mxu0 %v14659_v21  ;;  %v14716_v21 = vld [vmem:[#allocation6 + $0x714] ss:$20 sps:$4 sm:$0xff]  }
0x1068   :  { %13063 = vmatprep.mubr.msk.bf16.mxu0 %vm66_vm3, %v17052_v31  ;;  %10021 = vmatpush1.bf16.msra.mxu1 %v14662_v59  ;;  %v14714_v59 = vld [vmem:[#allocation6 + $0x710] ss:$20 sps:$4 sm:$0xff]  }
0x1069   :  { %13064 = vmatprep.mubr.msk.bf16.mxu1 %vm66_vm3, %v17052_v31  ;;  %9979 = vmatprep.subr.bf16.mxu0 %v14665_v37  ;;  %v14689_v31 = vld [vmem:[#allocation6 + $0x4bc] ss:$20 sps:$4 sm:$0xff]   ;;  %v14719_v37 = vld [vmem:[#allocation6 + $0x6e4] ss:$20 sps:$4 sm:$0xff]  }
0x106a   :  { %10022 = vmatprep.subr.bf16.mxu1 %v14907_v0 }
0x106b   :  { %9980 = vmatpush1.bf16.msra.mxu0 %v14663_v42  ;;  %v14717_v42 = vld [vmem:[#allocation6 + $0x6e0] ss:$20 sps:$4 sm:$0xff]  }
0x106c   :  { %10023 = vmatpush1.bf16.msra.mxu1 %v14666_v49  ;;  %9981 = vmatprep.subr.bf16.mxu0 %v14669_v34  ;;  %v14720_v49 = vld [vmem:[#allocation6 + $0x6e8] ss:$20 sps:$4 sm:$0xff]  }
0x106d   :  { %10024 = vmatprep.subr.bf16.mxu1 %v14907_v0  ;;  %v14725_v34 = vld [vmem:[#allocation6 + $0x6bc] ss:$20 sps:$4 sm:$0xff]  }
0x106f   :  { %9982 = vmatpush1.bf16.msra.mxu0 %v14667_v41  ;;  %v14728_v41 = vld [vmem:[#allocation6 + $0x6c4] ss:$20 sps:$4 sm:$0xff]  }
0x1070   :  { %10025 = vmatpush1.bf16.msra.mxu1 %v14670_v50  ;;  %9983 = vmatprep.subr.bf16.mxu0 %v14673_v56  ;;  %v14723_v50 = vld [vmem:[#allocation6 + $0x6b8] ss:$20 sps:$4 sm:$0xff]   ;;  %v14726_v56 = vld [vmem:[#allocation6 + $0x6c0] ss:$20 sps:$4 sm:$0xff]  }
0x1071   :  { %10026 = vmatprep.subr.bf16.mxu1 %v14907_v0 }
0x1073   :  { %9984 = vmatpush1.bf16.msra.mxu0 %v14671_v53  ;;  %v14731_v53 = vld [vmem:[#allocation6 + $0x694] ss:$20 sps:$4 sm:$0xff]  }
0x1074   :  { %10027 = vmatpush1.bf16.msra.mxu1 %v14674_v45  ;;  %9985 = vmatprep.subr.bf16.mxu0 %v14677_v2  ;;  %v14734_v45 = vld [vmem:[#allocation6 + $0x69c] ss:$20 sps:$4 sm:$0xff]  }
0x1075   :  { %10028 = vmatprep.subr.bf16.mxu1 %v14907_v0  ;;  %v14729_v2 = vld [vmem:[#allocation6 + $0x690] ss:$20 sps:$4 sm:$0xff]  }
0x1077   :  { %9986 = vmatpush1.bf16.msra.mxu0 %v14675_v52 }
0x1078   :  { %10029 = vmatpush1.bf16.msra.mxu1 %v14678_v15  ;;  %9987 = vmatprep.subr.bf16.mxu0 %v14681_v13  ;;  %v14732_v13 = vld [vmem:[#allocation6 + $0x698] ss:$20 sps:$4 sm:$0xff]  }
0x1079   :  { %10030 = vmatprep.subr.bf16.mxu1 %v14907_v0 }
0x107b   :  { %9988 = vmatpush1.bf16.msra.mxu0 %v14679_v51  ;;  %v14737_v51 = vld [vmem:[#allocation6 + $0x66c] ss:$20 sps:$4 sm:$0xff]  }
0x107c   :  { %10031 = vmatpush1.bf16.msra.mxu1 %v14682_v54  ;;  %9989 = vmatprep.subr.bf16.mxu0 %v14685_v38  ;;  %v14740_v54 = vld [vmem:[#allocation6 + $0x674] ss:$20 sps:$4 sm:$0xff]  }
0x107d   :  { %10032 = vmatprep.subr.bf16.mxu1 %v14907_v0  ;;  %v10071_v38 = vld [vmem:[#allocation4 + $0x20] sm:$0x80] }
0x107f   :  { %9990 = vmatpush1.bf16.msra.mxu0 %v14683_v58  ;;  %v14735_v58 = vld [vmem:[#allocation6 + $0x668] ss:$20 sps:$4 sm:$0xff]  }
0x1080   :  { %10033 = vmatpush1.bf16.msra.mxu1 %v14686_v25  ;;  %9991 = vmatprep.subr.bf16.mxu0 %v14689_v31 }
0x1081   :  { %10034 = vmatprep.subr.bf16.mxu1 %v14907_v0 }
0x1083   :  { %9992 = vmatpush1.bf16.msra.mxu0 %v14687_v48  ;;  %v10073_v48 = vld [vmem:[#allocation4 + $0x40] sm:$0x3f] }
0x1084   :  { %10035 = vmatpush1.bf16.msra.mxu1 %v14690_v19  ;;  %10005 = vmatprep.subr.bf16.mxu0 %v14693_v27  ;;  %v14880_v19 = vld [vmem:[#allocation4 + $0x30] sm:$0xff] }
0x1085   :  { %10048 = vmatprep.subr.bf16.mxu1 %v14907_v0  ;;  %v10135_v27 = vpack.c.bf16 %v14880_v19, %v10071_v38  ;;  %v14764_v38 = vld [vmem:[#allocation6 + $0x6a0] ss:$20 sps:$4 sm:$0xff]  }
0x1086   :  { %v8569_v52 = vpop.f32.mrf.mxu0  ;;  %v17095_v15 = vpop.f32.mrf.mxu1 }
0x1087   :  { %10006 = vmatpush2.bf16.msra.mxu0 %v14691_v7  ;;  %v10137_v7 = vpack.c.bf16 %v10073_v48, %v10073_v48  ;;  %v10141_v60 = vshrl.u32 %v10135_v27, 16  ;;  %v14768_v48 = vld [vmem:[#allocation6 + $0x790] ss:$20 sps:$4 sm:$0xff]  }
0x1088   :  { %10049 = vmatpush2.bf16.msra.mxu1 %v14694_v40  ;;  %10007 = vmatprep.subr.bf16.mxu0 %v14697_v5  ;;  %v8571_v25 = vpop.f32.mrf.mxu0  ;;  %v17097_v31 = vpop.f32.mrf.mxu1  ;;  %v14744_v40 = vld [vmem:[#allocation6 + $0x648] ss:$20 sps:$4 sm:$0xff]   ;;  %v14749_v5 = vld [vmem:[#allocation6 + $0x7ac] ss:$20 sps:$4 sm:$0xff]  }
0x1089   :  { %10050 = vmatprep.subr.bf16.mxu1 %v14907_v0  ;;  %v10149_v6 = vshrl.u32 %v10137_v7, 16  ;;  %v10143_v1 = vrot.slane %v10141_v60, 3 }
0x108a   :  { %v8573_v46 = vpop.f32.mrf.mxu0  ;;  %v17099_v57 = vpop.f32.mrf.mxu1 }
0x108b   :  { %10008 = vmatpush2.bf16.msra.mxu0 %v14695_v22  ;;  %v10144_v22 = vshll.u32 %v10135_v27, 16 }
0x108c   :  { %10051 = vmatpush2.bf16.msra.mxu1 %v14698_v26  ;;  %10438 = vmatprep.subr.bf16.mxu0 %v14701_v63  ;;  %v10152_v26 = vshll.u32 %v10137_v7, 16  ;;  %v8575_v63 = vpop.f32.mrf.mxu0 }
0x108d   :  { %10481 = vmatprep.subr.bf16.mxu1 %v14704_v11  ;;  %v17101_v11 = vpop.f32.mrf.mxu1 }
0x108e   :  { %10010 = vmatmul.mubr.bf16.vlgmr.msra.gmra.mxu0 %v17069_v18 }
0x108f   :  { %10053 = vmatmul.mubr.bf16.vlgmr.msra.gmra.mxu1 %v17069_v18  ;;  %10439 = vmatpush1.bf16.msra.mxu0 %v14699_v16  ;;  %v14722_v18 = vld [vmem:[#allocation6 + $0x6ec] ss:$20 sps:$4 sm:$0xff]  }
0x1090   :  { %13115 = vmatprep.mubr.msk.bf16.mxu0 %vm66_vm3, %v17089_v30  ;;  %10482 = vmatpush1.bf16.msra.mxu1 %v14702_v29  ;;  %v14758_v16 = vld [vmem:[#allocation6 + $0x78c] ss:$20 sps:$4 sm:$0xff]   ;;  %v10146_v29 = vrot.slane %v10144_v22, 4 }
0x1091   :  { %13116 = vmatprep.mubr.msk.bf16.mxu1 %vm66_vm3, %v17089_v30  ;;  %10440 = vmatprep.subr.bf16.mxu0 %v14707_v9 }
0x1092   :  { %10483 = vmatprep.subr.bf16.mxu1 %v14710_v33 }
0x1093   :  { %10441 = vmatpush1.bf16.msra.mxu0 %v14705_v24  ;;  %v14753_v24 = vld [vmem:[#allocation6 + $0x780] ss:$20 sps:$4 sm:$0xff]  }
0x1094   :  { %10484 = vmatpush1.bf16.msra.mxu1 %v14708_v32  ;;  %10442 = vmatprep.subr.bf16.mxu0 %v14713_v36  ;;  %v10151_v32 = vrot.slane %v10149_v6, 3  ;;  %v10154_v36 = vrot.slane %v10152_v26, 4 }
0x1095   :  { %10485 = vmatprep.subr.bf16.mxu1 %v14716_v21 }
0x1097   :  { %10443 = vmatpush1.bf16.msra.mxu0 %v14711_v62 }
0x1098   :  { %10486 = vmatpush1.bf16.msra.mxu1 %v14714_v59  ;;  %10444 = vmatprep.subr.bf16.mxu0 %v14719_v37  ;;  %v14756_v59 = vld [vmem:[#allocation6 + $0x788] ss:$20 sps:$4 sm:$0xff]  }
0x1099   :  { %10487 = vmatprep.subr.bf16.mxu1 %v14722_v18  ;;  %v10147_v18 = vor.u32 %v10146_v29, %v10143_v1 }
0x109b   :  { %10445 = vmatpush1.bf16.msra.mxu0 %v14717_v42 }
0x109c   :  { %10488 = vmatpush1.bf16.msra.mxu1 %v14720_v49  ;;  %10446 = vmatprep.subr.bf16.mxu0 %v14725_v34 }
0x109d   :  { %10489 = vmatprep.subr.bf16.mxu1 %v14728_v41  ;;  %v10155_v41 = vor.u32 %v10154_v36, %v10151_v32 }
0x109f   :  { %10447 = vmatpush1.bf16.msra.mxu0 %v14723_v50  ;;  %v14759_v50 = vld [vmem:[#allocation6 + $0x768] ss:$20 sps:$4 sm:$0xff]  }
0x10a0   :  { %10490 = vmatpush1.bf16.msra.mxu1 %v14726_v56  ;;  %10448 = vmatprep.subr.bf16.mxu0 %v14731_v53 }
0x10a1   :  { %10491 = vmatprep.subr.bf16.mxu1 %v14734_v45 }
0x10a3   :  { %10449 = vmatpush1.bf16.msra.mxu0 %v14729_v2  ;;  %v10156_v2 = vsel %vm10139_vm2, %v10147_v18, %v10155_v41 }
0x10a4   :  { %10492 = vmatpush1.bf16.msra.mxu1 %v14732_v13  ;;  %10450 = vmatprep.subr.bf16.mxu0 %v14737_v51  ;;  %v14761_v13 = vld [vmem:[#allocation6 + $0x718] ss:$20 sps:$4 sm:$0xff]   ;;  %v14762_v51 = vld [vmem:[#allocation6 + $0x6f0] ss:$20 sps:$4 sm:$0xff]  }
0x10a5   :  { %10493 = vmatprep.subr.bf16.mxu1 %v14740_v54  ;;  %v14763_v54 = vld [vmem:[#allocation6 + $0x6c8] ss:$20 sps:$4 sm:$0xff]  }
0x10a7   :  { %10451 = vmatpush1.bf16.msra.mxu0 %v14735_v58  ;;  %v14766_v58 = vld [vmem:[#allocation6 + $0x650] ss:$20 sps:$4 sm:$0xff]  }
0x10a8   :  { %10494 = vmatpush1.bf16.msra.mxu1 %v14738_v10  ;;  %10452 = vmatprep.subr.bf16.mxu0 %v14743_v23 }
0x10a9   :  { %10495 = vmatprep.subr.bf16.mxu1 %v14746_v43 }
0x10ab   :  { %10453 = vmatpush1.bf16.msra.mxu0 %v14741_v3 }
0x10ac   :  { %10496 = vmatpush1.bf16.msra.mxu1 %v14744_v40  ;;  %10466 = vmatprep.subr.bf16.mxu0 %v14749_v5 }
0x10ad   :  { %10509 = vmatprep.subr.bf16.mxu1 %v14752_v28 }
0x10ae   :  { %v8655_v35 = vpop.f32.mrf.mxu0  ;;  %v8994_v9 = vpop.f32.mrf.mxu1 }
0x10af   :  { %v17103_v33 = vadd.f32 %v8994_v9, %v8569_v52  ;;  %10467 = vmatpush2.bf16.msra.mxu0 %v14747_v44  ;;  %v14760_v52 = vld [vmem:[#allocation6 + $0x740] ss:$20 sps:$4 sm:$0xff]  }
0x10b0   :  { %10510 = vmatpush2.bf16.msra.mxu1 %v14750_v14  ;;  %v8657_v21 = vpop.f32.mrf.mxu0  ;;  %v8996_v62 = vpop.f32.mrf.mxu1  ;;  %10468 = vmatprep.subr.bf16.mxu0 %v14755_v17 }
0x10b1   :  { %v17105_v37 = vadd.f32 %v8996_v62, %v8571_v25  ;;  %10511 = vmatprep.subr.bf16.mxu1 %v14758_v16  ;;  %v14767_v25 = vld [vmem:[#allocation6 + $0x7b8] ss:$20 sps:$4 sm:$0xff]  }
0x10b2   :  { %v8658_v42 = vpop.f32.mrf.mxu0  ;;  %v8998_v49 = vpop.f32.mrf.mxu1 }
0x10b3   :  { %v17107_v34 = vadd.f32 %v8998_v49, %v8573_v46  ;;  %10469 = vmatpush2.bf16.msra.mxu0 %v14753_v24 }
0x10b4   :  { %10512 = vmatpush2.bf16.msra.mxu1 %v14756_v59  ;;  %v8660_v56 = vpop.f32.mrf.mxu0  ;;  %v9000_v53 = vpop.f32.mrf.mxu1  ;;  %10524 = vmatprep.subr.bf16.mxu0 %v14907_v0 }
0x10b5   :  { %v9001_v45 = vadd.f32 %v9000_v53, %v8575_v63  ;;  %v14769_v53 = vld [vmem:[%s17617_s13 + $0x1a4] sm:$0xff]  }
0x10b6   :  { %10471 = vmatmul.mubr.bf16.vlgmr.msra.gmra.mxu0 %v10156_v2  ;;  %13466 = vmatprep.subr.bf16.mxu1 %v14769_v53 }
0x10b7   :  { %10514 = vmatmul.mubr.bf16.vlgmr.msra.gmra.mxu1 %v10156_v2  ;;  %10525 = vmatpush1.bf16.msra.mxu0 %v14759_v50 }
0x10b8   :  { %13117 = vmatprep.mubr.msk.bf16.mxu0 %vm66_vm3, %v17089_v30  ;;  %10526 = vmatprep.subr.bf16.mxu0 %v14907_v0  ;;  %v14765_v30 = vld [vmem:[#allocation6 + $0x678] ss:$20 sps:$4 sm:$0xff]   ;;  %vm123_vm3 = vcmask 713728  }
0x10bb   :  { %10527 = vmatpush1.bf16.msra.mxu0 %v14760_v52  ;;  %v14771_v52 = vld [vmem:[%s17617_s13 + $0x19c] sm:$0xff]  }
0x10bc   :  { %10528 = vmatprep.subr.bf16.mxu0 %v14907_v0 }
0x10bf   :  { %10529 = vmatpush1.bf16.msra.mxu0 %v14761_v13  ;;  %v14772_v13 = vld [vmem:[%s17617_s13 + $0x15c] sm:$0xff]  }
0x10c0   :  { %10530 = vmatprep.subr.bf16.mxu0 %v14907_v0 }
0x10c3   :  { %10531 = vmatpush1.bf16.msra.mxu0 %v14762_v51  ;;  %v14773_v51 = vld [vmem:[%s17617_s13 + $0x194] sm:$0xff]  }
0x10c4   :  { %10532 = vmatprep.subr.bf16.mxu0 %v14907_v0 }
0x10c7   :  { %10533 = vmatpush1.bf16.msra.mxu0 %v14763_v54  ;;  %v14774_v54 = vld [vmem:[%s17617_s13 + $0x254] ss:$0 sps:$4 sm:$0xff]  }
0x10c8   :  { %10534 = vmatprep.subr.bf16.mxu0 %v14907_v0 }
0x10cb   :  { %10535 = vmatpush1.bf16.msra.mxu0 %v14764_v38  ;;  %v14777_v38 = vld [vmem:[%s17617_s13 + $0x24c] sm:$0xff]  }
0x10cc   :  { %10536 = vmatprep.subr.bf16.mxu0 %v14907_v0 }
0x10cf   :  { %10537 = vmatpush1.bf16.msra.mxu0 %v14765_v30  ;;  %v14775_v30 = vld [vmem:[%s17617_s13 + $0x154] sm:$0xff]  }
0x10d0   :  { %10538 = vmatprep.subr.bf16.mxu0 %v14907_v0 }
0x10d3   :  { %10539 = vmatpush1.bf16.msra.mxu0 %v14766_v58  ;;  %v11415_v58 = vsel %vm5493_vm4, %v14774_v54, 0 }
0x10d4   :  { %10552 = vmatprep.subr.bf16.mxu0 %v14907_v0 }
0x10d6   :  { %v9037_v10 = vpop.f32.mrf.mxu0 }
0x10d7   :  { %v9080_v23 = vpop.f32.mrf.mxu1  ;;  %10553 = vmatpush2.bf16.msra.mxu0 %v14767_v25  ;;  %v9038_v60 = vadd.f32 %v9037_v10, %v17095_v15  ;;  %v14776_v25 = vld [vmem:[%s17617_s13 + $0x18c] sm:$0xff]   ;;  %v14780_v10 = vld [vmem:[%s17617_s13 + $0x244] sm:$0xff]  }
0x10d8   :  { %v9081_v43 = vadd.f32 %v9080_v23, %v8655_v35  ;;  %v9039_v19 = vpop.f32.mrf.mxu0  ;;  %10554 = vmatprep.subr.bf16.mxu0 %v14907_v0  ;;  %v14778_v23 = vld [vmem:[%s17617_s13 + $0x14c] sm:$0xff]  }
0x10d9   :  { %v9082_v27 = vpop.f32.mrf.mxu1  ;;  %v9040_v26 = vadd.f32 %v9039_v19, %v17097_v31  ;;  %v14781_v19 = vld [vmem:[%s17617_s13 + $0x144] sm:$0xff]  }
0x10da   :  { %v9041_v3 = vpop.f32.mrf.mxu0  ;;  %v14782_v27 = vld [vmem:[%s17617_s13 + $0x17c] sm:$0xff]  }
0x10db   :  { %v9083_v7 = vpop.f32.mrf.mxu1  ;;  %10555 = vmatpush2.bf16.msra.mxu0 %v14768_v48  ;;  %v9042_v16 = vadd.f32 %v9041_v3, %v17099_v57  ;;  %v14779_v48 = vld [vmem:[%s17617_s13 + $0x184] sm:$0xff]   ;;  %v14786_v3 = vld [vmem:[%s17617_s13 + $0x234] sm:$0xff]  }
0x10dc   :  { %v9084_v46 = vadd.f32 %v9083_v7, %v8658_v42  ;;  %v9043_v40 = vpop.f32.mrf.mxu0  ;;  %13828 = vmatprep.subr.msk.bf16.mxu0 %vm5493_vm4, %v14774_v54  ;;  %v14784_v7 = vld [vmem:[%s17617_s13 + $0x13c] sm:$0xff]  }
0x10dd   :  { %v9044_v5 = vadd.f32 %v9043_v40, %v17101_v11  ;;  %v9085_v28 = vpop.f32.mrf.mxu1  ;;  %v14789_v40 = vld [vmem:[%s17617_s13 + $0x22c] sm:$0xff]  }
0x10de   :  { %10557 = vmatmul.mubr.bf16.vlgmr.msra.gmra.mxu0 %v10156_v2  ;;  %v14881_v2 = vld [vmem:[#allocation5 + $0xa0] sm:$0xff]  ;;  %v14788_v28 = vld [vmem:[%s17617_s13 + $0x16c] sm:$0xff]  }
0x10df   :  { %124 = vst.msk [vmem:[#allocation5 + $0x138] sm:$0x3] %vm123_vm3, %v14881_v2  ;;  %13795 = vmatpush3.bf16.msra.mxu0 %v11415_v58 }
0x10e0   :  { %13796 = vmatprep.subr.bf16.mxu0 %v14777_v38 }
0x10e3   :  { %13797 = vmatpush3.bf16.msra.mxu0 %v14777_v38 }
0x10e4   :  { %13798 = vmatprep.subr.bf16.mxu0 %v14780_v10 }
0x10e7   :  { %13799 = vmatpush3.bf16.msra.mxu0 %v14780_v10 }
0x10fe   :  { %v9488_v22 = vpop.f32.mrf.mxu0 }
0x10ff   :  { %v9581_v44 = vadd.f32 %v9488_v22, %v17103_v33  ;;  %v9531_v6 = vpop.f32.mrf.mxu1  ;;  %v14790_v22 = vld [vmem:[%s17617_s13 + $0x12c] sm:$0xff]  }
0x1100   :  { %v17126_v63 = vadd.f32 %v9531_v6, %v9038_v60  ;;  %v9490_v0 = vpop.f32.mrf.mxu0  ;;  %v14792_v60 = vld [vmem:[%s17617_s13 + $0x78] sm:$0xff]  }
0x1101   :  { %v9582_v14 = vadd.f32 %v9490_v0, %v17105_v37  ;;  %v9533_v17 = vpop.f32.mrf.mxu1 }
0x1102   :  { %v17130_v1 = vadd.f32 %v9533_v17, %v9040_v26  ;;  %v9492_v11 = vpop.f32.mrf.mxu0 }
0x1103   :  { %v9586_v29 = vadd.f32 %v9492_v11, %v17107_v34  ;;  %v9535_v15 = vpop.f32.mrf.mxu1 }
0x1104   :  { %v17133_v35 = vadd.f32 %v9535_v15, %v9042_v16  ;;  %v9494_v9 = vpop.f32.mrf.mxu0 }
0x1105   :  { %v9587_v33 = vadd.f32 %v9494_v9, %v9001_v45  ;;  %v9537_v24 = vpop.f32.mrf.mxu1  ;;  %v14770_v45 = vld [vmem:[%s17617_s13 + $0x164] sm:$0xff]  }
0x1106   :  { %v17135_v31 = vadd.f32 %v9537_v24, %v9044_v5  ;;  %13467 = vmatpush3.bf16.msra.mxu1 %v14770_v45  ;;  %v14787_v5 = vld [vmem:[%s17617_s13 + $0x134] sm:$0xff]   ;;  %v17232_v9 = vld [vmem:[%s17616_s12] sm:$0x1f] }
0x1107   :  { %13468 = vmatprep.subr.bf16.mxu1 %v14771_v52  ;;  %v10580_v24 = vrot.slane %v17232_v9, %v15172_v4  ;;  %v10592_v4 = vrot.slane %v17232_v9, %v4642_v12 }
0x110a   :  { %13469 = vmatpush3.bf16.msra.mxu1 %v14772_v13 }
0x110b   :  { %13470 = vmatprep.subr.bf16.mxu1 %v14773_v51 }
0x110e   :  { %13471 = vmatpush3.bf16.msra.mxu1 %v14775_v30 }
0x110f   :  { %13472 = vmatprep.subr.bf16.mxu1 %v14776_v25 }
0x1112   :  { %13473 = vmatpush3.bf16.msra.mxu1 %v14778_v23 }
0x1113   :  { %13474 = vmatprep.subr.bf16.mxu1 %v14779_v48 }
0x1116   :  { %13475 = vmatpush3.bf16.msra.mxu1 %v14781_v19 }
0x1117   :  { %13476 = vmatprep.subr.bf16.mxu1 %v14782_v27 }
0x111a   :  { %13477 = vmatpush3.bf16.msra.mxu1 %v14784_v7 }
0x1126   :  { %v9574_v32 = vpop.f32.mrf.mxu0 }
0x1127   :  { %v17137_v36 = vadd.f32 %v9574_v32, %v9081_v43  ;;  %v9968_v21 = vpop.f32.mrf.mxu1  ;;  %v14783_v43 = vld [vmem:[%s17617_s13 + $0x23c] sm:$0xff]  }
0x1128   :  { %v17139_v62 = vadd.f32 %v9968_v21, %v9581_v44  ;;  %v9576_v57 = vpop.f32.mrf.mxu0  ;;  %13800 = vmatprep.subr.bf16.mxu0 %v14783_v43  ;;  %v14791_v44 = vld [vmem:[%s17617_s13 + $0x224] sm:$0xff]   ;;  %v10588_v21 = vrot.slane %v17232_v9, %v15186_v39 }
0x1129   :  { %v9970_v59 = vpop.f32.mrf.mxu1  ;;  %13801 = vmatpush3.bf16.msra.mxu0 %v14783_v43 }
0x112a   :  { %v17141_v37 = vadd.f32 %v9970_v59, %v9582_v14  ;;  %v9577_v18 = vpop.f32.mrf.mxu0  ;;  %13802 = vmatprep.subr.bf16.mxu0 %v14786_v3 }
0x112b   :  { %v17143_v42 = vadd.f32 %v9577_v18, %v9084_v46  ;;  %v9972_v49 = vpop.f32.mrf.mxu1  ;;  %v14785_v46 = vld [vmem:[%s17617_s13 + $0x174] sm:$0xff]   ;;  %v10584_v18 = vrot.slane %v17232_v9, %v15175_v8 }
0x112c   :  { %v17145_v34 = vadd.f32 %v9972_v49, %v9586_v29  ;;  %v9579_v41 = vpop.f32.mrf.mxu0  ;;  %13478 = vmatprep.subr.bf16.mxu1 %v14785_v46 }
0x112d   :  { %v9974_v50 = vpop.f32.mrf.mxu1  ;;  %13803 = vmatpush3.bf16.msra.mxu0 %v14786_v3  ;;  %13479 = vmatpush3.bf16.msra.mxu1 %v14787_v5 }
0x112e   :  { %v17147_v56 = vadd.f32 %v9974_v50, %v9587_v33  ;;  %13804 = vmatprep.subr.bf16.mxu0 %v14789_v40  ;;  %13480 = vmatprep.subr.bf16.mxu1 %v14788_v28 }
0x1131   :  { %13805 = vmatpush3.bf16.msra.mxu0 %v14789_v40  ;;  %13481 = vmatpush3.bf16.msra.mxu1 %v14790_v22 }
0x1132   :  { %13530 = vmatprep.subr.bf16.mxu0 %v14792_v60  ;;  %13494 = vmatprep.subr.bf16.mxu1 %v14791_v44 }
0x114e   :  { %v10011_v11 = vpop.f32.mrf.mxu0 }
0x114f   :  { %v10054_v6 = vpop.f32.mrf.mxu1  ;;  %v10063_v32 = vadd.f32 %v10011_v11, %v17126_v63 }
0x1150   :  { %v17224_v26 = vadd.f32 %v10054_v6, %v17137_v36  ;;  %v10013_v29 = vpop.f32.mrf.mxu0 }
0x1151   :  { %v10056_v0 = vpop.f32.mrf.mxu1 }
0x1152   :  { %v10015_v15 = vpop.f32.mrf.mxu0 }
0x1153   :  { %v10057_v14 = vpop.f32.mrf.mxu1  ;;  %v10068_v39 = vadd.f32 %v10015_v15, %v17133_v35 }
0x1154   :  { %v17227_v17 = vadd.f32 %v10057_v14, %v17143_v42  ;;  %v10017_v33 = vpop.f32.mrf.mxu0  ;;  %v10064_v42 = vadd.f32 %v10013_v29, %v17130_v1 }
0x1155   :  { %v10059_v16 = vpop.f32.mrf.mxu1  ;;  %v10069_v1 = vadd.f32 %v10017_v33, %v17135_v31 }
0x1176   :  { %v10472_v36 = vpop.f32.mrf.mxu0 }
0x1177   :  { %v10565_v57 = vadd.f32 %v10472_v36, %v17139_v62  ;;  %v10515_v59 = vpop.f32.mrf.mxu1 }
0x1178   :  { %v10567_v49 = vadd.f32 %v10515_v59, %v10063_v32  ;;  %v10474_v41 = vpop.f32.mrf.mxu0 }
0x1179   :  { %v10602_v50 = vadd.f32 %v10580_v24, %v10565_v57  ;;  %v10566_v63 = vadd.f32 %v10474_v41, %v17141_v37  ;;  %v10517_v53 = vpop.f32.mrf.mxu1 }
0x117a   :  { %v10604_v45 = vadd.f32 %v10588_v21, %v10567_v49  ;;  %v10568_v62 = vadd.f32 %v10517_v53, %v10064_v42  ;;  %v10476_v2 = vpop.f32.mrf.mxu0  ;;  %v10596_v42 = vrot.slane %v17232_v9, %v4646_v20 }
0x117b   :  { %v10603_v52 = vadd.f32 %v10584_v18, %v10566_v63  ;;  %v10570_v8 = vadd.f32 %v10476_v2, %v17145_v34  ;;  %v10519_v13 = vpop.f32.mrf.mxu1  ;;  %v10612_v30 = vmax.f32 %v10602_v50, 0.0 }
0x117c   :  { %v10605_v51 = vadd.f32 %v10592_v4, %v10568_v62  ;;  %v10572_v54 = vadd.f32 %v10519_v13, %v10068_v39  ;;  %v10478_v38 = vpop.f32.mrf.mxu0  ;;  %v10614_v10 = vmax.f32 %v10604_v45, 0.0 }
0x117d   :  { %v10613_v12 = vmax.f32 %v10603_v52, 0.0  ;;  %v10607_v58 = vadd.f32 %v10580_v24, %v10570_v8  ;;  %v10571_v37 = vadd.f32 %v10478_v38, %v17147_v56  ;;  %v10521_v25 = vpop.f32.mrf.mxu1 }
0x117e   :  { %v10615_v35 = vmax.f32 %v10605_v51, 0.0  ;;  %v10573_v23 = vadd.f32 %v10521_v25, %v10069_v1  ;;  %v10609_v19 = vadd.f32 %v10588_v21, %v10572_v54 }
0x117f   :  { %v10627_v48 = vcombine.low %v10612_v30, %v10613_v12  ;;  %v10701_v43 = vcombine.high %v10612_v30, %v10613_v12  ;;  %v10608_v27 = vadd.f32 %v10584_v18, %v10571_v37  ;;  %v10617_v40 = vmax.f32 %v10607_v58, 0.0 }
0x1180   :  { %v10628_v34 = vcombine.low %v10614_v10, %v10615_v35  ;;  %v10702_v3 = vcombine.high %v10614_v10, %v10615_v35  ;;  %v10610_v7 = vadd.f32 %v10592_v4, %v10573_v23  ;;  %v10619_v22 = vmax.f32 %v10609_v19, 0.0 }
0x1181   :  { %v10635_v31 = vrot.slane %v10627_v48, %v15666_v47  ;;  %v10710_v46 = vrot.slane %v10701_v43, %v15666_v47  ;;  %v10618_v5 = vmax.f32 %v10608_v27, 0.0 }
0x1182   :  { %v10642_v28 = vrot.slane %v10628_v34, %v15666_v47  ;;  %v10717_v56 = vrot.slane %v10702_v3, %v15666_v47  ;;  %v10620_v60 = vmax.f32 %v10610_v7, 0.0 }
0x1183   :  { %v10781_v44 = vcombine.low %v10617_v40, %v10618_v5  ;;  %v10855_v6 = vcombine.high %v10617_v40, %v10618_v5 }
0x1184   :  { %v10650_v0 = vcombine.low %v10635_v31, %v10642_v28  ;;  %v10670_v14 = vcombine.high %v10635_v31, %v10642_v28  ;;  %v10725_v16 = vcombine.low %v10710_v46, %v10717_v56  ;;  %v10745_v11 = vcombine.high %v10710_v46, %v10717_v56 }
0x1185   :  { %v10789_v29 = vrot.slane %v10781_v44, %v15666_v47  ;;  %v17257_v15 = vrot.slane %v10855_v6, %v15666_v47  ;;  %v10782_v33 = vcombine.low %v10619_v22, %v10620_v60  ;;  %v10856_v24 = vcombine.high %v10619_v22, %v10620_v60 }
0x1186   :  { %v10657_v8 = vrot.slane %v10650_v0, %v15666_v47  ;;  %v10732_v1 = vrot.slane %v10725_v16, %v15666_v47  ;;  %v10753_v51 = vrot.slane %v10745_v11, %v15666_v47 }
0x1187   :  { %v10796_v32 = vrot.slane %v10782_v33, %v15666_v47  ;;  %v17261_v36 = vrot.slane %v10856_v24, %v15666_v47 }
0x1189   :  { %v10804_v21 = vcombine.low %v10789_v29, %v10796_v32  ;;  %v10824_v57 = vcombine.high %v10789_v29, %v10796_v32  ;;  %v10879_v59 = vcombine.low %v17257_v15, %v17261_v36  ;;  %v10899_v18 = vcombine.high %v17257_v15, %v17261_v36 }
0x118b   :  { %v10811_v37 = vrot.slane %v10804_v21, %v15666_v47  ;;  %v10832_v3 = vrot.slane %v10824_v57, %v15666_v47  ;;  %v10886_v5 = vrot.slane %v10879_v59, %v15666_v47  ;;  %v10907_v6 = vrot.slane %v10899_v18, %v15666_v47 }
0x119e   :  { %v10558_v49 = vpop.f32.mrf.mxu0 }
0x119f   :  { %v10569_v41 = vadd.f32 %v10558_v49, %v17224_v26  ;;  %v10678_v26 = vrot.slane %v10670_v14, %v15666_v47 }
0x11a0   :  { %v10560_v4 = vpop.f32.mrf.mxu0 }
0x11a1   :  { %v10606_v50 = vadd.f32 %v10596_v42, %v10569_v41 }
0x11a2   :  { %v10561_v63 = vpop.f32.mrf.mxu0 }
0x11a3   :  { %v10616_v53 = vmax.f32 %v10606_v50, 0.0  ;;  %v10574_v39 = vadd.f32 %v10561_v63, %v17227_v17 }
0x11a4   :  { %v10563_v45 = vpop.f32.mrf.mxu0 }
0x11a5   :  { %v10649_v62 = vrot.slane %v10616_v53, %v15666_v47  ;;  %v10703_v2 = vcombine.high %v10616_v53, %v10616_v53  ;;  %v10611_v52 = vadd.f32 %v10596_v42, %v10574_v39 }
0x11a7   :  { %v10664_v61 = vrot.slane %v10649_v62, %v15666_v47  ;;  %v10671_v13 = vcombine.high %v10649_v62, %v10649_v62  ;;  %v10724_v20 = vrot.slane %v10703_v2, %v15666_v47  ;;  %v10621_v9 = vmax.f32 %v10611_v52, 0.0 }
0x11a9   :  { %v10665_v17 = vcombine.low %v10657_v8, %v10664_v61  ;;  %v10685_v54 = vrot.slane %v10671_v13, %v15666_v47  ;;  %v10691_v38 = vcombine.high %v10657_v8, %v10664_v61  ;;  %v10739_v30 = vrot.slane %v10724_v20, %v15666_v47 }
0x11aa   :  { %v10746_v12 = vcombine.high %v10724_v20, %v10724_v20  ;;  %v10803_v58 = vrot.slane %v10621_v9, %v15666_v47  ;;  %v10857_v25 = vcombine.high %v10621_v9, %v10621_v9 }
0x11ab   :  { %10668 = vst.msk [vmem:[#allocation5 + $0x7d] ss:$8 sm:$0xf] %vm15999_vm5, %v10665_v17  ;;  %10669 = vst.msk [vmem:[#allocation5 + $0x7d] ss:$8 sm:$0x10] %vm15999_vm5, %v10665_v17  ;;  %v10686_v10 = vcombine.low %v10678_v26, %v10685_v54  ;;  %v10696_v35 = vcombine.high %v10678_v26, %v10685_v54  ;;  %v10740_v23 = vcombine.low %v10732_v1, %v10739_v30 }
0x11ac   :  { %10694 = vst.msk [vmem:[#allocation5 + $0xa1] ss:$8 sm:$0xf] %vm15999_vm5, %v10691_v38  ;;  %10695 = vst.msk [vmem:[#allocation5 + $0xa1] ss:$8 sm:$0x10] %vm15999_vm5, %v10691_v38  ;;  %v10766_v48 = vcombine.high %v10732_v1, %v10739_v30  ;;  %v10760_v43 = vrot.slane %v10746_v12, %v15666_v47  ;;  %v10818_v19 = vrot.slane %v10803_v58, %v15666_v47 }
0x11ad   :  { %v10825_v27 = vcombine.high %v10803_v58, %v10803_v58  ;;  %v10878_v34 = vrot.slane %v10857_v25, %v15666_v47  ;;  %10689 = vst.msk [vmem:[#allocation5 + $0x7f] ss:$8 sm:$0xf] %vm15999_vm5, %v10686_v10  ;;  %10690 = vst.msk [vmem:[#allocation5 + $0x7f] ss:$8 sm:$0x10] %vm15999_vm5, %v10686_v10 }
0x11ae   :  { %10699 = vst.msk [vmem:[#allocation5 + $0xa3] ss:$8 sm:$0xf] %vm15999_vm5, %v10696_v35  ;;  %10700 = vst.msk [vmem:[#allocation5 + $0xa3] ss:$8 sm:$0x10] %vm15999_vm5, %v10696_v35  ;;  %v10761_v7 = vcombine.low %v10753_v51, %v10760_v43  ;;  %v10771_v31 = vcombine.high %v10753_v51, %v10760_v43  ;;  %v10819_v46 = vcombine.low %v10811_v37, %v10818_v19 }
0x11af   :  { %10743 = vst.msk [vmem:[#allocation5 + $0xa5] ss:$8 sm:$0xf] %vm15999_vm5, %v10740_v23  ;;  %10744 = vst.msk [vmem:[#allocation5 + $0xa5] ss:$8 sm:$0x10] %vm15999_vm5, %v10740_v23  ;;  %v10839_v40 = vrot.slane %v10825_v27, %v15666_v47  ;;  %v10845_v28 = vcombine.high %v10811_v37, %v10818_v19  ;;  %v10893_v56 = vrot.slane %v10878_v34, %v15666_v47 }
0x11b0   :  { %10769 = vst.msk [vmem:[#allocation5 + $0xc9] ss:$8 sm:$0xf] %vm15999_vm5, %v10766_v48  ;;  %10770 = vst.msk [vmem:[#allocation5 + $0xc9] ss:$8 sm:$0x10] %vm15999_vm5, %v10766_v48  ;;  %v10900_v60 = vcombine.high %v10878_v34, %v10878_v34 }
0x11b1   :  { %10764 = vst.msk [vmem:[#allocation5 + $0xa7] ss:$8 sm:$0xf] %vm15999_vm5, %v10761_v7  ;;  %10765 = vst.msk [vmem:[#allocation5 + $0xa7] ss:$8 sm:$0x10] %vm15999_vm5, %v10761_v7  ;;  %v10840_v22 = vcombine.low %v10832_v3, %v10839_v40  ;;  %v10850_v44 = vcombine.high %v10832_v3, %v10839_v40  ;;  %v10894_v0 = vcombine.low %v10886_v5, %v10893_v56 }
0x11b2   :  { %10774 = vst.msk [vmem:[#allocation5 + $0xcb] ss:$8 sm:$0xf] %vm15999_vm5, %v10771_v31  ;;  %10775 = vst.msk [vmem:[#allocation5 + $0xcb] ss:$8 sm:$0x10] %vm15999_vm5, %v10771_v31  ;;  %v10914_v14 = vrot.slane %v10900_v60, %v15666_v47  ;;  %v10920_v16 = vcombine.high %v10886_v5, %v10893_v56 }
0x11b3   :  { %10822 = vst.msk [vmem:[#allocation5 + $0xcd] ss:$8 sm:$0xf] %vm15999_vm5, %v10819_v46  ;;  %10823 = vst.msk [vmem:[#allocation5 + $0xcd] ss:$8 sm:$0x10] %vm15999_vm5, %v10819_v46 }
0x11b4   :  { %10848 = vst.msk [vmem:[#allocation5 + $0xf1] ss:$8 sm:$0xf] %vm15999_vm5, %v10845_v28  ;;  %10849 = vst.msk [vmem:[#allocation5 + $0xf1] ss:$8 sm:$0x10] %vm15999_vm5, %v10845_v28  ;;  %v10915_v47 = vcombine.low %v10907_v6, %v10914_v14 }
0x11b5   :  { %10843 = vst.msk [vmem:[#allocation5 + $0xcf] ss:$8 sm:$0xf] %vm15999_vm5, %v10840_v22  ;;  %10844 = vst.msk [vmem:[#allocation5 + $0xcf] ss:$8 sm:$0x10] %vm15999_vm5, %v10840_v22 }
0x11b6   :  { %10853 = vst.msk [vmem:[#allocation5 + $0xf3] ss:$8 sm:$0xf] %vm15999_vm5, %v10850_v44  ;;  %10854 = vst.msk [vmem:[#allocation5 + $0xf3] ss:$8 sm:$0x10] %vm15999_vm5, %v10850_v44 }
0x11b7   :  { %10897 = vst.msk [vmem:[#allocation5 + $0xf5] ss:$8 sm:$0xf] %vm15999_vm5, %v10894_v0  ;;  %10898 = vst.msk [vmem:[#allocation5 + $0xf5] ss:$8 sm:$0x10] %vm15999_vm5, %v10894_v0 }
0x11b8   :  { %10923 = vst.msk [vmem:[#allocation5 + $0x119] ss:$8 sm:$0xf] %vm15999_vm5, %v10920_v16  ;;  %10924 = vst.msk [vmem:[#allocation5 + $0x119] ss:$8 sm:$0x10] %vm15999_vm5, %v10920_v16 }
0x11b9   :  { %10918 = vst.msk [vmem:[#allocation5 + $0xf7] ss:$8 sm:$0xf] %vm15999_vm5, %v10915_v47  ;;  %10919 = vst.msk [vmem:[#allocation5 + $0xf7] ss:$8 sm:$0x10] %vm15999_vm5, %v10915_v47 }
0x11ba   :  { %v10926_v11 = vld [vmem:[#allocation5 + $0x80] sm:$0xe0]  ;;  %v11044_v15 = vld [vmem:[#allocation5 + $0x98] sm:$0xc0]  ;;  %v10931_v33 = vld [vmem:[#allocation5 + $0xa8] sm:$0xff] }
0x11bb   :  { %v11041_v29 = vld [vmem:[#allocation5 + $0x80] sm:$0xc0]  ;;  %v11026_v36 = vpack.c.bf16 %v10931_v33, %v10926_v11  ;;  %v11040_v59 = vld [vmem:[#allocation5 + $0x78] sm:$0xc0]  ;;  %v14796_v34 = vld [vmem:[%s17617_s13 + $0x70] sm:$0xff]  }
0x11bc   :  { %v17355_v24 = vld [vmem:[#allocation5 + $0xc0] sm:$0xff]  ;;  %v11126_v21 = vpack.c.bf16 %v10931_v33, %v11041_v29  ;;  %v10936_v42 = vld [vmem:[#allocation5 + $0xd0] sm:$0xff]  ;;  %v10939_v41 = vld [vmem:[#allocation5 + $0xe8] sm:$0xff] }
0x11bd   :  { %v17357_v32 = vld [vmem:[#allocation5 + $0xa0] sm:$0xff]  ;;  %v11129_v57 = vpack.c.bf16 %v17355_v24, %v11044_v15  ;;  %v10935_v55 = vld [vmem:[#allocation5 + $0xc8] sm:$0xff]  ;;  %v11582_v63 = vshrl.u32 %v11026_v36, 16  ;;  %v11585_v52 = vshll.u32 %v11026_v36, 16  ;;  %v14794_v58 = vld [vmem:[%s17617_s13 + $0x38] sm:$0xff]  }
0x11be   :  { %v11125_v18 = vpack.c.bf16 %v17357_v32, %v11040_v59  ;;  %v11153_v39 = vrot.slane %v11126_v21, 3  ;;  %v14793_v12 = vld [vmem:[%s17617_s13 + $0x1e4] sm:$0xff]   ;;  %v14795_v43 = vld [vmem:[%s17617_s13 + $0x21c] sm:$0xff]   ;;  %v14798_v22 = vld [vmem:[%s17617_s13 + $0x30] sm:$0xff]  }
0x11bf   :  { %v11049_v49 = vld [vmem:[#allocation5 + $0x138] sm:$0x3]  ;;  %v11046_v50 = vld [vmem:[#allocation5 + $0x120] sm:$0x3]  ;;  %v11162_v62 = vrot.slane %v11129_v57, 3  ;;  %v11584_v1 = vrot.slane %v11582_v63, 2 }
0x11c0   :  { %v11134_v4 = vpack.c.bf16 %v11049_v49, %v11049_v49  ;;  %v10941_v53 = vld [vmem:[#allocation5 + $0xf8] sm:$0xff]  ;;  %v10944_v45 = vld [vmem:[#allocation5 + $0x110] sm:$0xff]  ;;  %v11150_v20 = vrot.slane %v11125_v18, 3  ;;  %v11131_v26 = vpack.c.bf16 %v11046_v50, %v11046_v50  ;;  %v11587_v51 = vrot.slane %v11585_v52, 3  ;;  %v10943_v19 = vld [vmem:[#allocation5 + $0x108] sm:$0xff] }
0x11c1   :  { %v10940_v2 = vld [vmem:[#allocation5 + $0xf0] sm:$0xff]  ;;  %v11031_v8 = vpack.c.bf16 %v10941_v53, %v10936_v42  ;;  %v17361_v61 = vpack.c.bf16 %v10944_v45, %v10939_v41  ;;  %v11045_v25 = vld [vmem:[#allocation5 + $0x118] sm:$0x3]  ;;  %v10938_v5 = vld [vmem:[#allocation5 + $0xe0] sm:$0xff] }
0x11c2   :  { %v17363_v13 = vpack.c.bf16 %v10940_v2, %v10935_v55  ;;  %v11173_v9 = vrot.slane %v11134_v4, 3  ;;  %v11167_v27 = vrot.slane %v11131_v26, 3  ;;  %v11588_v31 = vor.u32 %v11587_v51, %v11584_v1  ;;  %v17385_v40 = vld [vmem:[#allocation5 + $0xb8] sm:$0xff]  ;;  %v14800_v0 = vld [vmem:[%s17617_s13 + $0x68] sm:$0xff]   ;;  %v11043_v14 = vld [vmem:[#allocation5 + $0x90] sm:$0xc0] }
0x11c3   :  { %v11154_v17 = vrot.slane %v11031_v8, 3  ;;  %v11163_v54 = vrot.slane %v17361_v61, 3  ;;  %v11590_v30 = vshrl.u32 %v11031_v8, 16  ;;  %v11593_v37 = vshll.u32 %v11031_v8, 16  ;;  %v14797_v60 = vld [vmem:[%s17617_s13 + $0x1dc] sm:$0xff]   ;;  %v14799_v6 = vld [vmem:[%s17617_s13 + $0x214] sm:$0xff]  }
0x11c4   :  { %v11151_v38 = vrot.slane %v17363_v13, 3  ;;  %v11130_v46 = vpack.c.bf16 %v11045_v25, %v11045_v25  ;;  %v17396_v44 = vpack.c.bf16 %v10943_v19, %v10938_v5  ;;  %v11128_v47 = vpack.c.bf16 %v17385_v40, %v11043_v14  ;;  %v14801_v29 = vld [vmem:[%s17617_s13 + $0x1d4] sm:$0xff]   ;;  %v14802_v15 = vld [vmem:[%s17617_s13 + $0x28] sm:$0xff]   ;;  %v14804_v59 = vld [vmem:[%s17617_s13 + $0x60] sm:$0xff]  }
0x11c5   :  { %v11155_v10 = vsel %vm9663_vm1, %v11153_v39, %v11154_v17  ;;  %v11164_v35 = vsel %vm9663_vm1, %v11162_v62, %v11163_v54  ;;  %v11174_v48 = vsel %vm9663_vm1, %v11163_v54, %v11173_v9  ;;  %v11592_v3 = vrot.slane %v11590_v30, 2  ;;  %v14803_v36 = vld [vmem:[%s17617_s13 + $0x20c] sm:$0xff]   ;;  %v14806_v49 = vld [vmem:[%s17617_s13 + $0x20] sm:$0xff]   ;;  %v14808_v55 = vld [vmem:[%s17617_s13 + $0x58] sm:$0xff]  }
0x11c6   :  { %v11152_v23 = vsel %vm9663_vm1, %v11150_v20, %v11151_v38  ;;  %11449 = vmatprep.mubr.bf16.mxu1 %v11155_v10  ;;  %13806 = vmatprep.mubr.msk.bf16.mxu0 %vm87_vm15, %v11164_v35  ;;  %v11595_v7 = vrot.slane %v11593_v37, 3  ;;  %v11168_v28 = vsel %vm9663_vm1, %v11154_v17, %v11167_v27  ;;  %v11165_v11 = vrot.slane %v11130_v46, 3  ;;  %v14805_v42 = vld [vmem:[%s17617_s13 + $0x1cc] sm:$0xff]   ;;  %v14807_v41 = vld [vmem:[%s17617_s13 + $0x204] sm:$0xff]   ;;  %v14810_v50 = vld [vmem:[%s17617_s13 + $0x18] sm:$0xff]  }
0x11c7   :  { %11450 = vmatmul.mubr.bf16.vlgmr.msra.gmra.mxu1 %v11152_v23  ;;  %13807 = vmatmul.mubr.msk.bf16.vlgmr.msra.gmra.mxu0 %vm87_vm15, %v11174_v48  ;;  %v11160_v33 = vrot.slane %v17396_v44, 3  ;;  %v11159_v57 = vrot.slane %v11128_v47, 3  ;;  %v14809_v4 = vld [vmem:[%s17617_s13 + $0x1c4] sm:$0xff]   ;;  %v14811_v63 = vld [vmem:[%s17617_s13 + $0x1fc] sm:$0xff]   ;;  %v14812_v53 = vld [vmem:[%s17617_s13 + $0x50] sm:$0xff]   ;;  %v11573_v20 = vshrl.u32 %v17363_v13, 16 }
0x11c8   :  { %13495 = vmatpush3.bf16.msra.mxu1 %v14793_v12  ;;  %13531 = vmatpush3.bf16.msra.mxu0 %v14794_v58  ;;  %v17388_v56 = vor.u32 %v11595_v7, %v11592_v3  ;;  %v11166_v21 = vsel %vm9663_vm1, %v11151_v38, %v11165_v11  ;;  %v10925_v39 = vld [vmem:[#allocation5 + $0x78] sm:$0xe0]  ;;  %v10946_v45 = vld [vmem:[#allocation5 + $0x120] sm:$0x1]  ;;  %v14814_v52 = vld [vmem:[%s17617_s13 + $0x10] sm:$0xff]   ;;  %v11576_v9 = vshll.u32 %v17363_v13, 16 }
0x11c9   :  { %11457 = vmatprep.mubr.bf16.mxu1 %v11168_v28  ;;  %13496 = vmatprep.subr.bf16.mxu1 %v14795_v43  ;;  %v11161_v18 = vsel %vm9663_vm1, %v11159_v57, %v11160_v33  ;;  %v11025_v62 = vpack.c.bf16 %v17357_v32, %v10925_v39  ;;  %v14813_v2 = vld [vmem:[%s17617_s13 + $0x1bc] sm:$0xff]   ;;  %v14815_v8 = vld [vmem:[%s17617_s13 + $0x1f4] sm:$0xff]   ;;  %v14816_v32 = vld [vmem:[%s17617_s13 + $0x48] sm:$0xff]   ;;  %v11036_v26 = vpack.c.bf16 %v10946_v45, %v10946_v45  ;;  %v11575_v48 = vrot.slane %v11573_v20, 2 }
0x11ca   :  { %13532 = vmatprep.subr.bf16.mxu0 %v14796_v34  ;;  %v11597_v16 = vsel %vm9155_vm0, %v11588_v31, %v17388_v56  ;;  %v10945_v1 = vld [vmem:[#allocation5 + $0x118] sm:$0x1]  ;;  %v10942_v17 = vld [vmem:[#allocation5 + $0x100] sm:$0xff]  ;;  %v14818_v54 = vld [vmem:[%s17617_s13 + $0x8] sm:$0xff]   ;;  %v11578_v43 = vrot.slane %v11576_v9, 3 }
0x11cb   :  { %11948 = vmatprep.mubr.bf16.mxu0 %v11597_v16  ;;  %v14817_v51 = vld [vmem:[%s17617_s13 + $0x1b4] sm:$0xff]   ;;  %v14819_v38 = vld [vmem:[%s17617_s13 + $0x1ec] sm:$0xff]   ;;  %v14820_v13 = vld [vmem:[%s17617_s13 + $0x40] sm:$0xff]   ;;  %v11565_v30 = vshrl.u32 %v11025_v62, 16  ;;  %v11568_v12 = vshll.u32 %v11025_v62, 16  ;;  %v11035_v10 = vpack.c.bf16 %v10945_v1, %v10945_v1  ;;  %v11655_v19 = vshll.u32 %v11036_v26, 16 }
0x11cc   :  { %13497 = vmatpush3.bf16.msra.mxu1 %v14797_v60  ;;  %13533 = vmatpush3.bf16.msra.mxu0 %v14798_v22  ;;  %v17475_v58 = vld [vmem:[#allocation5 + $0xb0] sm:$0xff]  ;;  %v10937_v37 = vld [vmem:[#allocation5 + $0xd8] sm:$0xff]  ;;  %v14822_v27 = vld [vmem:[%s17617_s13] sm:$0xff]   ;;  %v11579_v16 = vor.u32 %v11578_v43, %v11575_v48 }
0x11cd   :  { %13498 = vmatprep.subr.bf16.mxu1 %v14799_v6  ;;  %13534 = vmatprep.subr.bf16.mxu0 %v14800_v0  ;;  %v11048_v25 = vld [vmem:[#allocation5 + $0x130] sm:$0x3]  ;;  %v17480_v23 = vpack.c.bf16 %v10942_v17, %v10937_v37  ;;  %v11042_v34 = vld [vmem:[#allocation5 + $0x88] sm:$0xc0]  ;;  %v14824_v3 = vld [vmem:[%s17617_s13 + $0x128] ss:$0 sps:$4 sm:$0xff]  }
0x11ce   :  { %v14821_v35 = vld [vmem:[%s17617_s13 + $0x1ac] sm:$0xff]   ;;  %v10929_v7 = vld [vmem:[#allocation5 + $0x98] sm:$0xe0]  ;;  %v10928_v31 = vld [vmem:[#allocation5 + $0x90] sm:$0xe0]  ;;  %v11127_v46 = vpack.c.bf16 %v17475_v58, %v11042_v34  ;;  %v11567_v5 = vrot.slane %v11565_v30, 2  ;;  %v11133_v60 = vpack.c.bf16 %v11048_v25, %v11048_v25 }
0x11cf   :  { %11458 = vmatmul.mubr.bf16.gmra.mxu1 %v11166_v21  ;;  %v11570_v28 = vrot.slane %v11568_v12, 3  ;;  %v11029_v22 = vpack.c.bf16 %v17355_v24, %v10929_v7  ;;  %v11028_v6 = vpack.c.bf16 %v17385_v40, %v10928_v31  ;;  %v14823_v0 = vld [vmem:[%s17617_s13 + $0xf8] sm:$0xff]   ;;  %v11157_v14 = vrot.slane %v17480_v23, 3  ;;  %v14826_v39 = vld [vmem:[%s17617_s13 + $0xf0] sm:$0xff]   ;;  %v14827_v45 = vld [vmem:[%s17617_s13 + $0x120] sm:$0xff]  }
0x11d0   :  { %13499 = vmatpush3.bf16.msra.mxu1 %v14801_v29  ;;  %13535 = vmatpush3.bf16.msra.mxu0 %v14802_v15  ;;  %v11657_v47 = vrot.slane %v11655_v19, 3  ;;  %v11650_v11 = vshll.u32 %v11035_v10, 16  ;;  %v11624_v29 = vshrl.u32 %v17396_v44, 16  ;;  %v11627_v15 = vshll.u32 %v17396_v44, 16  ;;  %v14829_v1 = vld [vmem:[%s17617_s13 + $0xe8] sm:$0xff]   ;;  %v14832_v10 = vld [vmem:[%s17617_s13 + $0xe0] sm:$0xff]  }
0x11d1   :  { %11498 = vmatprep.mubr.bf16.mxu1 %v11161_v18  ;;  %13500 = vmatprep.subr.bf16.mxu1 %v14803_v36  ;;  %v11641_v36 = vshrl.u32 %v17361_v61, 16  ;;  %v11644_v24 = vshll.u32 %v17361_v61, 16  ;;  %v11156_v40 = vrot.slane %v11127_v46, 3  ;;  %v11571_v21 = vor.u32 %v11570_v28, %v11567_v5  ;;  %v10949_v19 = vld [vmem:[#allocation5 + $0x138] sm:$0x1]  ;;  %v14838_v46 = vld [vmem:[%s17617_s13 + $0xd0] sm:$0xff]  }
0x11d2   :  { %13536 = vmatprep.subr.bf16.mxu0 %v14804_v59  ;;  %v11171_v57 = vrot.slane %v11133_v60, 3  ;;  %v14825_v59 = vld [vmem:[%s17617_s13 + $0xb8] sm:$0xff]   ;;  %v11914_v18 = vsel %vm5493_vm4, %v14824_v3, 0  ;;  %v11626_v62 = vrot.slane %v11624_v29, 2  ;;  %v11652_v26 = vrot.slane %v11650_v11, 3  ;;  %v14839_v5 = vld [vmem:[%s17617_s13 + $0x100] sm:$0xff]  }
0x11d3   :  { %v11158_v61 = vsel %vm9663_vm1, %v11156_v40, %v11157_v14  ;;  %v14835_v34 = vld [vmem:[%s17617_s13 + $0xd8] sm:$0xff]   ;;  %v11039_v7 = vpack.c.bf16 %v10949_v19, %v10949_v19  ;;  %v10927_v60 = vld [vmem:[#allocation5 + $0x88] sm:$0xe0]  ;;  %v11610_v11 = vshll.u32 %v17480_v23, 16 }
0x11d4   :  { %13501 = vmatpush3.bf16.msra.mxu1 %v14805_v42  ;;  %13537 = vmatpush3.bf16.msra.mxu0 %v14806_v49  ;;  %v11047_v42 = vld [vmem:[#allocation5 + $0x128] sm:$0x3]  ;;  %v11616_v49 = vshrl.u32 %v11028_v6, 16  ;;  %v11653_v25 = vsel %vm9155_vm0, %v11579_v16, %v11652_v26  ;;  %v14837_v31 = vld [vmem:[%s17617_s13 + $0x98] sm:$0xff]  }
0x11d5   :  { %13502 = vmatprep.subr.bf16.mxu1 %v14807_v41  ;;  %13538 = vmatprep.subr.bf16.mxu0 %v14808_v55  ;;  %v11619_v41 = vshll.u32 %v11028_v6, 16  ;;  %v11633_v55 = vshrl.u32 %v11029_v22, 16  ;;  %v11132_v44 = vpack.c.bf16 %v11047_v42, %v11047_v42  ;;  %v11670_v28 = vshll.u32 %v11039_v7, 16  ;;  %v14840_v6 = vld [vmem:[%s17617_s13 + $0x90] sm:$0xff]  }
0x11d7   :  { %v11635_v20 = vrot.slane %v11633_v55, 2 }
0x11d8   :  { %13503 = vmatpush3.bf16.msra.mxu1 %v14809_v4  ;;  %13539 = vmatpush3.bf16.msra.mxu0 %v14810_v50  ;;  %v11636_v4 = vshll.u32 %v11029_v22, 16  ;;  %v11580_v50 = vsel %vm9155_vm0, %v11571_v21, %v11579_v16  ;;  %v11027_v22 = vpack.c.bf16 %v17475_v58, %v10927_v60  ;;  %v11672_v16 = vrot.slane %v11670_v28, 3  ;;  %v14842_v58 = vld [vmem:[%s17617_s13 + $0x88] sm:$0xff]  }
0x11d9   :  { %13504 = vmatprep.subr.bf16.mxu1 %v14811_v63  ;;  %13540 = vmatprep.subr.bf16.mxu0 %v14812_v53  ;;  %v11172_v63 = vsel %vm9663_vm1, %v11160_v33, %v11171_v57  ;;  %v11658_v53 = vsel %vm9155_vm0, %v17388_v56, %v11657_v47  ;;  %v14828_v56 = vld [vmem:[%s17617_s13 + $0xb0] sm:$0xff]   ;;  %v11618_v33 = vrot.slane %v11616_v49, 2  ;;  %v11607_v47 = vshrl.u32 %v17480_v23, 16 }
0x11da   :  { %v11638_v9 = vrot.slane %v11636_v4, 3  ;;  %v11612_v57 = vrot.slane %v11610_v11, 3 }
0x11db   :  { %v11609_v21 = vrot.slane %v11607_v47, 2 }
0x11dc   :  { %13505 = vmatpush3.bf16.msra.mxu1 %v14813_v2  ;;  %13541 = vmatpush3.bf16.msra.mxu0 %v14814_v52  ;;  %v11629_v2 = vrot.slane %v11627_v15, 3  ;;  %v11643_v52 = vrot.slane %v11641_v36, 2  ;;  %v11639_v12 = vor.u32 %v11638_v9, %v11635_v20  ;;  %v11599_v15 = vshrl.u32 %v11027_v22, 16 }
0x11dd   :  { %13506 = vmatprep.subr.bf16.mxu1 %v14815_v8  ;;  %13542 = vmatprep.subr.bf16.mxu0 %v14816_v32  ;;  %v11646_v8 = vrot.slane %v11644_v24, 3  ;;  %v11621_v32 = vrot.slane %v11619_v41, 3  ;;  %v11602_v36 = vshll.u32 %v11027_v22, 16  ;;  %v14843_v24 = vld [vmem:[%s17617_s13 + $0xc0] sm:$0xff]   ;;  %v11613_v41 = vor.u32 %v11612_v57, %v11609_v21 }
0x11de   :  { %v17526_v17 = vor.u32 %v11629_v2, %v11626_v62  ;;  %v11601_v42 = vrot.slane %v11599_v15, 2 }
0x11df   :  { %v11622_v30 = vor.u32 %v11621_v32, %v11618_v33  ;;  %v11604_v49 = vrot.slane %v11602_v36, 3 }
0x11e0   :  { %13507 = vmatpush3.bf16.msra.mxu1 %v14817_v51  ;;  %13543 = vmatpush3.bf16.msra.mxu0 %v14818_v54  ;;  %v14830_v51 = vld [vmem:[%s17617_s13 + $0x118] sm:$0xff]   ;;  %v11647_v54 = vor.u32 %v11646_v8, %v11643_v52 }
0x11e1   :  { %13508 = vmatprep.subr.bf16.mxu1 %v14819_v38  ;;  %13544 = vmatprep.subr.bf16.mxu0 %v14820_v13  ;;  %v11169_v38 = vrot.slane %v11132_v44, 3  ;;  %v14831_v13 = vld [vmem:[%s17617_s13 + $0xa8] sm:$0xff]   ;;  %v11631_v48 = vsel %vm9155_vm0, %v11622_v30, %v17526_v17 }
0x11e2   :  { %v11648_v43 = vsel %vm9155_vm0, %v11639_v12, %v11647_v54  ;;  %v11673_v40 = vsel %vm9155_vm0, %v11647_v54, %v11672_v16 }
0x11e3   :  { %v11170_v37 = vsel %vm9663_vm1, %v11157_v14, %v11169_v38  ;;  %v14841_v14 = vld [vmem:[%s17617_s13 + $0xc8] sm:$0xff]  }
0x11e4   :  { %13509 = vmatpush3.bf16.msra.mxu1 %v14821_v35  ;;  %13545 = vmatpush3.bf16.msra.mxu0 %v14822_v27  ;;  %v14833_v35 = vld [vmem:[%s17617_s13 + $0x110] sm:$0xff]   ;;  %v14834_v27 = vld [vmem:[%s17617_s13 + $0xa0] sm:$0xff]  }
0x11e5   :  { %13558 = vmatprep.subr.bf16.mxu1 %v14823_v0  ;;  %13829 = vmatprep.subr.msk.bf16.mxu0 %vm5493_vm4, %v14824_v3  ;;  %v14836_v3 = vld [vmem:[%s17617_s13 + $0x108] sm:$0xff]   ;;  %v10948_v0 = vld [vmem:[#allocation5 + $0x130] sm:$0x1] }
0x11e6   :  { %v11038_v29 = vpack.c.bf16 %v10948_v0, %v10948_v0 }
0x11e7   :  { %11499 = vmatmul.mubr.bf16.vlgmr.msra.gmra.mxu1 %v11158_v61  ;;  %11949 = vmatmul.mubr.bf16.vlgmr.msra.gmra.mxu0 %v11580_v50  ;;  %v11605_v61 = vor.u32 %v11604_v49, %v11601_v42  ;;  %v13273_v42 = vld [vmem:[%s17618_s14] ss:$0 sm:$0xff] }
0x11e8   :  { %11506 = vmatprep.mubr.bf16.mxu1 %v11172_v63  ;;  %11956 = vmatprep.mubr.bf16.mxu0 %v11658_v53  ;;  %v11665_v23 = vshll.u32 %v11038_v29, 16 }
0x11e9   :  { %13559 = vmatpush3.bf16.msra.mxu1 %v14825_v59  ;;  %13811 = vmatpush3.bf16.msra.mxu0 %v11914_v18  ;;  %v10947_v59 = vld [vmem:[#allocation5 + $0x128] sm:$0x1]  ;;  %v14844_v18 = vld [vmem:[%s17617_s13 + $0x80] sm:$0xff]   ;;  %v11614_v50 = vsel %vm9155_vm0, %v11605_v61, %v11613_v41 }
0x11ea   :  { %13560 = vmatprep.subr.bf16.mxu1 %v14826_v39  ;;  %13812 = vmatprep.subr.bf16.mxu0 %v14827_v45  ;;  %v11037_v55 = vpack.c.bf16 %v10947_v59, %v10947_v59  ;;  %v11667_v4 = vrot.slane %v11665_v23, 3 }
0x11ec   :  { %v11660_v63 = vshll.u32 %v11037_v55, 16  ;;  %v11668_v53 = vsel %vm9155_vm0, %v17526_v17, %v11667_v4 }
0x11ed   :  { %13561 = vmatpush3.bf16.msra.mxu1 %v14828_v56  ;;  %13813 = vmatpush3.bf16.msra.mxu0 %v14827_v45 }
0x11ee   :  { %13562 = vmatprep.subr.bf16.mxu1 %v14829_v1  ;;  %13814 = vmatprep.subr.bf16.mxu0 %v14830_v51  ;;  %v11662_v39 = vrot.slane %v11660_v63, 3 }
0x11ef   :  { %11507 = vmatmul.mubr.bf16.gmra.mxu1 %v11170_v37  ;;  %11957 = vmatmul.mubr.bf16.gmra.mxu0 %v11653_v25 }
0x11f0   :  { %11997 = vmatprep.mubr.bf16.mxu1 %v11631_v48  ;;  %13822 = vmatprep.mubr.msk.bf16.mxu0 %vm87_vm15, %v11648_v43  ;;  %v11663_v45 = vsel %vm9155_vm0, %v11613_v41, %v11662_v39 }
0x11f1   :  { %13563 = vmatpush3.bf16.msra.mxu1 %v14831_v13  ;;  %13815 = vmatpush3.bf16.msra.mxu0 %v14830_v51 }
0x11f2   :  { %13564 = vmatprep.subr.bf16.mxu1 %v14832_v10  ;;  %13816 = vmatprep.subr.bf16.mxu0 %v14833_v35 }
0x11f5   :  { %13565 = vmatpush3.bf16.msra.mxu1 %v14834_v27  ;;  %13817 = vmatpush3.bf16.msra.mxu0 %v14833_v35 }
0x11f6   :  { %13566 = vmatprep.subr.bf16.mxu1 %v14835_v34  ;;  %13818 = vmatprep.subr.bf16.mxu0 %v14836_v3 }
0x11f9   :  { %13567 = vmatpush3.bf16.msra.mxu1 %v14837_v31  ;;  %13819 = vmatpush3.bf16.msra.mxu0 %v14836_v3 }
0x11fa   :  { %13568 = vmatprep.subr.bf16.mxu1 %v14838_v46  ;;  %13820 = vmatprep.subr.bf16.mxu0 %v14839_v5 }
0x11fd   :  { %13569 = vmatpush3.bf16.msra.mxu1 %v14840_v6  ;;  %13821 = vmatpush3.bf16.msra.mxu0 %v14839_v5 }
0x11fe   :  { %13570 = vmatprep.subr.bf16.mxu1 %v14841_v14 }
0x1200   :  { %13823 = vmatmul.mubr.msk.bf16.vlgmr.msra.gmra.mxu0 %vm87_vm15, %v11673_v40 }
0x1201   :  { %13571 = vmatpush3.bf16.msra.mxu1 %v14842_v58 }
0x1202   :  { %13572 = vmatprep.subr.bf16.mxu1 %v14843_v24 }
0x1205   :  { %13573 = vmatpush3.bf16.msra.mxu1 %v14844_v18 }
0x1208   :  { %11998 = vmatmul.mubr.bf16.vlgmr.msra.gmra.mxu1 %v11614_v50 }
0x1209   :  { %12005 = vmatprep.mubr.bf16.mxu1 %v11668_v53 }
0x1210   :  { %12006 = vmatmul.mubr.bf16.gmra.mxu1 %v11663_v45 }
0x1287   :  { %v13482_v62 = vpop.f32.mrf.mxu1  ;;  %v13808_v44 = vpop.f32.mrf.mxu0 }
0x1289   :  { %v13483_v2 = vpop.f32.mrf.mxu1  ;;  %v11549_v33 = vpop.f32.mrf.mxu0 }
0x128a   :  { %v13484_v27 = vadd.f32 %v13483_v2, %v13482_v62 }
0x128b   :  { %v13485_v52 = vpop.f32.mrf.mxu1  ;;  %v13809_v20 = vpop.f32.mrf.mxu0 }
0x128d   :  { %v13486_v8 = vpop.f32.mrf.mxu1  ;;  %v11552_v26 = vpop.f32.mrf.mxu0 }
0x128e   :  { %v13487_v46 = vadd.f32 %v13486_v8, %v13485_v52 }
0x128f   :  { %v13488_v56 = vpop.f32.mrf.mxu1 }
0x1291   :  { %v13489_v32 = vpop.f32.mrf.mxu1 }
0x1292   :  { %v13490_v0 = vadd.f32 %v13489_v32, %v13488_v56 }
0x1293   :  { %v13491_v9 = vpop.f32.mrf.mxu1 }
0x1295   :  { %v13492_v1 = vpop.f32.mrf.mxu1 }
0x1296   :  { %v13493_v21 = vadd.f32 %v13492_v1, %v13491_v9 }
0x12a7   :  { %v13546_v51 = vpop.f32.mrf.mxu0  ;;  %v13510_v54 = vpop.f32.mrf.mxu1 }
0x12a9   :  { %v13547_v17 = vpop.f32.mrf.mxu0  ;;  %v13511_v38 = vpop.f32.mrf.mxu1 }
0x12aa   :  { %v13512_v43 = vadd.f32 %v13511_v38, %v13510_v54  ;;  %v13548_v16 = vadd.f32 %v13547_v17, %v13546_v51 }
0x12ab   :  { %v13549_v13 = vpop.f32.mrf.mxu0  ;;  %v13513_v30 = vpop.f32.mrf.mxu1 }
0x12ac   :  { %v11501_v3 = vadd.f32 %v13512_v43, %v13484_v27 }
0x12ad   :  { %v13550_v12 = vpop.f32.mrf.mxu0  ;;  %v13514_v37 = vpop.f32.mrf.mxu1 }
0x12ae   :  { %v13515_v7 = vadd.f32 %v13514_v37, %v13513_v30  ;;  %v11550_v22 = vadd.f32 %v11549_v33, %v11501_v3  ;;  %v13551_v57 = vadd.f32 %v13550_v12, %v13549_v13 }
0x12af   :  { %v13552_v25 = vpop.f32.mrf.mxu0  ;;  %v13516_v10 = vpop.f32.mrf.mxu1 }
0x12b0   :  { %v11504_v6 = vadd.f32 %v13515_v7, %v13487_v46  ;;  %v11951_v58 = vadd.f32 %v13548_v16, %v11550_v22 }
0x12b1   :  { %v13553_v35 = vpop.f32.mrf.mxu0  ;;  %v13517_v48 = vpop.f32.mrf.mxu1 }
0x12b2   :  { %v13518_v5 = vadd.f32 %v13517_v48, %v13516_v10  ;;  %v11553_v15 = vadd.f32 %v11552_v26, %v11504_v6  ;;  %v13554_v50 = vadd.f32 %v13553_v35, %v13552_v25 }
0x12b3   :  { %v13555_v19 = vpop.f32.mrf.mxu0  ;;  %v13519_v34 = vpop.f32.mrf.mxu1 }
0x12b4   :  { %v11509_v47 = vadd.f32 %v13518_v5, %v13490_v0  ;;  %v11954_v41 = vadd.f32 %v13551_v57, %v11553_v15 }
0x12b5   :  { %v13556_v31 = vpop.f32.mrf.mxu0  ;;  %v13520_v28 = vpop.f32.mrf.mxu1 }
0x12b6   :  { %v13521_v36 = vadd.f32 %v13520_v28, %v13519_v34  ;;  %v11558_v59 = vadd.f32 %v13808_v44, %v11509_v47  ;;  %v13557_v33 = vadd.f32 %v13556_v31, %v13555_v19 }
0x12b8   :  { %v11512_v55 = vadd.f32 %v13521_v36, %v13493_v21  ;;  %v11959_v45 = vadd.f32 %v13554_v50, %v11558_v59 }
0x12ba   :  { %v11561_v52 = vadd.f32 %v13809_v20, %v11512_v55 }
0x12bc   :  { %v11962_v1 = vadd.f32 %v13557_v33, %v11561_v52 }
0x12c0   :  { %v13824_v60 = vpop.f32.mrf.mxu0 }
0x12c2   :  { %v12048_v11 = vpop.f32.mrf.mxu0 }
0x12c4   :  { %v13825_v18 = vpop.f32.mrf.mxu0 }
0x12c6   :  { %v12051_v62 = vpop.f32.mrf.mxu0 }
0x12c8   :  { %v13574_v14 = vpop.f32.mrf.mxu1 }
0x12ca   :  { %v13575_v29 = vpop.f32.mrf.mxu1 }
0x12cb   :  { %v13576_v24 = vadd.f32 %v13575_v29, %v13574_v14 }
0x12cc   :  { %v13577_v40 = vpop.f32.mrf.mxu1 }
0x12cd   :  { %v12000_v23 = vadd.f32 %v13576_v24, %v11951_v58 }
0x12ce   :  { %v13578_v49 = vpop.f32.mrf.mxu1 }
0x12cf   :  { %v12049_v4 = vadd.f32 %v12048_v11, %v12000_v23  ;;  %v13579_v61 = vadd.f32 %v13578_v49, %v13577_v40 }
0x12d0   :  { %v13580_v63 = vpop.f32.mrf.mxu1 }
0x12d1   :  { %v12070_v53 = vadd.f32 %v13273_v42, %v12049_v4  ;;  %v12003_v39 = vadd.f32 %v13579_v61, %v11954_v41 }
0x12d2   :  { %v13581_v2 = vpop.f32.mrf.mxu1 }
0x12d3   :  { %14853 = vtanh.f32 %v12070_v53  ;;  %v12052_v8 = vadd.f32 %v12051_v62, %v12003_v39  ;;  %v13582_v44 = vadd.f32 %v13581_v2, %v13580_v63 }
0x12d4   :  { %v13583_v56 = vpop.f32.mrf.mxu1 }
0x12d5   :  { %v12071_v32 = vadd.f32 %v13273_v42, %v12052_v8  ;;  %v12008_v9 = vadd.f32 %v13582_v44, %v11959_v45 }
0x12d6   :  { %v13584_v26 = vpop.f32.mrf.mxu1 }
0x12d7   :  { %14855 = vtanh.f32 %v12071_v32  ;;  %v12057_v51 = vadd.f32 %v13824_v60, %v12008_v9  ;;  %v13585_v54 = vadd.f32 %v13584_v26, %v13583_v56 }
0x12d9   :  { %v12072_v17 = vadd.f32 %v13273_v42, %v12057_v51  ;;  %v12011_v38 = vadd.f32 %v13585_v54, %v11962_v1 }
0x12db   :  { %14857 = vtanh.f32 %v12072_v17  ;;  %v12060_v13 = vadd.f32 %v13825_v18, %v12011_v38 }
0x12dd   :  { %v12073_v30 = vadd.f32 %v13273_v42, %v12060_v13 }
0x12df   :  { %14859 = vtanh.f32 %v12073_v30 }
0x12e0   :  { %v14854_v12 = vpop.eup %14853 }
0x12e1   :  { %13274 = vst.msk [vmem:[%s17619_s15 + $0x20] sm:$0xff] %vm17626_vm8, %v14854_v12 }
0x12e4   :  { %v14856_v20 = vpop.eup %14855 }
0x12e5   :  { %13275 = vst.msk [vmem:[%s17619_s15 + $0x28] sm:$0xff] %vm17627_vm9, %v14856_v20 }
0x12e8   :  { %v14858_v37 = vpop.eup %14857 }
0x12e9   :  { %13276 = vst.msk [vmem:[%s17619_s15 + $0x30] sm:$0xff] %vm17628_vm10, %v14858_v37 }
0x12ec   :  { %v14860_v25 = vpop.eup %14859 }
0x12ed   :  { %13277 = vst.msk [vmem:[%s17619_s15 + $0x38] sm:$0xf] %vm17629_vm11, %v14860_v25 }
0x12ee   :  { %12087 = vsyncpa [#allocation7], 1 }

</bundles_post_ra>
